<compile_context>
chip_gen: v7x
topology: tpu7x:2x2x1
jax: 0.10.0
libtpu: 0.0.40
codegen_flags: <defaults>
</compile_context>

<pallas_src>
import functools

import jax
import jax.numpy as jnp
from jax.experimental import pallas as pl
from jax.experimental.pallas import tpu as pltpu

LANE = 128         # vreg lane width (last-dim alignment)
BATCH_ALIGN = 16   # batch rows padded to the bf16 sublane tile (16)


def _round_up(x, m):
    return (x + m - 1) // m * m


# ----------------------------------------------------------------------------
# In-kernel LSTM cell step (recurrent part only; x-projection precomputed).
# ----------------------------------------------------------------------------
def _sigmoid(x):
    # sigmoid(x) = 0.5*tanh(0.5*x) + 0.5 : one EUP push (tanh) instead of
    # exp + reciprocal; frees EUP headroom once the matmuls are bf16.
    return 0.5 * jnp.tanh(0.5 * x) + 0.5


def _lstm_cell(gx, h, c, whhT, mask):
    """One LSTM cell update.

    gx:   (B, 4Hp) precomputed x @ W_ih^T + (b_ih + b_hh), bf16 (upcast here)
    h, c: (B, Hp)  float32 running state
    whhT: (Hp, 4Hp) bf16 recurrent weights
    mask: (B, Hp)  bool, True where this timestep is inside the sequence
    """
    hp = whhT.shape[0]
    gates = gx.astype(jnp.float32) + jnp.dot(
        h.astype(whhT.dtype), whhT, preferred_element_type=jnp.float32)
    # PyTorch gate order: input, forget, cell (g), output.  hp is a multiple
    # of 128, so every slice below is lane-aligned (no intra-vreg shuffles).
    i_g = _sigmoid(gates[:, 0 * hp:1 * hp])
    f_g = _sigmoid(gates[:, 1 * hp:2 * hp])
    g_g = jnp.tanh(gates[:, 2 * hp:3 * hp])
    o_g = _sigmoid(gates[:, 3 * hp:4 * hp])
    c_new = f_g * c + i_g * g_g
    h_new = o_g * jnp.tanh(c_new)
    h_out = jnp.where(mask, h_new, 0.0)   # packed semantics: zero at pads
    h_upd = jnp.where(mask, h_new, h)     # state frozen at pads
    c_upd = jnp.where(mask, c_new, c)
    return h_out, h_upd, c_upd


# ----------------------------------------------------------------------------
# Direction-axis recurrent kernel: grid = (n_dir, time_blocks).
# The direction axis is 'parallel' so on multi-TensorCore chips forward and
# backward run on different cores; time is a sequential 'arbitrary' axis.
# ----------------------------------------------------------------------------
def _lstm_dir_kernel(lens_ref, gx_ref, whh_ref,
                     out_ref, hlast_ref, clast_ref,
                     h_sc, c_sc, *, tblk, n_dir, unroll):
    d = pl.program_id(0)
    t = pl.program_id(1)
    nT = pl.num_programs(1)
    bp = lens_ref.shape[0]
    hp = whh_ref.shape[0]

    @pl.when(t == 0)
    def _():
        h_sc[...] = jnp.zeros_like(h_sc)
        c_sc[...] = jnp.zeros_like(c_sc)

    lens = lens_ref[...]          # (Bp, 1) int32, loaded once per time block
    whhT = whh_ref[...]           # (Hp, 4Hp) bf16

    def run_block(base, reverse):
        def step(j, carry):
            h, c = carry
            idx = (tblk - 1 - j) if reverse else j
            # one explicit mask broadcast per step, reused by all 3 selects
            mask = jnp.broadcast_to((base + idx) < lens, (bp, hp))
            h_out, h, c = _lstm_cell(gx_ref[idx], h, c, whhT, mask)
            out_ref[idx] = h_out.astype(out_ref.dtype)
            return h, c

        h, c = jax.lax.fori_loop(0, tblk, step, (h_sc[...], c_sc[...]),
                                 unroll=unroll)
        h_sc[...] = h
        c_sc[...] = c

        @pl.when(t == nT - 1)     # final states stored once, not every step
        def _():
            hlast_ref[...] = h
            clast_ref[...] = c

    if n_dir == 1:
        run_block(t * tblk, reverse=False)
    else:
        # forward (d=0) walks its block ascending; backward (d=1) received the
        # mirrored block (nT-1-t) from its index_map and walks it descending.
        @pl.when(d == 0)
        def _():
            run_block(t * tblk, reverse=False)

        @pl.when(d == 1)
        def _():
            run_block((nT - 1 - t) * tblk, reverse=True)


# ----------------------------------------------------------------------------
# Fused bidirectional kernel (single-core chips): forward + backward
# interleaved in one unrolled time loop -> one direction's MXU work overlaps
# the other's EUP gate nonlinearities.
# ----------------------------------------------------------------------------
def _lstm_bidir_fused_kernel(lens_ref, gf_ref, gb_ref, whhf_ref, whhb_ref,
                             outf_ref, outb_ref,
                             hf_last, cf_last, hb_last, cb_last,
                             hf_sc, cf_sc, hb_sc, cb_sc, *, tblk, unroll):
    t = pl.program_id(0)
    nT = pl.num_programs(0)
    bp = lens_ref.shape[0]
    hp = whhf_ref.shape[0]

    @pl.when(t == 0)
    def _():
        for ref in (hf_sc, cf_sc, hb_sc, cb_sc):
            ref[...] = jnp.zeros_like(ref)

    lens = lens_ref[...]
    whhf = whhf_ref[...]
    whhb = whhb_ref[...]
    base_f = t * tblk                  # forward block start time
    base_b = (nT - 1 - t) * tblk       # backward (mirrored) block start time

    def step(j, carry):
        hf, cf, hb, cb = carry
        # forward direction: ascending within the block
        mf = jnp.broadcast_to((base_f + j) < lens, (bp, hp))
        hof, hf, cf = _lstm_cell(gf_ref[j], hf, cf, whhf, mf)
        outf_ref[j] = hof.astype(outf_ref.dtype)
        # backward direction: descending within the mirrored block
        jb = tblk - 1 - j
        mb = jnp.broadcast_to((base_b + jb) < lens, (bp, hp))
        hob, hb, cb = _lstm_cell(gb_ref[jb], hb, cb, whhb, mb)
        outb_ref[jb] = hob.astype(outb_ref.dtype)
        return (hf, cf, hb, cb)

    hf, cf, hb, cb = jax.lax.fori_loop(
        0, tblk, step, (hf_sc[...], cf_sc[...], hb_sc[...], cb_sc[...]),
        unroll=unroll)
    hf_sc[...] = hf
    cf_sc[...] = cf
    hb_sc[...] = hb
    cb_sc[...] = cb

    @pl.when(t == nT - 1)
    def _():
        hf_last[...] = hf
        cf_last[...] = cf
        hb_last[...] = hb
        cb_last[...] = cb


# ----------------------------------------------------------------------------
# Host-side planning / preparation helpers (plain XLA ops under jit).
# ----------------------------------------------------------------------------
def _vmem_capacity_bytes():
    try:
        cap = getattr(pltpu.get_tpu_info(), "vmem_capacity_bytes", None)
        if cap:
            return int(cap)
    except Exception:
        pass
    return 64 * 1024 * 1024            # conservative fallback (v7x per-core)


def _plan_blocks(T, Bp, Hp, dirs_in_flight, *, max_tblk=64):
    """Generation-aware time-block / unroll / vmem-limit selection: solve for
    the largest time block whose double-buffered gx/out blocks plus weights
    and state scratch fit in ~70% of this chip's VMEM."""
    cap = _vmem_capacity_bytes()
    budget = int(0.70 * cap)
    # Per-timestep VMEM bytes (double-buffered pipeline blocks, bf16 streams).
    per_t = dirs_in_flight * 2 * Bp * (4 * Hp * 2 + Hp * 2)       # gx + out
    # Block-size-independent: W_hh^T (double-buffered, see TODO on Buffered(1)),
    # f32 h/c scratch, f32 final-state output blocks.
    fixed = dirs_in_flight * (2 * Hp * 4 * Hp * 2
                              + 2 * Bp * Hp * 4
                              + 2 * 2 * Bp * Hp * 4)
    tblk_max = max(1, min(max_tblk, T, (budget - fixed) // max(per_t, 1)))
    nT = -(-T // tblk_max)
    tblk = -(-T // nT)
    if tblk >= 8:
        tblk = _round_up(tblk, 8)      # keep the partial-unroll factor a divisor
    Tp = _round_up(T, tblk)
    # Full unroll while the per-step working set is small; partial unroll at
    # production sizes (keeps LLO visibility without vreg/I-cache blowup).
    unroll = True if (Bp * Hp <= 64 * 512 or tblk < 8) else 8
    vmem_limit = min(int(0.90 * cap), 128 * 1024 * 1024)
    return tblk, Tp, vmem_limit, unroll


def _prep_direction(w_ih, w_hh, b_ih, b_hh, H, Hp):
    """Transpose + pad one direction's parameters so each of the 4 gates
    occupies its own lane-aligned Hp-wide slab; weights stored bf16 for the
    MXU, bias kept f32 (added into the f32 gate accumulator)."""
    E = w_ih.shape[1]
    pad_h = Hp - H
    wihT = jnp.transpose(w_ih).reshape(E, 4, H)
    whhT = jnp.transpose(w_hh).reshape(H, 4, H)
    bias = (b_ih + b_hh).reshape(4, H)
    wihT = jnp.pad(wihT, ((0, 0), (0, 0), (0, pad_h))).reshape(E, 4 * Hp)
    whhT = jnp.pad(whhT, ((0, pad_h), (0, 0), (0, pad_h))).reshape(Hp, 4 * Hp)
    bias = jnp.pad(bias, ((0, 0), (0, pad_h))).reshape(4 * Hp)
    return (wihT.astype(jnp.bfloat16), whhT.astype(jnp.bfloat16),
            bias.astype(jnp.float32))


def _input_projection(x_p, wihT_stack, bias_stack):
    """Hoisted x-projection, one bf16 MXU matmul per direction:
    (T*B, E) @ (E, 4Hp) + bias, accumulated in f32, stored bf16."""
    T, B, E = x_p.shape
    n_dir = wihT_stack.shape[0]
    xb = x_p.reshape(T * B, E).astype(jnp.bfloat16)
    g = jnp.einsum("ne,deg->dng", xb, wihT_stack,
                   preferred_element_type=jnp.float32)
    g = g + bias_stack[:, None, :]
    return g.reshape(n_dir, T, B, -1).astype(jnp.bfloat16)


def _pad_inputs(x, lengths, Bp, Tp):
    T, B, _ = x.shape
    x_p = jnp.pad(x, ((0, Tp - T), (0, Bp - B), (0, 0)))
    lens_p = jnp.pad(lengths.astype(jnp.int32), (0, Bp - B)).reshape(Bp, 1)
    return x_p, lens_p


def _auto_split_directions():
    """Split the bidirectional layer's directions onto a 'parallel' grid axis
    only on chips with 2 TensorCores behind one Pallas grid (v4/v5p megacore,
    v7x).  Correct either way; fused is better on single-core v5e/v6e."""
    try:
        kind = jax.devices()[0].device_kind.lower()
    except Exception:
        return False
    if "lite" in kind or "v5e" in kind or "v6" in kind:
        return False
    return any(tag in kind for tag in ("v4", "v5p", "v7"))


# ----------------------------------------------------------------------------
# Recurrence runner (direction-axis kernel) + layer wrappers
# ----------------------------------------------------------------------------
def _run_recurrence(lens_p, gx, whh, *, Bp, Hp, tblk, nT, vmem_limit, unroll):
    n_dir = gx.shape[0]
    Tp = nT * tblk

    def t_blk(d, t):
        # d == 0 walks time blocks ascending, d == 1 gets the mirrored block.
        return t + d * (nT - 1 - 2 * t)

    kernel = functools.partial(_lstm_dir_kernel, tblk=tblk, n_dir=n_dir,
                               unroll=unroll)
    out, h_last, c_last = pl.pallas_call(
        kernel,
        grid=(n_dir, nT),
        in_specs=[
            pl.BlockSpec((Bp, 1), lambda d, t: (0, 0)),                    # lengths
            pl.BlockSpec((None, tblk, Bp, 4 * Hp),
                         lambda d, t: (d, t_blk(d, t), 0, 0)),             # gates
            pl.BlockSpec((None, Hp, 4 * Hp), lambda d, t: (d, 0, 0)),      # W_hh^T
        ],
        out_specs=[
            pl.BlockSpec((None, tblk, Bp, Hp),
                         lambda d, t: (d, t_blk(d, t), 0, 0)),             # outputs
            pl.BlockSpec((None, Bp, Hp), lambda d, t: (d, 0, 0)),          # h_last
            pl.BlockSpec((None, Bp, Hp), lambda d, t: (d, 0, 0)),          # c_last
        ],
        out_shape=[
            jax.ShapeDtypeStruct((n_dir, Tp, Bp, Hp), jnp.bfloat16),
            jax.ShapeDtypeStruct((n_dir, Bp, Hp), jnp.float32),
            jax.ShapeDtypeStruct((n_dir, Bp, Hp), jnp.float32),
        ],
        scratch_shapes=[pltpu.VMEM((Bp, Hp), jnp.float32) for _ in range(2)],
        compiler_params=pltpu.CompilerParams(
            dimension_semantics=("parallel", "arbitrary"),
            vmem_limit_bytes=vmem_limit),
    )(lens_p, gx, whh)
    return out, h_last, c_last


def lstm_layer(x, lengths, w_ih, w_hh, b_ih, b_hh):
    """Single-direction LSTM over x (T,B,E) -> out (T,B,H) bf16, h/c_last f32."""
    # TODO(synk): on v7x add a 'parallel' batch-tile axis so unidirectional
    #             layers also use both TensorCores (needs Bp >= 2*BATCH_ALIGN).
    T, B, E = x.shape
    H = w_ih.shape[0] // 4
    Hp = _round_up(H, LANE)
    Bp = _round_up(B, BATCH_ALIGN)
    tblk, Tp, vmem_limit, unroll = _plan_blocks(T, Bp, Hp, dirs_in_flight=1)
    nT = Tp // tblk

    x_p, lens_p = _pad_inputs(x, lengths, Bp, Tp)
    wihT, whhT, bias = _prep_direction(w_ih, w_hh, b_ih, b_hh, H, Hp)
    gx = _input_projection(x_p, wihT[None], bias[None])      # (1, Tp, Bp, 4Hp)

    out, h_last, c_last = _run_recurrence(
        lens_p, gx, whhT[None], Bp=Bp, Hp=Hp, tblk=tblk, nT=nT,
        vmem_limit=vmem_limit, unroll=unroll)
    return out[0, :T, :B, :H], h_last[0, :B, :H], c_last[0, :B, :H]


def bilstm_layer(x, lengths, fwd, bwd, *, split_directions):
    """Bidirectional LSTM (layer 0)."""
    T, B, E = x.shape
    H = fwd[0].shape[0] // 4
    Hp = _round_up(H, LANE)
    Bp = _round_up(B, BATCH_ALIGN)
    dirs_in_flight = 1 if split_directions else 2
    tblk, Tp, vmem_limit, unroll = _plan_blocks(
        T, Bp, Hp, dirs_in_flight=dirs_in_flight)
    nT = Tp // tblk

    x_p, lens_p = _pad_inputs(x, lengths, Bp, Tp)
    wihT_f, whhT_f, bias_f = _prep_direction(*fwd, H, Hp)
    wihT_b, whhT_b, bias_b = _prep_direction(*bwd, H, Hp)
    wih = jnp.stack([wihT_f, wihT_b])            # (2, E, 4Hp)  bf16
    whh = jnp.stack([whhT_f, whhT_b])            # (2, Hp, 4Hp) bf16
    bias = jnp.stack([bias_f, bias_b])           # (2, 4Hp)     f32
    gx = _input_projection(x_p, wih, bias)       # (2, Tp, Bp, 4Hp) bf16

    if split_directions:
        # directions on a 'parallel' grid axis -> one TensorCore each.
        out, h_last, c_last = _run_recurrence(
            lens_p, gx, whh, Bp=Bp, Hp=Hp, tblk=tblk, nT=nT,
            vmem_limit=vmem_limit, unroll=unroll)
        out_f, out_b = out[0], out[1]
        hf, hb = h_last[0], h_last[1]
        cf, cb = c_last[0], c_last[1]
    else:
        # fused: both directions interleaved per time step on one core.  The
        # stacked gx / whh arrays are passed twice with fixed leading indices
        # so no host-side slice copy is needed.
        kernel = functools.partial(_lstm_bidir_fused_kernel, tblk=tblk,
                                   unroll=unroll)
        state_spec = pl.BlockSpec((Bp, Hp), lambda t: (0, 0))
        state_shape = jax.ShapeDtypeStruct((Bp, Hp), jnp.float32)
        out_f, out_b, hf, cf, hb, cb = pl.pallas_call(
            kernel,
            grid=(nT,),
            in_specs=[
                pl.BlockSpec((Bp, 1), lambda t: (0, 0)),                       # lengths
                pl.BlockSpec((None, tblk, Bp, 4 * Hp),
                             lambda t: (0, t, 0, 0)),                          # fwd gates
                pl.BlockSpec((None, tblk, Bp, 4 * Hp),
                             lambda t: (1, nT - 1 - t, 0, 0)),                 # bwd gates
                pl.BlockSpec((None, Hp, 4 * Hp), lambda t: (0, 0, 0)),         # W_hh^T f
                pl.BlockSpec((None, Hp, 4 * Hp), lambda t: (1, 0, 0)),         # W_hh^T b
            ],
            out_specs=[
                pl.BlockSpec((tblk, Bp, Hp), lambda t: (t, 0, 0)),             # fwd out
                pl.BlockSpec((tblk, Bp, Hp), lambda t: (nT - 1 - t, 0, 0)),    # bwd out
                state_spec, state_spec, state_spec, state_spec,
            ],
            out_shape=[
                jax.ShapeDtypeStruct((Tp, Bp, Hp), jnp.bfloat16),
                jax.ShapeDtypeStruct((Tp, Bp, Hp), jnp.bfloat16),
                state_shape, state_shape, state_shape, state_shape,
            ],
            scratch_shapes=[pltpu.VMEM((Bp, Hp), jnp.float32)
                            for _ in range(4)],
            compiler_params=pltpu.CompilerParams(
                dimension_semantics=("arbitrary",),
                vmem_limit_bytes=vmem_limit),
        )(lens_p, gx, gx, whh, whh)

    # TODO(synk): keep activations in the padded per-direction layout between
    # layers instead of this slice+concat (needs residual-aware threading).
    out = jnp.concatenate([out_f[:T, :B, :H], out_b[:T, :B, :H]], axis=-1)
    h_last = jnp.concatenate([hf[:B, :H], hb[:B, :H]], axis=-1)
    c_last = jnp.concatenate([cf[:B, :H], cb[:B, :H]], axis=-1)
    return out, h_last, c_last


# ----------------------------------------------------------------------------
# BiLSTM module: parameters + forward
# ----------------------------------------------------------------------------
def init_lstm_params(key, input_size, hidden_size):
    ks = jax.random.split(key, 4)
    u = lambda k, shape: jax.random.uniform(
        k, shape, dtype=jnp.float32, minval=-0.1, maxval=0.1)
    return (u(ks[0], (4 * hidden_size, input_size)),
            u(ks[1], (4 * hidden_size, hidden_size)),
            u(ks[2], (4 * hidden_size,)),
            u(ks[3], (4 * hidden_size,)))


def init_bilstm_params(key, num_layers, bidirectional, embed_dim, hidden_dim):
    params = []
    for layer in range(num_layers):
        is_bi = bidirectional and layer == 0
        in_dim = embed_dim if layer == 0 else hidden_dim
        h = hidden_dim // 2 if is_bi else hidden_dim
        key, kf, kb = jax.random.split(key, 3)
        layer_p = {"fwd": init_lstm_params(kf, in_dim, h)}
        if is_bi:
            layer_p["bwd"] = init_lstm_params(kb, in_dim, h)
        params.append(layer_p)
    return params


def bilstm_forward(params, embeddings, lengths, *, num_layers, bidirectional,
                   hidden_dim, residual_level, split_directions=None):
    del hidden_dim  # implied by the parameter shapes
    if split_directions is None:
        split_directions = _auto_split_directions()
    x = embeddings
    hiddens, cells = [], []
    for layer in range(num_layers):
        p = params[layer]
        if bidirectional and layer == 0:
            out, h_last, c_last = bilstm_layer(
                x, lengths, p["fwd"], p["bwd"],
                split_directions=split_directions)
        else:
            out, h_last, c_last = lstm_layer(x, lengths, *p["fwd"])
        hiddens.append(h_last)
        cells.append(c_last)
        if residual_level is not None and layer >= residual_level:
            x = x + out          # residual on packed data
        else:
            x = out

    # The kernels already zero padded timesteps; a trailing re-mask is only
    # needed if a layer-0 residual adds the (unmasked) embeddings back in.
    if residual_level is not None and residual_level <= 0:
        T, B, _ = x.shape
        tmask = (jnp.arange(T)[:, None] < lengths[None, :])[:, :, None]
        x = jnp.where(tmask, x, 0.0)

    final_hiddens = jnp.stack(hiddens, axis=0)   # (num_layers, B, hidden_dim)
    final_cells = jnp.stack(cells, axis=0)       # (num_layers, B, hidden_dim)
    return x.astype(jnp.float32), final_hiddens, final_cells


if __name__ == "__main__":
    # Module config (small, consistent with the PyTorch module's __init__).
    num_layers = 2
    bidirectional = True
    embed_dim = 16
    hidden_dim = 32
    residual_level = 1
    # dropout is a no-op (each nn.LSTM has num_layers=1), so it is omitted.

    T, B = 8, 4
    key = jax.random.PRNGKey(0)
    k_param, k_emb = jax.random.split(key)

    params = init_bilstm_params(k_param, num_layers, bidirectional,
                                embed_dim, hidden_dim)
    embeddings = jax.random.normal(k_emb, (T, B, embed_dim), dtype=jnp.float32)
    # Sorted descending (enforce_sorted=True); max length == T.
    lengths = jnp.array([8, 7, 5, 3], dtype=jnp.int32)

    fwd_fn = jax.jit(functools.partial(
        bilstm_forward, num_layers=num_layers, bidirectional=bidirectional,
        hidden_dim=hidden_dim, residual_level=residual_level))
    unpacked_output, final_hiddens, final_cells = fwd_fn(
        params, embeddings, lengths)

    jax.block_until_ready((unpacked_output, final_hiddens, final_cells))
    assert unpacked_output.shape == (T, B, hidden_dim)
    assert final_hiddens.shape == (num_layers, B, hidden_dim)
    assert final_cells.shape == (num_layers, B, hidden_dim)
    print("KERNEL_OK")
</pallas_src>

<mosaic_0001>
module attributes {stable_mosaic.version = 11 : i64} {
  func.func @_lstm_bidir_fused_kernel(%arg0: i32, %arg1: memref<16x1xi32, #tpu.memory_space<vmem>>, %arg2: memref<1x8x16x512xbf16, #tpu.memory_space<vmem>>, %arg3: memref<1x8x16x512xbf16, #tpu.memory_space<vmem>>, %arg4: memref<1x128x512xbf16, #tpu.memory_space<vmem>>, %arg5: memref<1x128x512xbf16, #tpu.memory_space<vmem>>, %arg6: memref<8x16x128xbf16, #tpu.memory_space<vmem>>, %arg7: memref<8x16x128xbf16, #tpu.memory_space<vmem>>, %arg8: memref<16x128xf32, #tpu.memory_space<vmem>>, %arg9: memref<16x128xf32, #tpu.memory_space<vmem>>, %arg10: memref<16x128xf32, #tpu.memory_space<vmem>>, %arg11: memref<16x128xf32, #tpu.memory_space<vmem>>, %arg12: memref<16x128xf32, #tpu.memory_space<vmem>>, %arg13: memref<16x128xf32, #tpu.memory_space<vmem>>, %arg14: memref<16x128xf32, #tpu.memory_space<vmem>>, %arg15: memref<16x128xf32, #tpu.memory_space<vmem>>) attributes {dimension_semantics = [#tpu.dimension_semantics<arbitrary>], iteration_bounds = array<i64: 1>, scalar_prefetch = 0 : i64, scratch_operands = 4 : i64, tpu.core_type = #tpu.core_type<tc>, window_params = [{pipeline_mode = #tpu.pipeline_mode<synchronous>, transform_indices = @transform_0, window_bounds = array<i64: 16, 1>}, {transform_indices = @transform_1, window_bounds = array<i64: 1, 8, 16, 512>}, {transform_indices = @transform_2, window_bounds = array<i64: 1, 8, 16, 512>}, {transform_indices = @transform_3, window_bounds = array<i64: 1, 128, 512>}, {transform_indices = @transform_4, window_bounds = array<i64: 1, 128, 512>}, {transform_indices = @transform_5, window_bounds = array<i64: 8, 16, 128>}, {transform_indices = @transform_6, window_bounds = array<i64: 8, 16, 128>}, {pipeline_mode = #tpu.pipeline_mode<synchronous>, transform_indices = @transform_7, window_bounds = array<i64: 16, 128>}, {pipeline_mode = #tpu.pipeline_mode<synchronous>, transform_indices = @transform_8, window_bounds = array<i64: 16, 128>}, {pipeline_mode = #tpu.pipeline_mode<synchronous>, transform_indices = @transform_9, window_bounds = array<i64: 16, 128>}, {pipeline_mode = #tpu.pipeline_mode<synchronous>, transform_indices = @transform_10, window_bounds = array<i64: 16, 128>}]} {
    %c0_i32 = arith.constant 0 : i32
    %0 = arith.cmpi eq, %arg0, %c0_i32 : i32
    %1 = arith.extui %0 : i1 to i32
    %c0_i32_0 = arith.constant 0 : i32
    %2 = arith.cmpi ne, %1, %c0_i32_0 : i32
    scf.if %2 {
      %cst_293 = arith.constant 0.000000e+00 : f32
      %862 = vector.broadcast %cst_293 : f32 to vector<16x128xf32>
      %c0_294 = arith.constant 0 : index
      %c0_295 = arith.constant 0 : index
      %863 = vector.load %arg12[%c0_294, %c0_295] : memref<16x128xf32, #tpu.memory_space<vmem>>, vector<16x128xf32>
      tpu.vector_store %arg12[%c0_294, %c0_295], %862 {strides = array<i32>} : memref<16x128xf32, #tpu.memory_space<vmem>>, vector<16x128xf32>,
      %cst_296 = arith.constant 0.000000e+00 : f32
      %864 = vector.broadcast %cst_296 : f32 to vector<16x128xf32>
      %c0_297 = arith.constant 0 : index
      %c0_298 = arith.constant 0 : index
      %865 = vector.load %arg13[%c0_297, %c0_298] : memref<16x128xf32, #tpu.memory_space<vmem>>, vector<16x128xf32>
      tpu.vector_store %arg13[%c0_297, %c0_298], %864 {strides = array<i32>} : memref<16x128xf32, #tpu.memory_space<vmem>>, vector<16x128xf32>,
      %cst_299 = arith.constant 0.000000e+00 : f32
      %866 = vector.broadcast %cst_299 : f32 to vector<16x128xf32>
      %c0_300 = arith.constant 0 : index
      %c0_301 = arith.constant 0 : index
      %867 = vector.load %arg14[%c0_300, %c0_301] : memref<16x128xf32, #tpu.memory_space<vmem>>, vector<16x128xf32>
      tpu.vector_store %arg14[%c0_300, %c0_301], %866 {strides = array<i32>} : memref<16x128xf32, #tpu.memory_space<vmem>>, vector<16x128xf32>,
      %cst_302 = arith.constant 0.000000e+00 : f32
      %868 = vector.broadcast %cst_302 : f32 to vector<16x128xf32>
      %c0_303 = arith.constant 0 : index
      %c0_304 = arith.constant 0 : index
      %869 = vector.load %arg15[%c0_303, %c0_304] : memref<16x128xf32, #tpu.memory_space<vmem>>, vector<16x128xf32>
      tpu.vector_store %arg15[%c0_303, %c0_304], %868 {strides = array<i32>} : memref<16x128xf32, #tpu.memory_space<vmem>>, vector<16x128xf32>,
    } else {
    }
    %c0 = arith.constant 0 : index
    %c0_1 = arith.constant 0 : index
    %3 = vector.load %arg1[%c0, %c0_1] : memref<16x1xi32, #tpu.memory_space<vmem>>, vector<16x1xi32>
    %c0_2 = arith.constant 0 : index
    %c0_3 = arith.constant 0 : index
    %c0_4 = arith.constant 0 : index
    %4 = vector.load %arg4[%c0_2, %c0_3, %c0_4] : memref<1x128x512xbf16, #tpu.memory_space<vmem>>, vector<1x128x512xbf16>
    %5 = vector.shape_cast %4 : vector<1x128x512xbf16> to vector<128x512xbf16>
    %c0_5 = arith.constant 0 : index
    %c0_6 = arith.constant 0 : index
    %c0_7 = arith.constant 0 : index
    %6 = vector.load %arg5[%c0_5, %c0_6, %c0_7] : memref<1x128x512xbf16, #tpu.memory_space<vmem>>, vector<1x128x512xbf16>
    %7 = vector.shape_cast %6 : vector<1x128x512xbf16> to vector<128x512xbf16>
    %c8_i32 = arith.constant 8 : i32
    %8 = arith.muli %arg0, %c8_i32 : i32
    %c0_i32_8 = arith.constant 0 : i32
    %9 = arith.subi %c0_i32_8, %arg0 : i32
    %c8_i32_9 = arith.constant 8 : i32
    %10 = arith.muli %9, %c8_i32_9 : i32
    %c0_10 = arith.constant 0 : index
    %c0_11 = arith.constant 0 : index
    %11 = vector.load %arg12[%c0_10, %c0_11] : memref<16x128xf32, #tpu.memory_space<vmem>>, vector<16x128xf32>
    %c0_12 = arith.constant 0 : index
    %c0_13 = arith.constant 0 : index
    %12 = vector.load %arg13[%c0_12, %c0_13] : memref<16x128xf32, #tpu.memory_space<vmem>>, vector<16x128xf32>
    %c0_14 = arith.constant 0 : index
    %c0_15 = arith.constant 0 : index
    %13 = vector.load %arg14[%c0_14, %c0_15] : memref<16x128xf32, #tpu.memory_space<vmem>>, vector<16x128xf32>
    %c0_16 = arith.constant 0 : index
    %c0_17 = arith.constant 0 : index
    %14 = vector.load %arg15[%c0_16, %c0_17] : memref<16x128xf32, #tpu.memory_space<vmem>>, vector<16x128xf32>
    %c0_i32_18 = arith.constant 0 : i32
    %15 = arith.addi %8, %c0_i32_18 : i32
    %16 = vector.broadcast %15 : i32 to vector<16x1xi32>
    %17 = arith.cmpi slt, %16, %3 : vector<16x1xi32>
    %18 = vector.shape_cast %17 : vector<16x1xi1> to vector<16x1xi1>
    %19 = vector.broadcast %18 : vector<16x1xi1> to vector<16x128xi1>
    %c0_19 = arith.constant 0 : index
    %20 = arith.index_cast %c0_i32_18 : i32 to index
    %c0_20 = arith.constant 0 : index
    %c0_21 = arith.constant 0 : index
    %21 = vector.load %arg2[%c0_19, %20, %c0_20, %c0_21] : memref<1x8x16x512xbf16, #tpu.memory_space<vmem>>, vector<1x1x16x512xbf16>
    %22 = vector.shape_cast %21 : vector<1x1x16x512xbf16> to vector<16x512xbf16>
    %23 = arith.extf %22 : vector<16x512xbf16> to vector<16x512xf32>
    %24 = arith.truncf %11 : vector<16x128xf32> to vector<16x128xbf16>
    %cst = arith.constant dense<0.000000e+00> : vector<16x512xf32>
    %25 = tpu.matmul %24, %5, %cst {dimension_numbers = #tpu.dot_dimension_numbers<[1], [0], [0], [1], [0, 0, 1, 1], [], []>} : vector<16x128xbf16>, vector<128x512xbf16>, vector<16x512xf32> -> vector<16x512xf32>
    %26 = arith.addf %23, %25 : vector<16x512xf32>
    %27 = vector.extract_strided_slice %26 {offsets = [0, 0], sizes = [16, 128], strides = [1, 1]} : vector<16x512xf32> to vector<16x128xf32>
    %cst_22 = arith.constant 5.000000e-01 : f32
    %28 = vector.broadcast %cst_22 : f32 to vector<16x128xf32>
    %29 = arith.mulf %28, %27 : vector<16x128xf32>
    %30 = math.tanh %29 : vector<16x128xf32>
    %cst_23 = arith.constant 5.000000e-01 : f32
    %31 = vector.broadcast %cst_23 : f32 to vector<16x128xf32>
    %32 = arith.mulf %31, %30 : vector<16x128xf32>
    %cst_24 = arith.constant 5.000000e-01 : f32
    %33 = vector.broadcast %cst_24 : f32 to vector<16x128xf32>
    %34 = arith.addf %32, %33 : vector<16x128xf32>
    %35 = vector.extract_strided_slice %26 {offsets = [0, 128], sizes = [16, 128], strides = [1, 1]} : vector<16x512xf32> to vector<16x128xf32>
    %cst_25 = arith.constant 5.000000e-01 : f32
    %36 = vector.broadcast %cst_25 : f32 to vector<16x128xf32>
    %37 = arith.mulf %36, %35 : vector<16x128xf32>
    %38 = math.tanh %37 : vector<16x128xf32>
    %cst_26 = arith.constant 5.000000e-01 : f32
    %39 = vector.broadcast %cst_26 : f32 to vector<16x128xf32>
    %40 = arith.mulf %39, %38 : vector<16x128xf32>
    %cst_27 = arith.constant 5.000000e-01 : f32
    %41 = vector.broadcast %cst_27 : f32 to vector<16x128xf32>
    %42 = arith.addf %40, %41 : vector<16x128xf32>
    %43 = vector.extract_strided_slice %26 {offsets = [0, 256], sizes = [16, 128], strides = [1, 1]} : vector<16x512xf32> to vector<16x128xf32>
    %44 = math.tanh %43 : vector<16x128xf32>
    %45 = vector.extract_strided_slice %26 {offsets = [0, 384], sizes = [16, 128], strides = [1, 1]} : vector<16x512xf32> to vector<16x128xf32>
    %cst_28 = arith.constant 5.000000e-01 : f32
    %46 = vector.broadcast %cst_28 : f32 to vector<16x128xf32>
    %47 = arith.mulf %46, %45 : vector<16x128xf32>
    %48 = math.tanh %47 : vector<16x128xf32>
    %cst_29 = arith.constant 5.000000e-01 : f32
    %49 = vector.broadcast %cst_29 : f32 to vector<16x128xf32>
    %50 = arith.mulf %49, %48 : vector<16x128xf32>
    %cst_30 = arith.constant 5.000000e-01 : f32
    %51 = vector.broadcast %cst_30 : f32 to vector<16x128xf32>
    %52 = arith.addf %50, %51 : vector<16x128xf32>
    %53 = arith.mulf %42, %12 : vector<16x128xf32>
    %54 = arith.mulf %34, %44 : vector<16x128xf32>
    %55 = arith.addf %53, %54 : vector<16x128xf32>
    %56 = math.tanh %55 : vector<16x128xf32>
    %57 = arith.mulf %52, %56 : vector<16x128xf32>
    %cst_31 = arith.constant 0.000000e+00 : f32
    %58 = vector.broadcast %cst_31 : f32 to vector<16x128xf32>
    %59 = arith.select %19, %57, %58 : vector<16x128xi1>, vector<16x128xf32>
    %60 = arith.select %19, %57, %11 : vector<16x128xi1>, vector<16x128xf32>
    %61 = arith.select %19, %55, %12 : vector<16x128xi1>, vector<16x128xf32>
    %62 = arith.truncf %59 : vector<16x128xf32> to vector<16x128xbf16>
    %63 = arith.index_cast %c0_i32_18 : i32 to index
    %c0_32 = arith.constant 0 : index
    %c0_33 = arith.constant 0 : index
    %64 = vector.load %arg6[%63, %c0_32, %c0_33] : memref<8x16x128xbf16, #tpu.memory_space<vmem>>, vector<1x16x128xbf16>
    %65 = vector.shape_cast %64 : vector<1x16x128xbf16> to vector<16x128xbf16>
    %66 = vector.shape_cast %62 : vector<16x128xbf16> to vector<1x16x128xbf16>
    tpu.vector_store %arg6[%63, %c0_32, %c0_33], %66 {strides = array<i32>} : memref<8x16x128xbf16, #tpu.memory_space<vmem>>, vector<1x16x128xbf16>,
    %c7_i32 = arith.constant 7 : i32
    %67 = arith.subi %c7_i32, %c0_i32_18 : i32
    %68 = arith.addi %10, %67 : i32
    %69 = vector.broadcast %68 : i32 to vector<16x1xi32>
    %70 = arith.cmpi slt, %69, %3 : vector<16x1xi32>
    %71 = vector.shape_cast %70 : vector<16x1xi1> to vector<16x1xi1>
    %72 = vector.broadcast %71 : vector<16x1xi1> to vector<16x128xi1>
    %c0_34 = arith.constant 0 : index
    %73 = arith.index_cast %67 : i32 to index
    %c0_35 = arith.constant 0 : index
    %c0_36 = arith.constant 0 : index
    %74 = vector.load %arg3[%c0_34, %73, %c0_35, %c0_36] : memref<1x8x16x512xbf16, #tpu.memory_space<vmem>>, vector<1x1x16x512xbf16>
    %75 = vector.shape_cast %74 : vector<1x1x16x512xbf16> to vector<16x512xbf16>
    %76 = arith.extf %75 : vector<16x512xbf16> to vector<16x512xf32>
    %77 = arith.truncf %13 : vector<16x128xf32> to vector<16x128xbf16>
    %cst_37 = arith.constant dense<0.000000e+00> : vector<16x512xf32>
    %78 = tpu.matmul %77, %7, %cst_37 {dimension_numbers = #tpu.dot_dimension_numbers<[1], [0], [0], [1], [0, 0, 1, 1], [], []>} : vector<16x128xbf16>, vector<128x512xbf16>, vector<16x512xf32> -> vector<16x512xf32>
    %79 = arith.addf %76, %78 : vector<16x512xf32>
    %80 = vector.extract_strided_slice %79 {offsets = [0, 0], sizes = [16, 128], strides = [1, 1]} : vector<16x512xf32> to vector<16x128xf32>
    %cst_38 = arith.constant 5.000000e-01 : f32
    %81 = vector.broadcast %cst_38 : f32 to vector<16x128xf32>
    %82 = arith.mulf %81, %80 : vector<16x128xf32>
    %83 = math.tanh %82 : vector<16x128xf32>
    %cst_39 = arith.constant 5.000000e-01 : f32
    %84 = vector.broadcast %cst_39 : f32 to vector<16x128xf32>
    %85 = arith.mulf %84, %83 : vector<16x128xf32>
    %cst_40 = arith.constant 5.000000e-01 : f32
    %86 = vector.broadcast %cst_40 : f32 to vector<16x128xf32>
    %87 = arith.addf %85, %86 : vector<16x128xf32>
    %88 = vector.extract_strided_slice %79 {offsets = [0, 128], sizes = [16, 128], strides = [1, 1]} : vector<16x512xf32> to vector<16x128xf32>
    %cst_41 = arith.constant 5.000000e-01 : f32
    %89 = vector.broadcast %cst_41 : f32 to vector<16x128xf32>
    %90 = arith.mulf %89, %88 : vector<16x128xf32>
    %91 = math.tanh %90 : vector<16x128xf32>
    %cst_42 = arith.constant 5.000000e-01 : f32
    %92 = vector.broadcast %cst_42 : f32 to vector<16x128xf32>
    %93 = arith.mulf %92, %91 : vector<16x128xf32>
    %cst_43 = arith.constant 5.000000e-01 : f32
    %94 = vector.broadcast %cst_43 : f32 to vector<16x128xf32>
    %95 = arith.addf %93, %94 : vector<16x128xf32>
    %96 = vector.extract_strided_slice %79 {offsets = [0, 256], sizes = [16, 128], strides = [1, 1]} : vector<16x512xf32> to vector<16x128xf32>
    %97 = math.tanh %96 : vector<16x128xf32>
    %98 = vector.extract_strided_slice %79 {offsets = [0, 384], sizes = [16, 128], strides = [1, 1]} : vector<16x512xf32> to vector<16x128xf32>
    %cst_44 = arith.constant 5.000000e-01 : f32
    %99 = vector.broadcast %cst_44 : f32 to vector<16x128xf32>
    %100 = arith.mulf %99, %98 : vector<16x128xf32>
    %101 = math.tanh %100 : vector<16x128xf32>
    %cst_45 = arith.constant 5.000000e-01 : f32
    %102 = vector.broadcast %cst_45 : f32 to vector<16x128xf32>
    %103 = arith.mulf %102, %101 : vector<16x128xf32>
    %cst_46 = arith.constant 5.000000e-01 : f32
    %104 = vector.broadcast %cst_46 : f32 to vector<16x128xf32>
    %105 = arith.addf %103, %104 : vector<16x128xf32>
    %106 = arith.mulf %95, %14 : vector<16x128xf32>
    %107 = arith.mulf %87, %97 : vector<16x128xf32>
    %108 = arith.addf %106, %107 : vector<16x128xf32>
    %109 = math.tanh %108 : vector<16x128xf32>
    %110 = arith.mulf %105, %109 : vector<16x128xf32>
    %cst_47 = arith.constant 0.000000e+00 : f32
    %111 = vector.broadcast %cst_47 : f32 to vector<16x128xf32>
    %112 = arith.select %72, %110, %111 : vector<16x128xi1>, vector<16x128xf32>
    %113 = arith.select %72, %110, %13 : vector<16x128xi1>, vector<16x128xf32>
    %114 = arith.select %72, %108, %14 : vector<16x128xi1>, vector<16x128xf32>
    %115 = arith.truncf %112 : vector<16x128xf32> to vector<16x128xbf16>
    %116 = arith.index_cast %67 : i32 to index
    %c0_48 = arith.constant 0 : index
    %c0_49 = arith.constant 0 : index
    %117 = vector.load %arg7[%116, %c0_48, %c0_49] : memref<8x16x128xbf16, #tpu.memory_space<vmem>>, vector<1x16x128xbf16>
    %118 = vector.shape_cast %117 : vector<1x16x128xbf16> to vector<16x128xbf16>
    %119 = vector.shape_cast %115 : vector<16x128xbf16> to vector<1x16x128xbf16>
    tpu.vector_store %arg7[%116, %c0_48, %c0_49], %119 {strides = array<i32>} : memref<8x16x128xbf16, #tpu.memory_space<vmem>>, vector<1x16x128xbf16>,
    %c1_i32 = arith.constant 1 : i32
    %120 = arith.addi %8, %c1_i32 : i32
    %121 = vector.broadcast %120 : i32 to vector<16x1xi32>
    %122 = arith.cmpi slt, %121, %3 : vector<16x1xi32>
    %123 = vector.shape_cast %122 : vector<16x1xi1> to vector<16x1xi1>
    %124 = vector.broadcast %123 : vector<16x1xi1> to vector<16x128xi1>
    %c0_50 = arith.constant 0 : index
    %125 = arith.index_cast %c1_i32 : i32 to index
    %c0_51 = arith.constant 0 : index
    %c0_52 = arith.constant 0 : index
    %126 = vector.load %arg2[%c0_50, %125, %c0_51, %c0_52] : memref<1x8x16x512xbf16, #tpu.memory_space<vmem>>, vector<1x1x16x512xbf16>
    %127 = vector.shape_cast %126 : vector<1x1x16x512xbf16> to vector<16x512xbf16>
    %128 = arith.extf %127 : vector<16x512xbf16> to vector<16x512xf32>
    %129 = arith.truncf %60 : vector<16x128xf32> to vector<16x128xbf16>
    %cst_53 = arith.constant dense<0.000000e+00> : vector<16x512xf32>
    %130 = tpu.matmul %129, %5, %cst_53 {dimension_numbers = #tpu.dot_dimension_numbers<[1], [0], [0], [1], [0, 0, 1, 1], [], []>} : vector<16x128xbf16>, vector<128x512xbf16>, vector<16x512xf32> -> vector<16x512xf32>
    %131 = arith.addf %128, %130 : vector<16x512xf32>
    %132 = vector.extract_strided_slice %131 {offsets = [0, 0], sizes = [16, 128], strides = [1, 1]} : vector<16x512xf32> to vector<16x128xf32>
    %cst_54 = arith.constant 5.000000e-01 : f32
    %133 = vector.broadcast %cst_54 : f32 to vector<16x128xf32>
    %134 = arith.mulf %133, %132 : vector<16x128xf32>
    %135 = math.tanh %134 : vector<16x128xf32>
    %cst_55 = arith.constant 5.000000e-01 : f32
    %136 = vector.broadcast %cst_55 : f32 to vector<16x128xf32>
    %137 = arith.mulf %136, %135 : vector<16x128xf32>
    %cst_56 = arith.constant 5.000000e-01 : f32
    %138 = vector.broadcast %cst_56 : f32 to vector<16x128xf32>
    %139 = arith.addf %137, %138 : vector<16x128xf32>
    %140 = vector.extract_strided_slice %131 {offsets = [0, 128], sizes = [16, 128], strides = [1, 1]} : vector<16x512xf32> to vector<16x128xf32>
    %cst_57 = arith.constant 5.000000e-01 : f32
    %141 = vector.broadcast %cst_57 : f32 to vector<16x128xf32>
    %142 = arith.mulf %141, %140 : vector<16x128xf32>
    %143 = math.tanh %142 : vector<16x128xf32>
    %cst_58 = arith.constant 5.000000e-01 : f32
    %144 = vector.broadcast %cst_58 : f32 to vector<16x128xf32>
    %145 = arith.mulf %144, %143 : vector<16x128xf32>
    %cst_59 = arith.constant 5.000000e-01 : f32
    %146 = vector.broadcast %cst_59 : f32 to vector<16x128xf32>
    %147 = arith.addf %145, %146 : vector<16x128xf32>
    %148 = vector.extract_strided_slice %131 {offsets = [0, 256], sizes = [16, 128], strides = [1, 1]} : vector<16x512xf32> to vector<16x128xf32>
    %149 = math.tanh %148 : vector<16x128xf32>
    %150 = vector.extract_strided_slice %131 {offsets = [0, 384], sizes = [16, 128], strides = [1, 1]} : vector<16x512xf32> to vector<16x128xf32>
    %cst_60 = arith.constant 5.000000e-01 : f32
    %151 = vector.broadcast %cst_60 : f32 to vector<16x128xf32>
    %152 = arith.mulf %151, %150 : vector<16x128xf32>
    %153 = math.tanh %152 : vector<16x128xf32>
    %cst_61 = arith.constant 5.000000e-01 : f32
    %154 = vector.broadcast %cst_61 : f32 to vector<16x128xf32>
    %155 = arith.mulf %154, %153 : vector<16x128xf32>
    %cst_62 = arith.constant 5.000000e-01 : f32
    %156 = vector.broadcast %cst_62 : f32 to vector<16x128xf32>
    %157 = arith.addf %155, %156 : vector<16x128xf32>
    %158 = arith.mulf %147, %61 : vector<16x128xf32>
    %159 = arith.mulf %139, %149 : vector<16x128xf32>
    %160 = arith.addf %158, %159 : vector<16x128xf32>
    %161 = math.tanh %160 : vector<16x128xf32>
    %162 = arith.mulf %157, %161 : vector<16x128xf32>
    %cst_63 = arith.constant 0.000000e+00 : f32
    %163 = vector.broadcast %cst_63 : f32 to vector<16x128xf32>
    %164 = arith.select %124, %162, %163 : vector<16x128xi1>, vector<16x128xf32>
    %165 = arith.select %124, %162, %60 : vector<16x128xi1>, vector<16x128xf32>
    %166 = arith.select %124, %160, %61 : vector<16x128xi1>, vector<16x128xf32>
    %167 = arith.truncf %164 : vector<16x128xf32> to vector<16x128xbf16>
    %168 = arith.index_cast %c1_i32 : i32 to index
    %c0_64 = arith.constant 0 : index
    %c0_65 = arith.constant 0 : index
    %169 = vector.load %arg6[%168, %c0_64, %c0_65] : memref<8x16x128xbf16, #tpu.memory_space<vmem>>, vector<1x16x128xbf16>
    %170 = vector.shape_cast %169 : vector<1x16x128xbf16> to vector<16x128xbf16>
    %171 = vector.shape_cast %167 : vector<16x128xbf16> to vector<1x16x128xbf16>
    tpu.vector_store %arg6[%168, %c0_64, %c0_65], %171 {strides = array<i32>} : memref<8x16x128xbf16, #tpu.memory_space<vmem>>, vector<1x16x128xbf16>,
    %c7_i32_66 = arith.constant 7 : i32
    %172 = arith.subi %c7_i32_66, %c1_i32 : i32
    %173 = arith.addi %10, %172 : i32
    %174 = vector.broadcast %173 : i32 to vector<16x1xi32>
    %175 = arith.cmpi slt, %174, %3 : vector<16x1xi32>
    %176 = vector.shape_cast %175 : vector<16x1xi1> to vector<16x1xi1>
    %177 = vector.broadcast %176 : vector<16x1xi1> to vector<16x128xi1>
    %c0_67 = arith.constant 0 : index
    %178 = arith.index_cast %172 : i32 to index
    %c0_68 = arith.constant 0 : index
    %c0_69 = arith.constant 0 : index
    %179 = vector.load %arg3[%c0_67, %178, %c0_68, %c0_69] : memref<1x8x16x512xbf16, #tpu.memory_space<vmem>>, vector<1x1x16x512xbf16>
    %180 = vector.shape_cast %179 : vector<1x1x16x512xbf16> to vector<16x512xbf16>
    %181 = arith.extf %180 : vector<16x512xbf16> to vector<16x512xf32>
    %182 = arith.truncf %113 : vector<16x128xf32> to vector<16x128xbf16>
    %cst_70 = arith.constant dense<0.000000e+00> : vector<16x512xf32>
    %183 = tpu.matmul %182, %7, %cst_70 {dimension_numbers = #tpu.dot_dimension_numbers<[1], [0], [0], [1], [0, 0, 1, 1], [], []>} : vector<16x128xbf16>, vector<128x512xbf16>, vector<16x512xf32> -> vector<16x512xf32>
    %184 = arith.addf %181, %183 : vector<16x512xf32>
    %185 = vector.extract_strided_slice %184 {offsets = [0, 0], sizes = [16, 128], strides = [1, 1]} : vector<16x512xf32> to vector<16x128xf32>
    %cst_71 = arith.constant 5.000000e-01 : f32
    %186 = vector.broadcast %cst_71 : f32 to vector<16x128xf32>
    %187 = arith.mulf %186, %185 : vector<16x128xf32>
    %188 = math.tanh %187 : vector<16x128xf32>
    %cst_72 = arith.constant 5.000000e-01 : f32
    %189 = vector.broadcast %cst_72 : f32 to vector<16x128xf32>
    %190 = arith.mulf %189, %188 : vector<16x128xf32>
    %cst_73 = arith.constant 5.000000e-01 : f32
    %191 = vector.broadcast %cst_73 : f32 to vector<16x128xf32>
    %192 = arith.addf %190, %191 : vector<16x128xf32>
    %193 = vector.extract_strided_slice %184 {offsets = [0, 128], sizes = [16, 128], strides = [1, 1]} : vector<16x512xf32> to vector<16x128xf32>
    %cst_74 = arith.constant 5.000000e-01 : f32
    %194 = vector.broadcast %cst_74 : f32 to vector<16x128xf32>
    %195 = arith.mulf %194, %193 : vector<16x128xf32>
    %196 = math.tanh %195 : vector<16x128xf32>
    %cst_75 = arith.constant 5.000000e-01 : f32
    %197 = vector.broadcast %cst_75 : f32 to vector<16x128xf32>
    %198 = arith.mulf %197, %196 : vector<16x128xf32>
    %cst_76 = arith.constant 5.000000e-01 : f32
    %199 = vector.broadcast %cst_76 : f32 to vector<16x128xf32>
    %200 = arith.addf %198, %199 : vector<16x128xf32>
    %201 = vector.extract_strided_slice %184 {offsets = [0, 256], sizes = [16, 128], strides = [1, 1]} : vector<16x512xf32> to vector<16x128xf32>
    %202 = math.tanh %201 : vector<16x128xf32>
    %203 = vector.extract_strided_slice %184 {offsets = [0, 384], sizes = [16, 128], strides = [1, 1]} : vector<16x512xf32> to vector<16x128xf32>
    %cst_77 = arith.constant 5.000000e-01 : f32
    %204 = vector.broadcast %cst_77 : f32 to vector<16x128xf32>
    %205 = arith.mulf %204, %203 : vector<16x128xf32>
    %206 = math.tanh %205 : vector<16x128xf32>
    %cst_78 = arith.constant 5.000000e-01 : f32
    %207 = vector.broadcast %cst_78 : f32 to vector<16x128xf32>
    %208 = arith.mulf %207, %206 : vector<16x128xf32>
    %cst_79 = arith.constant 5.000000e-01 : f32
    %209 = vector.broadcast %cst_79 : f32 to vector<16x128xf32>
    %210 = arith.addf %208, %209 : vector<16x128xf32>
    %211 = arith.mulf %200, %114 : vector<16x128xf32>
    %212 = arith.mulf %192, %202 : vector<16x128xf32>
    %213 = arith.addf %211, %212 : vector<16x128xf32>
    %214 = math.tanh %213 : vector<16x128xf32>
    %215 = arith.mulf %210, %214 : vector<16x128xf32>
    %cst_80 = arith.constant 0.000000e+00 : f32
    %216 = vector.broadcast %cst_80 : f32 to vector<16x128xf32>
    %217 = arith.select %177, %215, %216 : vector<16x128xi1>, vector<16x128xf32>
    %218 = arith.select %177, %215, %113 : vector<16x128xi1>, vector<16x128xf32>
    %219 = arith.select %177, %213, %114 : vector<16x128xi1>, vector<16x128xf32>
    %220 = arith.truncf %217 : vector<16x128xf32> to vector<16x128xbf16>
    %221 = arith.index_cast %172 : i32 to index
    %c0_81 = arith.constant 0 : index
    %c0_82 = arith.constant 0 : index
    %222 = vector.load %arg7[%221, %c0_81, %c0_82] : memref<8x16x128xbf16, #tpu.memory_space<vmem>>, vector<1x16x128xbf16>
    %223 = vector.shape_cast %222 : vector<1x16x128xbf16> to vector<16x128xbf16>
    %224 = vector.shape_cast %220 : vector<16x128xbf16> to vector<1x16x128xbf16>
    tpu.vector_store %arg7[%221, %c0_81, %c0_82], %224 {strides = array<i32>} : memref<8x16x128xbf16, #tpu.memory_space<vmem>>, vector<1x16x128xbf16>,
    %c2_i32 = arith.constant 2 : i32
    %225 = arith.addi %8, %c2_i32 : i32
    %226 = vector.broadcast %225 : i32 to vector<16x1xi32>
    %227 = arith.cmpi slt, %226, %3 : vector<16x1xi32>
    %228 = vector.shape_cast %227 : vector<16x1xi1> to vector<16x1xi1>
    %229 = vector.broadcast %228 : vector<16x1xi1> to vector<16x128xi1>
    %c0_83 = arith.constant 0 : index
    %230 = arith.index_cast %c2_i32 : i32 to index
    %c0_84 = arith.constant 0 : index
    %c0_85 = arith.constant 0 : index
    %231 = vector.load %arg2[%c0_83, %230, %c0_84, %c0_85] : memref<1x8x16x512xbf16, #tpu.memory_space<vmem>>, vector<1x1x16x512xbf16>
    %232 = vector.shape_cast %231 : vector<1x1x16x512xbf16> to vector<16x512xbf16>
    %233 = arith.extf %232 : vector<16x512xbf16> to vector<16x512xf32>
    %234 = arith.truncf %165 : vector<16x128xf32> to vector<16x128xbf16>
    %cst_86 = arith.constant dense<0.000000e+00> : vector<16x512xf32>
    %235 = tpu.matmul %234, %5, %cst_86 {dimension_numbers = #tpu.dot_dimension_numbers<[1], [0], [0], [1], [0, 0, 1, 1], [], []>} : vector<16x128xbf16>, vector<128x512xbf16>, vector<16x512xf32> -> vector<16x512xf32>
    %236 = arith.addf %233, %235 : vector<16x512xf32>
    %237 = vector.extract_strided_slice %236 {offsets = [0, 0], sizes = [16, 128], strides = [1, 1]} : vector<16x512xf32> to vector<16x128xf32>
    %cst_87 = arith.constant 5.000000e-01 : f32
    %238 = vector.broadcast %cst_87 : f32 to vector<16x128xf32>
    %239 = arith.mulf %238, %237 : vector<16x128xf32>
    %240 = math.tanh %239 : vector<16x128xf32>
    %cst_88 = arith.constant 5.000000e-01 : f32
    %241 = vector.broadcast %cst_88 : f32 to vector<16x128xf32>
    %242 = arith.mulf %241, %240 : vector<16x128xf32>
    %cst_89 = arith.constant 5.000000e-01 : f32
    %243 = vector.broadcast %cst_89 : f32 to vector<16x128xf32>
    %244 = arith.addf %242, %243 : vector<16x128xf32>
    %245 = vector.extract_strided_slice %236 {offsets = [0, 128], sizes = [16, 128], strides = [1, 1]} : vector<16x512xf32> to vector<16x128xf32>
    %cst_90 = arith.constant 5.000000e-01 : f32
    %246 = vector.broadcast %cst_90 : f32 to vector<16x128xf32>
    %247 = arith.mulf %246, %245 : vector<16x128xf32>
    %248 = math.tanh %247 : vector<16x128xf32>
    %cst_91 = arith.constant 5.000000e-01 : f32
    %249 = vector.broadcast %cst_91 : f32 to vector<16x128xf32>
    %250 = arith.mulf %249, %248 : vector<16x128xf32>
    %cst_92 = arith.constant 5.000000e-01 : f32
    %251 = vector.broadcast %cst_92 : f32 to vector<16x128xf32>
    %252 = arith.addf %250, %251 : vector<16x128xf32>
    %253 = vector.extract_strided_slice %236 {offsets = [0, 256], sizes = [16, 128], strides = [1, 1]} : vector<16x512xf32> to vector<16x128xf32>
    %254 = math.tanh %253 : vector<16x128xf32>
    %255 = vector.extract_strided_slice %236 {offsets = [0, 384], sizes = [16, 128], strides = [1, 1]} : vector<16x512xf32> to vector<16x128xf32>
    %cst_93 = arith.constant 5.000000e-01 : f32
    %256 = vector.broadcast %cst_93 : f32 to vector<16x128xf32>
    %257 = arith.mulf %256, %255 : vector<16x128xf32>
    %258 = math.tanh %257 : vector<16x128xf32>
    %cst_94 = arith.constant 5.000000e-01 : f32
    %259 = vector.broadcast %cst_94 : f32 to vector<16x128xf32>
    %260 = arith.mulf %259, %258 : vector<16x128xf32>
    %cst_95 = arith.constant 5.000000e-01 : f32
    %261 = vector.broadcast %cst_95 : f32 to vector<16x128xf32>
    %262 = arith.addf %260, %261 : vector<16x128xf32>
    %263 = arith.mulf %252, %166 : vector<16x128xf32>
    %264 = arith.mulf %244, %254 : vector<16x128xf32>
    %265 = arith.addf %263, %264 : vector<16x128xf32>
    %266 = math.tanh %265 : vector<16x128xf32>
    %267 = arith.mulf %262, %266 : vector<16x128xf32>
    %cst_96 = arith.constant 0.000000e+00 : f32
    %268 = vector.broadcast %cst_96 : f32 to vector<16x128xf32>
    %269 = arith.select %229, %267, %268 : vector<16x128xi1>, vector<16x128xf32>
    %270 = arith.select %229, %267, %165 : vector<16x128xi1>, vector<16x128xf32>
    %271 = arith.select %229, %265, %166 : vector<16x128xi1>, vector<16x128xf32>
    %272 = arith.truncf %269 : vector<16x128xf32> to vector<16x128xbf16>
    %273 = arith.index_cast %c2_i32 : i32 to index
    %c0_97 = arith.constant 0 : index
    %c0_98 = arith.constant 0 : index
    %274 = vector.load %arg6[%273, %c0_97, %c0_98] : memref<8x16x128xbf16, #tpu.memory_space<vmem>>, vector<1x16x128xbf16>
    %275 = vector.shape_cast %274 : vector<1x16x128xbf16> to vector<16x128xbf16>
    %276 = vector.shape_cast %272 : vector<16x128xbf16> to vector<1x16x128xbf16>
    tpu.vector_store %arg6[%273, %c0_97, %c0_98], %276 {strides = array<i32>} : memref<8x16x128xbf16, #tpu.memory_space<vmem>>, vector<1x16x128xbf16>,
    %c7_i32_99 = arith.constant 7 : i32
    %277 = arith.subi %c7_i32_99, %c2_i32 : i32
    %278 = arith.addi %10, %277 : i32
    %279 = vector.broadcast %278 : i32 to vector<16x1xi32>
    %280 = arith.cmpi slt, %279, %3 : vector<16x1xi32>
    %281 = vector.shape_cast %280 : vector<16x1xi1> to vector<16x1xi1>
    %282 = vector.broadcast %281 : vector<16x1xi1> to vector<16x128xi1>
    %c0_100 = arith.constant 0 : index
    %283 = arith.index_cast %277 : i32 to index
    %c0_101 = arith.constant 0 : index
    %c0_102 = arith.constant 0 : index
    %284 = vector.load %arg3[%c0_100, %283, %c0_101, %c0_102] : memref<1x8x16x512xbf16, #tpu.memory_space<vmem>>, vector<1x1x16x512xbf16>
    %285 = vector.shape_cast %284 : vector<1x1x16x512xbf16> to vector<16x512xbf16>
    %286 = arith.extf %285 : vector<16x512xbf16> to vector<16x512xf32>
    %287 = arith.truncf %218 : vector<16x128xf32> to vector<16x128xbf16>
    %cst_103 = arith.constant dense<0.000000e+00> : vector<16x512xf32>
    %288 = tpu.matmul %287, %7, %cst_103 {dimension_numbers = #tpu.dot_dimension_numbers<[1], [0], [0], [1], [0, 0, 1, 1], [], []>} : vector<16x128xbf16>, vector<128x512xbf16>, vector<16x512xf32> -> vector<16x512xf32>
    %289 = arith.addf %286, %288 : vector<16x512xf32>
    %290 = vector.extract_strided_slice %289 {offsets = [0, 0], sizes = [16, 128], strides = [1, 1]} : vector<16x512xf32> to vector<16x128xf32>
    %cst_104 = arith.constant 5.000000e-01 : f32
    %291 = vector.broadcast %cst_104 : f32 to vector<16x128xf32>
    %292 = arith.mulf %291, %290 : vector<16x128xf32>
    %293 = math.tanh %292 : vector<16x128xf32>
    %cst_105 = arith.constant 5.000000e-01 : f32
    %294 = vector.broadcast %cst_105 : f32 to vector<16x128xf32>
    %295 = arith.mulf %294, %293 : vector<16x128xf32>
    %cst_106 = arith.constant 5.000000e-01 : f32
    %296 = vector.broadcast %cst_106 : f32 to vector<16x128xf32>
    %297 = arith.addf %295, %296 : vector<16x128xf32>
    %298 = vector.extract_strided_slice %289 {offsets = [0, 128], sizes = [16, 128], strides = [1, 1]} : vector<16x512xf32> to vector<16x128xf32>
    %cst_107 = arith.constant 5.000000e-01 : f32
    %299 = vector.broadcast %cst_107 : f32 to vector<16x128xf32>
    %300 = arith.mulf %299, %298 : vector<16x128xf32>
    %301 = math.tanh %300 : vector<16x128xf32>
    %cst_108 = arith.constant 5.000000e-01 : f32
    %302 = vector.broadcast %cst_108 : f32 to vector<16x128xf32>
    %303 = arith.mulf %302, %301 : vector<16x128xf32>
    %cst_109 = arith.constant 5.000000e-01 : f32
    %304 = vector.broadcast %cst_109 : f32 to vector<16x128xf32>
    %305 = arith.addf %303, %304 : vector<16x128xf32>
    %306 = vector.extract_strided_slice %289 {offsets = [0, 256], sizes = [16, 128], strides = [1, 1]} : vector<16x512xf32> to vector<16x128xf32>
    %307 = math.tanh %306 : vector<16x128xf32>
    %308 = vector.extract_strided_slice %289 {offsets = [0, 384], sizes = [16, 128], strides = [1, 1]} : vector<16x512xf32> to vector<16x128xf32>
    %cst_110 = arith.constant 5.000000e-01 : f32
    %309 = vector.broadcast %cst_110 : f32 to vector<16x128xf32>
    %310 = arith.mulf %309, %308 : vector<16x128xf32>
    %311 = math.tanh %310 : vector<16x128xf32>
    %cst_111 = arith.constant 5.000000e-01 : f32
    %312 = vector.broadcast %cst_111 : f32 to vector<16x128xf32>
    %313 = arith.mulf %312, %311 : vector<16x128xf32>
    %cst_112 = arith.constant 5.000000e-01 : f32
    %314 = vector.broadcast %cst_112 : f32 to vector<16x128xf32>
    %315 = arith.addf %313, %314 : vector<16x128xf32>
    %316 = arith.mulf %305, %219 : vector<16x128xf32>
    %317 = arith.mulf %297, %307 : vector<16x128xf32>
    %318 = arith.addf %316, %317 : vector<16x128xf32>
    %319 = math.tanh %318 : vector<16x128xf32>
    %320 = arith.mulf %315, %319 : vector<16x128xf32>
    %cst_113 = arith.constant 0.000000e+00 : f32
    %321 = vector.broadcast %cst_113 : f32 to vector<16x128xf32>
    %322 = arith.select %282, %320, %321 : vector<16x128xi1>, vector<16x128xf32>
    %323 = arith.select %282, %320, %218 : vector<16x128xi1>, vector<16x128xf32>
    %324 = arith.select %282, %318, %219 : vector<16x128xi1>, vector<16x128xf32>
    %325 = arith.truncf %322 : vector<16x128xf32> to vector<16x128xbf16>
    %326 = arith.index_cast %277 : i32 to index
    %c0_114 = arith.constant 0 : index
    %c0_115 = arith.constant 0 : index
    %327 = vector.load %arg7[%326, %c0_114, %c0_115] : memref<8x16x128xbf16, #tpu.memory_space<vmem>>, vector<1x16x128xbf16>
    %328 = vector.shape_cast %327 : vector<1x16x128xbf16> to vector<16x128xbf16>
    %329 = vector.shape_cast %325 : vector<16x128xbf16> to vector<1x16x128xbf16>
    tpu.vector_store %arg7[%326, %c0_114, %c0_115], %329 {strides = array<i32>} : memref<8x16x128xbf16, #tpu.memory_space<vmem>>, vector<1x16x128xbf16>,
    %c3_i32 = arith.constant 3 : i32
    %330 = arith.addi %8, %c3_i32 : i32
    %331 = vector.broadcast %330 : i32 to vector<16x1xi32>
    %332 = arith.cmpi slt, %331, %3 : vector<16x1xi32>
    %333 = vector.shape_cast %332 : vector<16x1xi1> to vector<16x1xi1>
    %334 = vector.broadcast %333 : vector<16x1xi1> to vector<16x128xi1>
    %c0_116 = arith.constant 0 : index
    %335 = arith.index_cast %c3_i32 : i32 to index
    %c0_117 = arith.constant 0 : index
    %c0_118 = arith.constant 0 : index
    %336 = vector.load %arg2[%c0_116, %335, %c0_117, %c0_118] : memref<1x8x16x512xbf16, #tpu.memory_space<vmem>>, vector<1x1x16x512xbf16>
    %337 = vector.shape_cast %336 : vector<1x1x16x512xbf16> to vector<16x512xbf16>
    %338 = arith.extf %337 : vector<16x512xbf16> to vector<16x512xf32>
    %339 = arith.truncf %270 : vector<16x128xf32> to vector<16x128xbf16>
    %cst_119 = arith.constant dense<0.000000e+00> : vector<16x512xf32>
    %340 = tpu.matmul %339, %5, %cst_119 {dimension_numbers = #tpu.dot_dimension_numbers<[1], [0], [0], [1], [0, 0, 1, 1], [], []>} : vector<16x128xbf16>, vector<128x512xbf16>, vector<16x512xf32> -> vector<16x512xf32>
    %341 = arith.addf %338, %340 : vector<16x512xf32>
    %342 = vector.extract_strided_slice %341 {offsets = [0, 0], sizes = [16, 128], strides = [1, 1]} : vector<16x512xf32> to vector<16x128xf32>
    %cst_120 = arith.constant 5.000000e-01 : f32
    %343 = vector.broadcast %cst_120 : f32 to vector<16x128xf32>
    %344 = arith.mulf %343, %342 : vector<16x128xf32>
    %345 = math.tanh %344 : vector<16x128xf32>
    %cst_121 = arith.constant 5.000000e-01 : f32
    %346 = vector.broadcast %cst_121 : f32 to vector<16x128xf32>
    %347 = arith.mulf %346, %345 : vector<16x128xf32>
    %cst_122 = arith.constant 5.000000e-01 : f32
    %348 = vector.broadcast %cst_122 : f32 to vector<16x128xf32>
    %349 = arith.addf %347, %348 : vector<16x128xf32>
    %350 = vector.extract_strided_slice %341 {offsets = [0, 128], sizes = [16, 128], strides = [1, 1]} : vector<16x512xf32> to vector<16x128xf32>
    %cst_123 = arith.constant 5.000000e-01 : f32
    %351 = vector.broadcast %cst_123 : f32 to vector<16x128xf32>
    %352 = arith.mulf %351, %350 : vector<16x128xf32>
    %353 = math.tanh %352 : vector<16x128xf32>
    %cst_124 = arith.constant 5.000000e-01 : f32
    %354 = vector.broadcast %cst_124 : f32 to vector<16x128xf32>
    %355 = arith.mulf %354, %353 : vector<16x128xf32>
    %cst_125 = arith.constant 5.000000e-01 : f32
    %356 = vector.broadcast %cst_125 : f32 to vector<16x128xf32>
    %357 = arith.addf %355, %356 : vector<16x128xf32>
    %358 = vector.extract_strided_slice %341 {offsets = [0, 256], sizes = [16, 128], strides = [1, 1]} : vector<16x512xf32> to vector<16x128xf32>
    %359 = math.tanh %358 : vector<16x128xf32>
    %360 = vector.extract_strided_slice %341 {offsets = [0, 384], sizes = [16, 128], strides = [1, 1]} : vector<16x512xf32> to vector<16x128xf32>
    %cst_126 = arith.constant 5.000000e-01 : f32
    %361 = vector.broadcast %cst_126 : f32 to vector<16x128xf32>
    %362 = arith.mulf %361, %360 : vector<16x128xf32>
    %363 = math.tanh %362 : vector<16x128xf32>
    %cst_127 = arith.constant 5.000000e-01 : f32
    %364 = vector.broadcast %cst_127 : f32 to vector<16x128xf32>
    %365 = arith.mulf %364, %363 : vector<16x128xf32>
    %cst_128 = arith.constant 5.000000e-01 : f32
    %366 = vector.broadcast %cst_128 : f32 to vector<16x128xf32>
    %367 = arith.addf %365, %366 : vector<16x128xf32>
    %368 = arith.mulf %357, %271 : vector<16x128xf32>
    %369 = arith.mulf %349, %359 : vector<16x128xf32>
    %370 = arith.addf %368, %369 : vector<16x128xf32>
    %371 = math.tanh %370 : vector<16x128xf32>
    %372 = arith.mulf %367, %371 : vector<16x128xf32>
    %cst_129 = arith.constant 0.000000e+00 : f32
    %373 = vector.broadcast %cst_129 : f32 to vector<16x128xf32>
    %374 = arith.select %334, %372, %373 : vector<16x128xi1>, vector<16x128xf32>
    %375 = arith.select %334, %372, %270 : vector<16x128xi1>, vector<16x128xf32>
    %376 = arith.select %334, %370, %271 : vector<16x128xi1>, vector<16x128xf32>
    %377 = arith.truncf %374 : vector<16x128xf32> to vector<16x128xbf16>
    %378 = arith.index_cast %c3_i32 : i32 to index
    %c0_130 = arith.constant 0 : index
    %c0_131 = arith.constant 0 : index
    %379 = vector.load %arg6[%378, %c0_130, %c0_131] : memref<8x16x128xbf16, #tpu.memory_space<vmem>>, vector<1x16x128xbf16>
    %380 = vector.shape_cast %379 : vector<1x16x128xbf16> to vector<16x128xbf16>
    %381 = vector.shape_cast %377 : vector<16x128xbf16> to vector<1x16x128xbf16>
    tpu.vector_store %arg6[%378, %c0_130, %c0_131], %381 {strides = array<i32>} : memref<8x16x128xbf16, #tpu.memory_space<vmem>>, vector<1x16x128xbf16>,
    %c7_i32_132 = arith.constant 7 : i32
    %382 = arith.subi %c7_i32_132, %c3_i32 : i32
    %383 = arith.addi %10, %382 : i32
    %384 = vector.broadcast %383 : i32 to vector<16x1xi32>
    %385 = arith.cmpi slt, %384, %3 : vector<16x1xi32>
    %386 = vector.shape_cast %385 : vector<16x1xi1> to vector<16x1xi1>
    %387 = vector.broadcast %386 : vector<16x1xi1> to vector<16x128xi1>
    %c0_133 = arith.constant 0 : index
    %388 = arith.index_cast %382 : i32 to index
    %c0_134 = arith.constant 0 : index
    %c0_135 = arith.constant 0 : index
    %389 = vector.load %arg3[%c0_133, %388, %c0_134, %c0_135] : memref<1x8x16x512xbf16, #tpu.memory_space<vmem>>, vector<1x1x16x512xbf16>
    %390 = vector.shape_cast %389 : vector<1x1x16x512xbf16> to vector<16x512xbf16>
    %391 = arith.extf %390 : vector<16x512xbf16> to vector<16x512xf32>
    %392 = arith.truncf %323 : vector<16x128xf32> to vector<16x128xbf16>
    %cst_136 = arith.constant dense<0.000000e+00> : vector<16x512xf32>
    %393 = tpu.matmul %392, %7, %cst_136 {dimension_numbers = #tpu.dot_dimension_numbers<[1], [0], [0], [1], [0, 0, 1, 1], [], []>} : vector<16x128xbf16>, vector<128x512xbf16>, vector<16x512xf32> -> vector<16x512xf32>
    %394 = arith.addf %391, %393 : vector<16x512xf32>
    %395 = vector.extract_strided_slice %394 {offsets = [0, 0], sizes = [16, 128], strides = [1, 1]} : vector<16x512xf32> to vector<16x128xf32>
    %cst_137 = arith.constant 5.000000e-01 : f32
    %396 = vector.broadcast %cst_137 : f32 to vector<16x128xf32>
    %397 = arith.mulf %396, %395 : vector<16x128xf32>
    %398 = math.tanh %397 : vector<16x128xf32>
    %cst_138 = arith.constant 5.000000e-01 : f32
    %399 = vector.broadcast %cst_138 : f32 to vector<16x128xf32>
    %400 = arith.mulf %399, %398 : vector<16x128xf32>
    %cst_139 = arith.constant 5.000000e-01 : f32
    %401 = vector.broadcast %cst_139 : f32 to vector<16x128xf32>
    %402 = arith.addf %400, %401 : vector<16x128xf32>
    %403 = vector.extract_strided_slice %394 {offsets = [0, 128], sizes = [16, 128], strides = [1, 1]} : vector<16x512xf32> to vector<16x128xf32>
    %cst_140 = arith.constant 5.000000e-01 : f32
    %404 = vector.broadcast %cst_140 : f32 to vector<16x128xf32>
    %405 = arith.mulf %404, %403 : vector<16x128xf32>
    %406 = math.tanh %405 : vector<16x128xf32>
    %cst_141 = arith.constant 5.000000e-01 : f32
    %407 = vector.broadcast %cst_141 : f32 to vector<16x128xf32>
    %408 = arith.mulf %407, %406 : vector<16x128xf32>
    %cst_142 = arith.constant 5.000000e-01 : f32
    %409 = vector.broadcast %cst_142 : f32 to vector<16x128xf32>
    %410 = arith.addf %408, %409 : vector<16x128xf32>
    %411 = vector.extract_strided_slice %394 {offsets = [0, 256], sizes = [16, 128], strides = [1, 1]} : vector<16x512xf32> to vector<16x128xf32>
    %412 = math.tanh %411 : vector<16x128xf32>
    %413 = vector.extract_strided_slice %394 {offsets = [0, 384], sizes = [16, 128], strides = [1, 1]} : vector<16x512xf32> to vector<16x128xf32>
    %cst_143 = arith.constant 5.000000e-01 : f32
    %414 = vector.broadcast %cst_143 : f32 to vector<16x128xf32>
    %415 = arith.mulf %414, %413 : vector<16x128xf32>
    %416 = math.tanh %415 : vector<16x128xf32>
    %cst_144 = arith.constant 5.000000e-01 : f32
    %417 = vector.broadcast %cst_144 : f32 to vector<16x128xf32>
    %418 = arith.mulf %417, %416 : vector<16x128xf32>
    %cst_145 = arith.constant 5.000000e-01 : f32
    %419 = vector.broadcast %cst_145 : f32 to vector<16x128xf32>
    %420 = arith.addf %418, %419 : vector<16x128xf32>
    %421 = arith.mulf %410, %324 : vector<16x128xf32>
    %422 = arith.mulf %402, %412 : vector<16x128xf32>
    %423 = arith.addf %421, %422 : vector<16x128xf32>
    %424 = math.tanh %423 : vector<16x128xf32>
    %425 = arith.mulf %420, %424 : vector<16x128xf32>
    %cst_146 = arith.constant 0.000000e+00 : f32
    %426 = vector.broadcast %cst_146 : f32 to vector<16x128xf32>
    %427 = arith.select %387, %425, %426 : vector<16x128xi1>, vector<16x128xf32>
    %428 = arith.select %387, %425, %323 : vector<16x128xi1>, vector<16x128xf32>
    %429 = arith.select %387, %423, %324 : vector<16x128xi1>, vector<16x128xf32>
    %430 = arith.truncf %427 : vector<16x128xf32> to vector<16x128xbf16>
    %431 = arith.index_cast %382 : i32 to index
    %c0_147 = arith.constant 0 : index
    %c0_148 = arith.constant 0 : index
    %432 = vector.load %arg7[%431, %c0_147, %c0_148] : memref<8x16x128xbf16, #tpu.memory_space<vmem>>, vector<1x16x128xbf16>
    %433 = vector.shape_cast %432 : vector<1x16x128xbf16> to vector<16x128xbf16>
    %434 = vector.shape_cast %430 : vector<16x128xbf16> to vector<1x16x128xbf16>
    tpu.vector_store %arg7[%431, %c0_147, %c0_148], %434 {strides = array<i32>} : memref<8x16x128xbf16, #tpu.memory_space<vmem>>, vector<1x16x128xbf16>,
    %c4_i32 = arith.constant 4 : i32
    %435 = arith.addi %8, %c4_i32 : i32
    %436 = vector.broadcast %435 : i32 to vector<16x1xi32>
    %437 = arith.cmpi slt, %436, %3 : vector<16x1xi32>
    %438 = vector.shape_cast %437 : vector<16x1xi1> to vector<16x1xi1>
    %439 = vector.broadcast %438 : vector<16x1xi1> to vector<16x128xi1>
    %c0_149 = arith.constant 0 : index
    %440 = arith.index_cast %c4_i32 : i32 to index
    %c0_150 = arith.constant 0 : index
    %c0_151 = arith.constant 0 : index
    %441 = vector.load %arg2[%c0_149, %440, %c0_150, %c0_151] : memref<1x8x16x512xbf16, #tpu.memory_space<vmem>>, vector<1x1x16x512xbf16>
    %442 = vector.shape_cast %441 : vector<1x1x16x512xbf16> to vector<16x512xbf16>
    %443 = arith.extf %442 : vector<16x512xbf16> to vector<16x512xf32>
    %444 = arith.truncf %375 : vector<16x128xf32> to vector<16x128xbf16>
    %cst_152 = arith.constant dense<0.000000e+00> : vector<16x512xf32>
    %445 = tpu.matmul %444, %5, %cst_152 {dimension_numbers = #tpu.dot_dimension_numbers<[1], [0], [0], [1], [0, 0, 1, 1], [], []>} : vector<16x128xbf16>, vector<128x512xbf16>, vector<16x512xf32> -> vector<16x512xf32>
    %446 = arith.addf %443, %445 : vector<16x512xf32>
    %447 = vector.extract_strided_slice %446 {offsets = [0, 0], sizes = [16, 128], strides = [1, 1]} : vector<16x512xf32> to vector<16x128xf32>
    %cst_153 = arith.constant 5.000000e-01 : f32
    %448 = vector.broadcast %cst_153 : f32 to vector<16x128xf32>
    %449 = arith.mulf %448, %447 : vector<16x128xf32>
    %450 = math.tanh %449 : vector<16x128xf32>
    %cst_154 = arith.constant 5.000000e-01 : f32
    %451 = vector.broadcast %cst_154 : f32 to vector<16x128xf32>
    %452 = arith.mulf %451, %450 : vector<16x128xf32>
    %cst_155 = arith.constant 5.000000e-01 : f32
    %453 = vector.broadcast %cst_155 : f32 to vector<16x128xf32>
    %454 = arith.addf %452, %453 : vector<16x128xf32>
    %455 = vector.extract_strided_slice %446 {offsets = [0, 128], sizes = [16, 128], strides = [1, 1]} : vector<16x512xf32> to vector<16x128xf32>
    %cst_156 = arith.constant 5.000000e-01 : f32
    %456 = vector.broadcast %cst_156 : f32 to vector<16x128xf32>
    %457 = arith.mulf %456, %455 : vector<16x128xf32>
    %458 = math.tanh %457 : vector<16x128xf32>
    %cst_157 = arith.constant 5.000000e-01 : f32
    %459 = vector.broadcast %cst_157 : f32 to vector<16x128xf32>
    %460 = arith.mulf %459, %458 : vector<16x128xf32>
    %cst_158 = arith.constant 5.000000e-01 : f32
    %461 = vector.broadcast %cst_158 : f32 to vector<16x128xf32>
    %462 = arith.addf %460, %461 : vector<16x128xf32>
    %463 = vector.extract_strided_slice %446 {offsets = [0, 256], sizes = [16, 128], strides = [1, 1]} : vector<16x512xf32> to vector<16x128xf32>
    %464 = math.tanh %463 : vector<16x128xf32>
    %465 = vector.extract_strided_slice %446 {offsets = [0, 384], sizes = [16, 128], strides = [1, 1]} : vector<16x512xf32> to vector<16x128xf32>
    %cst_159 = arith.constant 5.000000e-01 : f32
    %466 = vector.broadcast %cst_159 : f32 to vector<16x128xf32>
    %467 = arith.mulf %466, %465 : vector<16x128xf32>
    %468 = math.tanh %467 : vector<16x128xf32>
    %cst_160 = arith.constant 5.000000e-01 : f32
    %469 = vector.broadcast %cst_160 : f32 to vector<16x128xf32>
    %470 = arith.mulf %469, %468 : vector<16x128xf32>
    %cst_161 = arith.constant 5.000000e-01 : f32
    %471 = vector.broadcast %cst_161 : f32 to vector<16x128xf32>
    %472 = arith.addf %470, %471 : vector<16x128xf32>
    %473 = arith.mulf %462, %376 : vector<16x128xf32>
    %474 = arith.mulf %454, %464 : vector<16x128xf32>
    %475 = arith.addf %473, %474 : vector<16x128xf32>
    %476 = math.tanh %475 : vector<16x128xf32>
    %477 = arith.mulf %472, %476 : vector<16x128xf32>
    %cst_162 = arith.constant 0.000000e+00 : f32
    %478 = vector.broadcast %cst_162 : f32 to vector<16x128xf32>
    %479 = arith.select %439, %477, %478 : vector<16x128xi1>, vector<16x128xf32>
    %480 = arith.select %439, %477, %375 : vector<16x128xi1>, vector<16x128xf32>
    %481 = arith.select %439, %475, %376 : vector<16x128xi1>, vector<16x128xf32>
    %482 = arith.truncf %479 : vector<16x128xf32> to vector<16x128xbf16>
    %483 = arith.index_cast %c4_i32 : i32 to index
    %c0_163 = arith.constant 0 : index
    %c0_164 = arith.constant 0 : index
    %484 = vector.load %arg6[%483, %c0_163, %c0_164] : memref<8x16x128xbf16, #tpu.memory_space<vmem>>, vector<1x16x128xbf16>
    %485 = vector.shape_cast %484 : vector<1x16x128xbf16> to vector<16x128xbf16>
    %486 = vector.shape_cast %482 : vector<16x128xbf16> to vector<1x16x128xbf16>
    tpu.vector_store %arg6[%483, %c0_163, %c0_164], %486 {strides = array<i32>} : memref<8x16x128xbf16, #tpu.memory_space<vmem>>, vector<1x16x128xbf16>,
    %c7_i32_165 = arith.constant 7 : i32
    %487 = arith.subi %c7_i32_165, %c4_i32 : i32
    %488 = arith.addi %10, %487 : i32
    %489 = vector.broadcast %488 : i32 to vector<16x1xi32>
    %490 = arith.cmpi slt, %489, %3 : vector<16x1xi32>
    %491 = vector.shape_cast %490 : vector<16x1xi1> to vector<16x1xi1>
    %492 = vector.broadcast %491 : vector<16x1xi1> to vector<16x128xi1>
    %c0_166 = arith.constant 0 : index
    %493 = arith.index_cast %487 : i32 to index
    %c0_167 = arith.constant 0 : index
    %c0_168 = arith.constant 0 : index
    %494 = vector.load %arg3[%c0_166, %493, %c0_167, %c0_168] : memref<1x8x16x512xbf16, #tpu.memory_space<vmem>>, vector<1x1x16x512xbf16>
    %495 = vector.shape_cast %494 : vector<1x1x16x512xbf16> to vector<16x512xbf16>
    %496 = arith.extf %495 : vector<16x512xbf16> to vector<16x512xf32>
    %497 = arith.truncf %428 : vector<16x128xf32> to vector<16x128xbf16>
    %cst_169 = arith.constant dense<0.000000e+00> : vector<16x512xf32>
    %498 = tpu.matmul %497, %7, %cst_169 {dimension_numbers = #tpu.dot_dimension_numbers<[1], [0], [0], [1], [0, 0, 1, 1], [], []>} : vector<16x128xbf16>, vector<128x512xbf16>, vector<16x512xf32> -> vector<16x512xf32>
    %499 = arith.addf %496, %498 : vector<16x512xf32>
    %500 = vector.extract_strided_slice %499 {offsets = [0, 0], sizes = [16, 128], strides = [1, 1]} : vector<16x512xf32> to vector<16x128xf32>
    %cst_170 = arith.constant 5.000000e-01 : f32
    %501 = vector.broadcast %cst_170 : f32 to vector<16x128xf32>
    %502 = arith.mulf %501, %500 : vector<16x128xf32>
    %503 = math.tanh %502 : vector<16x128xf32>
    %cst_171 = arith.constant 5.000000e-01 : f32
    %504 = vector.broadcast %cst_171 : f32 to vector<16x128xf32>
    %505 = arith.mulf %504, %503 : vector<16x128xf32>
    %cst_172 = arith.constant 5.000000e-01 : f32
    %506 = vector.broadcast %cst_172 : f32 to vector<16x128xf32>
    %507 = arith.addf %505, %506 : vector<16x128xf32>
    %508 = vector.extract_strided_slice %499 {offsets = [0, 128], sizes = [16, 128], strides = [1, 1]} : vector<16x512xf32> to vector<16x128xf32>
    %cst_173 = arith.constant 5.000000e-01 : f32
    %509 = vector.broadcast %cst_173 : f32 to vector<16x128xf32>
    %510 = arith.mulf %509, %508 : vector<16x128xf32>
    %511 = math.tanh %510 : vector<16x128xf32>
    %cst_174 = arith.constant 5.000000e-01 : f32
    %512 = vector.broadcast %cst_174 : f32 to vector<16x128xf32>
    %513 = arith.mulf %512, %511 : vector<16x128xf32>
    %cst_175 = arith.constant 5.000000e-01 : f32
    %514 = vector.broadcast %cst_175 : f32 to vector<16x128xf32>
    %515 = arith.addf %513, %514 : vector<16x128xf32>
    %516 = vector.extract_strided_slice %499 {offsets = [0, 256], sizes = [16, 128], strides = [1, 1]} : vector<16x512xf32> to vector<16x128xf32>
    %517 = math.tanh %516 : vector<16x128xf32>
    %518 = vector.extract_strided_slice %499 {offsets = [0, 384], sizes = [16, 128], strides = [1, 1]} : vector<16x512xf32> to vector<16x128xf32>
    %cst_176 = arith.constant 5.000000e-01 : f32
    %519 = vector.broadcast %cst_176 : f32 to vector<16x128xf32>
    %520 = arith.mulf %519, %518 : vector<16x128xf32>
    %521 = math.tanh %520 : vector<16x128xf32>
    %cst_177 = arith.constant 5.000000e-01 : f32
    %522 = vector.broadcast %cst_177 : f32 to vector<16x128xf32>
    %523 = arith.mulf %522, %521 : vector<16x128xf32>
    %cst_178 = arith.constant 5.000000e-01 : f32
    %524 = vector.broadcast %cst_178 : f32 to vector<16x128xf32>
    %525 = arith.addf %523, %524 : vector<16x128xf32>
    %526 = arith.mulf %515, %429 : vector<16x128xf32>
    %527 = arith.mulf %507, %517 : vector<16x128xf32>
    %528 = arith.addf %526, %527 : vector<16x128xf32>
    %529 = math.tanh %528 : vector<16x128xf32>
    %530 = arith.mulf %525, %529 : vector<16x128xf32>
    %cst_179 = arith.constant 0.000000e+00 : f32
    %531 = vector.broadcast %cst_179 : f32 to vector<16x128xf32>
    %532 = arith.select %492, %530, %531 : vector<16x128xi1>, vector<16x128xf32>
    %533 = arith.select %492, %530, %428 : vector<16x128xi1>, vector<16x128xf32>
    %534 = arith.select %492, %528, %429 : vector<16x128xi1>, vector<16x128xf32>
    %535 = arith.truncf %532 : vector<16x128xf32> to vector<16x128xbf16>
    %536 = arith.index_cast %487 : i32 to index
    %c0_180 = arith.constant 0 : index
    %c0_181 = arith.constant 0 : index
    %537 = vector.load %arg7[%536, %c0_180, %c0_181] : memref<8x16x128xbf16, #tpu.memory_space<vmem>>, vector<1x16x128xbf16>
    %538 = vector.shape_cast %537 : vector<1x16x128xbf16> to vector<16x128xbf16>
    %539 = vector.shape_cast %535 : vector<16x128xbf16> to vector<1x16x128xbf16>
    tpu.vector_store %arg7[%536, %c0_180, %c0_181], %539 {strides = array<i32>} : memref<8x16x128xbf16, #tpu.memory_space<vmem>>, vector<1x16x128xbf16>,
    %c5_i32 = arith.constant 5 : i32
    %540 = arith.addi %8, %c5_i32 : i32
    %541 = vector.broadcast %540 : i32 to vector<16x1xi32>
    %542 = arith.cmpi slt, %541, %3 : vector<16x1xi32>
    %543 = vector.shape_cast %542 : vector<16x1xi1> to vector<16x1xi1>
    %544 = vector.broadcast %543 : vector<16x1xi1> to vector<16x128xi1>
    %c0_182 = arith.constant 0 : index
    %545 = arith.index_cast %c5_i32 : i32 to index
    %c0_183 = arith.constant 0 : index
    %c0_184 = arith.constant 0 : index
    %546 = vector.load %arg2[%c0_182, %545, %c0_183, %c0_184] : memref<1x8x16x512xbf16, #tpu.memory_space<vmem>>, vector<1x1x16x512xbf16>
    %547 = vector.shape_cast %546 : vector<1x1x16x512xbf16> to vector<16x512xbf16>
    %548 = arith.extf %547 : vector<16x512xbf16> to vector<16x512xf32>
    %549 = arith.truncf %480 : vector<16x128xf32> to vector<16x128xbf16>
    %cst_185 = arith.constant dense<0.000000e+00> : vector<16x512xf32>
    %550 = tpu.matmul %549, %5, %cst_185 {dimension_numbers = #tpu.dot_dimension_numbers<[1], [0], [0], [1], [0, 0, 1, 1], [], []>} : vector<16x128xbf16>, vector<128x512xbf16>, vector<16x512xf32> -> vector<16x512xf32>
    %551 = arith.addf %548, %550 : vector<16x512xf32>
    %552 = vector.extract_strided_slice %551 {offsets = [0, 0], sizes = [16, 128], strides = [1, 1]} : vector<16x512xf32> to vector<16x128xf32>
    %cst_186 = arith.constant 5.000000e-01 : f32
    %553 = vector.broadcast %cst_186 : f32 to vector<16x128xf32>
    %554 = arith.mulf %553, %552 : vector<16x128xf32>
    %555 = math.tanh %554 : vector<16x128xf32>
    %cst_187 = arith.constant 5.000000e-01 : f32
    %556 = vector.broadcast %cst_187 : f32 to vector<16x128xf32>
    %557 = arith.mulf %556, %555 : vector<16x128xf32>
    %cst_188 = arith.constant 5.000000e-01 : f32
    %558 = vector.broadcast %cst_188 : f32 to vector<16x128xf32>
    %559 = arith.addf %557, %558 : vector<16x128xf32>
    %560 = vector.extract_strided_slice %551 {offsets = [0, 128], sizes = [16, 128], strides = [1, 1]} : vector<16x512xf32> to vector<16x128xf32>
    %cst_189 = arith.constant 5.000000e-01 : f32
    %561 = vector.broadcast %cst_189 : f32 to vector<16x128xf32>
    %562 = arith.mulf %561, %560 : vector<16x128xf32>
    %563 = math.tanh %562 : vector<16x128xf32>
    %cst_190 = arith.constant 5.000000e-01 : f32
    %564 = vector.broadcast %cst_190 : f32 to vector<16x128xf32>
    %565 = arith.mulf %564, %563 : vector<16x128xf32>
    %cst_191 = arith.constant 5.000000e-01 : f32
    %566 = vector.broadcast %cst_191 : f32 to vector<16x128xf32>
    %567 = arith.addf %565, %566 : vector<16x128xf32>
    %568 = vector.extract_strided_slice %551 {offsets = [0, 256], sizes = [16, 128], strides = [1, 1]} : vector<16x512xf32> to vector<16x128xf32>
    %569 = math.tanh %568 : vector<16x128xf32>
    %570 = vector.extract_strided_slice %551 {offsets = [0, 384], sizes = [16, 128], strides = [1, 1]} : vector<16x512xf32> to vector<16x128xf32>
    %cst_192 = arith.constant 5.000000e-01 : f32
    %571 = vector.broadcast %cst_192 : f32 to vector<16x128xf32>
    %572 = arith.mulf %571, %570 : vector<16x128xf32>
    %573 = math.tanh %572 : vector<16x128xf32>
    %cst_193 = arith.constant 5.000000e-01 : f32
    %574 = vector.broadcast %cst_193 : f32 to vector<16x128xf32>
    %575 = arith.mulf %574, %573 : vector<16x128xf32>
    %cst_194 = arith.constant 5.000000e-01 : f32
    %576 = vector.broadcast %cst_194 : f32 to vector<16x128xf32>
    %577 = arith.addf %575, %576 : vector<16x128xf32>
    %578 = arith.mulf %567, %481 : vector<16x128xf32>
    %579 = arith.mulf %559, %569 : vector<16x128xf32>
    %580 = arith.addf %578, %579 : vector<16x128xf32>
    %581 = math.tanh %580 : vector<16x128xf32>
    %582 = arith.mulf %577, %581 : vector<16x128xf32>
    %cst_195 = arith.constant 0.000000e+00 : f32
    %583 = vector.broadcast %cst_195 : f32 to vector<16x128xf32>
    %584 = arith.select %544, %582, %583 : vector<16x128xi1>, vector<16x128xf32>
    %585 = arith.select %544, %582, %480 : vector<16x128xi1>, vector<16x128xf32>
    %586 = arith.select %544, %580, %481 : vector<16x128xi1>, vector<16x128xf32>
    %587 = arith.truncf %584 : vector<16x128xf32> to vector<16x128xbf16>
    %588 = arith.index_cast %c5_i32 : i32 to index
    %c0_196 = arith.constant 0 : index
    %c0_197 = arith.constant 0 : index
    %589 = vector.load %arg6[%588, %c0_196, %c0_197] : memref<8x16x128xbf16, #tpu.memory_space<vmem>>, vector<1x16x128xbf16>
    %590 = vector.shape_cast %589 : vector<1x16x128xbf16> to vector<16x128xbf16>
    %591 = vector.shape_cast %587 : vector<16x128xbf16> to vector<1x16x128xbf16>
    tpu.vector_store %arg6[%588, %c0_196, %c0_197], %591 {strides = array<i32>} : memref<8x16x128xbf16, #tpu.memory_space<vmem>>, vector<1x16x128xbf16>,
    %c7_i32_198 = arith.constant 7 : i32
    %592 = arith.subi %c7_i32_198, %c5_i32 : i32
    %593 = arith.addi %10, %592 : i32
    %594 = vector.broadcast %593 : i32 to vector<16x1xi32>
    %595 = arith.cmpi slt, %594, %3 : vector<16x1xi32>
    %596 = vector.shape_cast %595 : vector<16x1xi1> to vector<16x1xi1>
    %597 = vector.broadcast %596 : vector<16x1xi1> to vector<16x128xi1>
    %c0_199 = arith.constant 0 : index
    %598 = arith.index_cast %592 : i32 to index
    %c0_200 = arith.constant 0 : index
    %c0_201 = arith.constant 0 : index
    %599 = vector.load %arg3[%c0_199, %598, %c0_200, %c0_201] : memref<1x8x16x512xbf16, #tpu.memory_space<vmem>>, vector<1x1x16x512xbf16>
    %600 = vector.shape_cast %599 : vector<1x1x16x512xbf16> to vector<16x512xbf16>
    %601 = arith.extf %600 : vector<16x512xbf16> to vector<16x512xf32>
    %602 = arith.truncf %533 : vector<16x128xf32> to vector<16x128xbf16>
    %cst_202 = arith.constant dense<0.000000e+00> : vector<16x512xf32>
    %603 = tpu.matmul %602, %7, %cst_202 {dimension_numbers = #tpu.dot_dimension_numbers<[1], [0], [0], [1], [0, 0, 1, 1], [], []>} : vector<16x128xbf16>, vector<128x512xbf16>, vector<16x512xf32> -> vector<16x512xf32>
    %604 = arith.addf %601, %603 : vector<16x512xf32>
    %605 = vector.extract_strided_slice %604 {offsets = [0, 0], sizes = [16, 128], strides = [1, 1]} : vector<16x512xf32> to vector<16x128xf32>
    %cst_203 = arith.constant 5.000000e-01 : f32
    %606 = vector.broadcast %cst_203 : f32 to vector<16x128xf32>
    %607 = arith.mulf %606, %605 : vector<16x128xf32>
    %608 = math.tanh %607 : vector<16x128xf32>
    %cst_204 = arith.constant 5.000000e-01 : f32
    %609 = vector.broadcast %cst_204 : f32 to vector<16x128xf32>
    %610 = arith.mulf %609, %608 : vector<16x128xf32>
    %cst_205 = arith.constant 5.000000e-01 : f32
    %611 = vector.broadcast %cst_205 : f32 to vector<16x128xf32>
    %612 = arith.addf %610, %611 : vector<16x128xf32>
    %613 = vector.extract_strided_slice %604 {offsets = [0, 128], sizes = [16, 128], strides = [1, 1]} : vector<16x512xf32> to vector<16x128xf32>
    %cst_206 = arith.constant 5.000000e-01 : f32
    %614 = vector.broadcast %cst_206 : f32 to vector<16x128xf32>
    %615 = arith.mulf %614, %613 : vector<16x128xf32>
    %616 = math.tanh %615 : vector<16x128xf32>
    %cst_207 = arith.constant 5.000000e-01 : f32
    %617 = vector.broadcast %cst_207 : f32 to vector<16x128xf32>
    %618 = arith.mulf %617, %616 : vector<16x128xf32>
    %cst_208 = arith.constant 5.000000e-01 : f32
    %619 = vector.broadcast %cst_208 : f32 to vector<16x128xf32>
    %620 = arith.addf %618, %619 : vector<16x128xf32>
    %621 = vector.extract_strided_slice %604 {offsets = [0, 256], sizes = [16, 128], strides = [1, 1]} : vector<16x512xf32> to vector<16x128xf32>
    %622 = math.tanh %621 : vector<16x128xf32>
    %623 = vector.extract_strided_slice %604 {offsets = [0, 384], sizes = [16, 128], strides = [1, 1]} : vector<16x512xf32> to vector<16x128xf32>
    %cst_209 = arith.constant 5.000000e-01 : f32
    %624 = vector.broadcast %cst_209 : f32 to vector<16x128xf32>
    %625 = arith.mulf %624, %623 : vector<16x128xf32>
    %626 = math.tanh %625 : vector<16x128xf32>
    %cst_210 = arith.constant 5.000000e-01 : f32
    %627 = vector.broadcast %cst_210 : f32 to vector<16x128xf32>
    %628 = arith.mulf %627, %626 : vector<16x128xf32>
    %cst_211 = arith.constant 5.000000e-01 : f32
    %629 = vector.broadcast %cst_211 : f32 to vector<16x128xf32>
    %630 = arith.addf %628, %629 : vector<16x128xf32>
    %631 = arith.mulf %620, %534 : vector<16x128xf32>
    %632 = arith.mulf %612, %622 : vector<16x128xf32>
    %633 = arith.addf %631, %632 : vector<16x128xf32>
    %634 = math.tanh %633 : vector<16x128xf32>
    %635 = arith.mulf %630, %634 : vector<16x128xf32>
    %cst_212 = arith.constant 0.000000e+00 : f32
    %636 = vector.broadcast %cst_212 : f32 to vector<16x128xf32>
    %637 = arith.select %597, %635, %636 : vector<16x128xi1>, vector<16x128xf32>
    %638 = arith.select %597, %635, %533 : vector<16x128xi1>, vector<16x128xf32>
    %639 = arith.select %597, %633, %534 : vector<16x128xi1>, vector<16x128xf32>
    %640 = arith.truncf %637 : vector<16x128xf32> to vector<16x128xbf16>
    %641 = arith.index_cast %592 : i32 to index
    %c0_213 = arith.constant 0 : index
    %c0_214 = arith.constant 0 : index
    %642 = vector.load %arg7[%641, %c0_213, %c0_214] : memref<8x16x128xbf16, #tpu.memory_space<vmem>>, vector<1x16x128xbf16>
    %643 = vector.shape_cast %642 : vector<1x16x128xbf16> to vector<16x128xbf16>
    %644 = vector.shape_cast %640 : vector<16x128xbf16> to vector<1x16x128xbf16>
    tpu.vector_store %arg7[%641, %c0_213, %c0_214], %644 {strides = array<i32>} : memref<8x16x128xbf16, #tpu.memory_space<vmem>>, vector<1x16x128xbf16>,
    %c6_i32 = arith.constant 6 : i32
    %645 = arith.addi %8, %c6_i32 : i32
    %646 = vector.broadcast %645 : i32 to vector<16x1xi32>
    %647 = arith.cmpi slt, %646, %3 : vector<16x1xi32>
    %648 = vector.shape_cast %647 : vector<16x1xi1> to vector<16x1xi1>
    %649 = vector.broadcast %648 : vector<16x1xi1> to vector<16x128xi1>
    %c0_215 = arith.constant 0 : index
    %650 = arith.index_cast %c6_i32 : i32 to index
    %c0_216 = arith.constant 0 : index
    %c0_217 = arith.constant 0 : index
    %651 = vector.load %arg2[%c0_215, %650, %c0_216, %c0_217] : memref<1x8x16x512xbf16, #tpu.memory_space<vmem>>, vector<1x1x16x512xbf16>
    %652 = vector.shape_cast %651 : vector<1x1x16x512xbf16> to vector<16x512xbf16>
    %653 = arith.extf %652 : vector<16x512xbf16> to vector<16x512xf32>
    %654 = arith.truncf %585 : vector<16x128xf32> to vector<16x128xbf16>
    %cst_218 = arith.constant dense<0.000000e+00> : vector<16x512xf32>
    %655 = tpu.matmul %654, %5, %cst_218 {dimension_numbers = #tpu.dot_dimension_numbers<[1], [0], [0], [1], [0, 0, 1, 1], [], []>} : vector<16x128xbf16>, vector<128x512xbf16>, vector<16x512xf32> -> vector<16x512xf32>
    %656 = arith.addf %653, %655 : vector<16x512xf32>
    %657 = vector.extract_strided_slice %656 {offsets = [0, 0], sizes = [16, 128], strides = [1, 1]} : vector<16x512xf32> to vector<16x128xf32>
    %cst_219 = arith.constant 5.000000e-01 : f32
    %658 = vector.broadcast %cst_219 : f32 to vector<16x128xf32>
    %659 = arith.mulf %658, %657 : vector<16x128xf32>
    %660 = math.tanh %659 : vector<16x128xf32>
    %cst_220 = arith.constant 5.000000e-01 : f32
    %661 = vector.broadcast %cst_220 : f32 to vector<16x128xf32>
    %662 = arith.mulf %661, %660 : vector<16x128xf32>
    %cst_221 = arith.constant 5.000000e-01 : f32
    %663 = vector.broadcast %cst_221 : f32 to vector<16x128xf32>
    %664 = arith.addf %662, %663 : vector<16x128xf32>
    %665 = vector.extract_strided_slice %656 {offsets = [0, 128], sizes = [16, 128], strides = [1, 1]} : vector<16x512xf32> to vector<16x128xf32>
    %cst_222 = arith.constant 5.000000e-01 : f32
    %666 = vector.broadcast %cst_222 : f32 to vector<16x128xf32>
    %667 = arith.mulf %666, %665 : vector<16x128xf32>
    %668 = math.tanh %667 : vector<16x128xf32>
    %cst_223 = arith.constant 5.000000e-01 : f32
    %669 = vector.broadcast %cst_223 : f32 to vector<16x128xf32>
    %670 = arith.mulf %669, %668 : vector<16x128xf32>
    %cst_224 = arith.constant 5.000000e-01 : f32
    %671 = vector.broadcast %cst_224 : f32 to vector<16x128xf32>
    %672 = arith.addf %670, %671 : vector<16x128xf32>
    %673 = vector.extract_strided_slice %656 {offsets = [0, 256], sizes = [16, 128], strides = [1, 1]} : vector<16x512xf32> to vector<16x128xf32>
    %674 = math.tanh %673 : vector<16x128xf32>
    %675 = vector.extract_strided_slice %656 {offsets = [0, 384], sizes = [16, 128], strides = [1, 1]} : vector<16x512xf32> to vector<16x128xf32>
    %cst_225 = arith.constant 5.000000e-01 : f32
    %676 = vector.broadcast %cst_225 : f32 to vector<16x128xf32>
    %677 = arith.mulf %676, %675 : vector<16x128xf32>
    %678 = math.tanh %677 : vector<16x128xf32>
    %cst_226 = arith.constant 5.000000e-01 : f32
    %679 = vector.broadcast %cst_226 : f32 to vector<16x128xf32>
    %680 = arith.mulf %679, %678 : vector<16x128xf32>
    %cst_227 = arith.constant 5.000000e-01 : f32
    %681 = vector.broadcast %cst_227 : f32 to vector<16x128xf32>
    %682 = arith.addf %680, %681 : vector<16x128xf32>
    %683 = arith.mulf %672, %586 : vector<16x128xf32>
    %684 = arith.mulf %664, %674 : vector<16x128xf32>
    %685 = arith.addf %683, %684 : vector<16x128xf32>
    %686 = math.tanh %685 : vector<16x128xf32>
    %687 = arith.mulf %682, %686 : vector<16x128xf32>
    %cst_228 = arith.constant 0.000000e+00 : f32
    %688 = vector.broadcast %cst_228 : f32 to vector<16x128xf32>
    %689 = arith.select %649, %687, %688 : vector<16x128xi1>, vector<16x128xf32>
    %690 = arith.select %649, %687, %585 : vector<16x128xi1>, vector<16x128xf32>
    %691 = arith.select %649, %685, %586 : vector<16x128xi1>, vector<16x128xf32>
    %692 = arith.truncf %689 : vector<16x128xf32> to vector<16x128xbf16>
    %693 = arith.index_cast %c6_i32 : i32 to index
    %c0_229 = arith.constant 0 : index
    %c0_230 = arith.constant 0 : index
    %694 = vector.load %arg6[%693, %c0_229, %c0_230] : memref<8x16x128xbf16, #tpu.memory_space<vmem>>, vector<1x16x128xbf16>
    %695 = vector.shape_cast %694 : vector<1x16x128xbf16> to vector<16x128xbf16>
    %696 = vector.shape_cast %692 : vector<16x128xbf16> to vector<1x16x128xbf16>
    tpu.vector_store %arg6[%693, %c0_229, %c0_230], %696 {strides = array<i32>} : memref<8x16x128xbf16, #tpu.memory_space<vmem>>, vector<1x16x128xbf16>,
    %c7_i32_231 = arith.constant 7 : i32
    %697 = arith.subi %c7_i32_231, %c6_i32 : i32
    %698 = arith.addi %10, %697 : i32
    %699 = vector.broadcast %698 : i32 to vector<16x1xi32>
    %700 = arith.cmpi slt, %699, %3 : vector<16x1xi32>
    %701 = vector.shape_cast %700 : vector<16x1xi1> to vector<16x1xi1>
    %702 = vector.broadcast %701 : vector<16x1xi1> to vector<16x128xi1>
    %c0_232 = arith.constant 0 : index
    %703 = arith.index_cast %697 : i32 to index
    %c0_233 = arith.constant 0 : index
    %c0_234 = arith.constant 0 : index
    %704 = vector.load %arg3[%c0_232, %703, %c0_233, %c0_234] : memref<1x8x16x512xbf16, #tpu.memory_space<vmem>>, vector<1x1x16x512xbf16>
    %705 = vector.shape_cast %704 : vector<1x1x16x512xbf16> to vector<16x512xbf16>
    %706 = arith.extf %705 : vector<16x512xbf16> to vector<16x512xf32>
    %707 = arith.truncf %638 : vector<16x128xf32> to vector<16x128xbf16>
    %cst_235 = arith.constant dense<0.000000e+00> : vector<16x512xf32>
    %708 = tpu.matmul %707, %7, %cst_235 {dimension_numbers = #tpu.dot_dimension_numbers<[1], [0], [0], [1], [0, 0, 1, 1], [], []>} : vector<16x128xbf16>, vector<128x512xbf16>, vector<16x512xf32> -> vector<16x512xf32>
    %709 = arith.addf %706, %708 : vector<16x512xf32>
    %710 = vector.extract_strided_slice %709 {offsets = [0, 0], sizes = [16, 128], strides = [1, 1]} : vector<16x512xf32> to vector<16x128xf32>
    %cst_236 = arith.constant 5.000000e-01 : f32
    %711 = vector.broadcast %cst_236 : f32 to vector<16x128xf32>
    %712 = arith.mulf %711, %710 : vector<16x128xf32>
    %713 = math.tanh %712 : vector<16x128xf32>
    %cst_237 = arith.constant 5.000000e-01 : f32
    %714 = vector.broadcast %cst_237 : f32 to vector<16x128xf32>
    %715 = arith.mulf %714, %713 : vector<16x128xf32>
    %cst_238 = arith.constant 5.000000e-01 : f32
    %716 = vector.broadcast %cst_238 : f32 to vector<16x128xf32>
    %717 = arith.addf %715, %716 : vector<16x128xf32>
    %718 = vector.extract_strided_slice %709 {offsets = [0, 128], sizes = [16, 128], strides = [1, 1]} : vector<16x512xf32> to vector<16x128xf32>
    %cst_239 = arith.constant 5.000000e-01 : f32
    %719 = vector.broadcast %cst_239 : f32 to vector<16x128xf32>
    %720 = arith.mulf %719, %718 : vector<16x128xf32>
    %721 = math.tanh %720 : vector<16x128xf32>
    %cst_240 = arith.constant 5.000000e-01 : f32
    %722 = vector.broadcast %cst_240 : f32 to vector<16x128xf32>
    %723 = arith.mulf %722, %721 : vector<16x128xf32>
    %cst_241 = arith.constant 5.000000e-01 : f32
    %724 = vector.broadcast %cst_241 : f32 to vector<16x128xf32>
    %725 = arith.addf %723, %724 : vector<16x128xf32>
    %726 = vector.extract_strided_slice %709 {offsets = [0, 256], sizes = [16, 128], strides = [1, 1]} : vector<16x512xf32> to vector<16x128xf32>
    %727 = math.tanh %726 : vector<16x128xf32>
    %728 = vector.extract_strided_slice %709 {offsets = [0, 384], sizes = [16, 128], strides = [1, 1]} : vector<16x512xf32> to vector<16x128xf32>
    %cst_242 = arith.constant 5.000000e-01 : f32
    %729 = vector.broadcast %cst_242 : f32 to vector<16x128xf32>
    %730 = arith.mulf %729, %728 : vector<16x128xf32>
    %731 = math.tanh %730 : vector<16x128xf32>
    %cst_243 = arith.constant 5.000000e-01 : f32
    %732 = vector.broadcast %cst_243 : f32 to vector<16x128xf32>
    %733 = arith.mulf %732, %731 : vector<16x128xf32>
    %cst_244 = arith.constant 5.000000e-01 : f32
    %734 = vector.broadcast %cst_244 : f32 to vector<16x128xf32>
    %735 = arith.addf %733, %734 : vector<16x128xf32>
    %736 = arith.mulf %725, %639 : vector<16x128xf32>
    %737 = arith.mulf %717, %727 : vector<16x128xf32>
    %738 = arith.addf %736, %737 : vector<16x128xf32>
    %739 = math.tanh %738 : vector<16x128xf32>
    %740 = arith.mulf %735, %739 : vector<16x128xf32>
    %cst_245 = arith.constant 0.000000e+00 : f32
    %741 = vector.broadcast %cst_245 : f32 to vector<16x128xf32>
    %742 = arith.select %702, %740, %741 : vector<16x128xi1>, vector<16x128xf32>
    %743 = arith.select %702, %740, %638 : vector<16x128xi1>, vector<16x128xf32>
    %744 = arith.select %702, %738, %639 : vector<16x128xi1>, vector<16x128xf32>
    %745 = arith.truncf %742 : vector<16x128xf32> to vector<16x128xbf16>
    %746 = arith.index_cast %697 : i32 to index
    %c0_246 = arith.constant 0 : index
    %c0_247 = arith.constant 0 : index
    %747 = vector.load %arg7[%746, %c0_246, %c0_247] : memref<8x16x128xbf16, #tpu.memory_space<vmem>>, vector<1x16x128xbf16>
    %748 = vector.shape_cast %747 : vector<1x16x128xbf16> to vector<16x128xbf16>
    %749 = vector.shape_cast %745 : vector<16x128xbf16> to vector<1x16x128xbf16>
    tpu.vector_store %arg7[%746, %c0_246, %c0_247], %749 {strides = array<i32>} : memref<8x16x128xbf16, #tpu.memory_space<vmem>>, vector<1x16x128xbf16>,
    %c7_i32_248 = arith.constant 7 : i32
    %750 = arith.addi %8, %c7_i32_248 : i32
    %751 = vector.broadcast %750 : i32 to vector<16x1xi32>
    %752 = arith.cmpi slt, %751, %3 : vector<16x1xi32>
    %753 = vector.shape_cast %752 : vector<16x1xi1> to vector<16x1xi1>
    %754 = vector.broadcast %753 : vector<16x1xi1> to vector<16x128xi1>
    %c0_249 = arith.constant 0 : index
    %755 = arith.index_cast %c7_i32_248 : i32 to index
    %c0_250 = arith.constant 0 : index
    %c0_251 = arith.constant 0 : index
    %756 = vector.load %arg2[%c0_249, %755, %c0_250, %c0_251] : memref<1x8x16x512xbf16, #tpu.memory_space<vmem>>, vector<1x1x16x512xbf16>
    %757 = vector.shape_cast %756 : vector<1x1x16x512xbf16> to vector<16x512xbf16>
    %758 = arith.extf %757 : vector<16x512xbf16> to vector<16x512xf32>
    %759 = arith.truncf %690 : vector<16x128xf32> to vector<16x128xbf16>
    %cst_252 = arith.constant dense<0.000000e+00> : vector<16x512xf32>
    %760 = tpu.matmul %759, %5, %cst_252 {dimension_numbers = #tpu.dot_dimension_numbers<[1], [0], [0], [1], [0, 0, 1, 1], [], []>} : vector<16x128xbf16>, vector<128x512xbf16>, vector<16x512xf32> -> vector<16x512xf32>
    %761 = arith.addf %758, %760 : vector<16x512xf32>
    %762 = vector.extract_strided_slice %761 {offsets = [0, 0], sizes = [16, 128], strides = [1, 1]} : vector<16x512xf32> to vector<16x128xf32>
    %cst_253 = arith.constant 5.000000e-01 : f32
    %763 = vector.broadcast %cst_253 : f32 to vector<16x128xf32>
    %764 = arith.mulf %763, %762 : vector<16x128xf32>
    %765 = math.tanh %764 : vector<16x128xf32>
    %cst_254 = arith.constant 5.000000e-01 : f32
    %766 = vector.broadcast %cst_254 : f32 to vector<16x128xf32>
    %767 = arith.mulf %766, %765 : vector<16x128xf32>
    %cst_255 = arith.constant 5.000000e-01 : f32
    %768 = vector.broadcast %cst_255 : f32 to vector<16x128xf32>
    %769 = arith.addf %767, %768 : vector<16x128xf32>
    %770 = vector.extract_strided_slice %761 {offsets = [0, 128], sizes = [16, 128], strides = [1, 1]} : vector<16x512xf32> to vector<16x128xf32>
    %cst_256 = arith.constant 5.000000e-01 : f32
    %771 = vector.broadcast %cst_256 : f32 to vector<16x128xf32>
    %772 = arith.mulf %771, %770 : vector<16x128xf32>
    %773 = math.tanh %772 : vector<16x128xf32>
    %cst_257 = arith.constant 5.000000e-01 : f32
    %774 = vector.broadcast %cst_257 : f32 to vector<16x128xf32>
    %775 = arith.mulf %774, %773 : vector<16x128xf32>
    %cst_258 = arith.constant 5.000000e-01 : f32
    %776 = vector.broadcast %cst_258 : f32 to vector<16x128xf32>
    %777 = arith.addf %775, %776 : vector<16x128xf32>
    %778 = vector.extract_strided_slice %761 {offsets = [0, 256], sizes = [16, 128], strides = [1, 1]} : vector<16x512xf32> to vector<16x128xf32>
    %779 = math.tanh %778 : vector<16x128xf32>
    %780 = vector.extract_strided_slice %761 {offsets = [0, 384], sizes = [16, 128], strides = [1, 1]} : vector<16x512xf32> to vector<16x128xf32>
    %cst_259 = arith.constant 5.000000e-01 : f32
    %781 = vector.broadcast %cst_259 : f32 to vector<16x128xf32>
    %782 = arith.mulf %781, %780 : vector<16x128xf32>
    %783 = math.tanh %782 : vector<16x128xf32>
    %cst_260 = arith.constant 5.000000e-01 : f32
    %784 = vector.broadcast %cst_260 : f32 to vector<16x128xf32>
    %785 = arith.mulf %784, %783 : vector<16x128xf32>
    %cst_261 = arith.constant 5.000000e-01 : f32
    %786 = vector.broadcast %cst_261 : f32 to vector<16x128xf32>
    %787 = arith.addf %785, %786 : vector<16x128xf32>
    %788 = arith.mulf %777, %691 : vector<16x128xf32>
    %789 = arith.mulf %769, %779 : vector<16x128xf32>
    %790 = arith.addf %788, %789 : vector<16x128xf32>
    %791 = math.tanh %790 : vector<16x128xf32>
    %792 = arith.mulf %787, %791 : vector<16x128xf32>
    %cst_262 = arith.constant 0.000000e+00 : f32
    %793 = vector.broadcast %cst_262 : f32 to vector<16x128xf32>
    %794 = arith.select %754, %792, %793 : vector<16x128xi1>, vector<16x128xf32>
    %795 = arith.select %754, %792, %690 : vector<16x128xi1>, vector<16x128xf32>
    %796 = arith.select %754, %790, %691 : vector<16x128xi1>, vector<16x128xf32>
    %797 = arith.truncf %794 : vector<16x128xf32> to vector<16x128xbf16>
    %798 = arith.index_cast %c7_i32_248 : i32 to index
    %c0_263 = arith.constant 0 : index
    %c0_264 = arith.constant 0 : index
    %799 = vector.load %arg6[%798, %c0_263, %c0_264] : memref<8x16x128xbf16, #tpu.memory_space<vmem>>, vector<1x16x128xbf16>
    %800 = vector.shape_cast %799 : vector<1x16x128xbf16> to vector<16x128xbf16>
    %801 = vector.shape_cast %797 : vector<16x128xbf16> to vector<1x16x128xbf16>
    tpu.vector_store %arg6[%798, %c0_263, %c0_264], %801 {strides = array<i32>} : memref<8x16x128xbf16, #tpu.memory_space<vmem>>, vector<1x16x128xbf16>,
    %c7_i32_265 = arith.constant 7 : i32
    %802 = arith.subi %c7_i32_265, %c7_i32_248 : i32
    %803 = arith.addi %10, %802 : i32
    %804 = vector.broadcast %803 : i32 to vector<16x1xi32>
    %805 = arith.cmpi slt, %804, %3 : vector<16x1xi32>
    %806 = vector.shape_cast %805 : vector<16x1xi1> to vector<16x1xi1>
    %807 = vector.broadcast %806 : vector<16x1xi1> to vector<16x128xi1>
    %c0_266 = arith.constant 0 : index
    %808 = arith.index_cast %802 : i32 to index
    %c0_267 = arith.constant 0 : index
    %c0_268 = arith.constant 0 : index
    %809 = vector.load %arg3[%c0_266, %808, %c0_267, %c0_268] : memref<1x8x16x512xbf16, #tpu.memory_space<vmem>>, vector<1x1x16x512xbf16>
    %810 = vector.shape_cast %809 : vector<1x1x16x512xbf16> to vector<16x512xbf16>
    %811 = arith.extf %810 : vector<16x512xbf16> to vector<16x512xf32>
    %812 = arith.truncf %743 : vector<16x128xf32> to vector<16x128xbf16>
    %cst_269 = arith.constant dense<0.000000e+00> : vector<16x512xf32>
    %813 = tpu.matmul %812, %7, %cst_269 {dimension_numbers = #tpu.dot_dimension_numbers<[1], [0], [0], [1], [0, 0, 1, 1], [], []>} : vector<16x128xbf16>, vector<128x512xbf16>, vector<16x512xf32> -> vector<16x512xf32>
    %814 = arith.addf %811, %813 : vector<16x512xf32>
    %815 = vector.extract_strided_slice %814 {offsets = [0, 0], sizes = [16, 128], strides = [1, 1]} : vector<16x512xf32> to vector<16x128xf32>
    %cst_270 = arith.constant 5.000000e-01 : f32
    %816 = vector.broadcast %cst_270 : f32 to vector<16x128xf32>
    %817 = arith.mulf %816, %815 : vector<16x128xf32>
    %818 = math.tanh %817 : vector<16x128xf32>
    %cst_271 = arith.constant 5.000000e-01 : f32
    %819 = vector.broadcast %cst_271 : f32 to vector<16x128xf32>
    %820 = arith.mulf %819, %818 : vector<16x128xf32>
    %cst_272 = arith.constant 5.000000e-01 : f32
    %821 = vector.broadcast %cst_272 : f32 to vector<16x128xf32>
    %822 = arith.addf %820, %821 : vector<16x128xf32>
    %823 = vector.extract_strided_slice %814 {offsets = [0, 128], sizes = [16, 128], strides = [1, 1]} : vector<16x512xf32> to vector<16x128xf32>
    %cst_273 = arith.constant 5.000000e-01 : f32
    %824 = vector.broadcast %cst_273 : f32 to vector<16x128xf32>
    %825 = arith.mulf %824, %823 : vector<16x128xf32>
    %826 = math.tanh %825 : vector<16x128xf32>
    %cst_274 = arith.constant 5.000000e-01 : f32
    %827 = vector.broadcast %cst_274 : f32 to vector<16x128xf32>
    %828 = arith.mulf %827, %826 : vector<16x128xf32>
    %cst_275 = arith.constant 5.000000e-01 : f32
    %829 = vector.broadcast %cst_275 : f32 to vector<16x128xf32>
    %830 = arith.addf %828, %829 : vector<16x128xf32>
    %831 = vector.extract_strided_slice %814 {offsets = [0, 256], sizes = [16, 128], strides = [1, 1]} : vector<16x512xf32> to vector<16x128xf32>
    %832 = math.tanh %831 : vector<16x128xf32>
    %833 = vector.extract_strided_slice %814 {offsets = [0, 384], sizes = [16, 128], strides = [1, 1]} : vector<16x512xf32> to vector<16x128xf32>
    %cst_276 = arith.constant 5.000000e-01 : f32
    %834 = vector.broadcast %cst_276 : f32 to vector<16x128xf32>
    %835 = arith.mulf %834, %833 : vector<16x128xf32>
    %836 = math.tanh %835 : vector<16x128xf32>
    %cst_277 = arith.constant 5.000000e-01 : f32
    %837 = vector.broadcast %cst_277 : f32 to vector<16x128xf32>
    %838 = arith.mulf %837, %836 : vector<16x128xf32>
    %cst_278 = arith.constant 5.000000e-01 : f32
    %839 = vector.broadcast %cst_278 : f32 to vector<16x128xf32>
    %840 = arith.addf %838, %839 : vector<16x128xf32>
    %841 = arith.mulf %830, %744 : vector<16x128xf32>
    %842 = arith.mulf %822, %832 : vector<16x128xf32>
    %843 = arith.addf %841, %842 : vector<16x128xf32>
    %844 = math.tanh %843 : vector<16x128xf32>
    %845 = arith.mulf %840, %844 : vector<16x128xf32>
    %cst_279 = arith.constant 0.000000e+00 : f32
    %846 = vector.broadcast %cst_279 : f32 to vector<16x128xf32>
    %847 = arith.select %807, %845, %846 : vector<16x128xi1>, vector<16x128xf32>
    %848 = arith.select %807, %845, %743 : vector<16x128xi1>, vector<16x128xf32>
    %849 = arith.select %807, %843, %744 : vector<16x128xi1>, vector<16x128xf32>
    %850 = arith.truncf %847 : vector<16x128xf32> to vector<16x128xbf16>
    %851 = arith.index_cast %802 : i32 to index
    %c0_280 = arith.constant 0 : index
    %c0_281 = arith.constant 0 : index
    %852 = vector.load %arg7[%851, %c0_280, %c0_281] : memref<8x16x128xbf16, #tpu.memory_space<vmem>>, vector<1x16x128xbf16>
    %853 = vector.shape_cast %852 : vector<1x16x128xbf16> to vector<16x128xbf16>
    %854 = vector.shape_cast %850 : vector<16x128xbf16> to vector<1x16x128xbf16>
    tpu.vector_store %arg7[%851, %c0_280, %c0_281], %854 {strides = array<i32>} : memref<8x16x128xbf16, #tpu.memory_space<vmem>>, vector<1x16x128xbf16>,
    %c8_i32_282 = arith.constant 8 : i32
    %c0_283 = arith.constant 0 : index
    %c0_284 = arith.constant 0 : index
    %855 = vector.load %arg12[%c0_283, %c0_284] : memref<16x128xf32, #tpu.memory_space<vmem>>, vector<16x128xf32>
    tpu.vector_store %arg12[%c0_283, %c0_284], %795 {strides = array<i32>} : memref<16x128xf32, #tpu.memory_space<vmem>>, vector<16x128xf32>,
    %c0_285 = arith.constant 0 : index
    %c0_286 = arith.constant 0 : index
    %856 = vector.load %arg13[%c0_285, %c0_286] : memref<16x128xf32, #tpu.memory_space<vmem>>, vector<16x128xf32>
    tpu.vector_store %arg13[%c0_285, %c0_286], %796 {strides = array<i32>} : memref<16x128xf32, #tpu.memory_space<vmem>>, vector<16x128xf32>,
    %c0_287 = arith.constant 0 : index
    %c0_288 = arith.constant 0 : index
    %857 = vector.load %arg14[%c0_287, %c0_288] : memref<16x128xf32, #tpu.memory_space<vmem>>, vector<16x128xf32>
    tpu.vector_store %arg14[%c0_287, %c0_288], %848 {strides = array<i32>} : memref<16x128xf32, #tpu.memory_space<vmem>>, vector<16x128xf32>,
    %c0_289 = arith.constant 0 : index
    %c0_290 = arith.constant 0 : index
    %858 = vector.load %arg15[%c0_289, %c0_290] : memref<16x128xf32, #tpu.memory_space<vmem>>, vector<16x128xf32>
    tpu.vector_store %arg15[%c0_289, %c0_290], %849 {strides = array<i32>} : memref<16x128xf32, #tpu.memory_space<vmem>>, vector<16x128xf32>,
    %c0_i32_291 = arith.constant 0 : i32
    %859 = arith.cmpi eq, %arg0, %c0_i32_291 : i32
    %860 = arith.extui %859 : i1 to i32
    %c0_i32_292 = arith.constant 0 : i32
    %861 = arith.cmpi ne, %860, %c0_i32_292 : i32
    scf.if %861 {
      %c0_293 = arith.constant 0 : index
      %c0_294 = arith.constant 0 : index
      %862 = vector.load %arg8[%c0_293, %c0_294] : memref<16x128xf32, #tpu.memory_space<vmem>>, vector<16x128xf32>
      tpu.vector_store %arg8[%c0_293, %c0_294], %795 {strides = array<i32>} : memref<16x128xf32, #tpu.memory_space<vmem>>, vector<16x128xf32>,
      %c0_295 = arith.constant 0 : index
      %c0_296 = arith.constant 0 : index
      %863 = vector.load %arg9[%c0_295, %c0_296] : memref<16x128xf32, #tpu.memory_space<vmem>>, vector<16x128xf32>
      tpu.vector_store %arg9[%c0_295, %c0_296], %796 {strides = array<i32>} : memref<16x128xf32, #tpu.memory_space<vmem>>, vector<16x128xf32>,
      %c0_297 = arith.constant 0 : index
      %c0_298 = arith.constant 0 : index
      %864 = vector.load %arg10[%c0_297, %c0_298] : memref<16x128xf32, #tpu.memory_space<vmem>>, vector<16x128xf32>
      tpu.vector_store %arg10[%c0_297, %c0_298], %848 {strides = array<i32>} : memref<16x128xf32, #tpu.memory_space<vmem>>, vector<16x128xf32>,
      %c0_299 = arith.constant 0 : index
      %c0_300 = arith.constant 0 : index
      %865 = vector.load %arg11[%c0_299, %c0_300] : memref<16x128xf32, #tpu.memory_space<vmem>>, vector<16x128xf32>
      tpu.vector_store %arg11[%c0_299, %c0_300], %849 {strides = array<i32>} : memref<16x128xf32, #tpu.memory_space<vmem>>, vector<16x128xf32>,
    } else {
    }
    return
  }
  func.func @transform_0(%arg0: i32) -> (i32, i32) {
    %c0_i32 = arith.constant 0 : i32
    %c0_i32_0 = arith.constant 0 : i32
    %c0_i32_1 = arith.constant 0 : i32
    return %c0_i32, %c0_i32_0 : i32, i32
  }
  func.func @transform_1(%arg0: i32) -> (i32, i32, i32, i32) {
    %c0_i32 = arith.constant 0 : i32
    %c0_i32_0 = arith.constant 0 : i32
    %c0_i32_1 = arith.constant 0 : i32
    %c0_i32_2 = arith.constant 0 : i32
    return %c0_i32, %arg0, %c0_i32_0, %c0_i32_1 : i32, i32, i32, i32
  }
  func.func @transform_2(%arg0: i32) -> (i32, i32, i32, i32) {
    %c0_i32 = arith.constant 0 : i32
    %0 = arith.subi %c0_i32, %arg0 : i32
    %c1_i32 = arith.constant 1 : i32
    %c0_i32_0 = arith.constant 0 : i32
    %c0_i32_1 = arith.constant 0 : i32
    %c0_i32_2 = arith.constant 0 : i32
    return %c1_i32, %0, %c0_i32_0, %c0_i32_1 : i32, i32, i32, i32
  }
  func.func @transform_3(%arg0: i32) -> (i32, i32, i32) {
    %c0_i32 = arith.constant 0 : i32
    %c0_i32_0 = arith.constant 0 : i32
    %c0_i32_1 = arith.constant 0 : i32
    %c0_i32_2 = arith.constant 0 : i32
    return %c0_i32, %c0_i32_0, %c0_i32_1 : i32, i32, i32
  }
  func.func @transform_4(%arg0: i32) -> (i32, i32, i32) {
    %c1_i32 = arith.constant 1 : i32
    %c0_i32 = arith.constant 0 : i32
    %c0_i32_0 = arith.constant 0 : i32
    %c0_i32_1 = arith.constant 0 : i32
    return %c1_i32, %c0_i32, %c0_i32_0 : i32, i32, i32
  }
  func.func @transform_5(%arg0: i32) -> (i32, i32, i32) {
    %c0_i32 = arith.constant 0 : i32
    %c0_i32_0 = arith.constant 0 : i32
    %c0_i32_1 = arith.constant 0 : i32
    return %arg0, %c0_i32, %c0_i32_0 : i32, i32, i32
  }
  func.func @transform_6(%arg0: i32) -> (i32, i32, i32) {
    %c0_i32 = arith.constant 0 : i32
    %0 = arith.subi %c0_i32, %arg0 : i32
    %c0_i32_0 = arith.constant 0 : i32
    %c0_i32_1 = arith.constant 0 : i32
    %c0_i32_2 = arith.constant 0 : i32
    return %0, %c0_i32_0, %c0_i32_1 : i32, i32, i32
  }
  func.func @transform_7(%arg0: i32) -> (i32, i32) {
    %c0_i32 = arith.constant 0 : i32
    %c0_i32_0 = arith.constant 0 : i32
    %c0_i32_1 = arith.constant 0 : i32
    return %c0_i32, %c0_i32_0 : i32, i32
  }
  func.func @transform_8(%arg0: i32) -> (i32, i32) {
    %c0_i32 = arith.constant 0 : i32
    %c0_i32_0 = arith.constant 0 : i32
    %c0_i32_1 = arith.constant 0 : i32
    return %c0_i32, %c0_i32_0 : i32, i32
  }
  func.func @transform_9(%arg0: i32) -> (i32, i32) {
    %c0_i32 = arith.constant 0 : i32
    %c0_i32_0 = arith.constant 0 : i32
    %c0_i32_1 = arith.constant 0 : i32
    return %c0_i32, %c0_i32_0 : i32, i32
  }
  func.func @transform_10(%arg0: i32) -> (i32, i32) {
    %c0_i32 = arith.constant 0 : i32
    %c0_i32_0 = arith.constant 0 : i32
    %c0_i32_1 = arith.constant 0 : i32
    return %c0_i32, %c0_i32_0 : i32, i32
  }
}

module attributes {stable_mosaic.version = 11 : i64} {
  func.func @_lstm_dir_kernel(%arg0: i32, %arg1: i32, %arg2: memref<16x1xi32, #tpu.memory_space<vmem>>, %arg3: memref<1x8x16x512xbf16, #tpu.memory_space<vmem>>, %arg4: memref<1x128x512xbf16, #tpu.memory_space<vmem>>, %arg5: memref<1x8x16x128xbf16, #tpu.memory_space<vmem>>, %arg6: memref<1x16x128xf32, #tpu.memory_space<vmem>>, %arg7: memref<1x16x128xf32, #tpu.memory_space<vmem>>, %arg8: memref<16x128xf32, #tpu.memory_space<vmem>>, %arg9: memref<16x128xf32, #tpu.memory_space<vmem>>) attributes {dimension_semantics = [#tpu.dimension_semantics<parallel>, #tpu.dimension_semantics<arbitrary>], iteration_bounds = array<i64: 1, 1>, scalar_prefetch = 0 : i64, scratch_operands = 2 : i64, tpu.core_type = #tpu.core_type<tc>, window_params = [{pipeline_mode = #tpu.pipeline_mode<synchronous>, transform_indices = @transform_0, window_bounds = array<i64: 16, 1>}, {transform_indices = @transform_1, window_bounds = array<i64: 1, 8, 16, 512>}, {transform_indices = @transform_2, window_bounds = array<i64: 1, 128, 512>}, {transform_indices = @transform_3, window_bounds = array<i64: 1, 8, 16, 128>}, {transform_indices = @transform_4, window_bounds = array<i64: 1, 16, 128>}, {transform_indices = @transform_5, window_bounds = array<i64: 1, 16, 128>}]} {
    %c0_i32 = arith.constant 0 : i32
    %0 = arith.cmpi eq, %arg1, %c0_i32 : i32
    %1 = arith.extui %0 : i1 to i32
    %c0_i32_0 = arith.constant 0 : i32
    %2 = arith.cmpi ne, %1, %c0_i32_0 : i32
    scf.if %2 {
      %cst_152 = arith.constant 0.000000e+00 : f32
      %430 = vector.broadcast %cst_152 : f32 to vector<16x128xf32>
      %c0_153 = arith.constant 0 : index
      %c0_154 = arith.constant 0 : index
      %431 = vector.load %arg8[%c0_153, %c0_154] : memref<16x128xf32, #tpu.memory_space<vmem>>, vector<16x128xf32>
      tpu.vector_store %arg8[%c0_153, %c0_154], %430 {strides = array<i32>} : memref<16x128xf32, #tpu.memory_space<vmem>>, vector<16x128xf32>,
      %cst_155 = arith.constant 0.000000e+00 : f32
      %432 = vector.broadcast %cst_155 : f32 to vector<16x128xf32>
      %c0_156 = arith.constant 0 : index
      %c0_157 = arith.constant 0 : index
      %433 = vector.load %arg9[%c0_156, %c0_157] : memref<16x128xf32, #tpu.memory_space<vmem>>, vector<16x128xf32>
      tpu.vector_store %arg9[%c0_156, %c0_157], %432 {strides = array<i32>} : memref<16x128xf32, #tpu.memory_space<vmem>>, vector<16x128xf32>,
    } else {
    }
    %c0 = arith.constant 0 : index
    %c0_1 = arith.constant 0 : index
    %3 = vector.load %arg2[%c0, %c0_1] : memref<16x1xi32, #tpu.memory_space<vmem>>, vector<16x1xi32>
    %c0_2 = arith.constant 0 : index
    %c0_3 = arith.constant 0 : index
    %c0_4 = arith.constant 0 : index
    %4 = vector.load %arg4[%c0_2, %c0_3, %c0_4] : memref<1x128x512xbf16, #tpu.memory_space<vmem>>, vector<1x128x512xbf16>
    %5 = vector.shape_cast %4 : vector<1x128x512xbf16> to vector<128x512xbf16>
    %c8_i32 = arith.constant 8 : i32
    %6 = arith.muli %arg1, %c8_i32 : i32
    %c0_5 = arith.constant 0 : index
    %c0_6 = arith.constant 0 : index
    %7 = vector.load %arg8[%c0_5, %c0_6] : memref<16x128xf32, #tpu.memory_space<vmem>>, vector<16x128xf32>
    %c0_7 = arith.constant 0 : index
    %c0_8 = arith.constant 0 : index
    %8 = vector.load %arg9[%c0_7, %c0_8] : memref<16x128xf32, #tpu.memory_space<vmem>>, vector<16x128xf32>
    %c0_i32_9 = arith.constant 0 : i32
    %9 = arith.addi %6, %c0_i32_9 : i32
    %10 = vector.broadcast %9 : i32 to vector<16x1xi32>
    %11 = arith.cmpi slt, %10, %3 : vector<16x1xi32>
    %12 = vector.shape_cast %11 : vector<16x1xi1> to vector<16x1xi1>
    %13 = vector.broadcast %12 : vector<16x1xi1> to vector<16x128xi1>
    %c0_10 = arith.constant 0 : index
    %14 = arith.index_cast %c0_i32_9 : i32 to index
    %c0_11 = arith.constant 0 : index
    %c0_12 = arith.constant 0 : index
    %15 = vector.load %arg3[%c0_10, %14, %c0_11, %c0_12] : memref<1x8x16x512xbf16, #tpu.memory_space<vmem>>, vector<1x1x16x512xbf16>
    %16 = vector.shape_cast %15 : vector<1x1x16x512xbf16> to vector<16x512xbf16>
    %17 = arith.extf %16 : vector<16x512xbf16> to vector<16x512xf32>
    %18 = arith.truncf %7 : vector<16x128xf32> to vector<16x128xbf16>
    %cst = arith.constant dense<0.000000e+00> : vector<16x512xf32>
    %19 = tpu.matmul %18, %5, %cst {dimension_numbers = #tpu.dot_dimension_numbers<[1], [0], [0], [1], [0, 0, 1, 1], [], []>} : vector<16x128xbf16>, vector<128x512xbf16>, vector<16x512xf32> -> vector<16x512xf32>
    %20 = arith.addf %17, %19 : vector<16x512xf32>
    %21 = vector.extract_strided_slice %20 {offsets = [0, 0], sizes = [16, 128], strides = [1, 1]} : vector<16x512xf32> to vector<16x128xf32>
    %cst_13 = arith.constant 5.000000e-01 : f32
    %22 = vector.broadcast %cst_13 : f32 to vector<16x128xf32>
    %23 = arith.mulf %22, %21 : vector<16x128xf32>
    %24 = math.tanh %23 : vector<16x128xf32>
    %cst_14 = arith.constant 5.000000e-01 : f32
    %25 = vector.broadcast %cst_14 : f32 to vector<16x128xf32>
    %26 = arith.mulf %25, %24 : vector<16x128xf32>
    %cst_15 = arith.constant 5.000000e-01 : f32
    %27 = vector.broadcast %cst_15 : f32 to vector<16x128xf32>
    %28 = arith.addf %26, %27 : vector<16x128xf32>
    %29 = vector.extract_strided_slice %20 {offsets = [0, 128], sizes = [16, 128], strides = [1, 1]} : vector<16x512xf32> to vector<16x128xf32>
    %cst_16 = arith.constant 5.000000e-01 : f32
    %30 = vector.broadcast %cst_16 : f32 to vector<16x128xf32>
    %31 = arith.mulf %30, %29 : vector<16x128xf32>
    %32 = math.tanh %31 : vector<16x128xf32>
    %cst_17 = arith.constant 5.000000e-01 : f32
    %33 = vector.broadcast %cst_17 : f32 to vector<16x128xf32>
    %34 = arith.mulf %33, %32 : vector<16x128xf32>
    %cst_18 = arith.constant 5.000000e-01 : f32
    %35 = vector.broadcast %cst_18 : f32 to vector<16x128xf32>
    %36 = arith.addf %34, %35 : vector<16x128xf32>
    %37 = vector.extract_strided_slice %20 {offsets = [0, 256], sizes = [16, 128], strides = [1, 1]} : vector<16x512xf32> to vector<16x128xf32>
    %38 = math.tanh %37 : vector<16x128xf32>
    %39 = vector.extract_strided_slice %20 {offsets = [0, 384], sizes = [16, 128], strides = [1, 1]} : vector<16x512xf32> to vector<16x128xf32>
    %cst_19 = arith.constant 5.000000e-01 : f32
    %40 = vector.broadcast %cst_19 : f32 to vector<16x128xf32>
    %41 = arith.mulf %40, %39 : vector<16x128xf32>
    %42 = math.tanh %41 : vector<16x128xf32>
    %cst_20 = arith.constant 5.000000e-01 : f32
    %43 = vector.broadcast %cst_20 : f32 to vector<16x128xf32>
    %44 = arith.mulf %43, %42 : vector<16x128xf32>
    %cst_21 = arith.constant 5.000000e-01 : f32
    %45 = vector.broadcast %cst_21 : f32 to vector<16x128xf32>
    %46 = arith.addf %44, %45 : vector<16x128xf32>
    %47 = arith.mulf %36, %8 : vector<16x128xf32>
    %48 = arith.mulf %28, %38 : vector<16x128xf32>
    %49 = arith.addf %47, %48 : vector<16x128xf32>
    %50 = math.tanh %49 : vector<16x128xf32>
    %51 = arith.mulf %46, %50 : vector<16x128xf32>
    %cst_22 = arith.constant 0.000000e+00 : f32
    %52 = vector.broadcast %cst_22 : f32 to vector<16x128xf32>
    %53 = arith.select %13, %51, %52 : vector<16x128xi1>, vector<16x128xf32>
    %54 = arith.select %13, %51, %7 : vector<16x128xi1>, vector<16x128xf32>
    %55 = arith.select %13, %49, %8 : vector<16x128xi1>, vector<16x128xf32>
    %56 = arith.truncf %53 : vector<16x128xf32> to vector<16x128xbf16>
    %c0_23 = arith.constant 0 : index
    %57 = arith.index_cast %c0_i32_9 : i32 to index
    %c0_24 = arith.constant 0 : index
    %c0_25 = arith.constant 0 : index
    %58 = vector.load %arg5[%c0_23, %57, %c0_24, %c0_25] : memref<1x8x16x128xbf16, #tpu.memory_space<vmem>>, vector<1x1x16x128xbf16>
    %59 = vector.shape_cast %58 : vector<1x1x16x128xbf16> to vector<16x128xbf16>
    %60 = vector.shape_cast %56 : vector<16x128xbf16> to vector<1x1x16x128xbf16>
    tpu.vector_store %arg5[%c0_23, %57, %c0_24, %c0_25], %60 {strides = array<i32>} : memref<1x8x16x128xbf16, #tpu.memory_space<vmem>>, vector<1x1x16x128xbf16>,
    %c1_i32 = arith.constant 1 : i32
    %61 = arith.addi %6, %c1_i32 : i32
    %62 = vector.broadcast %61 : i32 to vector<16x1xi32>
    %63 = arith.cmpi slt, %62, %3 : vector<16x1xi32>
    %64 = vector.shape_cast %63 : vector<16x1xi1> to vector<16x1xi1>
    %65 = vector.broadcast %64 : vector<16x1xi1> to vector<16x128xi1>
    %c0_26 = arith.constant 0 : index
    %66 = arith.index_cast %c1_i32 : i32 to index
    %c0_27 = arith.constant 0 : index
    %c0_28 = arith.constant 0 : index
    %67 = vector.load %arg3[%c0_26, %66, %c0_27, %c0_28] : memref<1x8x16x512xbf16, #tpu.memory_space<vmem>>, vector<1x1x16x512xbf16>
    %68 = vector.shape_cast %67 : vector<1x1x16x512xbf16> to vector<16x512xbf16>
    %69 = arith.extf %68 : vector<16x512xbf16> to vector<16x512xf32>
    %70 = arith.truncf %54 : vector<16x128xf32> to vector<16x128xbf16>
    %cst_29 = arith.constant dense<0.000000e+00> : vector<16x512xf32>
    %71 = tpu.matmul %70, %5, %cst_29 {dimension_numbers = #tpu.dot_dimension_numbers<[1], [0], [0], [1], [0, 0, 1, 1], [], []>} : vector<16x128xbf16>, vector<128x512xbf16>, vector<16x512xf32> -> vector<16x512xf32>
    %72 = arith.addf %69, %71 : vector<16x512xf32>
    %73 = vector.extract_strided_slice %72 {offsets = [0, 0], sizes = [16, 128], strides = [1, 1]} : vector<16x512xf32> to vector<16x128xf32>
    %cst_30 = arith.constant 5.000000e-01 : f32
    %74 = vector.broadcast %cst_30 : f32 to vector<16x128xf32>
    %75 = arith.mulf %74, %73 : vector<16x128xf32>
    %76 = math.tanh %75 : vector<16x128xf32>
    %cst_31 = arith.constant 5.000000e-01 : f32
    %77 = vector.broadcast %cst_31 : f32 to vector<16x128xf32>
    %78 = arith.mulf %77, %76 : vector<16x128xf32>
    %cst_32 = arith.constant 5.000000e-01 : f32
    %79 = vector.broadcast %cst_32 : f32 to vector<16x128xf32>
    %80 = arith.addf %78, %79 : vector<16x128xf32>
    %81 = vector.extract_strided_slice %72 {offsets = [0, 128], sizes = [16, 128], strides = [1, 1]} : vector<16x512xf32> to vector<16x128xf32>
    %cst_33 = arith.constant 5.000000e-01 : f32
    %82 = vector.broadcast %cst_33 : f32 to vector<16x128xf32>
    %83 = arith.mulf %82, %81 : vector<16x128xf32>
    %84 = math.tanh %83 : vector<16x128xf32>
    %cst_34 = arith.constant 5.000000e-01 : f32
    %85 = vector.broadcast %cst_34 : f32 to vector<16x128xf32>
    %86 = arith.mulf %85, %84 : vector<16x128xf32>
    %cst_35 = arith.constant 5.000000e-01 : f32
    %87 = vector.broadcast %cst_35 : f32 to vector<16x128xf32>
    %88 = arith.addf %86, %87 : vector<16x128xf32>
    %89 = vector.extract_strided_slice %72 {offsets = [0, 256], sizes = [16, 128], strides = [1, 1]} : vector<16x512xf32> to vector<16x128xf32>
    %90 = math.tanh %89 : vector<16x128xf32>
    %91 = vector.extract_strided_slice %72 {offsets = [0, 384], sizes = [16, 128], strides = [1, 1]} : vector<16x512xf32> to vector<16x128xf32>
    %cst_36 = arith.constant 5.000000e-01 : f32
    %92 = vector.broadcast %cst_36 : f32 to vector<16x128xf32>
    %93 = arith.mulf %92, %91 : vector<16x128xf32>
    %94 = math.tanh %93 : vector<16x128xf32>
    %cst_37 = arith.constant 5.000000e-01 : f32
    %95 = vector.broadcast %cst_37 : f32 to vector<16x128xf32>
    %96 = arith.mulf %95, %94 : vector<16x128xf32>
    %cst_38 = arith.constant 5.000000e-01 : f32
    %97 = vector.broadcast %cst_38 : f32 to vector<16x128xf32>
    %98 = arith.addf %96, %97 : vector<16x128xf32>
    %99 = arith.mulf %88, %55 : vector<16x128xf32>
    %100 = arith.mulf %80, %90 : vector<16x128xf32>
    %101 = arith.addf %99, %100 : vector<16x128xf32>
    %102 = math.tanh %101 : vector<16x128xf32>
    %103 = arith.mulf %98, %102 : vector<16x128xf32>
    %cst_39 = arith.constant 0.000000e+00 : f32
    %104 = vector.broadcast %cst_39 : f32 to vector<16x128xf32>
    %105 = arith.select %65, %103, %104 : vector<16x128xi1>, vector<16x128xf32>
    %106 = arith.select %65, %103, %54 : vector<16x128xi1>, vector<16x128xf32>
    %107 = arith.select %65, %101, %55 : vector<16x128xi1>, vector<16x128xf32>
    %108 = arith.truncf %105 : vector<16x128xf32> to vector<16x128xbf16>
    %c0_40 = arith.constant 0 : index
    %109 = arith.index_cast %c1_i32 : i32 to index
    %c0_41 = arith.constant 0 : index
    %c0_42 = arith.constant 0 : index
    %110 = vector.load %arg5[%c0_40, %109, %c0_41, %c0_42] : memref<1x8x16x128xbf16, #tpu.memory_space<vmem>>, vector<1x1x16x128xbf16>
    %111 = vector.shape_cast %110 : vector<1x1x16x128xbf16> to vector<16x128xbf16>
    %112 = vector.shape_cast %108 : vector<16x128xbf16> to vector<1x1x16x128xbf16>
    tpu.vector_store %arg5[%c0_40, %109, %c0_41, %c0_42], %112 {strides = array<i32>} : memref<1x8x16x128xbf16, #tpu.memory_space<vmem>>, vector<1x1x16x128xbf16>,
    %c2_i32 = arith.constant 2 : i32
    %113 = arith.addi %6, %c2_i32 : i32
    %114 = vector.broadcast %113 : i32 to vector<16x1xi32>
    %115 = arith.cmpi slt, %114, %3 : vector<16x1xi32>
    %116 = vector.shape_cast %115 : vector<16x1xi1> to vector<16x1xi1>
    %117 = vector.broadcast %116 : vector<16x1xi1> to vector<16x128xi1>
    %c0_43 = arith.constant 0 : index
    %118 = arith.index_cast %c2_i32 : i32 to index
    %c0_44 = arith.constant 0 : index
    %c0_45 = arith.constant 0 : index
    %119 = vector.load %arg3[%c0_43, %118, %c0_44, %c0_45] : memref<1x8x16x512xbf16, #tpu.memory_space<vmem>>, vector<1x1x16x512xbf16>
    %120 = vector.shape_cast %119 : vector<1x1x16x512xbf16> to vector<16x512xbf16>
    %121 = arith.extf %120 : vector<16x512xbf16> to vector<16x512xf32>
    %122 = arith.truncf %106 : vector<16x128xf32> to vector<16x128xbf16>
    %cst_46 = arith.constant dense<0.000000e+00> : vector<16x512xf32>
    %123 = tpu.matmul %122, %5, %cst_46 {dimension_numbers = #tpu.dot_dimension_numbers<[1], [0], [0], [1], [0, 0, 1, 1], [], []>} : vector<16x128xbf16>, vector<128x512xbf16>, vector<16x512xf32> -> vector<16x512xf32>
    %124 = arith.addf %121, %123 : vector<16x512xf32>
    %125 = vector.extract_strided_slice %124 {offsets = [0, 0], sizes = [16, 128], strides = [1, 1]} : vector<16x512xf32> to vector<16x128xf32>
    %cst_47 = arith.constant 5.000000e-01 : f32
    %126 = vector.broadcast %cst_47 : f32 to vector<16x128xf32>
    %127 = arith.mulf %126, %125 : vector<16x128xf32>
    %128 = math.tanh %127 : vector<16x128xf32>
    %cst_48 = arith.constant 5.000000e-01 : f32
    %129 = vector.broadcast %cst_48 : f32 to vector<16x128xf32>
    %130 = arith.mulf %129, %128 : vector<16x128xf32>
    %cst_49 = arith.constant 5.000000e-01 : f32
    %131 = vector.broadcast %cst_49 : f32 to vector<16x128xf32>
    %132 = arith.addf %130, %131 : vector<16x128xf32>
    %133 = vector.extract_strided_slice %124 {offsets = [0, 128], sizes = [16, 128], strides = [1, 1]} : vector<16x512xf32> to vector<16x128xf32>
    %cst_50 = arith.constant 5.000000e-01 : f32
    %134 = vector.broadcast %cst_50 : f32 to vector<16x128xf32>
    %135 = arith.mulf %134, %133 : vector<16x128xf32>
    %136 = math.tanh %135 : vector<16x128xf32>
    %cst_51 = arith.constant 5.000000e-01 : f32
    %137 = vector.broadcast %cst_51 : f32 to vector<16x128xf32>
    %138 = arith.mulf %137, %136 : vector<16x128xf32>
    %cst_52 = arith.constant 5.000000e-01 : f32
    %139 = vector.broadcast %cst_52 : f32 to vector<16x128xf32>
    %140 = arith.addf %138, %139 : vector<16x128xf32>
    %141 = vector.extract_strided_slice %124 {offsets = [0, 256], sizes = [16, 128], strides = [1, 1]} : vector<16x512xf32> to vector<16x128xf32>
    %142 = math.tanh %141 : vector<16x128xf32>
    %143 = vector.extract_strided_slice %124 {offsets = [0, 384], sizes = [16, 128], strides = [1, 1]} : vector<16x512xf32> to vector<16x128xf32>
    %cst_53 = arith.constant 5.000000e-01 : f32
    %144 = vector.broadcast %cst_53 : f32 to vector<16x128xf32>
    %145 = arith.mulf %144, %143 : vector<16x128xf32>
    %146 = math.tanh %145 : vector<16x128xf32>
    %cst_54 = arith.constant 5.000000e-01 : f32
    %147 = vector.broadcast %cst_54 : f32 to vector<16x128xf32>
    %148 = arith.mulf %147, %146 : vector<16x128xf32>
    %cst_55 = arith.constant 5.000000e-01 : f32
    %149 = vector.broadcast %cst_55 : f32 to vector<16x128xf32>
    %150 = arith.addf %148, %149 : vector<16x128xf32>
    %151 = arith.mulf %140, %107 : vector<16x128xf32>
    %152 = arith.mulf %132, %142 : vector<16x128xf32>
    %153 = arith.addf %151, %152 : vector<16x128xf32>
    %154 = math.tanh %153 : vector<16x128xf32>
    %155 = arith.mulf %150, %154 : vector<16x128xf32>
    %cst_56 = arith.constant 0.000000e+00 : f32
    %156 = vector.broadcast %cst_56 : f32 to vector<16x128xf32>
    %157 = arith.select %117, %155, %156 : vector<16x128xi1>, vector<16x128xf32>
    %158 = arith.select %117, %155, %106 : vector<16x128xi1>, vector<16x128xf32>
    %159 = arith.select %117, %153, %107 : vector<16x128xi1>, vector<16x128xf32>
    %160 = arith.truncf %157 : vector<16x128xf32> to vector<16x128xbf16>
    %c0_57 = arith.constant 0 : index
    %161 = arith.index_cast %c2_i32 : i32 to index
    %c0_58 = arith.constant 0 : index
    %c0_59 = arith.constant 0 : index
    %162 = vector.load %arg5[%c0_57, %161, %c0_58, %c0_59] : memref<1x8x16x128xbf16, #tpu.memory_space<vmem>>, vector<1x1x16x128xbf16>
    %163 = vector.shape_cast %162 : vector<1x1x16x128xbf16> to vector<16x128xbf16>
    %164 = vector.shape_cast %160 : vector<16x128xbf16> to vector<1x1x16x128xbf16>
    tpu.vector_store %arg5[%c0_57, %161, %c0_58, %c0_59], %164 {strides = array<i32>} : memref<1x8x16x128xbf16, #tpu.memory_space<vmem>>, vector<1x1x16x128xbf16>,
    %c3_i32 = arith.constant 3 : i32
    %165 = arith.addi %6, %c3_i32 : i32
    %166 = vector.broadcast %165 : i32 to vector<16x1xi32>
    %167 = arith.cmpi slt, %166, %3 : vector<16x1xi32>
    %168 = vector.shape_cast %167 : vector<16x1xi1> to vector<16x1xi1>
    %169 = vector.broadcast %168 : vector<16x1xi1> to vector<16x128xi1>
    %c0_60 = arith.constant 0 : index
    %170 = arith.index_cast %c3_i32 : i32 to index
    %c0_61 = arith.constant 0 : index
    %c0_62 = arith.constant 0 : index
    %171 = vector.load %arg3[%c0_60, %170, %c0_61, %c0_62] : memref<1x8x16x512xbf16, #tpu.memory_space<vmem>>, vector<1x1x16x512xbf16>
    %172 = vector.shape_cast %171 : vector<1x1x16x512xbf16> to vector<16x512xbf16>
    %173 = arith.extf %172 : vector<16x512xbf16> to vector<16x512xf32>
    %174 = arith.truncf %158 : vector<16x128xf32> to vector<16x128xbf16>
    %cst_63 = arith.constant dense<0.000000e+00> : vector<16x512xf32>
    %175 = tpu.matmul %174, %5, %cst_63 {dimension_numbers = #tpu.dot_dimension_numbers<[1], [0], [0], [1], [0, 0, 1, 1], [], []>} : vector<16x128xbf16>, vector<128x512xbf16>, vector<16x512xf32> -> vector<16x512xf32>
    %176 = arith.addf %173, %175 : vector<16x512xf32>
    %177 = vector.extract_strided_slice %176 {offsets = [0, 0], sizes = [16, 128], strides = [1, 1]} : vector<16x512xf32> to vector<16x128xf32>
    %cst_64 = arith.constant 5.000000e-01 : f32
    %178 = vector.broadcast %cst_64 : f32 to vector<16x128xf32>
    %179 = arith.mulf %178, %177 : vector<16x128xf32>
    %180 = math.tanh %179 : vector<16x128xf32>
    %cst_65 = arith.constant 5.000000e-01 : f32
    %181 = vector.broadcast %cst_65 : f32 to vector<16x128xf32>
    %182 = arith.mulf %181, %180 : vector<16x128xf32>
    %cst_66 = arith.constant 5.000000e-01 : f32
    %183 = vector.broadcast %cst_66 : f32 to vector<16x128xf32>
    %184 = arith.addf %182, %183 : vector<16x128xf32>
    %185 = vector.extract_strided_slice %176 {offsets = [0, 128], sizes = [16, 128], strides = [1, 1]} : vector<16x512xf32> to vector<16x128xf32>
    %cst_67 = arith.constant 5.000000e-01 : f32
    %186 = vector.broadcast %cst_67 : f32 to vector<16x128xf32>
    %187 = arith.mulf %186, %185 : vector<16x128xf32>
    %188 = math.tanh %187 : vector<16x128xf32>
    %cst_68 = arith.constant 5.000000e-01 : f32
    %189 = vector.broadcast %cst_68 : f32 to vector<16x128xf32>
    %190 = arith.mulf %189, %188 : vector<16x128xf32>
    %cst_69 = arith.constant 5.000000e-01 : f32
    %191 = vector.broadcast %cst_69 : f32 to vector<16x128xf32>
    %192 = arith.addf %190, %191 : vector<16x128xf32>
    %193 = vector.extract_strided_slice %176 {offsets = [0, 256], sizes = [16, 128], strides = [1, 1]} : vector<16x512xf32> to vector<16x128xf32>
    %194 = math.tanh %193 : vector<16x128xf32>
    %195 = vector.extract_strided_slice %176 {offsets = [0, 384], sizes = [16, 128], strides = [1, 1]} : vector<16x512xf32> to vector<16x128xf32>
    %cst_70 = arith.constant 5.000000e-01 : f32
    %196 = vector.broadcast %cst_70 : f32 to vector<16x128xf32>
    %197 = arith.mulf %196, %195 : vector<16x128xf32>
    %198 = math.tanh %197 : vector<16x128xf32>
    %cst_71 = arith.constant 5.000000e-01 : f32
    %199 = vector.broadcast %cst_71 : f32 to vector<16x128xf32>
    %200 = arith.mulf %199, %198 : vector<16x128xf32>
    %cst_72 = arith.constant 5.000000e-01 : f32
    %201 = vector.broadcast %cst_72 : f32 to vector<16x128xf32>
    %202 = arith.addf %200, %201 : vector<16x128xf32>
    %203 = arith.mulf %192, %159 : vector<16x128xf32>
    %204 = arith.mulf %184, %194 : vector<16x128xf32>
    %205 = arith.addf %203, %204 : vector<16x128xf32>
    %206 = math.tanh %205 : vector<16x128xf32>
    %207 = arith.mulf %202, %206 : vector<16x128xf32>
    %cst_73 = arith.constant 0.000000e+00 : f32
    %208 = vector.broadcast %cst_73 : f32 to vector<16x128xf32>
    %209 = arith.select %169, %207, %208 : vector<16x128xi1>, vector<16x128xf32>
    %210 = arith.select %169, %207, %158 : vector<16x128xi1>, vector<16x128xf32>
    %211 = arith.select %169, %205, %159 : vector<16x128xi1>, vector<16x128xf32>
    %212 = arith.truncf %209 : vector<16x128xf32> to vector<16x128xbf16>
    %c0_74 = arith.constant 0 : index
    %213 = arith.index_cast %c3_i32 : i32 to index
    %c0_75 = arith.constant 0 : index
    %c0_76 = arith.constant 0 : index
    %214 = vector.load %arg5[%c0_74, %213, %c0_75, %c0_76] : memref<1x8x16x128xbf16, #tpu.memory_space<vmem>>, vector<1x1x16x128xbf16>
    %215 = vector.shape_cast %214 : vector<1x1x16x128xbf16> to vector<16x128xbf16>
    %216 = vector.shape_cast %212 : vector<16x128xbf16> to vector<1x1x16x128xbf16>
    tpu.vector_store %arg5[%c0_74, %213, %c0_75, %c0_76], %216 {strides = array<i32>} : memref<1x8x16x128xbf16, #tpu.memory_space<vmem>>, vector<1x1x16x128xbf16>,
    %c4_i32 = arith.constant 4 : i32
    %217 = arith.addi %6, %c4_i32 : i32
    %218 = vector.broadcast %217 : i32 to vector<16x1xi32>
    %219 = arith.cmpi slt, %218, %3 : vector<16x1xi32>
    %220 = vector.shape_cast %219 : vector<16x1xi1> to vector<16x1xi1>
    %221 = vector.broadcast %220 : vector<16x1xi1> to vector<16x128xi1>
    %c0_77 = arith.constant 0 : index
    %222 = arith.index_cast %c4_i32 : i32 to index
    %c0_78 = arith.constant 0 : index
    %c0_79 = arith.constant 0 : index
    %223 = vector.load %arg3[%c0_77, %222, %c0_78, %c0_79] : memref<1x8x16x512xbf16, #tpu.memory_space<vmem>>, vector<1x1x16x512xbf16>
    %224 = vector.shape_cast %223 : vector<1x1x16x512xbf16> to vector<16x512xbf16>
    %225 = arith.extf %224 : vector<16x512xbf16> to vector<16x512xf32>
    %226 = arith.truncf %210 : vector<16x128xf32> to vector<16x128xbf16>
    %cst_80 = arith.constant dense<0.000000e+00> : vector<16x512xf32>
    %227 = tpu.matmul %226, %5, %cst_80 {dimension_numbers = #tpu.dot_dimension_numbers<[1], [0], [0], [1], [0, 0, 1, 1], [], []>} : vector<16x128xbf16>, vector<128x512xbf16>, vector<16x512xf32> -> vector<16x512xf32>
    %228 = arith.addf %225, %227 : vector<16x512xf32>
    %229 = vector.extract_strided_slice %228 {offsets = [0, 0], sizes = [16, 128], strides = [1, 1]} : vector<16x512xf32> to vector<16x128xf32>
    %cst_81 = arith.constant 5.000000e-01 : f32
    %230 = vector.broadcast %cst_81 : f32 to vector<16x128xf32>
    %231 = arith.mulf %230, %229 : vector<16x128xf32>
    %232 = math.tanh %231 : vector<16x128xf32>
    %cst_82 = arith.constant 5.000000e-01 : f32
    %233 = vector.broadcast %cst_82 : f32 to vector<16x128xf32>
    %234 = arith.mulf %233, %232 : vector<16x128xf32>
    %cst_83 = arith.constant 5.000000e-01 : f32
    %235 = vector.broadcast %cst_83 : f32 to vector<16x128xf32>
    %236 = arith.addf %234, %235 : vector<16x128xf32>
    %237 = vector.extract_strided_slice %228 {offsets = [0, 128], sizes = [16, 128], strides = [1, 1]} : vector<16x512xf32> to vector<16x128xf32>
    %cst_84 = arith.constant 5.000000e-01 : f32
    %238 = vector.broadcast %cst_84 : f32 to vector<16x128xf32>
    %239 = arith.mulf %238, %237 : vector<16x128xf32>
    %240 = math.tanh %239 : vector<16x128xf32>
    %cst_85 = arith.constant 5.000000e-01 : f32
    %241 = vector.broadcast %cst_85 : f32 to vector<16x128xf32>
    %242 = arith.mulf %241, %240 : vector<16x128xf32>
    %cst_86 = arith.constant 5.000000e-01 : f32
    %243 = vector.broadcast %cst_86 : f32 to vector<16x128xf32>
    %244 = arith.addf %242, %243 : vector<16x128xf32>
    %245 = vector.extract_strided_slice %228 {offsets = [0, 256], sizes = [16, 128], strides = [1, 1]} : vector<16x512xf32> to vector<16x128xf32>
    %246 = math.tanh %245 : vector<16x128xf32>
    %247 = vector.extract_strided_slice %228 {offsets = [0, 384], sizes = [16, 128], strides = [1, 1]} : vector<16x512xf32> to vector<16x128xf32>
    %cst_87 = arith.constant 5.000000e-01 : f32
    %248 = vector.broadcast %cst_87 : f32 to vector<16x128xf32>
    %249 = arith.mulf %248, %247 : vector<16x128xf32>
    %250 = math.tanh %249 : vector<16x128xf32>
    %cst_88 = arith.constant 5.000000e-01 : f32
    %251 = vector.broadcast %cst_88 : f32 to vector<16x128xf32>
    %252 = arith.mulf %251, %250 : vector<16x128xf32>
    %cst_89 = arith.constant 5.000000e-01 : f32
    %253 = vector.broadcast %cst_89 : f32 to vector<16x128xf32>
    %254 = arith.addf %252, %253 : vector<16x128xf32>
    %255 = arith.mulf %244, %211 : vector<16x128xf32>
    %256 = arith.mulf %236, %246 : vector<16x128xf32>
    %257 = arith.addf %255, %256 : vector<16x128xf32>
    %258 = math.tanh %257 : vector<16x128xf32>
    %259 = arith.mulf %254, %258 : vector<16x128xf32>
    %cst_90 = arith.constant 0.000000e+00 : f32
    %260 = vector.broadcast %cst_90 : f32 to vector<16x128xf32>
    %261 = arith.select %221, %259, %260 : vector<16x128xi1>, vector<16x128xf32>
    %262 = arith.select %221, %259, %210 : vector<16x128xi1>, vector<16x128xf32>
    %263 = arith.select %221, %257, %211 : vector<16x128xi1>, vector<16x128xf32>
    %264 = arith.truncf %261 : vector<16x128xf32> to vector<16x128xbf16>
    %c0_91 = arith.constant 0 : index
    %265 = arith.index_cast %c4_i32 : i32 to index
    %c0_92 = arith.constant 0 : index
    %c0_93 = arith.constant 0 : index
    %266 = vector.load %arg5[%c0_91, %265, %c0_92, %c0_93] : memref<1x8x16x128xbf16, #tpu.memory_space<vmem>>, vector<1x1x16x128xbf16>
    %267 = vector.shape_cast %266 : vector<1x1x16x128xbf16> to vector<16x128xbf16>
    %268 = vector.shape_cast %264 : vector<16x128xbf16> to vector<1x1x16x128xbf16>
    tpu.vector_store %arg5[%c0_91, %265, %c0_92, %c0_93], %268 {strides = array<i32>} : memref<1x8x16x128xbf16, #tpu.memory_space<vmem>>, vector<1x1x16x128xbf16>,
    %c5_i32 = arith.constant 5 : i32
    %269 = arith.addi %6, %c5_i32 : i32
    %270 = vector.broadcast %269 : i32 to vector<16x1xi32>
    %271 = arith.cmpi slt, %270, %3 : vector<16x1xi32>
    %272 = vector.shape_cast %271 : vector<16x1xi1> to vector<16x1xi1>
    %273 = vector.broadcast %272 : vector<16x1xi1> to vector<16x128xi1>
    %c0_94 = arith.constant 0 : index
    %274 = arith.index_cast %c5_i32 : i32 to index
    %c0_95 = arith.constant 0 : index
    %c0_96 = arith.constant 0 : index
    %275 = vector.load %arg3[%c0_94, %274, %c0_95, %c0_96] : memref<1x8x16x512xbf16, #tpu.memory_space<vmem>>, vector<1x1x16x512xbf16>
    %276 = vector.shape_cast %275 : vector<1x1x16x512xbf16> to vector<16x512xbf16>
    %277 = arith.extf %276 : vector<16x512xbf16> to vector<16x512xf32>
    %278 = arith.truncf %262 : vector<16x128xf32> to vector<16x128xbf16>
    %cst_97 = arith.constant dense<0.000000e+00> : vector<16x512xf32>
    %279 = tpu.matmul %278, %5, %cst_97 {dimension_numbers = #tpu.dot_dimension_numbers<[1], [0], [0], [1], [0, 0, 1, 1], [], []>} : vector<16x128xbf16>, vector<128x512xbf16>, vector<16x512xf32> -> vector<16x512xf32>
    %280 = arith.addf %277, %279 : vector<16x512xf32>
    %281 = vector.extract_strided_slice %280 {offsets = [0, 0], sizes = [16, 128], strides = [1, 1]} : vector<16x512xf32> to vector<16x128xf32>
    %cst_98 = arith.constant 5.000000e-01 : f32
    %282 = vector.broadcast %cst_98 : f32 to vector<16x128xf32>
    %283 = arith.mulf %282, %281 : vector<16x128xf32>
    %284 = math.tanh %283 : vector<16x128xf32>
    %cst_99 = arith.constant 5.000000e-01 : f32
    %285 = vector.broadcast %cst_99 : f32 to vector<16x128xf32>
    %286 = arith.mulf %285, %284 : vector<16x128xf32>
    %cst_100 = arith.constant 5.000000e-01 : f32
    %287 = vector.broadcast %cst_100 : f32 to vector<16x128xf32>
    %288 = arith.addf %286, %287 : vector<16x128xf32>
    %289 = vector.extract_strided_slice %280 {offsets = [0, 128], sizes = [16, 128], strides = [1, 1]} : vector<16x512xf32> to vector<16x128xf32>
    %cst_101 = arith.constant 5.000000e-01 : f32
    %290 = vector.broadcast %cst_101 : f32 to vector<16x128xf32>
    %291 = arith.mulf %290, %289 : vector<16x128xf32>
    %292 = math.tanh %291 : vector<16x128xf32>
    %cst_102 = arith.constant 5.000000e-01 : f32
    %293 = vector.broadcast %cst_102 : f32 to vector<16x128xf32>
    %294 = arith.mulf %293, %292 : vector<16x128xf32>
    %cst_103 = arith.constant 5.000000e-01 : f32
    %295 = vector.broadcast %cst_103 : f32 to vector<16x128xf32>
    %296 = arith.addf %294, %295 : vector<16x128xf32>
    %297 = vector.extract_strided_slice %280 {offsets = [0, 256], sizes = [16, 128], strides = [1, 1]} : vector<16x512xf32> to vector<16x128xf32>
    %298 = math.tanh %297 : vector<16x128xf32>
    %299 = vector.extract_strided_slice %280 {offsets = [0, 384], sizes = [16, 128], strides = [1, 1]} : vector<16x512xf32> to vector<16x128xf32>
    %cst_104 = arith.constant 5.000000e-01 : f32
    %300 = vector.broadcast %cst_104 : f32 to vector<16x128xf32>
    %301 = arith.mulf %300, %299 : vector<16x128xf32>
    %302 = math.tanh %301 : vector<16x128xf32>
    %cst_105 = arith.constant 5.000000e-01 : f32
    %303 = vector.broadcast %cst_105 : f32 to vector<16x128xf32>
    %304 = arith.mulf %303, %302 : vector<16x128xf32>
    %cst_106 = arith.constant 5.000000e-01 : f32
    %305 = vector.broadcast %cst_106 : f32 to vector<16x128xf32>
    %306 = arith.addf %304, %305 : vector<16x128xf32>
    %307 = arith.mulf %296, %263 : vector<16x128xf32>
    %308 = arith.mulf %288, %298 : vector<16x128xf32>
    %309 = arith.addf %307, %308 : vector<16x128xf32>
    %310 = math.tanh %309 : vector<16x128xf32>
    %311 = arith.mulf %306, %310 : vector<16x128xf32>
    %cst_107 = arith.constant 0.000000e+00 : f32
    %312 = vector.broadcast %cst_107 : f32 to vector<16x128xf32>
    %313 = arith.select %273, %311, %312 : vector<16x128xi1>, vector<16x128xf32>
    %314 = arith.select %273, %311, %262 : vector<16x128xi1>, vector<16x128xf32>
    %315 = arith.select %273, %309, %263 : vector<16x128xi1>, vector<16x128xf32>
    %316 = arith.truncf %313 : vector<16x128xf32> to vector<16x128xbf16>
    %c0_108 = arith.constant 0 : index
    %317 = arith.index_cast %c5_i32 : i32 to index
    %c0_109 = arith.constant 0 : index
    %c0_110 = arith.constant 0 : index
    %318 = vector.load %arg5[%c0_108, %317, %c0_109, %c0_110] : memref<1x8x16x128xbf16, #tpu.memory_space<vmem>>, vector<1x1x16x128xbf16>
    %319 = vector.shape_cast %318 : vector<1x1x16x128xbf16> to vector<16x128xbf16>
    %320 = vector.shape_cast %316 : vector<16x128xbf16> to vector<1x1x16x128xbf16>
    tpu.vector_store %arg5[%c0_108, %317, %c0_109, %c0_110], %320 {strides = array<i32>} : memref<1x8x16x128xbf16, #tpu.memory_space<vmem>>, vector<1x1x16x128xbf16>,
    %c6_i32 = arith.constant 6 : i32
    %321 = arith.addi %6, %c6_i32 : i32
    %322 = vector.broadcast %321 : i32 to vector<16x1xi32>
    %323 = arith.cmpi slt, %322, %3 : vector<16x1xi32>
    %324 = vector.shape_cast %323 : vector<16x1xi1> to vector<16x1xi1>
    %325 = vector.broadcast %324 : vector<16x1xi1> to vector<16x128xi1>
    %c0_111 = arith.constant 0 : index
    %326 = arith.index_cast %c6_i32 : i32 to index
    %c0_112 = arith.constant 0 : index
    %c0_113 = arith.constant 0 : index
    %327 = vector.load %arg3[%c0_111, %326, %c0_112, %c0_113] : memref<1x8x16x512xbf16, #tpu.memory_space<vmem>>, vector<1x1x16x512xbf16>
    %328 = vector.shape_cast %327 : vector<1x1x16x512xbf16> to vector<16x512xbf16>
    %329 = arith.extf %328 : vector<16x512xbf16> to vector<16x512xf32>
    %330 = arith.truncf %314 : vector<16x128xf32> to vector<16x128xbf16>
    %cst_114 = arith.constant dense<0.000000e+00> : vector<16x512xf32>
    %331 = tpu.matmul %330, %5, %cst_114 {dimension_numbers = #tpu.dot_dimension_numbers<[1], [0], [0], [1], [0, 0, 1, 1], [], []>} : vector<16x128xbf16>, vector<128x512xbf16>, vector<16x512xf32> -> vector<16x512xf32>
    %332 = arith.addf %329, %331 : vector<16x512xf32>
    %333 = vector.extract_strided_slice %332 {offsets = [0, 0], sizes = [16, 128], strides = [1, 1]} : vector<16x512xf32> to vector<16x128xf32>
    %cst_115 = arith.constant 5.000000e-01 : f32
    %334 = vector.broadcast %cst_115 : f32 to vector<16x128xf32>
    %335 = arith.mulf %334, %333 : vector<16x128xf32>
    %336 = math.tanh %335 : vector<16x128xf32>
    %cst_116 = arith.constant 5.000000e-01 : f32
    %337 = vector.broadcast %cst_116 : f32 to vector<16x128xf32>
    %338 = arith.mulf %337, %336 : vector<16x128xf32>
    %cst_117 = arith.constant 5.000000e-01 : f32
    %339 = vector.broadcast %cst_117 : f32 to vector<16x128xf32>
    %340 = arith.addf %338, %339 : vector<16x128xf32>
    %341 = vector.extract_strided_slice %332 {offsets = [0, 128], sizes = [16, 128], strides = [1, 1]} : vector<16x512xf32> to vector<16x128xf32>
    %cst_118 = arith.constant 5.000000e-01 : f32
    %342 = vector.broadcast %cst_118 : f32 to vector<16x128xf32>
    %343 = arith.mulf %342, %341 : vector<16x128xf32>
    %344 = math.tanh %343 : vector<16x128xf32>
    %cst_119 = arith.constant 5.000000e-01 : f32
    %345 = vector.broadcast %cst_119 : f32 to vector<16x128xf32>
    %346 = arith.mulf %345, %344 : vector<16x128xf32>
    %cst_120 = arith.constant 5.000000e-01 : f32
    %347 = vector.broadcast %cst_120 : f32 to vector<16x128xf32>
    %348 = arith.addf %346, %347 : vector<16x128xf32>
    %349 = vector.extract_strided_slice %332 {offsets = [0, 256], sizes = [16, 128], strides = [1, 1]} : vector<16x512xf32> to vector<16x128xf32>
    %350 = math.tanh %349 : vector<16x128xf32>
    %351 = vector.extract_strided_slice %332 {offsets = [0, 384], sizes = [16, 128], strides = [1, 1]} : vector<16x512xf32> to vector<16x128xf32>
    %cst_121 = arith.constant 5.000000e-01 : f32
    %352 = vector.broadcast %cst_121 : f32 to vector<16x128xf32>
    %353 = arith.mulf %352, %351 : vector<16x128xf32>
    %354 = math.tanh %353 : vector<16x128xf32>
    %cst_122 = arith.constant 5.000000e-01 : f32
    %355 = vector.broadcast %cst_122 : f32 to vector<16x128xf32>
    %356 = arith.mulf %355, %354 : vector<16x128xf32>
    %cst_123 = arith.constant 5.000000e-01 : f32
    %357 = vector.broadcast %cst_123 : f32 to vector<16x128xf32>
    %358 = arith.addf %356, %357 : vector<16x128xf32>
    %359 = arith.mulf %348, %315 : vector<16x128xf32>
    %360 = arith.mulf %340, %350 : vector<16x128xf32>
    %361 = arith.addf %359, %360 : vector<16x128xf32>
    %362 = math.tanh %361 : vector<16x128xf32>
    %363 = arith.mulf %358, %362 : vector<16x128xf32>
    %cst_124 = arith.constant 0.000000e+00 : f32
    %364 = vector.broadcast %cst_124 : f32 to vector<16x128xf32>
    %365 = arith.select %325, %363, %364 : vector<16x128xi1>, vector<16x128xf32>
    %366 = arith.select %325, %363, %314 : vector<16x128xi1>, vector<16x128xf32>
    %367 = arith.select %325, %361, %315 : vector<16x128xi1>, vector<16x128xf32>
    %368 = arith.truncf %365 : vector<16x128xf32> to vector<16x128xbf16>
    %c0_125 = arith.constant 0 : index
    %369 = arith.index_cast %c6_i32 : i32 to index
    %c0_126 = arith.constant 0 : index
    %c0_127 = arith.constant 0 : index
    %370 = vector.load %arg5[%c0_125, %369, %c0_126, %c0_127] : memref<1x8x16x128xbf16, #tpu.memory_space<vmem>>, vector<1x1x16x128xbf16>
    %371 = vector.shape_cast %370 : vector<1x1x16x128xbf16> to vector<16x128xbf16>
    %372 = vector.shape_cast %368 : vector<16x128xbf16> to vector<1x1x16x128xbf16>
    tpu.vector_store %arg5[%c0_125, %369, %c0_126, %c0_127], %372 {strides = array<i32>} : memref<1x8x16x128xbf16, #tpu.memory_space<vmem>>, vector<1x1x16x128xbf16>,
    %c7_i32 = arith.constant 7 : i32
    %373 = arith.addi %6, %c7_i32 : i32
    %374 = vector.broadcast %373 : i32 to vector<16x1xi32>
    %375 = arith.cmpi slt, %374, %3 : vector<16x1xi32>
    %376 = vector.shape_cast %375 : vector<16x1xi1> to vector<16x1xi1>
    %377 = vector.broadcast %376 : vector<16x1xi1> to vector<16x128xi1>
    %c0_128 = arith.constant 0 : index
    %378 = arith.index_cast %c7_i32 : i32 to index
    %c0_129 = arith.constant 0 : index
    %c0_130 = arith.constant 0 : index
    %379 = vector.load %arg3[%c0_128, %378, %c0_129, %c0_130] : memref<1x8x16x512xbf16, #tpu.memory_space<vmem>>, vector<1x1x16x512xbf16>
    %380 = vector.shape_cast %379 : vector<1x1x16x512xbf16> to vector<16x512xbf16>
    %381 = arith.extf %380 : vector<16x512xbf16> to vector<16x512xf32>
    %382 = arith.truncf %366 : vector<16x128xf32> to vector<16x128xbf16>
    %cst_131 = arith.constant dense<0.000000e+00> : vector<16x512xf32>
    %383 = tpu.matmul %382, %5, %cst_131 {dimension_numbers = #tpu.dot_dimension_numbers<[1], [0], [0], [1], [0, 0, 1, 1], [], []>} : vector<16x128xbf16>, vector<128x512xbf16>, vector<16x512xf32> -> vector<16x512xf32>
    %384 = arith.addf %381, %383 : vector<16x512xf32>
    %385 = vector.extract_strided_slice %384 {offsets = [0, 0], sizes = [16, 128], strides = [1, 1]} : vector<16x512xf32> to vector<16x128xf32>
    %cst_132 = arith.constant 5.000000e-01 : f32
    %386 = vector.broadcast %cst_132 : f32 to vector<16x128xf32>
    %387 = arith.mulf %386, %385 : vector<16x128xf32>
    %388 = math.tanh %387 : vector<16x128xf32>
    %cst_133 = arith.constant 5.000000e-01 : f32
    %389 = vector.broadcast %cst_133 : f32 to vector<16x128xf32>
    %390 = arith.mulf %389, %388 : vector<16x128xf32>
    %cst_134 = arith.constant 5.000000e-01 : f32
    %391 = vector.broadcast %cst_134 : f32 to vector<16x128xf32>
    %392 = arith.addf %390, %391 : vector<16x128xf32>
    %393 = vector.extract_strided_slice %384 {offsets = [0, 128], sizes = [16, 128], strides = [1, 1]} : vector<16x512xf32> to vector<16x128xf32>
    %cst_135 = arith.constant 5.000000e-01 : f32
    %394 = vector.broadcast %cst_135 : f32 to vector<16x128xf32>
    %395 = arith.mulf %394, %393 : vector<16x128xf32>
    %396 = math.tanh %395 : vector<16x128xf32>
    %cst_136 = arith.constant 5.000000e-01 : f32
    %397 = vector.broadcast %cst_136 : f32 to vector<16x128xf32>
    %398 = arith.mulf %397, %396 : vector<16x128xf32>
    %cst_137 = arith.constant 5.000000e-01 : f32
    %399 = vector.broadcast %cst_137 : f32 to vector<16x128xf32>
    %400 = arith.addf %398, %399 : vector<16x128xf32>
    %401 = vector.extract_strided_slice %384 {offsets = [0, 256], sizes = [16, 128], strides = [1, 1]} : vector<16x512xf32> to vector<16x128xf32>
    %402 = math.tanh %401 : vector<16x128xf32>
    %403 = vector.extract_strided_slice %384 {offsets = [0, 384], sizes = [16, 128], strides = [1, 1]} : vector<16x512xf32> to vector<16x128xf32>
    %cst_138 = arith.constant 5.000000e-01 : f32
    %404 = vector.broadcast %cst_138 : f32 to vector<16x128xf32>
    %405 = arith.mulf %404, %403 : vector<16x128xf32>
    %406 = math.tanh %405 : vector<16x128xf32>
    %cst_139 = arith.constant 5.000000e-01 : f32
    %407 = vector.broadcast %cst_139 : f32 to vector<16x128xf32>
    %408 = arith.mulf %407, %406 : vector<16x128xf32>
    %cst_140 = arith.constant 5.000000e-01 : f32
    %409 = vector.broadcast %cst_140 : f32 to vector<16x128xf32>
    %410 = arith.addf %408, %409 : vector<16x128xf32>
    %411 = arith.mulf %400, %367 : vector<16x128xf32>
    %412 = arith.mulf %392, %402 : vector<16x128xf32>
    %413 = arith.addf %411, %412 : vector<16x128xf32>
    %414 = math.tanh %413 : vector<16x128xf32>
    %415 = arith.mulf %410, %414 : vector<16x128xf32>
    %cst_141 = arith.constant 0.000000e+00 : f32
    %416 = vector.broadcast %cst_141 : f32 to vector<16x128xf32>
    %417 = arith.select %377, %415, %416 : vector<16x128xi1>, vector<16x128xf32>
    %418 = arith.select %377, %415, %366 : vector<16x128xi1>, vector<16x128xf32>
    %419 = arith.select %377, %413, %367 : vector<16x128xi1>, vector<16x128xf32>
    %420 = arith.truncf %417 : vector<16x128xf32> to vector<16x128xbf16>
    %c0_142 = arith.constant 0 : index
    %421 = arith.index_cast %c7_i32 : i32 to index
    %c0_143 = arith.constant 0 : index
    %c0_144 = arith.constant 0 : index
    %422 = vector.load %arg5[%c0_142, %421, %c0_143, %c0_144] : memref<1x8x16x128xbf16, #tpu.memory_space<vmem>>, vector<1x1x16x128xbf16>
    %423 = vector.shape_cast %422 : vector<1x1x16x128xbf16> to vector<16x128xbf16>
    %424 = vector.shape_cast %420 : vector<16x128xbf16> to vector<1x1x16x128xbf16>
    tpu.vector_store %arg5[%c0_142, %421, %c0_143, %c0_144], %424 {strides = array<i32>} : memref<1x8x16x128xbf16, #tpu.memory_space<vmem>>, vector<1x1x16x128xbf16>,
    %c8_i32_145 = arith.constant 8 : i32
    %c0_146 = arith.constant 0 : index
    %c0_147 = arith.constant 0 : index
    %425 = vector.load %arg8[%c0_146, %c0_147] : memref<16x128xf32, #tpu.memory_space<vmem>>, vector<16x128xf32>
    tpu.vector_store %arg8[%c0_146, %c0_147], %418 {strides = array<i32>} : memref<16x128xf32, #tpu.memory_space<vmem>>, vector<16x128xf32>,
    %c0_148 = arith.constant 0 : index
    %c0_149 = arith.constant 0 : index
    %426 = vector.load %arg9[%c0_148, %c0_149] : memref<16x128xf32, #tpu.memory_space<vmem>>, vector<16x128xf32>
    tpu.vector_store %arg9[%c0_148, %c0_149], %419 {strides = array<i32>} : memref<16x128xf32, #tpu.memory_space<vmem>>, vector<16x128xf32>,
    %c0_i32_150 = arith.constant 0 : i32
    %427 = arith.cmpi eq, %arg1, %c0_i32_150 : i32
    %428 = arith.extui %427 : i1 to i32
    %c0_i32_151 = arith.constant 0 : i32
    %429 = arith.cmpi ne, %428, %c0_i32_151 : i32
    scf.if %429 {
      %c0_152 = arith.constant 0 : index
      %c0_153 = arith.constant 0 : index
      %c0_154 = arith.constant 0 : index
      %430 = vector.load %arg6[%c0_152, %c0_153, %c0_154] : memref<1x16x128xf32, #tpu.memory_space<vmem>>, vector<1x16x128xf32>
      %431 = vector.shape_cast %430 : vector<1x16x128xf32> to vector<16x128xf32>
      %432 = vector.shape_cast %418 : vector<16x128xf32> to vector<1x16x128xf32>
      tpu.vector_store %arg6[%c0_152, %c0_153, %c0_154], %432 {strides = array<i32>} : memref<1x16x128xf32, #tpu.memory_space<vmem>>, vector<1x16x128xf32>,
      %c0_155 = arith.constant 0 : index
      %c0_156 = arith.constant 0 : index
      %c0_157 = arith.constant 0 : index
      %433 = vector.load %arg7[%c0_155, %c0_156, %c0_157] : memref<1x16x128xf32, #tpu.memory_space<vmem>>, vector<1x16x128xf32>
      %434 = vector.shape_cast %433 : vector<1x16x128xf32> to vector<16x128xf32>
      %435 = vector.shape_cast %419 : vector<16x128xf32> to vector<1x16x128xf32>
      tpu.vector_store %arg7[%c0_155, %c0_156, %c0_157], %435 {strides = array<i32>} : memref<1x16x128xf32, #tpu.memory_space<vmem>>, vector<1x16x128xf32>,
    } else {
    }
    return
  }
  func.func @transform_0(%arg0: i32, %arg1: i32) -> (i32, i32) {
    %c0_i32 = arith.constant 0 : i32
    %c0_i32_0 = arith.constant 0 : i32
    %c0_i32_1 = arith.constant 0 : i32
    return %c0_i32, %c0_i32_0 : i32, i32
  }
  func.func @transform_1(%arg0: i32, %arg1: i32) -> (i32, i32, i32, i32) {
    %c2_i32 = arith.constant 2 : i32
    %0 = arith.muli %c2_i32, %arg1 : i32
    %c0_i32 = arith.constant 0 : i32
    %1 = arith.subi %c0_i32, %0 : i32
    %2 = arith.muli %arg0, %1 : i32
    %3 = arith.addi %arg1, %2 : i32
    %c0_i32_0 = arith.constant 0 : i32
    %c0_i32_1 = arith.constant 0 : i32
    %c0_i32_2 = arith.constant 0 : i32
    return %arg0, %3, %c0_i32_0, %c0_i32_1 : i32, i32, i32, i32
  }
  func.func @transform_2(%arg0: i32, %arg1: i32) -> (i32, i32, i32) {
    %c0_i32 = arith.constant 0 : i32
    %c0_i32_0 = arith.constant 0 : i32
    %c0_i32_1 = arith.constant 0 : i32
    return %arg0, %c0_i32, %c0_i32_0 : i32, i32, i32
  }
  func.func @transform_3(%arg0: i32, %arg1: i32) -> (i32, i32, i32, i32) {
    %c2_i32 = arith.constant 2 : i32
    %0 = arith.muli %c2_i32, %arg1 : i32
    %c0_i32 = arith.constant 0 : i32
    %1 = arith.subi %c0_i32, %0 : i32
    %2 = arith.muli %arg0, %1 : i32
    %3 = arith.addi %arg1, %2 : i32
    %c0_i32_0 = arith.constant 0 : i32
    %c0_i32_1 = arith.constant 0 : i32
    %c0_i32_2 = arith.constant 0 : i32
    return %arg0, %3, %c0_i32_0, %c0_i32_1 : i32, i32, i32, i32
  }
  func.func @transform_4(%arg0: i32, %arg1: i32) -> (i32, i32, i32) {
    %c0_i32 = arith.constant 0 : i32
    %c0_i32_0 = arith.constant 0 : i32
    %c0_i32_1 = arith.constant 0 : i32
    return %arg0, %c0_i32, %c0_i32_0 : i32, i32, i32
  }
  func.func @transform_5(%arg0: i32, %arg1: i32) -> (i32, i32, i32) {
    %c0_i32 = arith.constant 0 : i32
    %c0_i32_0 = arith.constant 0 : i32
    %c0_i32_1 = arith.constant 0 : i32
    return %arg0, %c0_i32, %c0_i32_0 : i32, i32, i32
  }
}

</mosaic_0001>

<bundles_post_ra>
// kernel: bilstm_forward.3
= control target key start
LH: loop header
LB: loop body
LE: loop exit
PB: predicated region body
PF: predicated region fallthrough
CT: control target
= control target key end

     0   :  { %v3131_v1 = vmov 0   ;;  %v2169_v39 = vmov 0.0|0.0   ;;  %s3125_s2 = inlined_call_operand.vmem [shape: bf16[1,128,512], index: 2, kind: input, shape index: {}]   ;;  %s3126_s0 = inlined_call_operand.vmem [shape: s32[16,1], index: 0, kind: input, shape index: {}]   ;;  %s3127_s1 = inlined_call_operand.vmem [shape: bf16[1,8,16,512], index: 1, kind: input, shape index: {}]   ;;  %s3128_s3 = inlined_call_operand.vmem [shape: bf16[1,8,16,128], index: 3, kind: output, shape index: {0}]   ;;  %s3129_s5 = inlined_call_operand.vmem [shape: f32[1,16,128], index: 5, kind: output, shape index: {2}]   ;;  %s3130_s4 = inlined_call_operand.vmem [shape: f32[1,16,128], index: 4, kind: output, shape index: {1}]  }
   0x1   :  { %v2203_v0 = vld [vmem:[%s3125_s2 + $0x4] ss:$16 sps:$4 sm:$0xff]   ;;  %348 = vmatprep.mubr.bf16.mxu0 %v3131_v1  ;;  %391 = vmatprep.mubr.bf16.mxu1 %v3131_v1  ;;  %v2210_v2 = vld [vmem:[%s3125_s2] ss:$16 sps:$4 sm:$0xff]   ;;  %v2224_v4 = vld [vmem:[%s3125_s2 + $0xc] ss:$16 sps:$4 sm:$0xff]  }
   0x2   :  { %1926 = vset.pattern.permute.xlu0 %v3131_v1  ;;  %1927 = vset.pattern.permute.xlu1 %v3131_v1  ;;  %v2218_v3 = vld [vmem:[%s3125_s2 + $0x24] ss:$16 sps:$4 sm:$0xff]   ;;  %3134 = vst [vmem:[#allocation4_spill] sm:$0xff] %v2224_v4  ;;  %v2229_v5 = vld [vmem:[%s3125_s2 + $0x20] ss:$16 sps:$4 sm:$0xff]   ;;  %v2352_v26 = vld [vmem:[%s3126_s0 + $0x8] sm:$0xff] }
   0x3   :  { %316 = vmatprep.subr.bf16.mxu0 %v2203_v0  ;;  %v2234_v6 = vld [vmem:[%s3125_s2 + $0x8] ss:$16 sps:$4 sm:$0xff]   ;;  %v2240_v7 = vld [vmem:[%s3125_s2 + $0x44] ss:$16 sps:$4 sm:$0xff]   ;;  %359 = vmatprep.subr.bf16.mxu1 %v2224_v4  ;;  %v2246_v8 = vld [vmem:[%s3125_s2 + $0x2c] ss:$16 sps:$4 sm:$0xff]  }
   0x4   :  { %317 = vmatpush1.bf16.msra.mxu0 %v2210_v2  ;;  %360 = vmatpush1.bf16.msra.mxu1 %v2234_v6  ;;  %v2252_v9 = vld [vmem:[%s3125_s2 + $0x28] ss:$16 sps:$4 sm:$0xff]   ;;  %v2259_v10 = vld [vmem:[%s3125_s2 + $0x40] ss:$16 sps:$4 sm:$0xff]   ;;  %v2265_v11 = vld [vmem:[%s3125_s2 + $0x64] ss:$16 sps:$4 sm:$0xff]  }
   0x5   :  { %318 = vmatprep.subr.bf16.mxu0 %v2218_v3  ;;  %361 = vmatprep.subr.bf16.mxu1 %v2246_v8  ;;  %v2270_v12 = vld [vmem:[%s3125_s2 + $0x4c] ss:$16 sps:$4 sm:$0xff]   ;;  %v2276_v13 = vld [vmem:[%s3125_s2 + $0x48] ss:$16 sps:$4 sm:$0xff]   ;;  %v2283_v14 = vld [vmem:[%s3125_s2 + $0x60] ss:$16 sps:$4 sm:$0xff]  }
   0x6   :  { %v2288_v15 = vld [vmem:[%s3125_s2 + $0x6c] ss:$16 sps:$4 sm:$0xff]   ;;  %v2294_v16 = vld [vmem:[%s3125_s2 + $0x84] ss:$16 sps:$4 sm:$0xff]   ;;  %v2300_v17 = vld [vmem:[%s3125_s2 + $0x80] ss:$16 sps:$4 sm:$0xff]  }
   0x7   :  { %v2305_v18 = vld [vmem:[%s3125_s2 + $0x68] ss:$16 sps:$4 sm:$0xff]   ;;  %v2312_v19 = vld [vmem:[%s3125_s2 + $0x8c] ss:$16 sps:$4 sm:$0xff]   ;;  %v2318_v20 = vld [vmem:[%s3125_s2 + $0xa4] ss:$16 sps:$4 sm:$0xff]  }
   0x8   :  { %319 = vmatpush1.bf16.msra.mxu0 %v2229_v5  ;;  %362 = vmatpush1.bf16.msra.mxu1 %v2252_v9  ;;  %v2324_v21 = vld [vmem:[%s3125_s2 + $0x88] ss:$16 sps:$4 sm:$0xff]   ;;  %v2331_v22 = vld [vmem:[%s3125_s2 + $0xa0] ss:$16 sps:$4 sm:$0xff]   ;;  %v2336_v23 = vld [vmem:[%s3125_s2 + $0xac] ss:$16 sps:$4 sm:$0xff]  }
   0x9   :  { %320 = vmatprep.subr.bf16.mxu0 %v2240_v7  ;;  %363 = vmatprep.subr.bf16.mxu1 %v2270_v12  ;;  %v2342_v24 = vld [vmem:[%s3125_s2 + $0xc4] ss:$16 sps:$4 sm:$0xff]   ;;  %v2358_v27 = vld [vmem:[%s3125_s2 + $0xa8] ss:$16 sps:$4 sm:$0xff]   ;;  %vm1750_vm1 = vcmp.gt.s32.totalorder %v2352_v26, 0  ;;  %vm1786_vm9 = vcmp.gt.s32.totalorder %v2352_v26, 1 }
   0xa   :  { %v2347_v25 = vld [vmem:[%s3126_s0] sm:$0xff]  ;;  %v2372_v29 = vld [vmem:[%s3125_s2 + $0xcc] ss:$16 sps:$4 sm:$0xff]   ;;  %v134_v32 = vsel %vm1750_vm1, 1, %v3131_v1  ;;  %v2386_v33 = vld [vmem:[%s3125_s2 + $0xc8] ss:$16 sps:$4 sm:$0xff]  }
   0xb   :  { %vm1749_vm0 = vcmp.gt.s32.totalorder %v2347_v25, 0  ;;  %v2367_v28 = vld [vmem:[%s3125_s2 + $0xc0] ss:$16 sps:$4 sm:$0xff]   ;;  %v2379_v31 = vld [vmem:[%s3125_s2 + $0xe4] ss:$16 sps:$4 sm:$0xff]   ;;  %vm1795_vm2 = vcmp.gt.s32.totalorder %v2347_v25, 2 }
   0xc   :  { %321 = vmatpush1.bf16.msra.mxu0 %v2259_v10  ;;  %364 = vmatpush1.bf16.msra.mxu1 %v2276_v13  ;;  %v133_v30 = vsel %vm1749_vm0, 1, %v3131_v1  ;;  %v2394_v34 = vld [vmem:[%s3125_s2 + $0xe0] ss:$16 sps:$4 sm:$0xff]   ;;  %v2399_v35 = vld [vmem:[%s3125_s2 + $0xec] ss:$16 sps:$4 sm:$0xff]   ;;  %v641_v36 = vsel %vm1795_vm2, 1, %v3131_v1 }
   0xd   :  { %322 = vmatprep.subr.bf16.mxu0 %v2265_v11  ;;  %365 = vmatprep.subr.bf16.mxu1 %v2288_v15  ;;  %v2407_v37 = vld [vmem:[%s3125_s2 + $0xe8] ss:$16 sps:$4 sm:$0xff]   ;;  %vm1805_vm3 = vcmp.gt.s32.totalorder %v2347_v25, 3  ;;  %vm1815_vm4 = vcmp.gt.s32.totalorder %v2347_v25, 4  ;;  %vm1825_vm5 = vcmp.gt.s32.totalorder %v2347_v25, 5  ;;  %vm1835_vm6 = vcmp.gt.s32.totalorder %v2347_v25, 6 }
   0xe   :  { %136 = vperm.xlu0 %1926, %v133_v30   ;;  %v816_v38 = vsel %vm1805_vm3, 1, %v3131_v1  ;;  %v991_v40 = vsel %vm1815_vm4, 1, %v3131_v1  ;;  %v1166_v41 = vsel %vm1825_vm5, 1, %v3131_v1  ;;  %v1341_v42 = vsel %vm1835_vm6, 1, %v3131_v1  ;;  %v143_v52 = vld [vmem:[%s3127_s1] sm:$0xff]  ;;  %v145_v53 = vld [vmem:[%s3127_s1 + $0x10] sm:$0xff] }
   0xf   :  { %vm1845_vm7 = vcmp.gt.s32.totalorder %v2347_v25, 7  ;;  %vm1785_vm8 = vcmp.gt.s32.totalorder %v2347_v25, 1  ;;  %v467_v45 = vsel %vm1786_vm9, 1, %v3131_v1  ;;  %vm1796_vm10 = vcmp.gt.s32.totalorder %v2352_v26, 2  ;;  %v144_v56 = vld [vmem:[%s3127_s1 + $0x8] sm:$0xff]  ;;  %v146_v60 = vld [vmem:[%s3127_s1 + $0x18] sm:$0xff] }
  0x10   :  { %323 = vmatpush1.bf16.msra.mxu0 %v2283_v14  ;;  %366 = vmatpush1.bf16.msra.mxu1 %v2305_v18  ;;  %v1516_v43 = vsel %vm1845_vm7, 1, %v3131_v1  ;;  %v466_v44 = vsel %vm1785_vm8, 1, %v3131_v1  ;;  %v642_v46 = vsel %vm1796_vm10, 1, %v3131_v1  ;;  %vm1806_vm11 = vcmp.gt.s32.totalorder %v2352_v26, 3 }
  0x11   :  { %324 = vmatprep.subr.bf16.mxu0 %v2294_v16  ;;  %367 = vmatprep.subr.bf16.mxu1 %v2312_v19  ;;  %v817_v47 = vsel %vm1806_vm11, 1, %v3131_v1  ;;  %vm1816_vm12 = vcmp.gt.s32.totalorder %v2352_v26, 4  ;;  %vm1826_vm13 = vcmp.gt.s32.totalorder %v2352_v26, 5  ;;  %vm1836_vm14 = vcmp.gt.s32.totalorder %v2352_v26, 6 }
  0x12   :  { %139 = vperm.xlu0 %1926, %v134_v32   ;;  %469 = vperm.xlu1 %1927, %v466_v44   ;;  %v992_v48 = vsel %vm1816_vm12, 1, %v3131_v1  ;;  %v1167_v49 = vsel %vm1826_vm13, 1, %v3131_v1  ;;  %v1342_v50 = vsel %vm1836_vm14, 1, %v3131_v1  ;;  %vm1846_vm15 = vcmp.gt.s32.totalorder %v2352_v26, 7 }
  0x13   :  { %v1517_v51 = vsel %vm1846_vm15, 1, %v3131_v1  ;;  %v147_v54 = vunpack.c.l.bf16 %v143_v52  ;;  %v148_v55 = vunpack.c.h.bf16 %v143_v52  ;;  %v151_v57 = vunpack.c.l.bf16 %v145_v53 }
  0x14   :  { %325 = vmatpush1.bf16.msra.mxu0 %v2300_v17  ;;  %368 = vmatpush1.bf16.msra.mxu1 %v2324_v21  ;;  %v152_v59 = vunpack.c.h.bf16 %v145_v53  ;;  %v149_v63 = vunpack.c.l.bf16 %v144_v56 }
  0x15   :  { %326 = vmatprep.subr.bf16.mxu0 %v2318_v20  ;;  %369 = vmatprep.subr.bf16.mxu1 %v2336_v23 }
  0x16   :  { %644 = vperm.xlu0 %1926, %v641_v36   ;;  %472 = vperm.xlu1 %1927, %v467_v45   ;;  %v150_v45 = vunpack.c.h.bf16 %v144_v56 }
  0x18   :  { %327 = vmatpush1.bf16.msra.mxu0 %v2331_v22  ;;  %370 = vmatpush1.bf16.msra.mxu1 %v2358_v27 }
  0x19   :  { %328 = vmatprep.subr.bf16.mxu0 %v2342_v24  ;;  %371 = vmatprep.subr.bf16.mxu1 %v2372_v29 }
  0x1a   :  { %819 = vperm.xlu0 %1926, %v816_v38   ;;  %647 = vperm.xlu1 %1927, %v642_v46  }
  0x1c   :  { %329 = vmatpush1.bf16.msra.mxu0 %v2367_v28  ;;  %372 = vmatpush1.bf16.msra.mxu1 %v2386_v33 }
  0x1d   :  { %330 = vmatprep.subr.bf16.mxu0 %v2379_v31  ;;  %373 = vmatprep.subr.bf16.mxu1 %v2399_v35 }
  0x1e   :  { %994 = vperm.xlu0 %1926, %v991_v40   ;;  %822 = vperm.xlu1 %1927, %v817_v47  }
  0x20   :  { %331 = vmatpush1.bf16.msra.mxu0 %v2394_v34  ;;  %374 = vmatpush1.bf16.msra.mxu1 %v2407_v37 }
  0x21   :  { %490 = vmatprep.subr.bf16.mxu0 %v2203_v0  ;;  %533 = vmatprep.subr.bf16.mxu1 %v2224_v4 }
  0x22   :  { %1169 = vperm.xlu0 %1926, %v1166_v41   ;;  %997 = vperm.xlu1 %1927, %v992_v48  }
  0x23   :  { %349 = vmatmul.mubr.bf16.vlgmr.msra.gmra.mrb[0].mxu0 %v2169_v39  ;;  %392 = vmatmul.mubr.bf16.vlgmr.msra.gmra.mrb[0].mxu1 %v2169_v39  ;;  %v153_v39 = vunpack.c.l.bf16 %v146_v60 }
  0x24   :  { %491 = vmatpush1.bf16.msra.mxu0 %v2210_v2  ;;  %522 = vmatprep.mubr.bf16.mxu0 %v3131_v1 }
  0x25   :  { %492 = vmatprep.subr.bf16.mxu0 %v2218_v3  ;;  %534 = vmatpush1.bf16.msra.mxu1 %v2234_v6 }
  0x26   :  { %565 = vmatprep.mubr.bf16.mxu1 %v3131_v1  ;;  %535 = vmatprep.subr.bf16.mxu1 %v2246_v8 }
  0x27   :  { %1344 = vperm.xlu0 %1926, %v1341_v42   ;;  %1172 = vperm.xlu1 %1927, %v1167_v49  }
  0x28   :  { %493 = vmatpush1.bf16.msra.mxu0 %v2229_v5 }
  0x29   :  { %494 = vmatprep.subr.bf16.mxu0 %v2240_v7  ;;  %536 = vmatpush1.bf16.msra.mxu1 %v2252_v9 }
  0x2a   :  { %537 = vmatprep.subr.bf16.mxu1 %v2270_v12 }
  0x2b   :  { %1519 = vperm.xlu0 %1926, %v1516_v43   ;;  %1347 = vperm.xlu1 %1927, %v1342_v50   ;;  %v154_v50 = vunpack.c.h.bf16 %v146_v60 }
  0x2c   :  { %495 = vmatpush1.bf16.msra.mxu0 %v2259_v10 }
  0x2d   :  { %496 = vmatprep.subr.bf16.mxu0 %v2265_v11  ;;  %538 = vmatpush1.bf16.msra.mxu1 %v2276_v13 }
  0x2e   :  { %539 = vmatprep.subr.bf16.mxu1 %v2288_v15 }
  0x2f   :  { %1522 = vperm.xlu1 %1927, %v1517_v51  }
  0x30   :  { %497 = vmatpush1.bf16.msra.mxu0 %v2283_v14 }
  0x31   :  { %498 = vmatprep.subr.bf16.mxu0 %v2294_v16  ;;  %540 = vmatpush1.bf16.msra.mxu1 %v2305_v18 }
  0x32   :  { %541 = vmatprep.subr.bf16.mxu1 %v2312_v19 }
  0x34   :  { %499 = vmatpush1.bf16.msra.mxu0 %v2300_v17 }
  0x35   :  { %500 = vmatprep.subr.bf16.mxu0 %v2318_v20  ;;  %542 = vmatpush1.bf16.msra.mxu1 %v2324_v21 }
  0x36   :  { %543 = vmatprep.subr.bf16.mxu1 %v2336_v23 }
  0x38   :  { %501 = vmatpush1.bf16.msra.mxu0 %v2331_v22 }
  0x39   :  { %502 = vmatprep.subr.bf16.mxu0 %v2342_v24  ;;  %544 = vmatpush1.bf16.msra.mxu1 %v2358_v27 }
  0x3a   :  { %545 = vmatprep.subr.bf16.mxu1 %v2372_v29 }
  0x3c   :  { %503 = vmatpush1.bf16.msra.mxu0 %v2367_v28 }
  0x3d   :  { %504 = vmatprep.subr.bf16.mxu0 %v2379_v31  ;;  %546 = vmatpush1.bf16.msra.mxu1 %v2386_v33 }
  0x3e   :  { %547 = vmatprep.subr.bf16.mxu1 %v2399_v35 }
  0x40   :  { %505 = vmatpush1.bf16.msra.mxu0 %v2394_v34 }
  0x41   :  { %665 = vmatprep.subr.bf16.mxu0 %v2203_v0  ;;  %548 = vmatpush1.bf16.msra.mxu1 %v2407_v37 }
  0x42   :  { %708 = vmatprep.subr.bf16.mxu1 %v2224_v4 }
  0xf6   :  { %v350_v58 = vpop.f32.mrb[0].mxu0  ;;  %v393_v38 = vpop.f32.mrb[0].mxu1 }
  0xf7   :  { %v402_v61 = vadd.f32 %v350_v58, %v147_v54  ;;  %v352_v62 = vpop.f32.mrb[1].mxu0  ;;  %v395_v42 = vpop.f32.mrb[1].mxu1  ;;  %v404_v44 = vadd.f32 %v393_v38, %v149_v63 }
  0xf8   :  { %v403_v25 = vadd.f32 %v352_v62, %v148_v55  ;;  %v354_v26 = vpop.f32.mrb[2].mxu0  ;;  %v397_v46 = vpop.f32.mrb[2].mxu1  ;;  %v405_v51 = vadd.f32 %v395_v42, %v150_v45 }
  0xf9   :  { %v410_v30 = vmul.f32 0.5, %v402_v61  ;;  %v406_v32 = vadd.f32 %v354_v26, %v151_v57  ;;  %v356_v36 = vpop.f32.mrb[3].mxu0  ;;  %v399_v48 = vpop.f32.mrb[3].mxu1  ;;  %v408_v49 = vadd.f32 %v397_v46, %v153_v39 }
  0xfa   :  { %v418_v40 = vmul.f32 0.5, %v403_v25  ;;  %v407_v41 = vadd.f32 %v356_v36, %v152_v59  ;;  %v409_v52 = vadd.f32 %v399_v48, %v154_v50  ;;  %v428_v53 = vmul.f32 0.5, %v405_v51  ;;  %v2492_v48 = vpop.permute.xlu0 %136 }
  0xfb   :  { %1976 = vtanh.f32 %v410_v30  ;;  %v411_v43 = vmul.f32 0.5, %v406_v32  ;;  %vm141_vm0 = vcmp.eq.s32.totalorder %v2492_v48, 1 }
  0xfc   :  { %1978 = vtanh.f32 %v418_v40  ;;  %v419_v47 = vmul.f32 0.5, %v407_v41  ;;  %v429_v55 = vmul.f32 0.5, %v409_v52 }
  0xfd   :  { %1980 = vtanh.f32 %v411_v43 }
  0xfe   :  { %1982 = vtanh.f32 %v419_v47 }
  0xff   :  { %1984 = vtanh.f32 %v404_v44 }
 0x100   :  { %1986 = vtanh.f32 %v408_v49 }
 0x101   :  { %1988 = vtanh.f32 %v428_v53 }
 0x102   :  { %1990 = vtanh.f32 %v429_v55  ;;  %v2494_v55 = vpop.permute.xlu0 %139 }
 0x103   :  { %vm142_vm1 = vcmp.eq.s32.totalorder %v2494_v55, 1 }
 0x104   :  { %vm1918_vm2 = vmpackc.low %vm142_vm1, %vm141_vm0 }
 0x105   :  { %v1977_v54 = vpop.eup %1976 }
 0x106   :  { %v1979_v57 = vpop.eup %1978  ;;  %v414_v58 = vmul.f32 0.5, %v1977_v54 }
 0x107   :  { %v1981_v59 = vpop.eup %1980  ;;  %v422_v61 = vmul.f32 0.5, %v1979_v57 }
 0x108   :  { %v1983_v56 = vpop.eup %1982  ;;  %v416_v62 = vadd.f32 0.5, %v414_v58  ;;  %v415_v63 = vmul.f32 0.5, %v1981_v59 }
 0x109   :  { %v1985_v25 = vpop.eup %1984  ;;  %v424_v26 = vadd.f32 0.5, %v422_v61  ;;  %v423_v30 = vmul.f32 0.5, %v1983_v56  ;;  %v1787_v56 = vld [vmem:[%s3127_s1 + $0x20] sm:$0xff] }
 0x10a   :  { %v417_v60 = vadd.f32 0.5, %v415_v63  ;;  %v438_v32 = vmul.f32 %v1985_v25, %v416_v62  ;;  %v1987_v36 = vpop.eup %1986  ;;  %v1789_v62 = vld [vmem:[%s3127_s1 + $0x30] sm:$0xff]  ;;  %v481_v63 = vunpack.c.l.bf16 %v1787_v56  ;;  %v1788_v25 = vld [vmem:[%s3127_s1 + $0x28] sm:$0xff] }
 0x10b   :  { %v436_v38 = vmul.f32 0.0, %v424_v26  ;;  %v425_v39 = vadd.f32 0.5, %v423_v30  ;;  %v1989_v44 = vpop.eup %1988  ;;  %v482_v26 = vunpack.c.h.bf16 %v1787_v56  ;;  %v485_v30 = vunpack.c.l.bf16 %v1789_v62 }
 0x10c   :  { %v439_v40 = vmul.f32 %v1987_v36, %v417_v60  ;;  %v1991_v45 = vpop.eup %1990  ;;  %v432_v46 = vmul.f32 0.5, %v1989_v44  ;;  %v486_v36 = vunpack.c.h.bf16 %v1789_v62  ;;  %v1790_v44 = vld [vmem:[%s3127_s1 + $0x38] sm:$0xff]  ;;  %v484_v56 = vunpack.c.h.bf16 %v1788_v25 }
 0x10d   :  { %v437_v41 = vmul.f32 0.0, %v425_v39  ;;  %v2486_v42 = vadd.f32 %v438_v32, %v436_v38  ;;  %v433_v47 = vmul.f32 0.5, %v1991_v45  ;;  %v483_v39 = vunpack.c.l.bf16 %v1788_v25 }
 0x10e   :  { %v434_v49 = vadd.f32 0.5, %v432_v46 }
 0x10f   :  { %1992 = vtanh.f32 %v2486_v42  ;;  %v2489_v43 = vadd.f32 %v439_v40, %v437_v41  ;;  %v435_v51 = vadd.f32 0.5, %v433_v47 }
 0x111   :  { %1994 = vtanh.f32 %v2489_v43 }
 0x119   :  { %v1993_v50 = vpop.eup %1992 }
 0x11a   :  { %v444_v52 = vmul.f32 %v1993_v50, %v434_v49 }
 0x11b   :  { %v1995_v53 = vpop.eup %1994 }
 0x11c   :  { %v445_v54 = vmul.f32 %v1995_v53, %v435_v51  ;;  %v2500_v57 = vsel %vm141_vm0, %v444_v52, 0.0 }
 0x11e   :  { %v1919_v58 = vpack.c.bf16 %v445_v54, %v444_v52  ;;  %v2504_v59 = vsel %vm142_vm1, %v445_v54, 0.0  ;;  %v487_v54 = vunpack.c.l.bf16 %v1790_v44 }
 0x11f   :  { %v1874_v61 = vpack.c.bf16 %v2504_v59, %v2500_v57 }
 0x120   :  { %1920 = vmatmul.mubr.msk.bf16.vlgmr.msra.gmra.mrb[4].mxu0 %vm1918_vm2, %v1919_v58  ;;  %1923 = vmatmul.mubr.msk.bf16.vlgmr.msra.gmra.mrb[4].mxu1 %vm1918_vm2, %v1919_v58 }
 0x121   :  { %1875 = vst [vmem:[%s3128_s3] sm:$0xff] %v1874_v61   ;;  %666 = vmatpush1.bf16.msra.mxu0 %v2210_v2  ;;  %709 = vmatpush1.bf16.msra.mxu1 %v2234_v6 }
 0x122   :  { %667 = vmatprep.subr.bf16.mxu0 %v2218_v3  ;;  %710 = vmatprep.subr.bf16.mxu1 %v2246_v8 }
 0x123   :  { %697 = vmatprep.mubr.bf16.mxu0 %v3131_v1  ;;  %740 = vmatprep.mubr.bf16.mxu1 %v3131_v1 }
 0x125   :  { %668 = vmatpush1.bf16.msra.mxu0 %v2229_v5  ;;  %711 = vmatpush1.bf16.msra.mxu1 %v2252_v9 }
 0x126   :  { %669 = vmatprep.subr.bf16.mxu0 %v2240_v7  ;;  %712 = vmatprep.subr.bf16.mxu1 %v2270_v12 }
 0x129   :  { %670 = vmatpush1.bf16.msra.mxu0 %v2259_v10  ;;  %713 = vmatpush1.bf16.msra.mxu1 %v2276_v13 }
 0x12a   :  { %671 = vmatprep.subr.bf16.mxu0 %v2265_v11  ;;  %714 = vmatprep.subr.bf16.mxu1 %v2288_v15 }
 0x12d   :  { %672 = vmatpush1.bf16.msra.mxu0 %v2283_v14  ;;  %715 = vmatpush1.bf16.msra.mxu1 %v2305_v18 }
 0x12e   :  { %673 = vmatprep.subr.bf16.mxu0 %v2294_v16  ;;  %716 = vmatprep.subr.bf16.mxu1 %v2312_v19 }
 0x131   :  { %674 = vmatpush1.bf16.msra.mxu0 %v2300_v17  ;;  %717 = vmatpush1.bf16.msra.mxu1 %v2324_v21 }
 0x132   :  { %675 = vmatprep.subr.bf16.mxu0 %v2318_v20  ;;  %718 = vmatprep.subr.bf16.mxu1 %v2336_v23 }
 0x135   :  { %676 = vmatpush1.bf16.msra.mxu0 %v2331_v22  ;;  %719 = vmatpush1.bf16.msra.mxu1 %v2358_v27 }
 0x136   :  { %677 = vmatprep.subr.bf16.mxu0 %v2342_v24  ;;  %720 = vmatprep.subr.bf16.mxu1 %v2372_v29 }
 0x139   :  { %678 = vmatpush1.bf16.msra.mxu0 %v2367_v28  ;;  %721 = vmatpush1.bf16.msra.mxu1 %v2386_v33 }
 0x13a   :  { %679 = vmatprep.subr.bf16.mxu0 %v2379_v31  ;;  %722 = vmatprep.subr.bf16.mxu1 %v2399_v35 }
 0x13d   :  { %680 = vmatpush1.bf16.msra.mxu0 %v2394_v34  ;;  %723 = vmatpush1.bf16.msra.mxu1 %v2407_v37 }
 0x13e   :  { %840 = vmatprep.subr.bf16.mxu0 %v2203_v0  ;;  %883 = vmatprep.subr.bf16.mxu1 %v2224_v4 }
 0x1f3   :  { %v524_v60 = vpop.f32.mrb[4].mxu0  ;;  %v567_v32 = vpop.f32.mrb[4].mxu1 }
 0x1f4   :  { %v576_v38 = vadd.f32 %v524_v60, %v481_v63  ;;  %v526_v40 = vpop.f32.mrb[5].mxu0  ;;  %v569_v41 = vpop.f32.mrb[5].mxu1  ;;  %v578_v61 = vadd.f32 %v567_v32, %v483_v39 }
 0x1f5   :  { %v577_v45 = vadd.f32 %v526_v40, %v482_v26  ;;  %v528_v46 = vpop.f32.mrb[6].mxu0  ;;  %v571_v47 = vpop.f32.mrb[6].mxu1  ;;  %v579_v1 = vadd.f32 %v569_v41, %v484_v56  ;;  %v488_v26 = vunpack.c.h.bf16 %v1790_v44  ;;  %v450_v41 = vsel %vm141_vm0, %v2486_v42, 0.0 }
 0x1f6   :  { %v584_v49 = vmul.f32 0.5, %v576_v38  ;;  %v580_v50 = vadd.f32 %v528_v46, %v485_v30  ;;  %v530_v51 = vpop.f32.mrb[7].mxu0  ;;  %v573_v52 = vpop.f32.mrb[7].mxu1  ;;  %v582_v60 = vadd.f32 %v571_v47, %v487_v54 }
 0x1f7   :  { %v592_v53 = vmul.f32 0.5, %v577_v45  ;;  %v581_v58 = vadd.f32 %v530_v51, %v486_v36  ;;  %v602_v38 = vmul.f32 0.5, %v579_v1  ;;  %v583_v30 = vadd.f32 %v573_v52, %v488_v26  ;;  %v470_v51 = vpop.permute.xlu1 %469 }
 0x1f8   :  { %1996 = vtanh.f32 %v584_v49  ;;  %v585_v62 = vmul.f32 0.5, %v580_v50  ;;  %vm474_vm3 = vcmp.eq.s32.totalorder %v470_v51, 1 }
 0x1f9   :  { %1998 = vtanh.f32 %v592_v53  ;;  %v593_v63 = vmul.f32 0.5, %v581_v58  ;;  %v603_v36 = vmul.f32 0.5, %v583_v30 }
 0x1fa   :  { %2000 = vtanh.f32 %v585_v62 }
 0x1fb   :  { %2002 = vtanh.f32 %v578_v61  ;;  %v473_v42 = vpop.permute.xlu1 %472 }
 0x1fc   :  { %2004 = vtanh.f32 %v593_v63  ;;  %vm475_vm4 = vcmp.eq.s32.totalorder %v473_v42, 1 }
 0x1fd   :  { %2006 = vtanh.f32 %v582_v60 }
 0x1fe   :  { %2008 = vtanh.f32 %v602_v38 }
 0x1ff   :  { %2010 = vtanh.f32 %v603_v36 }
 0x202   :  { %v1997_v40 = vpop.eup %1996 }
 0x203   :  { %v1999_v46 = vpop.eup %1998  ;;  %v588_v45 = vmul.f32 0.5, %v1997_v40 }
 0x204   :  { %v596_v4 = vmul.f32 0.5, %v1999_v46  ;;  %v2001_v32 = vpop.eup %2000 }
 0x205   :  { %v590_v25 = vadd.f32 0.5, %v588_v45  ;;  %v2003_v39 = vpop.eup %2002  ;;  %v589_v50 = vmul.f32 0.5, %v2001_v32 }
 0x206   :  { %v598_v49 = vadd.f32 0.5, %v596_v4  ;;  %v2005_v47 = vpop.eup %2004  ;;  %v451_v4 = vsel %vm142_vm1, %v2489_v43, 0.0 }
 0x207   :  { %v612_v44 = vmul.f32 %v2003_v39, %v590_v25  ;;  %v591_v52 = vadd.f32 0.5, %v589_v50  ;;  %v597_v53 = vmul.f32 0.5, %v2005_v47  ;;  %v2007_v54 = vpop.eup %2006 }
 0x208   :  { %v610_v1 = vmul.f32 %v598_v49, %v450_v41  ;;  %v2009_v48 = vpop.eup %2008 }
 0x209   :  { %v599_v58 = vadd.f32 0.5, %v597_v53  ;;  %v613_v56 = vmul.f32 %v2007_v54, %v591_v52  ;;  %v606_v38 = vmul.f32 0.5, %v2009_v48  ;;  %v2011_v30 = vpop.eup %2010 }
 0x20a   :  { %v614_v61 = vadd.f32 %v612_v44, %v610_v1  ;;  %v607_v46 = vmul.f32 0.5, %v2011_v30 }
 0x20b   :  { %v611_v62 = vmul.f32 %v599_v58, %v451_v4  ;;  %v608_v40 = vadd.f32 0.5, %v606_v38 }
 0x20c   :  { %2012 = vtanh.f32 %v614_v61  ;;  %v2568_v63 = vsel %vm474_vm3, %v614_v61, %v450_v41  ;;  %v609_v43 = vadd.f32 0.5, %v607_v46 }
 0x20d   :  { %v615_v60 = vadd.f32 %v613_v56, %v611_v62  ;;  %v1800_v56 = vld [vmem:[%s3127_s1 + $0x58] sm:$0xff] }
 0x20e   :  { %v662_v46 = vunpack.c.l.bf16 %v1800_v56 }
 0x20f   :  { %2014 = vtanh.f32 %v615_v60  ;;  %v2571_v26 = vsel %vm475_vm4, %v615_v60, %v451_v4 }
 0x216   :  { %v2013_v45 = vpop.eup %2012 }
 0x217   :  { %v618_v55 = vmul.f32 %v2013_v45, %v608_v40 }
 0x219   :  { %v2015_v36 = vpop.eup %2014  ;;  %v620_v25 = vsel %vm474_vm3, %v618_v55, 0.0  ;;  %v2576_v39 = vsel %vm474_vm3, %v618_v55, %v2500_v57  ;;  %v3135_v57 = vmov 0  }
 0x21a   :  { %v619_v32 = vmul.f32 %v2015_v36, %v609_v43 }
 0x21c   :  { %v621_v49 = vsel %vm475_vm4, %v619_v32, 0.0  ;;  %v2581_v50 = vsel %vm475_vm4, %v619_v32, %v2504_v59  ;;  %v1798_v59 = vld [vmem:[%s3127_s1 + $0x48] sm:$0xff] }
 0x21d   :  { %v1879_v47 = vpack.c.bf16 %v621_v49, %v620_v25  ;;  %v664_v41 = vpack.c.bf16 %v2581_v50, %v2576_v39  ;;  %v658_v54 = vunpack.c.l.bf16 %v1798_v59  ;;  %v659_v43 = vunpack.c.h.bf16 %v1798_v59 }
 0x21f   :  { %1911 = vst [vmem:[%s3128_s3 + $0x8] sm:$0xff] %v1879_v47   ;;  %698 = vmatmul.mubr.bf16.vlgmr.msra.gmra.mrb[8].mxu0 %v664_v41  ;;  %741 = vmatmul.mubr.bf16.vlgmr.msra.gmra.mrb[8].mxu1 %v664_v41  ;;  %v663_v47 = vunpack.c.h.bf16 %v1800_v56 }
 0x220   :  { %841 = vmatpush1.bf16.msra.mxu0 %v2210_v2  ;;  %884 = vmatpush1.bf16.msra.mxu1 %v2234_v6  ;;  %v3136_v2 = vld [vmem:[#allocation4_spill] sm:$0xff] }
 0x221   :  { %842 = vmatprep.subr.bf16.mxu0 %v2218_v3  ;;  %885 = vmatprep.subr.bf16.mxu1 %v2246_v8  ;;  %v1797_v3 = vld [vmem:[%s3127_s1 + $0x40] sm:$0xff] }
 0x222   :  { %872 = vmatprep.mubr.bf16.mxu0 %v3135_v57  ;;  %915 = vmatprep.mubr.bf16.mxu1 %v3135_v57  ;;  %v657_v51 = vunpack.c.h.bf16 %v1797_v3 }
 0x224   :  { %843 = vmatpush1.bf16.msra.mxu0 %v2229_v5  ;;  %886 = vmatpush1.bf16.msra.mxu1 %v2252_v9  ;;  %v1799_v5 = vld [vmem:[%s3127_s1 + $0x50] sm:$0xff] }
 0x225   :  { %844 = vmatprep.subr.bf16.mxu0 %v2240_v7  ;;  %887 = vmatprep.subr.bf16.mxu1 %v2270_v12  ;;  %v656_v7 = vunpack.c.l.bf16 %v1797_v3  ;;  %v660_v44 = vunpack.c.l.bf16 %v1799_v5 }
 0x228   :  { %845 = vmatpush1.bf16.msra.mxu0 %v2259_v10  ;;  %888 = vmatpush1.bf16.msra.mxu1 %v2276_v13 }
 0x229   :  { %846 = vmatprep.subr.bf16.mxu0 %v2265_v11  ;;  %889 = vmatprep.subr.bf16.mxu1 %v2288_v15 }
 0x22c   :  { %847 = vmatpush1.bf16.msra.mxu0 %v2283_v14  ;;  %890 = vmatpush1.bf16.msra.mxu1 %v2305_v18 }
 0x22d   :  { %848 = vmatprep.subr.bf16.mxu0 %v2294_v16  ;;  %891 = vmatprep.subr.bf16.mxu1 %v2312_v19 }
 0x230   :  { %849 = vmatpush1.bf16.msra.mxu0 %v2300_v17  ;;  %892 = vmatpush1.bf16.msra.mxu1 %v2324_v21 }
 0x231   :  { %850 = vmatprep.subr.bf16.mxu0 %v2318_v20  ;;  %893 = vmatprep.subr.bf16.mxu1 %v2336_v23 }
 0x234   :  { %851 = vmatpush1.bf16.msra.mxu0 %v2331_v22  ;;  %894 = vmatpush1.bf16.msra.mxu1 %v2358_v27 }
 0x235   :  { %852 = vmatprep.subr.bf16.mxu0 %v2342_v24  ;;  %895 = vmatprep.subr.bf16.mxu1 %v2372_v29 }
 0x238   :  { %853 = vmatpush1.bf16.msra.mxu0 %v2367_v28  ;;  %896 = vmatpush1.bf16.msra.mxu1 %v2386_v33 }
 0x239   :  { %854 = vmatprep.subr.bf16.mxu0 %v2379_v31  ;;  %897 = vmatprep.subr.bf16.mxu1 %v2399_v35 }
 0x23c   :  { %855 = vmatpush1.bf16.msra.mxu0 %v2394_v34  ;;  %898 = vmatpush1.bf16.msra.mxu1 %v2407_v37 }
 0x23d   :  { %1015 = vmatprep.subr.bf16.mxu0 %v2203_v0  ;;  %1058 = vmatprep.subr.bf16.mxu1 %v3136_v2  ;;  %v661_v0 = vunpack.c.h.bf16 %v1799_v5 }
 0x2f2   :  { %v699_v1 = vpop.f32.mrb[8].mxu0  ;;  %v742_v52 = vpop.f32.mrb[8].mxu1 }
 0x2f3   :  { %v751_v53 = vadd.f32 %v699_v1, %v656_v7  ;;  %v701_v58 = vpop.f32.mrb[9].mxu0  ;;  %v744_v61 = vpop.f32.mrb[9].mxu1  ;;  %v753_v55 = vadd.f32 %v742_v52, %v658_v54 }
 0x2f4   :  { %v752_v4 = vadd.f32 %v701_v58, %v657_v51  ;;  %v703_v62 = vpop.f32.mrb[10].mxu0  ;;  %v746_v42 = vpop.f32.mrb[10].mxu1  ;;  %v754_v49 = vadd.f32 %v744_v61, %v659_v43 }
 0x2f5   :  { %v759_v48 = vmul.f32 0.5, %v751_v53  ;;  %v755_v60 = vadd.f32 %v703_v62, %v660_v44  ;;  %v705_v38 = vpop.f32.mrb[11].mxu0  ;;  %v748_v30 = vpop.f32.mrb[11].mxu1  ;;  %v757_v25 = vadd.f32 %v746_v42, %v662_v46 }
 0x2f6   :  { %v767_v40 = vmul.f32 0.5, %v752_v4  ;;  %v756_v45 = vadd.f32 %v705_v38, %v661_v0  ;;  %v777_v41 = vmul.f32 0.5, %v754_v49  ;;  %v758_v2 = vadd.f32 %v748_v30, %v663_v47  ;;  %v645_v42 = vpop.permute.xlu0 %644 }
 0x2f7   :  { %2016 = vtanh.f32 %v759_v48  ;;  %v760_v36 = vmul.f32 0.5, %v755_v60  ;;  %vm649_vm5 = vcmp.eq.s32.totalorder %v645_v42, 1 }
 0x2f8   :  { %2018 = vtanh.f32 %v767_v40  ;;  %v768_v32 = vmul.f32 0.5, %v756_v45  ;;  %v778_v44 = vmul.f32 0.5, %v758_v2  ;;  %v648_v45 = vpop.permute.xlu1 %647 }
 0x2f9   :  { %2020 = vtanh.f32 %v760_v36  ;;  %vm650_vm6 = vcmp.eq.s32.totalorder %v648_v45, 1 }
 0x2fa   :  { %2022 = vtanh.f32 %v753_v55 }
 0x2fb   :  { %2024 = vtanh.f32 %v768_v32 }
 0x2fc   :  { %2026 = vtanh.f32 %v757_v25 }
 0x2fd   :  { %2028 = vtanh.f32 %v777_v41 }
 0x2fe   :  { %2030 = vtanh.f32 %v778_v44 }
 0x301   :  { %v2017_v3 = vpop.eup %2016 }
 0x302   :  { %v2019_v5 = vpop.eup %2018  ;;  %v763_v7 = vmul.f32 0.5, %v2017_v3 }
 0x303   :  { %v771_v51 = vmul.f32 0.5, %v2019_v5  ;;  %v2021_v1 = vpop.eup %2020 }
 0x304   :  { %v765_v59 = vadd.f32 0.5, %v763_v7  ;;  %v2023_v52 = vpop.eup %2022  ;;  %v764_v53 = vmul.f32 0.5, %v2021_v1 }
 0x305   :  { %v773_v0 = vadd.f32 0.5, %v771_v51  ;;  %v2025_v54 = vpop.eup %2024 }
 0x306   :  { %v787_v58 = vmul.f32 %v2023_v52, %v765_v59  ;;  %v766_v56 = vadd.f32 0.5, %v764_v53  ;;  %v772_v4 = vmul.f32 0.5, %v2025_v54  ;;  %v2027_v62 = vpop.eup %2026  ;;  %v2659_v59 = vld [vmem:[%s3125_s2] ss:$16 sps:$4 sm:$0xff]  }
 0x307   :  { %v785_v61 = vmul.f32 %v773_v0, %v2568_v63  ;;  %v2029_v46 = vpop.eup %2028 }
 0x308   :  { %v774_v60 = vadd.f32 0.5, %v772_v4  ;;  %v788_v38 = vmul.f32 %v2027_v62, %v766_v56  ;;  %v781_v36 = vmul.f32 0.5, %v2029_v46  ;;  %v2031_v32 = vpop.eup %2030 }
 0x309   :  { %v789_v48 = vadd.f32 %v787_v58, %v785_v61  ;;  %v782_v49 = vmul.f32 0.5, %v2031_v32 }
 0x30a   :  { %v786_v30 = vmul.f32 %v774_v60, %v2571_v26  ;;  %v783_v25 = vadd.f32 0.5, %v781_v36 }
 0x30b   :  { %2032 = vtanh.f32 %v789_v48  ;;  %v2638_v40 = vsel %vm649_vm5, %v789_v48, %v2568_v63  ;;  %v784_v2 = vadd.f32 0.5, %v782_v49 }
 0x30c   :  { %v790_v55 = vadd.f32 %v788_v38, %v786_v30 }
 0x30e   :  { %2034 = vtanh.f32 %v790_v55  ;;  %v2641_v43 = vsel %vm650_vm6, %v790_v55, %v2571_v26 }
 0x315   :  { %v2033_v47 = vpop.eup %2032 }
 0x316   :  { %v793_v41 = vmul.f32 %v2033_v47, %v783_v25 }
 0x318   :  { %v2035_v3 = vpop.eup %2034  ;;  %v795_v63 = vsel %vm649_vm5, %v793_v41, 0.0  ;;  %v2646_v51 = vsel %vm649_vm5, %v793_v41, %v2576_v39  ;;  %v2666_v39 = vld [vmem:[%s3125_s2 + $0x24] ss:$16 sps:$4 sm:$0xff]  }
 0x319   :  { %v794_v5 = vmul.f32 %v2035_v3, %v784_v2 }
 0x31b   :  { %v796_v7 = vsel %vm650_vm6, %v794_v5, 0.0  ;;  %v2649_v44 = vsel %vm650_vm6, %v794_v5, %v2581_v50  ;;  %v2675_v50 = vld [vmem:[%s3125_s2 + $0x20] ss:$16 sps:$4 sm:$0xff]  }
 0x31c   :  { %v1884_v26 = vpack.c.bf16 %v796_v7, %v795_v63  ;;  %v839_v1 = vpack.c.bf16 %v2649_v44, %v2646_v51  ;;  %v820_v63 = vpop.permute.xlu0 %819 }
 0x31d   :  { %vm824_vm7 = vcmp.eq.s32.totalorder %v820_v63, 1 }
 0x31e   :  { %1912 = vst [vmem:[%s3128_s3 + $0x10] sm:$0xff] %v1884_v26   ;;  %873 = vmatmul.mubr.bf16.vlgmr.msra.gmra.mrb[12].mxu0 %v839_v1  ;;  %916 = vmatmul.mubr.bf16.vlgmr.msra.gmra.mrb[12].mxu1 %v839_v1 }
 0x31f   :  { %1016 = vmatpush1.bf16.msra.mxu0 %v2659_v59  ;;  %1059 = vmatpush1.bf16.msra.mxu1 %v2234_v6  ;;  %v2682_v6 = vld [vmem:[%s3125_s2 + $0x44] ss:$16 sps:$4 sm:$0xff]  }
 0x320   :  { %1017 = vmatprep.subr.bf16.mxu0 %v2666_v39  ;;  %1060 = vmatprep.subr.bf16.mxu1 %v2246_v8  ;;  %v2711_v8 = vld [vmem:[%s3125_s2 + $0x4] ss:$16 sps:$4 sm:$0xff]  }
 0x321   :  { %1047 = vmatprep.mubr.bf16.mxu0 %v3135_v57  ;;  %1090 = vmatprep.mubr.bf16.mxu1 %v3135_v57 }
 0x323   :  { %1018 = vmatpush1.bf16.msra.mxu0 %v2675_v50  ;;  %1061 = vmatpush1.bf16.msra.mxu1 %v2252_v9  ;;  %v2717_v9 = vld [vmem:[%s3125_s2 + $0xc] ss:$16 sps:$4 sm:$0xff]  }
 0x324   :  { %1019 = vmatprep.subr.bf16.mxu0 %v2682_v6  ;;  %1062 = vmatprep.subr.bf16.mxu1 %v2270_v12 }
 0x327   :  { %1020 = vmatpush1.bf16.msra.mxu0 %v2259_v10  ;;  %1063 = vmatpush1.bf16.msra.mxu1 %v2276_v13  ;;  %v1807_v10 = vld [vmem:[%s3127_s1 + $0x60] sm:$0xff]  ;;  %v1808_v13 = vld [vmem:[%s3127_s1 + $0x68] sm:$0xff] }
 0x328   :  { %1021 = vmatprep.subr.bf16.mxu0 %v2265_v11  ;;  %1064 = vmatprep.subr.bf16.mxu1 %v2288_v15  ;;  %v1809_v11 = vld [vmem:[%s3127_s1 + $0x70] sm:$0xff]  ;;  %v831_v12 = vunpack.c.l.bf16 %v1807_v10  ;;  %v834_v53 = vunpack.c.h.bf16 %v1808_v13 }
 0x329   :  { %v835_v15 = vunpack.c.l.bf16 %v1809_v11 }
 0x32b   :  { %1022 = vmatpush1.bf16.msra.mxu0 %v2283_v14  ;;  %1065 = vmatpush1.bf16.msra.mxu1 %v2305_v18  ;;  %v832_v14 = vunpack.c.h.bf16 %v1807_v10  ;;  %v836_v18 = vunpack.c.h.bf16 %v1809_v11 }
 0x32c   :  { %1023 = vmatprep.subr.bf16.mxu0 %v2294_v16  ;;  %1066 = vmatprep.subr.bf16.mxu1 %v2312_v19 }
 0x32f   :  { %1024 = vmatpush1.bf16.msra.mxu0 %v2300_v17  ;;  %1067 = vmatpush1.bf16.msra.mxu1 %v2324_v21 }
 0x330   :  { %1025 = vmatprep.subr.bf16.mxu0 %v2318_v20  ;;  %1068 = vmatprep.subr.bf16.mxu1 %v2336_v23  ;;  %v833_v20 = vunpack.c.l.bf16 %v1808_v13  ;;  %v1810_v23 = vld [vmem:[%s3127_s1 + $0x78] sm:$0xff]  ;;  %v823_v13 = vpop.permute.xlu1 %822 }
 0x331   :  { %v838_v4 = vunpack.c.h.bf16 %v1810_v23  ;;  %vm825_vm8 = vcmp.eq.s32.totalorder %v823_v13, 1 }
 0x333   :  { %1026 = vmatpush1.bf16.msra.mxu0 %v2331_v22  ;;  %1069 = vmatpush1.bf16.msra.mxu1 %v2358_v27 }
 0x334   :  { %1027 = vmatprep.subr.bf16.mxu0 %v2342_v24  ;;  %1070 = vmatprep.subr.bf16.mxu1 %v2372_v29 }
 0x337   :  { %1028 = vmatpush1.bf16.msra.mxu0 %v2367_v28  ;;  %1071 = vmatpush1.bf16.msra.mxu1 %v2386_v33 }
 0x338   :  { %1029 = vmatprep.subr.bf16.mxu0 %v2379_v31  ;;  %1072 = vmatprep.subr.bf16.mxu1 %v2399_v35 }
 0x33b   :  { %1030 = vmatpush1.bf16.msra.mxu0 %v2394_v34  ;;  %1073 = vmatpush1.bf16.msra.mxu1 %v2407_v37  ;;  %v837_v37 = vunpack.c.l.bf16 %v1810_v23 }
 0x33c   :  { %1190 = vmatprep.subr.bf16.mxu0 %v2711_v8  ;;  %1233 = vmatprep.subr.bf16.mxu1 %v2717_v9 }
 0x3f1   :  { %v874_v16 = vpop.f32.mrb[12].mxu0  ;;  %v917_v17 = vpop.f32.mrb[12].mxu1 }
 0x3f2   :  { %v926_v19 = vadd.f32 %v874_v16, %v831_v12  ;;  %v876_v21 = vpop.f32.mrb[13].mxu0  ;;  %v919_v22 = vpop.f32.mrb[13].mxu1  ;;  %v928_v0 = vadd.f32 %v917_v17, %v833_v20 }
 0x3f3   :  { %v927_v24 = vadd.f32 %v876_v21, %v832_v14  ;;  %v878_v27 = vpop.f32.mrb[14].mxu0  ;;  %v921_v28 = vpop.f32.mrb[14].mxu1  ;;  %v929_v56 = vadd.f32 %v919_v22, %v834_v53  ;;  %v2811_v53 = vld [vmem:[%s3125_s2 + $0x60] ss:$16 sps:$4 sm:$0xff]  }
 0x3f4   :  { %v934_v29 = vmul.f32 0.5, %v926_v19  ;;  %v930_v31 = vadd.f32 %v878_v27, %v835_v15  ;;  %v880_v33 = vpop.f32.mrb[15].mxu0  ;;  %v923_v34 = vpop.f32.mrb[15].mxu1  ;;  %v932_v61 = vadd.f32 %v921_v28, %v837_v37  ;;  %v2793_v37 = vld [vmem:[%s3125_s2 + $0x48] ss:$16 sps:$4 sm:$0xff]  }
 0x3f5   :  { %v942_v35 = vmul.f32 0.5, %v927_v24  ;;  %v931_v52 = vadd.f32 %v880_v33, %v836_v18  ;;  %v952_v62 = vmul.f32 0.5, %v929_v56  ;;  %v933_v42 = vadd.f32 %v923_v34, %v838_v4  ;;  %v2774_v33 = vld [vmem:[%s3125_s2 + $0x28] ss:$16 sps:$4 sm:$0xff]   ;;  %v2781_v34 = vld [vmem:[%s3125_s2 + $0x4c] ss:$16 sps:$4 sm:$0xff]  }
 0x3f6   :  { %2036 = vtanh.f32 %v934_v29  ;;  %v935_v54 = vmul.f32 0.5, %v930_v31  ;;  %v2835_v56 = vld [vmem:[%s3125_s2 + $0x80] ss:$16 sps:$4 sm:$0xff]   ;;  %v2841_v4 = vld [vmem:[%s3125_s2 + $0x88] ss:$16 sps:$4 sm:$0xff]  }
 0x3f7   :  { %2038 = vtanh.f32 %v942_v35  ;;  %v943_v58 = vmul.f32 0.5, %v931_v52  ;;  %v953_v46 = vmul.f32 0.5, %v933_v42  ;;  %v2787_v35 = vld [vmem:[%s3125_s2 + $0x40] ss:$16 sps:$4 sm:$0xff]   ;;  %v2799_v52 = vld [vmem:[%s3125_s2 + $0x64] ss:$16 sps:$4 sm:$0xff]  }
 0x3f8   :  { %2040 = vtanh.f32 %v935_v54  ;;  %v2817_v54 = vld [vmem:[%s3125_s2 + $0x68] ss:$16 sps:$4 sm:$0xff]   ;;  %v2853_v42 = vld [vmem:[%s3125_s2 + $0xac] ss:$16 sps:$4 sm:$0xff]  }
 0x3f9   :  { %2042 = vtanh.f32 %v928_v0  ;;  %v2805_v0 = vld [vmem:[%s3125_s2 + $0x6c] ss:$16 sps:$4 sm:$0xff]  }
 0x3fa   :  { %2044 = vtanh.f32 %v943_v58  ;;  %v2823_v58 = vld [vmem:[%s3125_s2 + $0x84] ss:$16 sps:$4 sm:$0xff]  }
 0x3fb   :  { %2046 = vtanh.f32 %v932_v61  ;;  %v2829_v61 = vld [vmem:[%s3125_s2 + $0x8c] ss:$16 sps:$4 sm:$0xff]  }
 0x3fc   :  { %2048 = vtanh.f32 %v952_v62  ;;  %v2847_v62 = vld [vmem:[%s3125_s2 + $0xa4] ss:$16 sps:$4 sm:$0xff]  }
 0x3fd   :  { %2050 = vtanh.f32 %v953_v46  ;;  %v2883_v46 = vld [vmem:[%s3125_s2 + $0xc0] ss:$16 sps:$4 sm:$0xff]  }
 0x400   :  { %v2037_v48 = vpop.eup %2036 }
 0x401   :  { %v2039_v60 = vpop.eup %2038  ;;  %v938_v38 = vmul.f32 0.5, %v2037_v48  ;;  %v2859_v48 = vld [vmem:[%s3125_s2 + $0xa0] ss:$16 sps:$4 sm:$0xff]  }
 0x402   :  { %v946_v30 = vmul.f32 0.5, %v2039_v60  ;;  %v2041_v45 = vpop.eup %2040  ;;  %v2865_v60 = vld [vmem:[%s3125_s2 + $0xa8] ss:$16 sps:$4 sm:$0xff]  }
 0x403   :  { %v940_v55 = vadd.f32 0.5, %v938_v38  ;;  %v2043_v36 = vpop.eup %2042  ;;  %v939_v25 = vmul.f32 0.5, %v2041_v45  ;;  %v2871_v38 = vld [vmem:[%s3125_s2 + $0xc4] ss:$16 sps:$4 sm:$0xff]   ;;  %v2889_v45 = vld [vmem:[%s3125_s2 + $0xc8] ss:$16 sps:$4 sm:$0xff]  }
 0x404   :  { %v948_v32 = vadd.f32 0.5, %v946_v30  ;;  %v2045_v49 = vpop.eup %2044  ;;  %v2877_v30 = vld [vmem:[%s3125_s2 + $0xcc] ss:$16 sps:$4 sm:$0xff]  }
 0x405   :  { %v962_v47 = vmul.f32 %v2043_v36, %v940_v55  ;;  %v941_v2 = vadd.f32 0.5, %v939_v25  ;;  %v947_v3 = vmul.f32 0.5, %v2045_v49  ;;  %v2047_v5 = vpop.eup %2046  ;;  %v2895_v55 = vld [vmem:[%s3125_s2 + $0xe4] ss:$16 sps:$4 sm:$0xff]   ;;  %v2901_v36 = vld [vmem:[%s3125_s2 + $0xec] ss:$16 sps:$4 sm:$0xff]  }
 0x406   :  { %v960_v41 = vmul.f32 %v948_v32, %v2638_v40  ;;  %v2049_v12 = vpop.eup %2048  ;;  %v2907_v32 = vld [vmem:[%s3125_s2 + $0xe0] ss:$16 sps:$4 sm:$0xff]   ;;  %v2913_v25 = vld [vmem:[%s3125_s2 + $0xe8] ss:$16 sps:$4 sm:$0xff]  }
 0x407   :  { %v949_v26 = vadd.f32 0.5, %v947_v3  ;;  %v963_v1 = vmul.f32 %v2047_v5, %v941_v2  ;;  %v956_v16 = vmul.f32 0.5, %v2049_v12  ;;  %v2051_v17 = vpop.eup %2050  ;;  %v1817_v49 = vld [vmem:[%s3127_s1 + $0x80] sm:$0xff]  ;;  %v1818_v2 = vld [vmem:[%s3127_s1 + $0x88] sm:$0xff] }
 0x408   :  { %v964_v7 = vadd.f32 %v962_v47, %v960_v41  ;;  %v957_v19 = vmul.f32 0.5, %v2051_v17  ;;  %v1819_v47 = vld [vmem:[%s3127_s1 + $0x90] sm:$0xff]  ;;  %v1006_v41 = vunpack.c.l.bf16 %v1817_v49  ;;  %v1007_v3 = vunpack.c.h.bf16 %v1817_v49 }
 0x409   :  { %v961_v10 = vmul.f32 %v949_v26, %v2641_v43  ;;  %v958_v18 = vadd.f32 0.5, %v956_v16  ;;  %v1010_v5 = vunpack.c.l.bf16 %v1819_v47  ;;  %v1011_v26 = vunpack.c.h.bf16 %v1819_v47 }
 0x40a   :  { %2052 = vtanh.f32 %v964_v7  ;;  %v2736_v11 = vsel %vm824_vm7, %v964_v7, %v2638_v40  ;;  %v959_v22 = vadd.f32 0.5, %v957_v19 }
 0x40b   :  { %v965_v14 = vadd.f32 %v963_v1, %v961_v10  ;;  %v1008_v10 = vunpack.c.l.bf16 %v1818_v2 }
 0x40d   :  { %2054 = vtanh.f32 %v965_v14  ;;  %v2739_v15 = vsel %vm825_vm8, %v965_v14, %v2641_v43  ;;  %v1820_v14 = vld [vmem:[%s3127_s1 + $0x98] sm:$0xff] }
 0x414   :  { %v2053_v20 = vpop.eup %2052 }
 0x415   :  { %v968_v21 = vmul.f32 %v2053_v20, %v958_v18 }
 0x417   :  { %v2055_v23 = vpop.eup %2054  ;;  %v970_v40 = vsel %vm824_vm7, %v968_v21, 0.0  ;;  %v2744_v28 = vsel %vm824_vm7, %v968_v21, %v2646_v51  ;;  %v2758_v51 = vld [vmem:[%s3125_s2 + $0x8] ss:$16 sps:$4 sm:$0xff]  }
 0x418   :  { %v969_v24 = vmul.f32 %v2055_v23, %v959_v22 }
 0x41a   :  { %v971_v27 = vsel %vm825_vm8, %v969_v24, 0.0  ;;  %v2747_v29 = vsel %vm825_vm8, %v969_v24, %v2649_v44  ;;  %v2765_v44 = vld [vmem:[%s3125_s2 + $0x2c] ss:$16 sps:$4 sm:$0xff]   ;;  %v1012_v24 = vunpack.c.l.bf16 %v1820_v14 }
 0x41b   :  { %v1889_v43 = vpack.c.bf16 %v971_v27, %v970_v40  ;;  %v1014_v31 = vpack.c.bf16 %v2747_v29, %v2744_v28 }
 0x41d   :  { %1913 = vst [vmem:[%s3128_s3 + $0x18] sm:$0xff] %v1889_v43   ;;  %1048 = vmatmul.mubr.bf16.vlgmr.msra.gmra.mrb[16].mxu0 %v1014_v31  ;;  %1091 = vmatmul.mubr.bf16.vlgmr.msra.gmra.mrb[16].mxu1 %v1014_v31  ;;  %v1009_v43 = vunpack.c.h.bf16 %v1818_v2 }
 0x41e   :  { %1191 = vmatpush1.bf16.msra.mxu0 %v2659_v59  ;;  %1234 = vmatpush1.bf16.msra.mxu1 %v2758_v51 }
 0x41f   :  { %1192 = vmatprep.subr.bf16.mxu0 %v2666_v39  ;;  %1235 = vmatprep.subr.bf16.mxu1 %v2765_v44 }
 0x420   :  { %1222 = vmatprep.mubr.bf16.mxu0 %v3135_v57  ;;  %1265 = vmatprep.mubr.bf16.mxu1 %v3135_v57 }
 0x422   :  { %1193 = vmatpush1.bf16.msra.mxu0 %v2675_v50  ;;  %1236 = vmatpush1.bf16.msra.mxu1 %v2774_v33 }
 0x423   :  { %1194 = vmatprep.subr.bf16.mxu0 %v2682_v6  ;;  %1237 = vmatprep.subr.bf16.mxu1 %v2781_v34 }
 0x426   :  { %1195 = vmatpush1.bf16.msra.mxu0 %v2787_v35  ;;  %1238 = vmatpush1.bf16.msra.mxu1 %v2793_v37 }
 0x427   :  { %1196 = vmatprep.subr.bf16.mxu0 %v2799_v52  ;;  %1239 = vmatprep.subr.bf16.mxu1 %v2805_v0 }
 0x42a   :  { %1197 = vmatpush1.bf16.msra.mxu0 %v2811_v53  ;;  %1240 = vmatpush1.bf16.msra.mxu1 %v2817_v54 }
 0x42b   :  { %1198 = vmatprep.subr.bf16.mxu0 %v2823_v58  ;;  %1241 = vmatprep.subr.bf16.mxu1 %v2829_v61 }
 0x42e   :  { %1199 = vmatpush1.bf16.msra.mxu0 %v2835_v56  ;;  %1242 = vmatpush1.bf16.msra.mxu1 %v2841_v4 }
 0x42f   :  { %1200 = vmatprep.subr.bf16.mxu0 %v2847_v62  ;;  %1243 = vmatprep.subr.bf16.mxu1 %v2853_v42 }
 0x432   :  { %1201 = vmatpush1.bf16.msra.mxu0 %v2859_v48  ;;  %1244 = vmatpush1.bf16.msra.mxu1 %v2865_v60 }
 0x433   :  { %1202 = vmatprep.subr.bf16.mxu0 %v2871_v38  ;;  %1245 = vmatprep.subr.bf16.mxu1 %v2877_v30 }
 0x436   :  { %1203 = vmatpush1.bf16.msra.mxu0 %v2883_v46  ;;  %1246 = vmatpush1.bf16.msra.mxu1 %v2889_v45 }
 0x437   :  { %1204 = vmatprep.subr.bf16.mxu0 %v2895_v55  ;;  %1247 = vmatprep.subr.bf16.mxu1 %v2901_v36 }
 0x43a   :  { %1205 = vmatpush1.bf16.msra.mxu0 %v2907_v32  ;;  %1248 = vmatpush1.bf16.msra.mxu1 %v2913_v25 }
 0x43b   :  { %1365 = vmatprep.subr.bf16.mxu0 %v2711_v8  ;;  %1408 = vmatprep.subr.bf16.mxu1 %v2717_v9 }
 0x4f0   :  { %v1049_v63 = vpop.f32.mrb[16].mxu0  ;;  %v1092_v7 = vpop.f32.mrb[16].mxu1 }
 0x4f1   :  { %v1101_v1 = vadd.f32 %v1049_v63, %v1006_v41  ;;  %v1051_v12 = vpop.f32.mrb[17].mxu0  ;;  %v1094_v13 = vpop.f32.mrb[17].mxu1  ;;  %v1103_v27 = vadd.f32 %v1092_v7, %v1008_v10 }
 0x4f2   :  { %v1102_v16 = vadd.f32 %v1051_v12, %v1007_v3  ;;  %v1053_v17 = vpop.f32.mrb[18].mxu0  ;;  %v1096_v18 = vpop.f32.mrb[18].mxu1  ;;  %v1104_v41 = vadd.f32 %v1094_v13, %v1009_v43  ;;  %v1013_v3 = vunpack.c.h.bf16 %v1820_v14 }
 0x4f3   :  { %v1109_v19 = vmul.f32 0.5, %v1101_v1  ;;  %v1105_v20 = vadd.f32 %v1053_v17, %v1010_v5  ;;  %v1055_v21 = vpop.f32.mrb[19].mxu0  ;;  %v1098_v22 = vpop.f32.mrb[19].mxu1  ;;  %v1107_v47 = vadd.f32 %v1096_v18, %v1012_v24 }
 0x4f4   :  { %v1117_v23 = vmul.f32 0.5, %v1102_v16  ;;  %v1106_v40 = vadd.f32 %v1055_v21, %v1011_v26  ;;  %v1127_v63 = vmul.f32 0.5, %v1104_v41  ;;  %v1108_v5 = vadd.f32 %v1098_v22, %v1013_v3  ;;  %v995_v22 = vpop.permute.xlu0 %994  ;;  %v998_v41 = vpop.permute.xlu1 %997 }
 0x4f5   :  { %2056 = vtanh.f32 %v1109_v19  ;;  %v1110_v31 = vmul.f32 0.5, %v1105_v20  ;;  %vm999_vm9 = vcmp.eq.s32.totalorder %v995_v22, 1  ;;  %vm1000_vm10 = vcmp.eq.s32.totalorder %v998_v41, 1 }
 0x4f6   :  { %2058 = vtanh.f32 %v1117_v23  ;;  %v1118_v49 = vmul.f32 0.5, %v1106_v40  ;;  %v1128_v26 = vmul.f32 0.5, %v1108_v5 }
 0x4f7   :  { %2060 = vtanh.f32 %v1110_v31 }
 0x4f8   :  { %2062 = vtanh.f32 %v1103_v27 }
 0x4f9   :  { %2064 = vtanh.f32 %v1118_v49 }
 0x4fa   :  { %2066 = vtanh.f32 %v1107_v47 }
 0x4fb   :  { %2068 = vtanh.f32 %v1127_v63 }
 0x4fc   :  { %2070 = vtanh.f32 %v1128_v26 }
 0x4ff   :  { %v2057_v1 = vpop.eup %2056 }
 0x500   :  { %v2059_v12 = vpop.eup %2058  ;;  %v1113_v16 = vmul.f32 0.5, %v2057_v1 }
 0x501   :  { %v1121_v17 = vmul.f32 0.5, %v2059_v12  ;;  %v2061_v7 = vpop.eup %2060 }
 0x502   :  { %v1115_v2 = vadd.f32 0.5, %v1113_v16  ;;  %v2063_v10 = vpop.eup %2062  ;;  %v1114_v20 = vmul.f32 0.5, %v2061_v7 }
 0x503   :  { %v1123_v19 = vadd.f32 0.5, %v1121_v17  ;;  %v2065_v21 = vpop.eup %2064 }
 0x504   :  { %v1137_v18 = vmul.f32 %v2063_v10, %v1115_v2  ;;  %v1116_v14 = vadd.f32 0.5, %v1114_v20  ;;  %v1122_v23 = vmul.f32 0.5, %v2065_v21  ;;  %v2067_v24 = vpop.eup %2066 }
 0x505   :  { %v1135_v13 = vmul.f32 %v1123_v19, %v2736_v11  ;;  %v2069_v47 = vpop.eup %2068 }
 0x506   :  { %v1124_v27 = vadd.f32 0.5, %v1122_v23  ;;  %v1138_v43 = vmul.f32 %v2067_v24, %v1116_v14  ;;  %v1131_v5 = vmul.f32 0.5, %v2069_v47  ;;  %v2071_v1 = vpop.eup %2070  ;;  %v1828_v14 = vld [vmem:[%s3127_s1 + $0xa8] sm:$0xff]  ;;  %v1830_v47 = vld [vmem:[%s3127_s1 + $0xb8] sm:$0xff] }
 0x507   :  { %v1139_v40 = vadd.f32 %v1137_v18, %v1135_v13  ;;  %v1132_v16 = vmul.f32 0.5, %v2071_v1 }
 0x508   :  { %v1136_v31 = vmul.f32 %v1124_v27, %v2739_v15  ;;  %v1133_v12 = vadd.f32 0.5, %v1131_v5 }
 0x509   :  { %2072 = vtanh.f32 %v1139_v40  ;;  %v2934_v49 = vsel %vm999_vm9, %v1139_v40, %v2736_v11  ;;  %v1134_v7 = vadd.f32 0.5, %v1132_v16 }
 0x50a   :  { %v1140_v3 = vadd.f32 %v1138_v43, %v1136_v31 }
 0x50c   :  { %2074 = vtanh.f32 %v1140_v3  ;;  %v2937_v63 = vsel %vm1000_vm10, %v1140_v3, %v2739_v15 }
 0x513   :  { %v2073_v17 = vpop.eup %2072 }
 0x514   :  { %v1143_v26 = vmul.f32 %v2073_v17, %v1133_v12 }
 0x516   :  { %v2075_v2 = vpop.eup %2074  ;;  %v1145_v11 = vsel %vm999_vm9, %v1143_v26, 0.0  ;;  %v2942_v20 = vsel %vm999_vm9, %v1143_v26, %v2744_v28  ;;  %v1827_v28 = vld [vmem:[%s3127_s1 + $0xa0] sm:$0xff] }
 0x517   :  { %v1144_v10 = vmul.f32 %v2075_v2, %v1134_v7  ;;  %v1181_v13 = vunpack.c.l.bf16 %v1827_v28  ;;  %v1182_v23 = vunpack.c.h.bf16 %v1827_v28  ;;  %v1187_v7 = vunpack.c.l.bf16 %v1830_v47 }
 0x519   :  { %v1146_v19 = vsel %vm1000_vm10, %v1144_v10, 0.0  ;;  %v2945_v21 = vsel %vm1000_vm10, %v1144_v10, %v2747_v29  ;;  %v1829_v29 = vld [vmem:[%s3127_s1 + $0xb0] sm:$0xff] }
 0x51a   :  { %v1894_v15 = vpack.c.bf16 %v1146_v19, %v1145_v11  ;;  %v1189_v18 = vpack.c.bf16 %v2945_v21, %v2942_v20  ;;  %v1185_v24 = vunpack.c.l.bf16 %v1829_v29  ;;  %v1184_v11 = vunpack.c.h.bf16 %v1828_v14 }
 0x51c   :  { %1914 = vst [vmem:[%s3128_s3 + $0x20] sm:$0xff] %v1894_v15   ;;  %1223 = vmatmul.mubr.bf16.vlgmr.msra.gmra.mrb[20].mxu0 %v1189_v18  ;;  %1266 = vmatmul.mubr.bf16.vlgmr.msra.gmra.mrb[20].mxu1 %v1189_v18 }
 0x51d   :  { %1366 = vmatpush1.bf16.msra.mxu0 %v2659_v59  ;;  %1409 = vmatpush1.bf16.msra.mxu1 %v2758_v51 }
 0x51e   :  { %1367 = vmatprep.subr.bf16.mxu0 %v2666_v39  ;;  %1410 = vmatprep.subr.bf16.mxu1 %v2765_v44 }
 0x51f   :  { %1397 = vmatprep.mubr.bf16.mxu0 %v3135_v57  ;;  %1440 = vmatprep.mubr.bf16.mxu1 %v3135_v57 }
 0x521   :  { %1368 = vmatpush1.bf16.msra.mxu0 %v2675_v50  ;;  %1411 = vmatpush1.bf16.msra.mxu1 %v2774_v33 }
 0x522   :  { %1369 = vmatprep.subr.bf16.mxu0 %v2682_v6  ;;  %1412 = vmatprep.subr.bf16.mxu1 %v2781_v34 }
 0x525   :  { %1370 = vmatpush1.bf16.msra.mxu0 %v2787_v35  ;;  %1413 = vmatpush1.bf16.msra.mxu1 %v2793_v37 }
 0x526   :  { %1371 = vmatprep.subr.bf16.mxu0 %v2799_v52  ;;  %1414 = vmatprep.subr.bf16.mxu1 %v2805_v0 }
 0x529   :  { %1372 = vmatpush1.bf16.msra.mxu0 %v2811_v53  ;;  %1415 = vmatpush1.bf16.msra.mxu1 %v2817_v54 }
 0x52a   :  { %1373 = vmatprep.subr.bf16.mxu0 %v2823_v58  ;;  %1416 = vmatprep.subr.bf16.mxu1 %v2829_v61 }
 0x52d   :  { %1374 = vmatpush1.bf16.msra.mxu0 %v2835_v56  ;;  %1417 = vmatpush1.bf16.msra.mxu1 %v2841_v4 }
 0x52e   :  { %1375 = vmatprep.subr.bf16.mxu0 %v2847_v62  ;;  %1418 = vmatprep.subr.bf16.mxu1 %v2853_v42 }
 0x531   :  { %1376 = vmatpush1.bf16.msra.mxu0 %v2859_v48  ;;  %1419 = vmatpush1.bf16.msra.mxu1 %v2865_v60 }
 0x532   :  { %1377 = vmatprep.subr.bf16.mxu0 %v2871_v38  ;;  %1420 = vmatprep.subr.bf16.mxu1 %v2877_v30 }
 0x535   :  { %1378 = vmatpush1.bf16.msra.mxu0 %v2883_v46  ;;  %1421 = vmatpush1.bf16.msra.mxu1 %v2889_v45 }
 0x536   :  { %1379 = vmatprep.subr.bf16.mxu0 %v2895_v55  ;;  %1422 = vmatprep.subr.bf16.mxu1 %v2901_v36 }
 0x539   :  { %1380 = vmatpush1.bf16.msra.mxu0 %v2907_v32  ;;  %1423 = vmatpush1.bf16.msra.mxu1 %v2913_v25 }
 0x53a   :  { %1540 = vmatprep.subr.bf16.mxu0 %v2711_v8  ;;  %1583 = vmatprep.subr.bf16.mxu1 %v2717_v9  ;;  %v1186_v8 = vunpack.c.h.bf16 %v1829_v29  ;;  %v1183_v9 = vunpack.c.l.bf16 %v1828_v14  ;;  %v1188_v29 = vunpack.c.h.bf16 %v1830_v47 }
 0x5ef   :  { %v1224_v22 = vpop.f32.mrb[20].mxu0  ;;  %v1267_v40 = vpop.f32.mrb[20].mxu1 }
 0x5f0   :  { %v1276_v27 = vadd.f32 %v1224_v22, %v1181_v13  ;;  %v1226_v43 = vpop.f32.mrb[21].mxu0  ;;  %v1269_v31 = vpop.f32.mrb[21].mxu1  ;;  %v1278_v10 = vadd.f32 %v1267_v40, %v1183_v9 }
 0x5f1   :  { %v1277_v41 = vadd.f32 %v1226_v43, %v1182_v23  ;;  %v1228_v3 = vpop.f32.mrb[22].mxu0  ;;  %v1271_v5 = vpop.f32.mrb[22].mxu1  ;;  %v1279_v28 = vadd.f32 %v1269_v31, %v1184_v11 }
 0x5f2   :  { %v1284_v1 = vmul.f32 0.5, %v1276_v27  ;;  %v1280_v12 = vadd.f32 %v1228_v3, %v1185_v24  ;;  %v1230_v16 = vpop.f32.mrb[23].mxu0  ;;  %v1273_v17 = vpop.f32.mrb[23].mxu1  ;;  %v1282_v18 = vadd.f32 %v1271_v5, %v1187_v7 }
 0x5f3   :  { %v1292_v26 = vmul.f32 0.5, %v1277_v41  ;;  %v1281_v2 = vadd.f32 %v1230_v16, %v1186_v8  ;;  %v1302_v13 = vmul.f32 0.5, %v1279_v28  ;;  %v1283_v23 = vadd.f32 %v1273_v17, %v1188_v29  ;;  %v1170_v17 = vpop.permute.xlu0 %1169 }
 0x5f4   :  { %2076 = vtanh.f32 %v1284_v1  ;;  %v1285_v19 = vmul.f32 0.5, %v1280_v12  ;;  %vm1174_vm11 = vcmp.eq.s32.totalorder %v1170_v17, 1 }
 0x5f5   :  { %2078 = vtanh.f32 %v1292_v26  ;;  %v1293_v15 = vmul.f32 0.5, %v1281_v2  ;;  %v1303_v8 = vmul.f32 0.5, %v1283_v23 }
 0x5f6   :  { %2080 = vtanh.f32 %v1285_v19 }
 0x5f7   :  { %2082 = vtanh.f32 %v1278_v10 }
 0x5f8   :  { %2084 = vtanh.f32 %v1293_v15  ;;  %v1173_v15 = vpop.permute.xlu1 %1172 }
 0x5f9   :  { %2086 = vtanh.f32 %v1282_v18  ;;  %vm1175_vm12 = vcmp.eq.s32.totalorder %v1173_v15, 1 }
 0x5fa   :  { %2088 = vtanh.f32 %v1302_v13 }
 0x5fb   :  { %2090 = vtanh.f32 %v1303_v8 }
 0x5fe   :  { %v2077_v24 = vpop.eup %2076 }
 0x5ff   :  { %v2079_v22 = vpop.eup %2078  ;;  %v1288_v27 = vmul.f32 0.5, %v2077_v24 }
 0x600   :  { %v1296_v43 = vmul.f32 0.5, %v2079_v22  ;;  %v2081_v40 = vpop.eup %2080 }
 0x601   :  { %v1290_v14 = vadd.f32 0.5, %v1288_v27  ;;  %v2083_v9 = vpop.eup %2082  ;;  %v1289_v3 = vmul.f32 0.5, %v2081_v40 }
 0x602   :  { %v1298_v41 = vadd.f32 0.5, %v1296_v43  ;;  %v2085_v1 = vpop.eup %2084 }
 0x603   :  { %v1312_v5 = vmul.f32 %v2083_v9, %v1290_v14  ;;  %v1291_v47 = vadd.f32 0.5, %v1289_v3  ;;  %v1297_v12 = vmul.f32 0.5, %v2085_v1  ;;  %v2087_v16 = vpop.eup %2086 }
 0x604   :  { %v1310_v31 = vmul.f32 %v1298_v41, %v2934_v49  ;;  %v2089_v19 = vpop.eup %2088 }
 0x605   :  { %v1299_v7 = vadd.f32 0.5, %v1297_v12  ;;  %v1313_v2 = vmul.f32 %v2087_v16, %v1291_v47  ;;  %v1306_v29 = vmul.f32 0.5, %v2089_v19  ;;  %v2091_v13 = vpop.eup %2090 }
 0x606   :  { %v1314_v26 = vadd.f32 %v1312_v5, %v1310_v31  ;;  %v1307_v24 = vmul.f32 0.5, %v2091_v13 }
 0x607   :  { %v1311_v10 = vmul.f32 %v1299_v7, %v2937_v63  ;;  %v1308_v23 = vadd.f32 0.5, %v1306_v29 }
 0x608   :  { %2092 = vtanh.f32 %v1314_v26  ;;  %v3002_v11 = vsel %vm1174_vm11, %v1314_v26, %v2934_v49  ;;  %v1309_v43 = vadd.f32 0.5, %v1307_v24 }
 0x609   :  { %v1315_v18 = vadd.f32 %v1313_v2, %v1311_v10 }
 0x60b   :  { %2094 = vtanh.f32 %v1315_v18  ;;  %v3005_v28 = vsel %vm1175_vm12, %v1315_v18, %v2937_v63 }
 0x612   :  { %v2093_v22 = vpop.eup %2092 }
 0x613   :  { %v1318_v27 = vmul.f32 %v2093_v22, %v1308_v23  ;;  %v1345_v23 = vpop.permute.xlu0 %1344 }
 0x614   :  { %vm1349_vm13 = vcmp.eq.s32.totalorder %v1345_v23, 1 }
 0x615   :  { %v2095_v8 = vpop.eup %2094  ;;  %v1320_v49 = vsel %vm1174_vm11, %v1318_v27, 0.0  ;;  %v3010_v9 = vsel %vm1174_vm11, %v1318_v27, %v2942_v20 }
 0x616   :  { %v1319_v40 = vmul.f32 %v2095_v8, %v1309_v43 }
 0x618   :  { %v1321_v14 = vsel %vm1175_vm12, %v1319_v40, 0.0  ;;  %v3013_v41 = vsel %vm1175_vm12, %v1319_v40, %v2945_v21 }
 0x619   :  { %v1899_v63 = vpack.c.bf16 %v1321_v14, %v1320_v49  ;;  %v1364_v3 = vpack.c.bf16 %v3013_v41, %v3010_v9  ;;  %v1348_v49 = vpop.permute.xlu1 %1347 }
 0x61a   :  { %vm1350_vm14 = vcmp.eq.s32.totalorder %v1348_v49, 1  ;;  %v1520_v49 = vpop.permute.xlu0 %1519 }
 0x61b   :  { %1915 = vst [vmem:[%s3128_s3 + $0x28] sm:$0xff] %v1899_v63   ;;  %1398 = vmatmul.mubr.bf16.vlgmr.msra.gmra.mrb[24].mxu0 %v1364_v3  ;;  %1441 = vmatmul.mubr.bf16.vlgmr.msra.gmra.mrb[24].mxu1 %v1364_v3  ;;  %vm1524_vm15 = vcmp.eq.s32.totalorder %v1520_v49, 1 }
 0x61c   :  { %1541 = vmatpush1.bf16.msra.mxu0 %v2659_v59  ;;  %1584 = vmatpush1.bf16.msra.mxu1 %v2758_v51  ;;  %v1839_v59 = vld [vmem:[%s3127_s1 + $0xd0] sm:$0xff] }
 0x61d   :  { %1542 = vmatprep.subr.bf16.mxu0 %v2666_v39  ;;  %1585 = vmatprep.subr.bf16.mxu1 %v2765_v44  ;;  %v1360_v51 = vunpack.c.l.bf16 %v1839_v59 }
 0x61e   :  { %1572 = vmatprep.mubr.bf16.mxu0 %v3135_v57  ;;  %1615 = vmatprep.mubr.bf16.mxu1 %v3135_v57  ;;  %v1837_v57 = vld [vmem:[%s3127_s1 + $0xc0] sm:$0xff] }
 0x61f   :  { %v1356_v39 = vunpack.c.l.bf16 %v1837_v57 }
 0x620   :  { %1543 = vmatpush1.bf16.msra.mxu0 %v2675_v50  ;;  %1586 = vmatpush1.bf16.msra.mxu1 %v2774_v33  ;;  %v1838_v50 = vld [vmem:[%s3127_s1 + $0xc8] sm:$0xff] }
 0x621   :  { %1544 = vmatprep.subr.bf16.mxu0 %v2682_v6  ;;  %1587 = vmatprep.subr.bf16.mxu1 %v2781_v34  ;;  %v1357_v6 = vunpack.c.h.bf16 %v1837_v57  ;;  %v1361_v34 = vunpack.c.h.bf16 %v1839_v59 }
 0x624   :  { %1545 = vmatpush1.bf16.msra.mxu0 %v2787_v35  ;;  %1588 = vmatpush1.bf16.msra.mxu1 %v2793_v37  ;;  %v1358_v37 = vunpack.c.l.bf16 %v1838_v50 }
 0x625   :  { %1546 = vmatprep.subr.bf16.mxu0 %v2799_v52  ;;  %1589 = vmatprep.subr.bf16.mxu1 %v2805_v0 }
 0x628   :  { %1547 = vmatpush1.bf16.msra.mxu0 %v2811_v53  ;;  %1590 = vmatpush1.bf16.msra.mxu1 %v2817_v54  ;;  %v1840_v53 = vld [vmem:[%s3127_s1 + $0xd8] sm:$0xff] }
 0x629   :  { %1548 = vmatprep.subr.bf16.mxu0 %v2823_v58  ;;  %1591 = vmatprep.subr.bf16.mxu1 %v2829_v61 }
 0x62c   :  { %1549 = vmatpush1.bf16.msra.mxu0 %v2835_v56  ;;  %1592 = vmatpush1.bf16.msra.mxu1 %v2841_v4 }
 0x62d   :  { %1550 = vmatprep.subr.bf16.mxu0 %v2847_v62  ;;  %1593 = vmatprep.subr.bf16.mxu1 %v2853_v42 }
 0x630   :  { %1551 = vmatpush1.bf16.msra.mxu0 %v2859_v48  ;;  %1594 = vmatpush1.bf16.msra.mxu1 %v2865_v60  ;;  %v1362_v60 = vunpack.c.l.bf16 %v1840_v53 }
 0x631   :  { %1552 = vmatprep.subr.bf16.mxu0 %v2871_v38  ;;  %1595 = vmatprep.subr.bf16.mxu1 %v2877_v30 }
 0x634   :  { %1553 = vmatpush1.bf16.msra.mxu0 %v2883_v46  ;;  %1596 = vmatpush1.bf16.msra.mxu1 %v2889_v45  ;;  %v1359_v46 = vunpack.c.h.bf16 %v1838_v50 }
 0x635   :  { %1554 = vmatprep.subr.bf16.mxu0 %v2895_v55  ;;  %1597 = vmatprep.subr.bf16.mxu1 %v2901_v36 }
 0x638   :  { %1555 = vmatpush1.bf16.msra.mxu0 %v2907_v32  ;;  %1598 = vmatpush1.bf16.msra.mxu1 %v2913_v25  ;;  %v1363_v25 = vunpack.c.h.bf16 %v1840_v53  ;;  %v1848_v53 = vld [vmem:[%s3127_s1 + $0xe8] sm:$0xff] }
 0x6ee   :  { %v1399_v44 = vpop.f32.mrb[24].mxu0  ;;  %v1442_v33 = vpop.f32.mrb[24].mxu1 }
 0x6ef   :  { %v1451_v35 = vadd.f32 %v1399_v44, %v1356_v39  ;;  %v1401_v52 = vpop.f32.mrb[25].mxu0  ;;  %v1444_v0 = vpop.f32.mrb[25].mxu1  ;;  %v1453_v30 = vadd.f32 %v1442_v33, %v1358_v37 }
 0x6f0   :  { %v1452_v54 = vadd.f32 %v1401_v52, %v1357_v6  ;;  %v1403_v58 = vpop.f32.mrb[26].mxu0  ;;  %v1446_v61 = vpop.f32.mrb[26].mxu1  ;;  %v1454_v32 = vadd.f32 %v1444_v0, %v1359_v46  ;;  %v1847_v0 = vld [vmem:[%s3127_s1 + $0xe0] sm:$0xff] }
 0x6f1   :  { %v1459_v56 = vmul.f32 0.5, %v1451_v35  ;;  %v1455_v4 = vadd.f32 %v1403_v58, %v1360_v51  ;;  %v1405_v62 = vpop.f32.mrb[27].mxu0  ;;  %v1448_v42 = vpop.f32.mrb[27].mxu1  ;;  %v1457_v36 = vadd.f32 %v1446_v61, %v1362_v60 }
 0x6f2   :  { %v1467_v48 = vmul.f32 0.5, %v1452_v54  ;;  %v1456_v38 = vadd.f32 %v1405_v62, %v1361_v34  ;;  %v1477_v20 = vmul.f32 0.5, %v1454_v32  ;;  %v1458_v21 = vadd.f32 %v1448_v42, %v1363_v25 }
 0x6f3   :  { %2096 = vtanh.f32 %v1459_v56  ;;  %v1460_v45 = vmul.f32 0.5, %v1455_v4  ;;  %v1532_v54 = vunpack.c.h.bf16 %v1847_v0  ;;  %v1533_v42 = vunpack.c.l.bf16 %v1848_v53 }
 0x6f4   :  { %2098 = vtanh.f32 %v1467_v48  ;;  %v1468_v55 = vmul.f32 0.5, %v1456_v38  ;;  %v1478_v12 = vmul.f32 0.5, %v1458_v21  ;;  %v1850_v38 = vld [vmem:[%s3127_s1 + $0xf8] sm:$0xff] }
 0x6f5   :  { %2100 = vtanh.f32 %v1460_v45  ;;  %v1537_v21 = vunpack.c.l.bf16 %v1850_v38 }
 0x6f6   :  { %2102 = vtanh.f32 %v1453_v30 }
 0x6f7   :  { %2104 = vtanh.f32 %v1468_v55 }
 0x6f8   :  { %2106 = vtanh.f32 %v1457_v36 }
 0x6f9   :  { %2108 = vtanh.f32 %v1477_v20 }
 0x6fa   :  { %2110 = vtanh.f32 %v1478_v12 }
 0x6fd   :  { %v2097_v1 = vpop.eup %2096 }
 0x6fe   :  { %v2099_v5 = vpop.eup %2098  ;;  %v1463_v31 = vmul.f32 0.5, %v2097_v1 }
 0x6ff   :  { %v1471_v47 = vmul.f32 0.5, %v2099_v5  ;;  %v2101_v16 = vpop.eup %2100 }
 0x700   :  { %v1465_v17 = vadd.f32 0.5, %v1463_v31  ;;  %v2103_v26 = vpop.eup %2102  ;;  %v1464_v2 = vmul.f32 0.5, %v2101_v16  ;;  %v1534_v31 = vunpack.c.h.bf16 %v1848_v53 }
 0x701   :  { %v1473_v7 = vadd.f32 0.5, %v1471_v47  ;;  %v2105_v10 = vpop.eup %2104 }
 0x702   :  { %v1487_v19 = vmul.f32 %v2103_v26, %v1465_v17  ;;  %v1466_v18 = vadd.f32 0.5, %v1464_v2  ;;  %v1472_v29 = vmul.f32 0.5, %v2105_v10  ;;  %v2107_v13 = vpop.eup %2106  ;;  %v1538_v26 = vunpack.c.h.bf16 %v1850_v38 }
 0x703   :  { %v1485_v15 = vmul.f32 %v1473_v7, %v3002_v11  ;;  %v2109_v40 = vpop.eup %2108 }
 0x704   :  { %v1474_v22 = vadd.f32 0.5, %v1472_v29  ;;  %v1488_v27 = vmul.f32 %v2107_v13, %v1466_v18  ;;  %v1481_v3 = vmul.f32 0.5, %v2109_v40  ;;  %v2111_v57 = vpop.eup %2110 }
 0x705   :  { %v1489_v24 = vadd.f32 %v1487_v19, %v1485_v15  ;;  %v1482_v39 = vmul.f32 0.5, %v2111_v57 }
 0x706   :  { %v1486_v43 = vmul.f32 %v1474_v22, %v3005_v28  ;;  %v1483_v59 = vadd.f32 0.5, %v1481_v3 }
 0x707   :  { %2112 = vtanh.f32 %v1489_v24  ;;  %v3068_v8 = vsel %vm1349_vm13, %v1489_v24, %v3002_v11  ;;  %v1484_v51 = vadd.f32 0.5, %v1482_v39 }
 0x708   :  { %v1490_v14 = vadd.f32 %v1488_v27, %v1486_v43 }
 0x70a   :  { %2114 = vtanh.f32 %v1490_v14  ;;  %v3071_v63 = vsel %vm1350_vm14, %v1490_v14, %v3005_v28 }
 0x711   :  { %v2113_v50 = vpop.eup %2112 }
 0x712   :  { %v1493_v6 = vmul.f32 %v2113_v50, %v1483_v59 }
 0x714   :  { %v2115_v44 = vpop.eup %2114  ;;  %v1495_v11 = vsel %vm1349_vm13, %v1493_v6, 0.0  ;;  %v3076_v35 = vsel %vm1349_vm13, %v1493_v6, %v3010_v9  ;;  %v1849_v9 = vld [vmem:[%s3127_s1 + $0xf0] sm:$0xff] }
 0x715   :  { %v1494_v33 = vmul.f32 %v2115_v44, %v1484_v51  ;;  %v1535_v58 = vunpack.c.l.bf16 %v1849_v9  ;;  %v1536_v4 = vunpack.c.h.bf16 %v1849_v9  ;;  %v1523_v51 = vpop.permute.xlu1 %1522 }
 0x716   :  { %vm1525_vm0 = vcmp.eq.s32.totalorder %v1523_v51, 1 }
 0x717   :  { %v1496_v34 = vsel %vm1350_vm14, %v1494_v33, 0.0  ;;  %v3079_v37 = vsel %vm1350_vm14, %v1494_v33, %v3013_v41  ;;  %v1531_v41 = vunpack.c.l.bf16 %v1847_v0 }
 0x718   :  { %v1904_v28 = vpack.c.bf16 %v1496_v34, %v1495_v11  ;;  %v1539_v52 = vpack.c.bf16 %v3079_v37, %v3076_v35 }
 0x71a   :  { %1916 = vst [vmem:[%s3128_s3 + $0x30] sm:$0xff] %v1904_v28   ;;  %1573 = vmatmul.mubr.bf16.vlgmr.msra.gmra.mrb[28].mxu0 %v1539_v52  ;;  %1616 = vmatmul.mubr.bf16.vlgmr.msra.gmra.mrb[28].mxu1 %v1539_v52 }
 0x7ed   :  { %v1574_v61 = vpop.f32.mrb[28].mxu0  ;;  %v1617_v56 = vpop.f32.mrb[28].mxu1 }
 0x7ee   :  { %v1626_v62 = vadd.f32 %v1574_v61, %v1531_v41  ;;  %v1576_v48 = vpop.f32.mrb[29].mxu0  ;;  %v1619_v60 = vpop.f32.mrb[29].mxu1  ;;  %v1628_v5 = vadd.f32 %v1617_v56, %v1533_v42 }
 0x7ef   :  { %v1627_v30 = vadd.f32 %v1576_v48, %v1532_v54  ;;  %v1578_v46 = vpop.f32.mrb[30].mxu0  ;;  %v1621_v45 = vpop.f32.mrb[30].mxu1  ;;  %v1629_v17 = vadd.f32 %v1619_v60, %v1534_v31 }
 0x7f0   :  { %v1634_v55 = vmul.f32 0.5, %v1626_v62  ;;  %v1630_v36 = vadd.f32 %v1578_v46, %v1535_v58  ;;  %v1580_v32 = vpop.f32.mrb[31].mxu0  ;;  %v1623_v25 = vpop.f32.mrb[31].mxu1  ;;  %v1632_v16 = vadd.f32 %v1621_v45, %v1537_v21 }
 0x7f1   :  { %v1642_v20 = vmul.f32 0.5, %v1627_v30  ;;  %v1631_v1 = vadd.f32 %v1580_v32, %v1536_v4  ;;  %v1652_v7 = vmul.f32 0.5, %v1629_v17  ;;  %v1633_v2 = vadd.f32 %v1623_v25, %v1538_v26 }
 0x7f2   :  { %2116 = vtanh.f32 %v1634_v55  ;;  %v1635_v47 = vmul.f32 0.5, %v1630_v36 }
 0x7f3   :  { %2118 = vtanh.f32 %v1642_v20  ;;  %v1643_v12 = vmul.f32 0.5, %v1631_v1  ;;  %v1653_v29 = vmul.f32 0.5, %v1633_v2 }
 0x7f4   :  { %2120 = vtanh.f32 %v1635_v47 }
 0x7f5   :  { %2122 = vtanh.f32 %v1628_v5 }
 0x7f6   :  { %2124 = vtanh.f32 %v1643_v12 }
 0x7f7   :  { %2126 = vtanh.f32 %v1632_v16 }
 0x7f8   :  { %2128 = vtanh.f32 %v1652_v7 }
 0x7f9   :  { %2130 = vtanh.f32 %v1653_v29 }
 0x7fc   :  { %v2117_v10 = vpop.eup %2116 }
 0x7fd   :  { %v2119_v19 = vpop.eup %2118  ;;  %v1638_v15 = vmul.f32 0.5, %v2117_v10 }
 0x7fe   :  { %v1646_v18 = vmul.f32 0.5, %v2119_v19  ;;  %v2121_v13 = vpop.eup %2120 }
 0x7ff   :  { %v1640_v23 = vadd.f32 0.5, %v1638_v15  ;;  %v2123_v24 = vpop.eup %2122  ;;  %v1639_v27 = vmul.f32 0.5, %v2121_v13 }
 0x800   :  { %v1648_v22 = vadd.f32 0.5, %v1646_v18  ;;  %v2125_v43 = vpop.eup %2124 }
 0x801   :  { %v1662_v40 = vmul.f32 %v2123_v24, %v1640_v23  ;;  %v1641_v3 = vadd.f32 0.5, %v1639_v27  ;;  %v1647_v57 = vmul.f32 0.5, %v2125_v43  ;;  %v2127_v59 = vpop.eup %2126 }
 0x802   :  { %v1660_v14 = vmul.f32 %v1648_v22, %v3068_v8  ;;  %v2129_v11 = vpop.eup %2128 }
 0x803   :  { %v1649_v50 = vadd.f32 0.5, %v1647_v57  ;;  %v1663_v6 = vmul.f32 %v2127_v59, %v1641_v3  ;;  %v1656_v52 = vmul.f32 0.5, %v2129_v11  ;;  %v2131_v0 = vpop.eup %2130 }
 0x804   :  { %v1664_v39 = vadd.f32 %v1662_v40, %v1660_v14  ;;  %v1657_v9 = vmul.f32 0.5, %v2131_v0 }
 0x805   :  { %v1661_v33 = vmul.f32 %v1649_v50, %v3071_v63 }
 0x806   :  { %2132 = vtanh.f32 %v1664_v39  ;;  %v1674_v44 = vsel %vm1524_vm15, %v1664_v39, %v3068_v8  ;;  %v1658_v8 = vadd.f32 0.5, %v1656_v52  ;;  %v1659_v58 = vadd.f32 0.5, %v1657_v9 }
 0x807   :  { %1696 = vst [vmem:[%s3129_s5] sm:$0xff] %v1674_v44  ;;  %v1665_v34 = vadd.f32 %v1663_v6, %v1661_v33 }
 0x809   :  { %2134 = vtanh.f32 %v1665_v34  ;;  %v1675_v28 = vsel %vm1525_vm0, %v1665_v34, %v3071_v63 }
 0x80a   :  { %1697 = vst [vmem:[%s3129_s5 + $0x8] sm:$0xff] %v1675_v28 }
 0x810   :  { %v2133_v41 = vpop.eup %2132 }
 0x811   :  { %v1668_v53 = vmul.f32 %v2133_v41, %v1658_v8 }
 0x813   :  { %v1672_v54 = vsel %vm1524_vm15, %v1668_v53, %v3076_v35  ;;  %v2135_v61 = vpop.eup %2134  ;;  %v1670_v56 = vsel %vm1524_vm15, %v1668_v53, 0.0 }
 0x814   :  { %1694 = vst [vmem:[%s3130_s4] sm:$0xff] %v1672_v54  ;;  %v1669_v63 = vmul.f32 %v2135_v61, %v1659_v58 }
 0x816   :  { %v1671_v4 = vsel %vm1525_vm0, %v1669_v63, 0.0  ;;  %v1673_v62 = vsel %vm1525_vm0, %v1669_v63, %v3079_v37 }
 0x817   :  { %v1909_v42 = vpack.c.bf16 %v1671_v4, %v1670_v56  ;;  %1695 = vst [vmem:[%s3130_s4 + $0x8] sm:$0xff] %v1673_v62 }
 0x819   :  { %1917 = vst [vmem:[%s3128_s3 + $0x38] sm:$0xff] %v1909_v42  }

// kernel: bilstm_forward.2
= control target key start
LH: loop header
LB: loop body
LE: loop exit
PB: predicated region body
PF: predicated region fallthrough
CT: control target
= control target key end

     0   :  { %v6622_v1 = vmov 0   ;;  %v6615_v37 = vmov 0.0|0.0   ;;  %s6604_s3 = inlined_call_operand.vmem [shape: bf16[2,128,512], index: 3, kind: input, shape index: {}, may-alias: {3,4}]   ;;  %s6605_s4 = inlined_call_operand.vmem [shape: bf16[2,128,512], index: 4, kind: input, shape index: {}, may-alias: {3,4}]   ;;  %s6606_s0 = inlined_call_operand.vmem [shape: s32[16,1], index: 0, kind: input, shape index: {}]   ;;  %s6607_s1 = inlined_call_operand.vmem [shape: bf16[2,8,16,512], index: 1, kind: input, shape index: {}, may-alias: {1,2}]   ;;  %s6608_s2 = inlined_call_operand.vmem [shape: bf16[2,8,16,512], index: 2, kind: input, shape index: {}, may-alias: {1,2}]   ;;  %s6609_s5 = inlined_call_operand.vmem [shape: bf16[8,16,128], index: 5, kind: output, shape index: {0}]   ;;  %s6610_s6 = inlined_call_operand.vmem [shape: bf16[8,16,128], index: 6, kind: output, shape index: {1}]   ;;  %s6611_s8 = inlined_call_operand.vmem [shape: f32[16,128], index: 8, kind: output, shape index: {3}]   ;;  %s6612_s7 = inlined_call_operand.vmem [shape: f32[16,128], index: 7, kind: output, shape index: {2}]   ;;  %s6613_s10 = inlined_call_operand.vmem [shape: f32[16,128], index: 10, kind: output, shape index: {5}]   ;;  %s6614_s9 = inlined_call_operand.vmem [shape: f32[16,128], index: 9, kind: output, shape index: {4}]  }
   0x1   :  { %v4357_v0 = vld [vmem:[%s6604_s3 + $0x4] ss:$16 sps:$4 sm:$0xff]   ;;  %381 = vmatprep.mubr.bf16.mxu0 %v6622_v1  ;;  %424 = vmatprep.mubr.bf16.mxu1 %v6622_v1  ;;  %v4364_v2 = vld [vmem:[%s6604_s3] ss:$16 sps:$4 sm:$0xff]   ;;  %v4378_v4 = vld [vmem:[%s6604_s3 + $0xc] ss:$16 sps:$4 sm:$0xff]  }
   0x2   :  { %6780 = vst [vmem:[#allocation6_spill] sm:$0xff] %v4357_v0  ;;  %3751 = vset.pattern.permute.xlu0 %v6622_v1  ;;  %3752 = vset.pattern.permute.xlu1 %v6622_v1  ;;  %v4372_v3 = vld [vmem:[%s6604_s3 + $0x24] ss:$16 sps:$4 sm:$0xff]   ;;  %v4383_v5 = vld [vmem:[%s6604_s3 + $0x20] ss:$16 sps:$4 sm:$0xff]   ;;  %v4649_v50 = vld [vmem:[%s6606_s0 + $0x8] sm:$0xff] }
   0x3   :  { %349 = vmatprep.subr.bf16.mxu0 %v4357_v0  ;;  %v4388_v6 = vld [vmem:[%s6604_s3 + $0x8] ss:$16 sps:$4 sm:$0xff]   ;;  %v4394_v7 = vld [vmem:[%s6604_s3 + $0x44] ss:$16 sps:$4 sm:$0xff]   ;;  %392 = vmatprep.subr.bf16.mxu1 %v4378_v4  ;;  %v4400_v8 = vld [vmem:[%s6604_s3 + $0x2c] ss:$16 sps:$4 sm:$0xff]  }
   0x4   :  { %350 = vmatpush1.bf16.msra.mxu0 %v4364_v2  ;;  %393 = vmatpush1.bf16.msra.mxu1 %v4388_v6  ;;  %v4406_v9 = vld [vmem:[%s6604_s3 + $0x28] ss:$16 sps:$4 sm:$0xff]   ;;  %v4413_v10 = vld [vmem:[%s6604_s3 + $0x40] ss:$16 sps:$4 sm:$0xff]   ;;  %v4419_v11 = vld [vmem:[%s6604_s3 + $0x64] ss:$16 sps:$4 sm:$0xff]  }
   0x5   :  { %351 = vmatprep.subr.bf16.mxu0 %v4372_v3  ;;  %394 = vmatprep.subr.bf16.mxu1 %v4400_v8  ;;  %v4424_v12 = vld [vmem:[%s6604_s3 + $0x4c] ss:$16 sps:$4 sm:$0xff]   ;;  %v4430_v13 = vld [vmem:[%s6604_s3 + $0x48] ss:$16 sps:$4 sm:$0xff]   ;;  %v4437_v14 = vld [vmem:[%s6604_s3 + $0x60] ss:$16 sps:$4 sm:$0xff]  }
   0x6   :  { %v4442_v15 = vld [vmem:[%s6604_s3 + $0x6c] ss:$16 sps:$4 sm:$0xff]   ;;  %v4448_v16 = vld [vmem:[%s6604_s3 + $0x84] ss:$16 sps:$4 sm:$0xff]   ;;  %v4454_v17 = vld [vmem:[%s6604_s3 + $0x80] ss:$16 sps:$4 sm:$0xff]  }
   0x7   :  { %v4459_v18 = vld [vmem:[%s6604_s3 + $0x68] ss:$16 sps:$4 sm:$0xff]   ;;  %v4466_v19 = vld [vmem:[%s6604_s3 + $0x8c] ss:$16 sps:$4 sm:$0xff]   ;;  %v4472_v20 = vld [vmem:[%s6604_s3 + $0xa4] ss:$16 sps:$4 sm:$0xff]  }
   0x8   :  { %352 = vmatpush1.bf16.msra.mxu0 %v4383_v5  ;;  %395 = vmatpush1.bf16.msra.mxu1 %v4406_v9  ;;  %v4478_v21 = vld [vmem:[%s6604_s3 + $0x88] ss:$16 sps:$4 sm:$0xff]   ;;  %v4485_v22 = vld [vmem:[%s6604_s3 + $0xa0] ss:$16 sps:$4 sm:$0xff]   ;;  %v4490_v23 = vld [vmem:[%s6604_s3 + $0xac] ss:$16 sps:$4 sm:$0xff]  }
   0x9   :  { %353 = vmatprep.subr.bf16.mxu0 %v4394_v7  ;;  %396 = vmatprep.subr.bf16.mxu1 %v4424_v12  ;;  %v4496_v24 = vld [vmem:[%s6604_s3 + $0xc4] ss:$16 sps:$4 sm:$0xff]   ;;  %v4502_v25 = vld [vmem:[%s6604_s3 + $0xc0] ss:$16 sps:$4 sm:$0xff]   ;;  %v4507_v26 = vld [vmem:[%s6604_s3 + $0xa8] ss:$16 sps:$4 sm:$0xff]  }
   0xa   :  { %6781 = vst [vmem:[#allocation7_spill] sm:$0xff] %v4496_v24  ;;  %6782 = vst [vmem:[#allocation8_spill] sm:$0xff] %v4502_v25  ;;  %v4514_v27 = vld [vmem:[%s6604_s3 + $0xcc] ss:$16 sps:$4 sm:$0xff]   ;;  %v4520_v28 = vld [vmem:[%s6604_s3 + $0xe4] ss:$16 sps:$4 sm:$0xff]  }
   0xb   :  { %6783 = vst [vmem:[#allocation9_spill] sm:$0xff] %v4507_v26  ;;  %6784 = vst [vmem:[#allocation10_spill] sm:$0xff] %v4514_v27  ;;  %v4526_v29 = vld [vmem:[%s6604_s3 + $0xc8] ss:$16 sps:$4 sm:$0xff]   ;;  %v4533_v30 = vld [vmem:[%s6604_s3 + $0xe0] ss:$16 sps:$4 sm:$0xff]  }
   0xc   :  { %354 = vmatpush1.bf16.msra.mxu0 %v4413_v10  ;;  %397 = vmatpush1.bf16.msra.mxu1 %v4430_v13  ;;  %6785 = vst [vmem:[#allocation11_spill] sm:$0xff] %v4520_v28  ;;  %6786 = vst [vmem:[#allocation12_spill] sm:$0xff] %v4526_v29  ;;  %v4538_v31 = vld [vmem:[%s6604_s3 + $0xec] ss:$16 sps:$4 sm:$0xff]   ;;  %v4544_v32 = vld [vmem:[%s6605_s4 + $0x104] ss:$16 sps:$4 sm:$0xff]  }
   0xd   :  { %355 = vmatprep.subr.bf16.mxu0 %v4419_v11  ;;  %398 = vmatprep.subr.bf16.mxu1 %v4442_v15  ;;  %6787 = vst [vmem:[#allocation13_spill] sm:$0xff] %v4533_v30  ;;  %6788 = vst [vmem:[#allocation14_spill] sm:$0xff] %v4538_v31  ;;  %v4550_v33 = vld [vmem:[%s6604_s3 + $0xe8] ss:$16 sps:$4 sm:$0xff]   ;;  %v4555_v34 = vld [vmem:[%s6605_s4 + $0x100] ss:$16 sps:$4 sm:$0xff]  }
   0xe   :  { %6789 = vst [vmem:[#allocation15_spill] sm:$0xff] %v4544_v32  ;;  %6790 = vst [vmem:[#allocation16_spill] sm:$0xff] %v4550_v33  ;;  %v4562_v35 = vld [vmem:[%s6605_s4 + $0x10c] ss:$16 sps:$4 sm:$0xff]   ;;  %v4568_v36 = vld [vmem:[%s6605_s4 + $0x124] ss:$16 sps:$4 sm:$0xff]  }
   0xf   :  { %6791 = vst [vmem:[#allocation17_spill] sm:$0xff] %v4562_v35  ;;  %v4575_v38 = vld [vmem:[%s6605_s4 + $0x108] ss:$16 sps:$4 sm:$0xff]   ;;  %v4582_v39 = vld [vmem:[%s6605_s4 + $0x120] ss:$16 sps:$4 sm:$0xff]   ;;  %vm3396_vm1 = vcmp.gt.s32.totalorder %v4649_v50, 0 }
  0x10   :  { %356 = vmatpush1.bf16.msra.mxu0 %v4437_v14  ;;  %399 = vmatpush1.bf16.msra.mxu1 %v4459_v18  ;;  %v4587_v40 = vld [vmem:[%s6605_s4 + $0x12c] ss:$16 sps:$4 sm:$0xff]   ;;  %v4593_v41 = vld [vmem:[%s6605_s4 + $0x144] ss:$16 sps:$4 sm:$0xff]   ;;  %v4601_v42 = vld [vmem:[%s6605_s4 + $0x140] ss:$16 sps:$4 sm:$0xff]  }
  0x11   :  { %357 = vmatprep.subr.bf16.mxu0 %v4448_v16  ;;  %400 = vmatprep.subr.bf16.mxu1 %v4466_v19  ;;  %v4606_v43 = vld [vmem:[%s6605_s4 + $0x128] ss:$16 sps:$4 sm:$0xff]   ;;  %v4614_v44 = vld [vmem:[%s6605_s4 + $0x14c] ss:$16 sps:$4 sm:$0xff]   ;;  %v4620_v45 = vld [vmem:[%s6605_s4 + $0x164] ss:$16 sps:$4 sm:$0xff]  }
  0x12   :  { %6792 = vst [vmem:[#allocation18_spill] sm:$0xff] %v4620_v45  ;;  %v4626_v46 = vld [vmem:[%s6605_s4 + $0x148] ss:$16 sps:$4 sm:$0xff]   ;;  %v4631_v47 = vld [vmem:[%s6606_s0] sm:$0xff]  ;;  %v4643_v49 = vld [vmem:[%s6605_s4 + $0x16c] ss:$16 sps:$4 sm:$0xff]  }
  0x13   :  { %v4638_v48 = vld [vmem:[%s6605_s4 + $0x160] ss:$16 sps:$4 sm:$0xff]   ;;  %6794 = vst [vmem:[#allocation20_spill] sm:$0xff] %v4643_v49  ;;  %vm3395_vm0 = vcmp.gt.s32.totalorder %v4631_v47, 0  ;;  %v4655_v51 = vld [vmem:[%s6605_s4 + $0x184] ss:$16 sps:$4 sm:$0xff]  }
  0x14   :  { %358 = vmatpush1.bf16.msra.mxu0 %v4454_v17  ;;  %401 = vmatpush1.bf16.msra.mxu1 %v4478_v21  ;;  %6793 = vst [vmem:[#allocation19_spill] sm:$0xff] %v4638_v48  ;;  %6795 = vst [vmem:[#allocation21_spill] sm:$0xff] %v4655_v51  ;;  %v4658_v52 = vsel %vm3395_vm0, 1, %v6622_v1  ;;  %v4666_v53 = vld [vmem:[%s6605_s4 + $0x180] ss:$16 sps:$4 sm:$0xff]   ;;  %v4674_v55 = vsel %vm3396_vm1, 1, %v6622_v1 }
  0x15   :  { %359 = vmatprep.subr.bf16.mxu0 %v4472_v20  ;;  %402 = vmatprep.subr.bf16.mxu1 %v4490_v23  ;;  %6796 = vst [vmem:[#allocation22_spill] sm:$0xff] %v4666_v53  ;;  %v4671_v54 = vld [vmem:[%s6605_s4 + $0x168] ss:$16 sps:$4 sm:$0xff]   ;;  %vm3431_vm2 = vcmp.gt.s32.totalorder %v4631_v47, 7  ;;  %v4682_v56 = vld [vmem:[%s6605_s4 + $0x18c] ss:$16 sps:$4 sm:$0xff]  }
  0x16   :  { %169 = vperm.xlu0 %3751, %v4658_v52   ;;  %6797 = vst [vmem:[#allocation23_spill] sm:$0xff] %v4671_v54  ;;  %6798 = vst [vmem:[#allocation24_spill] sm:$0xff] %v4682_v56  ;;  %vm3473_vm3 = vcmp.gt.s32.totalorder %v4631_v47, 1  ;;  %v4686_v57 = vsel %vm3431_vm2, 1, %v6622_v1  ;;  %vm3432_vm4 = vcmp.gt.s32.totalorder %v4649_v50, 7  ;;  %vm3474_vm5 = vcmp.gt.s32.totalorder %v4649_v50, 1 }
  0x17   :  { %v4693_v58 = vld [vmem:[%s6605_s4 + $0x1a4] ss:$16 sps:$4 sm:$0xff]   ;;  %502 = vperm.xlu1 %3752, %v4686_v57   ;;  %v4698_v59 = vsel %vm3432_vm4, 1, %v6622_v1  ;;  %v4704_v60 = vld [vmem:[%s6605_s4 + $0x188] ss:$16 sps:$4 sm:$0xff]   ;;  %v4707_v61 = vsel %vm3473_vm3, 1, %v6622_v1 }
  0x18   :  { %360 = vmatpush1.bf16.msra.mxu0 %v4485_v22  ;;  %403 = vmatpush1.bf16.msra.mxu1 %v4507_v26  ;;  %6799 = vst [vmem:[#allocation25_spill] sm:$0xff] %v4693_v58  ;;  %6800 = vst [vmem:[#allocation26_spill] sm:$0xff] %v4704_v60  ;;  %v4715_v62 = vld [vmem:[%s6605_s4 + $0x1a0] ss:$16 sps:$4 sm:$0xff]   ;;  %v4720_v63 = vld [vmem:[%s6605_s4 + $0x1ac] ss:$16 sps:$4 sm:$0xff]  }
  0x19   :  { %361 = vmatprep.subr.bf16.mxu0 %v4496_v24  ;;  %404 = vmatprep.subr.bf16.mxu1 %v4514_v27  ;;  %6801 = vst [vmem:[#allocation27_spill] sm:$0xff] %v4715_v62  ;;  %6802 = vst [vmem:[#allocation28_spill] sm:$0xff] %v4720_v63  ;;  %vm3483_vm6 = vcmp.gt.s32.totalorder %v4631_v47, 6  ;;  %vm3484_vm7 = vcmp.gt.s32.totalorder %v4649_v50, 6  ;;  %vm3493_vm8 = vcmp.gt.s32.totalorder %v4631_v47, 2  ;;  %vm3494_vm9 = vcmp.gt.s32.totalorder %v4649_v50, 2 }
  0x1a   :  { %172 = vperm.xlu0 %3751, %v4674_v55   ;;  %vm3503_vm10 = vcmp.gt.s32.totalorder %v4631_v47, 5  ;;  %vm3504_vm11 = vcmp.gt.s32.totalorder %v4649_v50, 5  ;;  %vm3513_vm12 = vcmp.gt.s32.totalorder %v4631_v47, 3  ;;  %vm3514_vm13 = vcmp.gt.s32.totalorder %v4649_v50, 3 }
  0x1b   :  { %505 = vperm.xlu1 %3752, %v4698_v59   ;;  %vm3523_vm14 = vcmp.gt.s32.totalorder %v4631_v47, 4  ;;  %vm3524_vm15 = vcmp.gt.s32.totalorder %v4649_v50, 4  ;;  %v177_v47 = vld [vmem:[%s6607_s1 + $0x8] sm:$0xff] }
  0x1c   :  { %362 = vmatpush1.bf16.msra.mxu0 %v4502_v25  ;;  %405 = vmatpush1.bf16.msra.mxu1 %v4526_v29 }
  0x1d   :  { %363 = vmatprep.subr.bf16.mxu0 %v4520_v28  ;;  %406 = vmatprep.subr.bf16.mxu1 %v4538_v31 }
  0x1e   :  { %837 = vperm.xlu0 %3751, %v4707_v61  }
  0x20   :  { %364 = vmatpush1.bf16.msra.mxu0 %v4533_v30  ;;  %407 = vmatpush1.bf16.msra.mxu1 %v4550_v33 }
  0x21   :  { %683 = vmatprep.subr.bf16.mxu0 %v4544_v32  ;;  %726 = vmatprep.subr.bf16.mxu1 %v4562_v35 }
  0x23   :  { %382 = vmatmul.mubr.bf16.vlgmr.msra.gmra.mrb[0].mxu0 %v6615_v37  ;;  %425 = vmatmul.mubr.bf16.vlgmr.msra.gmra.mrb[0].mxu1 %v6615_v37  ;;  %v4727_v37 = vld [vmem:[%s6605_s4 + $0x1c4] ss:$16 sps:$4 sm:$0xff]  }
  0x24   :  { %684 = vmatpush1.bf16.msra.mxu0 %v4555_v34  ;;  %715 = vmatprep.mubr.bf16.mxu0 %v6622_v1  ;;  %6803 = vst [vmem:[#allocation29_spill] sm:$0xff] %v4727_v37 }
  0x25   :  { %685 = vmatprep.subr.bf16.mxu0 %v4568_v36  ;;  %727 = vmatpush1.bf16.msra.mxu1 %v4575_v38 }
  0x26   :  { %758 = vmatprep.mubr.bf16.mxu1 %v6622_v1  ;;  %728 = vmatprep.subr.bf16.mxu1 %v4587_v40 }
  0x28   :  { %686 = vmatpush1.bf16.msra.mxu0 %v4582_v39 }
  0x29   :  { %687 = vmatprep.subr.bf16.mxu0 %v4593_v41  ;;  %729 = vmatpush1.bf16.msra.mxu1 %v4606_v43 }
  0x2a   :  { %730 = vmatprep.subr.bf16.mxu1 %v4614_v44 }
  0x2c   :  { %688 = vmatpush1.bf16.msra.mxu0 %v4601_v42 }
  0x2d   :  { %689 = vmatprep.subr.bf16.mxu0 %v4620_v45  ;;  %731 = vmatpush1.bf16.msra.mxu1 %v4626_v46 }
  0x2e   :  { %732 = vmatprep.subr.bf16.mxu1 %v4643_v49 }
  0x30   :  { %690 = vmatpush1.bf16.msra.mxu0 %v4638_v48  ;;  %v4783_v48 = vld [vmem:[%s6605_s4 + $0x1e0] ss:$16 sps:$4 sm:$0xff]  }
  0x31   :  { %691 = vmatprep.subr.bf16.mxu0 %v4655_v51  ;;  %733 = vmatpush1.bf16.msra.mxu1 %v4671_v54  ;;  %v4749_v51 = vld [vmem:[%s6605_s4 + $0x1c0] ss:$16 sps:$4 sm:$0xff]   ;;  %v4772_v54 = vld [vmem:[%s6605_s4 + $0x1c8] ss:$16 sps:$4 sm:$0xff]  }
  0x32   :  { %734 = vmatprep.subr.bf16.mxu1 %v4682_v56  ;;  %v4738_v56 = vld [vmem:[%s6605_s4 + $0x1a8] ss:$16 sps:$4 sm:$0xff]   ;;  %6805 = vst [vmem:[#allocation31_spill] sm:$0xff] %v4749_v51  ;;  %6809 = vst [vmem:[#allocation34_spill] sm:$0xff] %v4772_v54 }
  0x33   :  { %6804 = vst [vmem:[#allocation30_spill] sm:$0xff] %v4738_v56 }
  0x34   :  { %692 = vmatpush1.bf16.msra.mxu0 %v4666_v53  ;;  %v4732_v53 = vsel %vm3474_vm5, 1, %v6622_v1 }
  0x35   :  { %693 = vmatprep.subr.bf16.mxu0 %v4693_v58  ;;  %735 = vmatpush1.bf16.msra.mxu1 %v4704_v60  ;;  %v4741_v58 = vsel %vm3483_vm6, 1, %v6622_v1  ;;  %v4754_v60 = vld [vmem:[%s6605_s4 + $0x1cc] ss:$16 sps:$4 sm:$0xff]   ;;  %v4761_v1 = vld [vmem:[%s6605_s4 + $0x1e4] ss:$16 sps:$4 sm:$0xff]  }
  0x36   :  { %736 = vmatprep.subr.bf16.mxu1 %v4720_v63  ;;  %6806 = vst [vmem:[#allocation32_spill] sm:$0xff] %v4754_v60  ;;  %6807 = vst [vmem:[#allocation33_spill] sm:$0xff] %v4761_v1  ;;  %840 = vperm.xlu1 %3752, %v4732_v53  }
  0x37   :  { %1012 = vperm.xlu0 %3751, %v4741_v58  }
  0x38   :  { %694 = vmatpush1.bf16.msra.mxu0 %v4715_v62  ;;  %v6808_v62 = vmov 0  }
  0x39   :  { %695 = vmatprep.subr.bf16.mxu0 %v4727_v37  ;;  %v4766_v63 = vsel %vm3484_vm7, 1, %v6808_v62  ;;  %737 = vmatpush1.bf16.msra.mxu1 %v4738_v56  ;;  %v4775_v37 = vsel %vm3493_vm8, 1, %v6808_v62  ;;  %v4788_v56 = vld [vmem:[%s6605_s4 + $0x1ec] ss:$16 sps:$4 sm:$0xff]   ;;  %v1359_v49 = vsel %vm3503_vm10, 1, %v6808_v62  ;;  %v1534_v45 = vsel %vm3513_vm12, 1, %v6808_v62 }
  0x3a   :  { %738 = vmatprep.subr.bf16.mxu1 %v4754_v60  ;;  %1015 = vperm.xlu1 %3752, %v4766_v63   ;;  %v4799_v60 = vld [vmem:[%s6605_s4 + $0x1e8] ss:$16 sps:$4 sm:$0xff]  }
  0x3b   :  { %1187 = vperm.xlu0 %3751, %v4775_v37   ;;  %6810 = vst [vmem:[#allocation35_spill] sm:$0xff] %v4799_v60 }
  0x3c   :  { %696 = vmatpush1.bf16.msra.mxu0 %v4749_v51  ;;  %v1185_v51 = vsel %vm3494_vm9, 1, %v6808_v62 }
  0x3d   :  { %697 = vmatprep.subr.bf16.mxu0 %v4761_v1  ;;  %739 = vmatpush1.bf16.msra.mxu1 %v4772_v54  ;;  %v1360_v1 = vsel %vm3504_vm11, 1, %v6808_v62  ;;  %v6811_v54 = vmov 0.0|0.0  }
  0x3e   :  { %740 = vmatprep.subr.bf16.mxu1 %v4788_v56  ;;  %1190 = vperm.xlu1 %3752, %v1185_v51  }
  0x3f   :  { %1362 = vperm.xlu0 %3751, %v1359_v49  }
  0x40   :  { %698 = vmatpush1.bf16.msra.mxu0 %v4783_v48 }
  0x41   :  { %858 = vmatprep.subr.bf16.mxu0 %v4357_v0  ;;  %741 = vmatpush1.bf16.msra.mxu1 %v4799_v60  ;;  %v1535_v0 = vsel %vm3514_vm13, 1, %v6808_v62  ;;  %v1709_v60 = vsel %vm3523_vm14, 1, %v6808_v62 }
  0x42   :  { %901 = vmatprep.subr.bf16.mxu1 %v4378_v4  ;;  %1365 = vperm.xlu1 %3752, %v1360_v1  }
  0x43   :  { %716 = vmatmul.mubr.bf16.vlgmr.msra.gmra.mrb[4].mxu0 %v6811_v54  ;;  %1537 = vperm.xlu0 %3751, %v1534_v45  }
  0x44   :  { %859 = vmatpush1.bf16.msra.mxu0 %v4364_v2  ;;  %759 = vmatmul.mubr.bf16.vlgmr.msra.gmra.mrb[4].mxu1 %v6811_v54  ;;  %v1710_v2 = vsel %vm3524_vm15, 1, %v6808_v62 }
  0x45   :  { %860 = vmatprep.subr.bf16.mxu0 %v4372_v3  ;;  %902 = vmatpush1.bf16.msra.mxu1 %v4388_v6 }
  0x46   :  { %890 = vmatprep.mubr.bf16.mxu0 %v6808_v62  ;;  %903 = vmatprep.subr.bf16.mxu1 %v4400_v8 }
  0x47   :  { %1540 = vperm.xlu1 %3752, %v1535_v0   ;;  %1712 = vperm.xlu0 %3751, %v1709_v60  }
  0x48   :  { %861 = vmatpush1.bf16.msra.mxu0 %v4383_v5  ;;  %933 = vmatprep.mubr.bf16.mxu1 %v6808_v62 }
  0x49   :  { %862 = vmatprep.subr.bf16.mxu0 %v4394_v7  ;;  %904 = vmatpush1.bf16.msra.mxu1 %v4406_v9 }
  0x4a   :  { %905 = vmatprep.subr.bf16.mxu1 %v4424_v12 }
  0x4b   :  { %1715 = vperm.xlu1 %3752, %v1710_v2   ;;  %1887 = vperm.xlu0 %3751, %v1709_v60  }
  0x4c   :  { %863 = vmatpush1.bf16.msra.mxu0 %v4413_v10 }
  0x4d   :  { %864 = vmatprep.subr.bf16.mxu0 %v4419_v11  ;;  %906 = vmatpush1.bf16.msra.mxu1 %v4430_v13 }
  0x4e   :  { %907 = vmatprep.subr.bf16.mxu1 %v4442_v15 }
  0x4f   :  { %1890 = vperm.xlu1 %3752, %v1710_v2   ;;  %2062 = vperm.xlu0 %3751, %v1534_v45  }
  0x50   :  { %865 = vmatpush1.bf16.msra.mxu0 %v4437_v14 }
  0x51   :  { %866 = vmatprep.subr.bf16.mxu0 %v4448_v16  ;;  %908 = vmatpush1.bf16.msra.mxu1 %v4459_v18 }
  0x52   :  { %909 = vmatprep.subr.bf16.mxu1 %v4466_v19 }
  0x53   :  { %2065 = vperm.xlu1 %3752, %v1535_v0   ;;  %2237 = vperm.xlu0 %3751, %v1359_v49   ;;  %v176_v0 = vld [vmem:[%s6607_s1] sm:$0xff] }
  0x54   :  { %867 = vmatpush1.bf16.msra.mxu0 %v4454_v17  ;;  %v181_v45 = vunpack.c.h.bf16 %v176_v0 }
  0x55   :  { %868 = vmatprep.subr.bf16.mxu0 %v4472_v20  ;;  %910 = vmatpush1.bf16.msra.mxu1 %v4478_v21 }
  0x56   :  { %911 = vmatprep.subr.bf16.mxu1 %v4490_v23 }
  0x57   :  { %2240 = vperm.xlu1 %3752, %v1360_v1   ;;  %2412 = vperm.xlu0 %3751, %v4775_v37   ;;  %v178_v1 = vld [vmem:[%s6607_s1 + $0x10] sm:$0xff]  ;;  %v180_v37 = vunpack.c.l.bf16 %v176_v0 }
  0x58   :  { %869 = vmatpush1.bf16.msra.mxu0 %v4485_v22  ;;  %v184_v49 = vunpack.c.l.bf16 %v178_v1 }
  0x59   :  { %870 = vmatprep.subr.bf16.mxu0 %v4496_v24  ;;  %912 = vmatpush1.bf16.msra.mxu1 %v4507_v26 }
  0x5a   :  { %913 = vmatprep.subr.bf16.mxu1 %v4514_v27 }
  0x5b   :  { %2415 = vperm.xlu1 %3752, %v1185_v51   ;;  %2587 = vperm.xlu0 %3751, %v4741_v58   ;;  %v185_v51 = vunpack.c.h.bf16 %v178_v1 }
  0x5c   :  { %871 = vmatpush1.bf16.msra.mxu0 %v4502_v25 }
  0x5d   :  { %872 = vmatprep.subr.bf16.mxu0 %v4520_v28  ;;  %914 = vmatpush1.bf16.msra.mxu1 %v4526_v29 }
  0x5e   :  { %915 = vmatprep.subr.bf16.mxu1 %v4538_v31 }
  0x5f   :  { %2590 = vperm.xlu1 %3752, %v4766_v63   ;;  %2762 = vperm.xlu0 %3751, %v4707_v61  }
  0x60   :  { %873 = vmatpush1.bf16.msra.mxu0 %v4533_v30  ;;  %v183_v30 = vunpack.c.h.bf16 %v177_v47 }
  0x61   :  { %1033 = vmatprep.subr.bf16.mxu0 %v4544_v32  ;;  %916 = vmatpush1.bf16.msra.mxu1 %v4550_v33 }
  0x62   :  { %1076 = vmatprep.subr.bf16.mxu1 %v4562_v35 }
  0x63   :  { %2765 = vperm.xlu1 %3752, %v4732_v53   ;;  %2937 = vperm.xlu0 %3751, %v4686_v57  }
  0x67   :  { %2940 = vperm.xlu1 %3752, %v4698_v59   ;;  %3111 = vperm.xlu0 %3751, %v4658_v52   ;;  %v179_v52 = vld [vmem:[%s6607_s1 + $0x18] sm:$0xff] }
  0x68   :  { %v186_v2 = vunpack.c.l.bf16 %v179_v52 }
  0x6b   :  { %3114 = vperm.xlu1 %3752, %v4674_v55   ;;  %v182_v55 = vunpack.c.l.bf16 %v177_v47 }
  0xf6   :  { %v383_v50 = vpop.f32.mrb[0].mxu0  ;;  %v426_v63 = vpop.f32.mrb[0].mxu1 }
  0xf7   :  { %v435_v53 = vadd.f32 %v383_v50, %v180_v37  ;;  %v385_v54 = vpop.f32.mrb[1].mxu0  ;;  %v428_v32 = vpop.f32.mrb[1].mxu1  ;;  %v437_v1 = vadd.f32 %v426_v63, %v182_v55 }
  0xf8   :  { %v436_v57 = vadd.f32 %v385_v54, %v181_v45  ;;  %v387_v58 = vpop.f32.mrb[2].mxu0  ;;  %v430_v31 = vpop.f32.mrb[2].mxu1  ;;  %v187_v45 = vunpack.c.h.bf16 %v179_v52 }
  0xf9   :  { %v443_v59 = vmul.f32 0.5, %v435_v53  ;;  %v439_v60 = vadd.f32 %v387_v58, %v184_v49  ;;  %v389_v61 = vpop.f32.mrb[3].mxu0  ;;  %v432_v37 = vpop.f32.mrb[3].mxu1  ;;  %v441_v50 = vadd.f32 %v430_v31, %v186_v2  ;;  %v438_v49 = vadd.f32 %v428_v32, %v183_v30 }
  0xfa   :  { %v451_v0 = vmul.f32 0.5, %v436_v57  ;;  %v440_v35 = vadd.f32 %v389_v61, %v185_v51  ;;  %v442_v53 = vadd.f32 %v432_v37, %v187_v45  ;;  %v3433_v45 = vld [vmem:[%s6608_s2 + $0x1e0] sm:$0xff] }
  0xfb   :  { %3849 = vtanh.f32 %v443_v59  ;;  %v444_v33 = vmul.f32 0.5, %v439_v60  ;;  %v461_v54 = vmul.f32 0.5, %v438_v49 }
  0xfc   :  { %3851 = vtanh.f32 %v451_v0  ;;  %v452_v28 = vmul.f32 0.5, %v440_v35  ;;  %v462_v51 = vmul.f32 0.5, %v442_v53  ;;  %v3435_v53 = vld [vmem:[%s6608_s2 + $0x1f0] sm:$0xff] }
  0xfd   :  { %3853 = vtanh.f32 %v444_v33 }
  0xfe   :  { %3855 = vtanh.f32 %v452_v28 }
  0xff   :  { %3857 = vtanh.f32 %v437_v1 }
 0x100   :  { %3859 = vtanh.f32 %v441_v50 }
 0x101   :  { %3861 = vtanh.f32 %v461_v54 }
 0x102   :  { %3863 = vtanh.f32 %v462_v51 }
 0x105   :  { %v3850_v57 = vpop.eup %3849 }
 0x106   :  { %v3852_v58 = vpop.eup %3851  ;;  %v447_v59 = vmul.f32 0.5, %v3850_v57  ;;  %v514_v57 = vunpack.c.l.bf16 %v3433_v45 }
 0x107   :  { %v3854_v60 = vpop.eup %3853  ;;  %v455_v55 = vmul.f32 0.5, %v3852_v58  ;;  %v515_v58 = vunpack.c.h.bf16 %v3433_v45 }
 0x108   :  { %v3856_v47 = vpop.eup %3855  ;;  %v449_v61 = vadd.f32 0.5, %v447_v59  ;;  %v448_v35 = vmul.f32 0.5, %v3854_v60  ;;  %v3434_v59 = vld [vmem:[%s6608_s2 + $0x1e8] sm:$0xff]  ;;  %v518_v60 = vunpack.c.l.bf16 %v3435_v53 }
 0x109   :  { %v3858_v63 = vpop.eup %3857  ;;  %v457_v33 = vadd.f32 0.5, %v455_v55  ;;  %v456_v31 = vmul.f32 0.5, %v3856_v47  ;;  %v4889_v55 = vpop.permute.xlu0 %169 }
 0x10a   :  { %v450_v28 = vadd.f32 0.5, %v448_v35  ;;  %v471_v52 = vmul.f32 %v3858_v63, %v449_v61  ;;  %v3860_v30 = vpop.eup %3859  ;;  %v519_v35 = vunpack.c.h.bf16 %v3435_v53  ;;  %v3436_v63 = vld [vmem:[%s6608_s2 + $0x1f8] sm:$0xff]  ;;  %vm174_vm0 = vcmp.eq.s32.totalorder %v4889_v55, 1 }
 0x10b   :  { %v469_v32 = vmul.f32 0.0, %v457_v33  ;;  %v458_v2 = vadd.f32 0.5, %v456_v31  ;;  %v3862_v49 = vpop.eup %3861 }
 0x10c   :  { %v472_v0 = vmul.f32 %v3860_v30, %v450_v28  ;;  %v3864_v54 = vpop.eup %3863  ;;  %v465_v51 = vmul.f32 0.5, %v3862_v49  ;;  %v516_v28 = vunpack.c.l.bf16 %v3434_v59 }
 0x10d   :  { %v470_v1 = vmul.f32 0.0, %v458_v2  ;;  %v4874_v37 = vadd.f32 %v471_v52, %v469_v32  ;;  %v466_v47 = vmul.f32 0.5, %v3864_v54 }
 0x10e   :  { %v467_v52 = vadd.f32 0.5, %v465_v51  ;;  %v4894_v51 = vpop.permute.xlu0 %172 }
 0x10f   :  { %6812 = vst [vmem:[#allocation36_spill] sm:$0xff] %v4874_v37  ;;  %3865 = vtanh.f32 %v4874_v37  ;;  %v4877_v50 = vadd.f32 %v472_v0, %v470_v1  ;;  %v468_v54 = vadd.f32 0.5, %v466_v47  ;;  %vm175_vm1 = vcmp.eq.s32.totalorder %v4894_v51, 1 }
 0x110   :  { %vm3737_vm2 = vmpackc.low %vm175_vm1, %vm174_vm0 }
 0x111   :  { %6813 = vst [vmem:[#allocation37_spill] sm:$0xff] %v4877_v50  ;;  %3867 = vtanh.f32 %v4877_v50  ;;  %v520_v50 = vunpack.c.l.bf16 %v3436_v63 }
 0x116   :  { %v717_v61 = vpop.f32.mrb[4].mxu0 }
 0x117   :  { %v769_v33 = vadd.f32 %v717_v61, %v514_v57  ;;  %v719_v31 = vpop.f32.mrb[5].mxu0  ;;  %v760_v49 = vpop.f32.mrb[4].mxu1  ;;  %v517_v61 = vunpack.c.h.bf16 %v3434_v59 }
 0x118   :  { %v770_v30 = vadd.f32 %v719_v31, %v515_v58  ;;  %v721_v32 = vpop.f32.mrb[6].mxu0  ;;  %v762_v25 = vpop.f32.mrb[5].mxu1  ;;  %v771_v57 = vadd.f32 %v760_v49, %v516_v28 }
 0x119   :  { %v3866_v2 = vpop.eup %3865  ;;  %v777_v0 = vmul.f32 0.5, %v769_v33  ;;  %v773_v1 = vadd.f32 %v721_v32, %v518_v60  ;;  %v723_v45 = vpop.f32.mrb[7].mxu0  ;;  %v521_v60 = vunpack.c.h.bf16 %v3436_v63 }
 0x11a   :  { %v477_v37 = vmul.f32 %v3866_v2, %v467_v52  ;;  %v785_v29 = vmul.f32 0.5, %v770_v30  ;;  %v774_v53 = vadd.f32 %v723_v45, %v519_v35  ;;  %v764_v26 = vpop.f32.mrb[6].mxu1 }
 0x11b   :  { %v3868_v27 = vpop.eup %3867  ;;  %3869 = vtanh.f32 %v777_v0  ;;  %v778_v24 = vmul.f32 0.5, %v773_v1  ;;  %v766_v31 = vpop.f32.mrb[7].mxu1  ;;  %v775_v47 = vadd.f32 %v764_v26, %v520_v50  ;;  %v6814_v0 = vld [vmem:[#allocation18_spill] sm:$0xff] }
 0x11c   :  { %v478_v58 = vmul.f32 %v3868_v27, %v468_v54  ;;  %3871 = vtanh.f32 %v785_v29  ;;  %v786_v33 = vmul.f32 0.5, %v774_v53  ;;  %v4900_v35 = vsel %vm174_vm0, %v477_v37, 0.0 }
 0x11d   :  { %3873 = vtanh.f32 %v778_v24  ;;  %v772_v24 = vadd.f32 %v762_v25, %v517_v61  ;;  %v776_v26 = vadd.f32 %v766_v31, %v521_v60  ;;  %v6817_v61 = vld [vmem:[#allocation23_spill] sm:$0xff]  ;;  %v6820_v60 = vld [vmem:[#allocation22_spill] sm:$0xff] }
 0x11e   :  { %v4904_v59 = vsel %vm175_vm1, %v478_v58, 0.0  ;;  %v3738_v28 = vpack.c.bf16 %v478_v58, %v477_v37  ;;  %3875 = vtanh.f32 %v786_v33  ;;  %v6821_v31 = vld [vmem:[#allocation26_spill] sm:$0xff] }
 0x11f   :  { %v3646_v27 = vpack.c.bf16 %v4904_v59, %v4900_v35  ;;  %3877 = vtanh.f32 %v771_v57  ;;  %v795_v29 = vmul.f32 0.5, %v772_v24  ;;  %v796_v37 = vmul.f32 0.5, %v776_v26  ;;  %v6816_v57 = vld [vmem:[#allocation19_spill] sm:$0xff] }
 0x120   :  { %3739 = vmatmul.mubr.msk.bf16.vlgmr.msra.gmra.mrb[8].mxu0 %vm3737_vm2, %v3738_v28  ;;  %3742 = vmatmul.mubr.msk.bf16.vlgmr.msra.gmra.mrb[8].mxu1 %vm3737_vm2, %v3738_v28  ;;  %3879 = vtanh.f32 %v775_v47  ;;  %v6822_v47 = vld [vmem:[#allocation25_spill] sm:$0xff]  ;;  %v6823_v28 = vld [vmem:[#allocation28_spill] sm:$0xff]  ;;  %v6824_v26 = vld [vmem:[#allocation27_spill] sm:$0xff] }
 0x121   :  { %3647 = vst [vmem:[%s6609_s5] sm:$0xff] %v3646_v27   ;;  %1034 = vmatpush1.bf16.msra.mxu0 %v4555_v34  ;;  %1077 = vmatpush1.bf16.msra.mxu1 %v4575_v38  ;;  %3881 = vtanh.f32 %v795_v29  ;;  %v6825_v29 = vld [vmem:[#allocation30_spill] sm:$0xff] }
 0x122   :  { %1035 = vmatprep.subr.bf16.mxu0 %v4568_v36  ;;  %1078 = vmatprep.subr.bf16.mxu1 %v4587_v40  ;;  %3883 = vtanh.f32 %v796_v37 }
 0x123   :  { %1065 = vmatprep.mubr.bf16.mxu0 %v6808_v62  ;;  %1108 = vmatprep.mubr.bf16.mxu1 %v6808_v62 }
 0x125   :  { %v3870_v25 = vpop.eup %3869  ;;  %1036 = vmatpush1.bf16.msra.mxu0 %v4582_v39  ;;  %1079 = vmatpush1.bf16.msra.mxu1 %v4606_v43 }
 0x126   :  { %v3872_v50 = vpop.eup %3871  ;;  %v781_v63 = vmul.f32 0.5, %v3870_v25  ;;  %1037 = vmatprep.subr.bf16.mxu0 %v4593_v41  ;;  %1080 = vmatprep.subr.bf16.mxu1 %v4614_v44  ;;  %v6815_v41 = vld [vmem:[#allocation20_spill] sm:$0xff]  ;;  %v4945_v25 = vpop.permute.xlu1 %502 }
 0x127   :  { %v3874_v34 = vpop.eup %3873  ;;  %v789_v36 = vmul.f32 0.5, %v3872_v50  ;;  %v6826_v50 = vld [vmem:[#allocation29_spill] sm:$0xff]  ;;  %vm507_vm3 = vcmp.eq.s32.totalorder %v4945_v25, 1 }
 0x128   :  { %v3876_v38 = vpop.eup %3875  ;;  %v783_v40 = vadd.f32 0.5, %v781_v63  ;;  %v782_v52 = vmul.f32 0.5, %v3874_v34  ;;  %v6827_v63 = vld [vmem:[#allocation32_spill] sm:$0xff] }
 0x129   :  { %v3878_v30 = vpop.eup %3877  ;;  %v791_v32 = vadd.f32 0.5, %v789_v36  ;;  %v790_v2 = vmul.f32 0.5, %v3876_v38  ;;  %1038 = vmatpush1.bf16.msra.mxu0 %v4601_v42  ;;  %1081 = vmatpush1.bf16.msra.mxu1 %v4626_v46  ;;  %v6818_v42 = vld [vmem:[#allocation21_spill] sm:$0xff]  ;;  %v6819_v46 = vld [vmem:[#allocation24_spill] sm:$0xff]  ;;  %v6828_v38 = vld [vmem:[#allocation31_spill] sm:$0xff] }
 0x12a   :  { %v784_v39 = vadd.f32 0.5, %v782_v52  ;;  %v805_v43 = vmul.f32 %v3878_v30, %v783_v40  ;;  %1039 = vmatprep.subr.bf16.mxu0 %v6814_v0  ;;  %1082 = vmatprep.subr.bf16.mxu1 %v6815_v41  ;;  %v3880_v44 = vpop.eup %3879  ;;  %v6829_v40 = vld [vmem:[#allocation34_spill] sm:$0xff]  ;;  %v6831_v0 = vld [vmem:[#allocation35_spill] sm:$0xff] }
 0x12b   :  { %v803_v1 = vmul.f32 0.0, %v791_v32  ;;  %v792_v45 = vadd.f32 0.5, %v790_v2  ;;  %v3882_v33 = vpop.eup %3881  ;;  %v6830_v32 = vld [vmem:[#allocation33_spill] sm:$0xff] }
 0x12c   :  { %v806_v49 = vmul.f32 %v3880_v44, %v784_v39  ;;  %v3884_v27 = vpop.eup %3883  ;;  %v799_v24 = vmul.f32 0.5, %v3882_v33  ;;  %v4953_v39 = vpop.permute.xlu1 %505 }
 0x12d   :  { %v804_v54 = vmul.f32 0.0, %v792_v45  ;;  %v4929_v53 = vadd.f32 %v805_v43, %v803_v1  ;;  %1040 = vmatpush1.bf16.msra.mxu0 %v6816_v57  ;;  %1083 = vmatpush1.bf16.msra.mxu1 %v6817_v61  ;;  %v800_v37 = vmul.f32 0.5, %v3884_v27  ;;  %vm508_vm4 = vcmp.eq.s32.totalorder %v4953_v39, 1  ;;  %v6832_v1 = vld [vmem:[#allocation6_spill] sm:$0xff]  ;;  %v3478_v61 = vld [vmem:[%s6607_s1 + $0x38] sm:$0xff] }
 0x12e   :  { %1041 = vmatprep.subr.bf16.mxu0 %v6818_v42  ;;  %1084 = vmatprep.subr.bf16.mxu1 %v6819_v46  ;;  %v801_v34 = vadd.f32 0.5, %v799_v24  ;;  %vm3743_vm5 = vmpackc.low %vm508_vm4, %vm507_vm3  ;;  %v4981_v45 = vld [vmem:[%s6604_s3] ss:$16 sps:$4 sm:$0xff]   ;;  %v855_v24 = vunpack.c.l.bf16 %v3478_v61 }
 0x12f   :  { %3885 = vtanh.f32 %v4929_v53  ;;  %v4936_v58 = vadd.f32 %v806_v49, %v804_v54  ;;  %v802_v30 = vadd.f32 0.5, %v800_v37  ;;  %6833 = vst [vmem:[#allocation18_spill] sm:$0xff] %v4981_v45 }
 0x131   :  { %3887 = vtanh.f32 %v4936_v58  ;;  %1042 = vmatpush1.bf16.msra.mxu0 %v6820_v60  ;;  %1085 = vmatpush1.bf16.msra.mxu1 %v6821_v31 }
 0x132   :  { %1043 = vmatprep.subr.bf16.mxu0 %v6822_v47  ;;  %1086 = vmatprep.subr.bf16.mxu1 %v6823_v28 }
 0x135   :  { %1044 = vmatpush1.bf16.msra.mxu0 %v6824_v26  ;;  %1087 = vmatpush1.bf16.msra.mxu1 %v6825_v29 }
 0x136   :  { %1045 = vmatprep.subr.bf16.mxu0 %v6826_v50  ;;  %1088 = vmatprep.subr.bf16.mxu1 %v6827_v63 }
 0x139   :  { %v3886_v36 = vpop.eup %3885  ;;  %1046 = vmatpush1.bf16.msra.mxu0 %v6828_v38  ;;  %1089 = vmatpush1.bf16.msra.mxu1 %v6829_v40  ;;  %v856_v38 = vunpack.c.h.bf16 %v3478_v61  ;;  %v3486_v61 = vld [vmem:[%s6608_s2 + $0x1c8] sm:$0xff] }
 0x13a   :  { %v811_v52 = vmul.f32 %v3886_v36, %v801_v34  ;;  %1047 = vmatprep.subr.bf16.mxu0 %v6830_v32  ;;  %1090 = vmatprep.subr.bf16.mxu1 %v4788_v56 }
 0x13b   :  { %v3888_v2 = vpop.eup %3887 }
 0x13c   :  { %v812_v43 = vmul.f32 %v3888_v2, %v802_v30  ;;  %v4961_v41 = vsel %vm507_vm3, %v811_v52, 0.0 }
 0x13d   :  { %1048 = vmatpush1.bf16.msra.mxu0 %v4783_v48  ;;  %1091 = vmatpush1.bf16.msra.mxu1 %v6831_v0 }
 0x13e   :  { %v4965_v44 = vsel %vm508_vm4, %v812_v43, 0.0  ;;  %v3744_v56 = vpack.c.bf16 %v812_v43, %v811_v52  ;;  %1208 = vmatprep.subr.bf16.mxu0 %v6832_v1  ;;  %1251 = vmatprep.subr.bf16.mxu1 %v4378_v4  ;;  %v6835_v4 = vld [vmem:[#allocation7_spill] sm:$0xff] }
 0x13f   :  { %v3651_v48 = vpack.c.bf16 %v4965_v44, %v4961_v41 }
 0x140   :  { %3745 = vmatmul.mubr.msk.bf16.vlgmr.msra.gmra.mrb[12].mxu0 %vm3743_vm5, %v3744_v56  ;;  %3748 = vmatmul.mubr.msk.bf16.vlgmr.msra.gmra.mrb[12].mxu1 %vm3743_vm5, %v3744_v56 }
 0x141   :  { %3723 = vst [vmem:[%s6610_s6 + $0x38] sm:$0xff] %v3651_v48   ;;  %1209 = vmatpush1.bf16.msra.mxu0 %v4981_v45  ;;  %1252 = vmatpush1.bf16.msra.mxu1 %v4388_v6  ;;  %v6837_v6 = vld [vmem:[#allocation8_spill] sm:$0xff] }
 0x142   :  { %1210 = vmatprep.subr.bf16.mxu0 %v4372_v3  ;;  %1253 = vmatprep.subr.bf16.mxu1 %v4400_v8  ;;  %v6834_v3 = vld [vmem:[#allocation9_spill] sm:$0xff]  ;;  %v6839_v8 = vld [vmem:[#allocation11_spill] sm:$0xff] }
 0x143   :  { %1240 = vmatprep.mubr.bf16.mxu0 %v6808_v62  ;;  %1283 = vmatprep.mubr.bf16.mxu1 %v6808_v62 }
 0x145   :  { %1211 = vmatpush1.bf16.msra.mxu0 %v4383_v5  ;;  %1254 = vmatpush1.bf16.msra.mxu1 %v4406_v9  ;;  %v6836_v5 = vld [vmem:[#allocation10_spill] sm:$0xff] }
 0x146   :  { %1212 = vmatprep.subr.bf16.mxu0 %v4394_v7  ;;  %1255 = vmatprep.subr.bf16.mxu1 %v4424_v12  ;;  %v6838_v7 = vld [vmem:[#allocation12_spill] sm:$0xff]  ;;  %v6840_v9 = vld [vmem:[#allocation14_spill] sm:$0xff]  ;;  %v6843_v12 = vld [vmem:[#allocation15_spill] sm:$0xff] }
 0x149   :  { %1213 = vmatpush1.bf16.msra.mxu0 %v4413_v10  ;;  %1256 = vmatpush1.bf16.msra.mxu1 %v4430_v13  ;;  %v6841_v10 = vld [vmem:[#allocation13_spill] sm:$0xff] }
 0x14a   :  { %1214 = vmatprep.subr.bf16.mxu0 %v4419_v11  ;;  %1257 = vmatprep.subr.bf16.mxu1 %v4442_v15  ;;  %v6842_v11 = vld [vmem:[#allocation16_spill] sm:$0xff]  ;;  %v6844_v13 = vld [vmem:[#allocation17_spill] sm:$0xff] }
 0x14b   :  { %v3477_v15 = vld [vmem:[%s6607_s1 + $0x30] sm:$0xff] }
 0x14d   :  { %1215 = vmatpush1.bf16.msra.mxu0 %v4437_v14  ;;  %1258 = vmatpush1.bf16.msra.mxu1 %v4459_v18  ;;  %v3475_v14 = vld [vmem:[%s6607_s1 + $0x20] sm:$0xff] }
 0x14e   :  { %1216 = vmatprep.subr.bf16.mxu0 %v4448_v16  ;;  %1259 = vmatprep.subr.bf16.mxu1 %v4466_v19  ;;  %v849_v16 = vunpack.c.l.bf16 %v3475_v14  ;;  %v850_v18 = vunpack.c.h.bf16 %v3475_v14  ;;  %v853_v19 = vunpack.c.l.bf16 %v3477_v15 }
 0x151   :  { %1217 = vmatpush1.bf16.msra.mxu0 %v4454_v17  ;;  %1260 = vmatpush1.bf16.msra.mxu1 %v4478_v21  ;;  %v3476_v17 = vld [vmem:[%s6607_s1 + $0x28] sm:$0xff] }
 0x152   :  { %1218 = vmatprep.subr.bf16.mxu0 %v4472_v20  ;;  %1261 = vmatprep.subr.bf16.mxu1 %v4490_v23  ;;  %v851_v49 = vunpack.c.l.bf16 %v3476_v17  ;;  %v852_v37 = vunpack.c.h.bf16 %v3476_v17  ;;  %v6846_v17 = vld [vmem:[#allocation37_spill] sm:$0xff] }
 0x155   :  { %1219 = vmatpush1.bf16.msra.mxu0 %v4485_v22  ;;  %1262 = vmatpush1.bf16.msra.mxu1 %v6834_v3  ;;  %v854_v22 = vunpack.c.h.bf16 %v3477_v15 }
 0x156   :  { %1220 = vmatprep.subr.bf16.mxu0 %v6835_v4  ;;  %1263 = vmatprep.subr.bf16.mxu1 %v6836_v5 }
 0x159   :  { %1221 = vmatpush1.bf16.msra.mxu0 %v6837_v6  ;;  %1264 = vmatpush1.bf16.msra.mxu1 %v6838_v7  ;;  %v6845_v6 = vld [vmem:[#allocation36_spill] sm:$0xff] }
 0x15a   :  { %1222 = vmatprep.subr.bf16.mxu0 %v6839_v8  ;;  %1265 = vmatprep.subr.bf16.mxu1 %v6840_v9  ;;  %v483_v7 = vsel %vm174_vm0, %v6845_v6, 0.0 }
 0x15d   :  { %1223 = vmatpush1.bf16.msra.mxu0 %v6841_v10  ;;  %1266 = vmatpush1.bf16.msra.mxu1 %v6842_v11 }
 0x15e   :  { %1383 = vmatprep.subr.bf16.mxu0 %v6843_v12  ;;  %1426 = vmatprep.subr.bf16.mxu1 %v6844_v13  ;;  %v5032_v13 = vpop.permute.xlu0 %837 }
 0x15f   :  { %vm842_vm6 = vcmp.eq.s32.totalorder %v5032_v13, 1 }
 0x1f3   :  { %v892_v20 = vpop.f32.mrb[8].mxu0  ;;  %v935_v21 = vpop.f32.mrb[8].mxu1 }
 0x1f4   :  { %v944_v23 = vadd.f32 %v892_v20, %v849_v16  ;;  %v894_v54 = vpop.f32.mrb[9].mxu0  ;;  %v937_v57 = vpop.f32.mrb[9].mxu1  ;;  %v946_v29 = vadd.f32 %v935_v21, %v851_v49  ;;  %v3485_v20 = vld [vmem:[%s6608_s2 + $0x1c0] sm:$0xff]  ;;  %v3487_v49 = vld [vmem:[%s6608_s2 + $0x1d0] sm:$0xff] }
 0x1f5   :  { %v945_v42 = vadd.f32 %v894_v54, %v850_v18  ;;  %v896_v46 = vpop.f32.mrb[10].mxu0  ;;  %v939_v33 = vpop.f32.mrb[10].mxu1  ;;  %v947_v36 = vadd.f32 %v937_v57, %v852_v37  ;;  %v484_v18 = vsel %vm175_vm1, %v6846_v17, 0.0  ;;  %v1024_v51 = vunpack.c.l.bf16 %v3485_v20 }
 0x1f6   :  { %v952_v60 = vmul.f32 0.5, %v944_v23  ;;  %v948_v31 = vadd.f32 %v896_v46, %v853_v19  ;;  %v898_v47 = vpop.f32.mrb[11].mxu0  ;;  %v941_v28 = vpop.f32.mrb[11].mxu1  ;;  %v950_v34 = vadd.f32 %v939_v33, %v855_v24  ;;  %v1028_v33 = vunpack.c.l.bf16 %v3487_v49 }
 0x1f7   :  { %v960_v27 = vmul.f32 0.5, %v945_v42  ;;  %v949_v26 = vadd.f32 %v898_v47, %v854_v22  ;;  %v970_v40 = vmul.f32 0.5, %v947_v36  ;;  %v951_v52 = vadd.f32 %v941_v28, %v856_v38  ;;  %v841_v22 = vpop.permute.xlu1 %840 }
 0x1f8   :  { %3889 = vtanh.f32 %v952_v60  ;;  %v953_v50 = vmul.f32 0.5, %v948_v31  ;;  %vm843_vm7 = vcmp.eq.s32.totalorder %v841_v22, 1  ;;  %v1025_v42 = vunpack.c.h.bf16 %v3485_v20  ;;  %v5089_v20 = vld [vmem:[%s6605_s4 + $0x124] ss:$16 sps:$4 sm:$0xff]  }
 0x1f9   :  { %3891 = vtanh.f32 %v960_v27  ;;  %v961_v63 = vmul.f32 0.5, %v949_v26  ;;  %v971_v0 = vmul.f32 0.5, %v951_v52  ;;  %v1029_v47 = vunpack.c.h.bf16 %v3487_v49 }
 0x1fa   :  { %3893 = vtanh.f32 %v953_v50  ;;  %v1026_v27 = vunpack.c.l.bf16 %v3486_v61 }
 0x1fb   :  { %3895 = vtanh.f32 %v946_v29  ;;  %v3488_v29 = vld [vmem:[%s6608_s2 + $0x1d8] sm:$0xff]  ;;  %v1016_v39 = vpop.permute.xlu1 %1015 }
 0x1fc   :  { %3897 = vtanh.f32 %v961_v63  ;;  %vm1018_vm9 = vcmp.eq.s32.totalorder %v1016_v39, 1  ;;  %v5349_v39 = vld [vmem:[%s6604_s3 + $0x40] ss:$16 sps:$4 sm:$0xff]  }
 0x1fd   :  { %3899 = vtanh.f32 %v950_v34  ;;  %6861 = vst [vmem:[#allocation34_spill] sm:$0xff] %v5349_v39 }
 0x1fe   :  { %3901 = vtanh.f32 %v970_v40 }
 0x1ff   :  { %3903 = vtanh.f32 %v971_v0  ;;  %v1030_v0 = vunpack.c.l.bf16 %v3488_v29 }
 0x202   :  { %v3890_v30 = vpop.eup %3889 }
 0x203   :  { %v3892_v32 = vpop.eup %3891  ;;  %v956_v2 = vmul.f32 0.5, %v3890_v30 }
 0x204   :  { %v964_v43 = vmul.f32 0.5, %v3892_v32  ;;  %v3894_v56 = vpop.eup %3893 }
 0x205   :  { %v958_v1 = vadd.f32 0.5, %v956_v2  ;;  %v3896_v48 = vpop.eup %3895  ;;  %v957_v4 = vmul.f32 0.5, %v3894_v56 }
 0x206   :  { %v966_v3 = vadd.f32 0.5, %v964_v43  ;;  %v3898_v5 = vpop.eup %3897 }
 0x207   :  { %v980_v8 = vmul.f32 %v3896_v48, %v958_v1  ;;  %v959_v10 = vadd.f32 0.5, %v957_v4  ;;  %v965_v11 = vmul.f32 0.5, %v3898_v5  ;;  %v3900_v12 = vpop.eup %3899  ;;  %v1027_v48 = vunpack.c.h.bf16 %v3486_v61 }
 0x208   :  { %v978_v9 = vmul.f32 %v966_v3, %v483_v7  ;;  %v3902_v21 = vpop.eup %3901 }
 0x209   :  { %v967_v15 = vadd.f32 0.5, %v965_v11  ;;  %v981_v16 = vmul.f32 %v3900_v12, %v959_v10  ;;  %v974_v57 = vmul.f32 0.5, %v3902_v21  ;;  %v3904_v46 = vpop.eup %3903  ;;  %v1031_v11 = vunpack.c.h.bf16 %v3488_v29  ;;  %v5095_v21 = vld [vmem:[%s6605_s4 + $0x12c] ss:$16 sps:$4 sm:$0xff]  }
 0x20a   :  { %v982_v14 = vadd.f32 %v980_v8, %v978_v9  ;;  %v975_v50 = vmul.f32 0.5, %v3904_v46  ;;  %v5109_v46 = vld [vmem:[%s6605_s4 + $0x128] ss:$16 sps:$4 sm:$0xff]  }
 0x20b   :  { %v979_v55 = vmul.f32 %v967_v15, %v484_v18  ;;  %v976_v37 = vadd.f32 0.5, %v974_v57 }
 0x20c   :  { %3905 = vtanh.f32 %v982_v14  ;;  %v5040_v19 = vsel %vm842_vm6, %v982_v14, %v483_v7  ;;  %v977_v4 = vadd.f32 0.5, %v975_v50 }
 0x20d   :  { %v983_v23 = vadd.f32 %v981_v16, %v979_v55 }
 0x20f   :  { %3907 = vtanh.f32 %v983_v23  ;;  %v5049_v54 = vsel %vm843_vm7, %v983_v23, %v484_v18 }
 0x213   :  { %v1067_v60 = vpop.f32.mrb[12].mxu0  ;;  %v1110_v31 = vpop.f32.mrb[12].mxu1 }
 0x214   :  { %v1119_v28 = vadd.f32 %v1067_v60, %v1024_v51  ;;  %v1069_v24 = vpop.f32.mrb[13].mxu0  ;;  %v1112_v26 = vpop.f32.mrb[13].mxu1  ;;  %v1121_v1 = vadd.f32 %v1110_v31, %v1026_v27 }
 0x215   :  { %v1120_v63 = vadd.f32 %v1069_v24, %v1025_v42  ;;  %v1071_v34 = vpop.f32.mrb[14].mxu0  ;;  %v1114_v36 = vpop.f32.mrb[14].mxu1  ;;  %v1122_v10 = vadd.f32 %v1112_v26, %v1027_v48  ;;  %v5103_v42 = vld [vmem:[%s6605_s4 + $0x120] ss:$16 sps:$4 sm:$0xff]   ;;  %v817_v24 = vsel %vm507_vm3, %v4929_v53, 0.0 }
 0x216   :  { %v3906_v38 = vpop.eup %3905  ;;  %v1127_v40 = vmul.f32 0.5, %v1119_v28  ;;  %v1123_v52 = vadd.f32 %v1071_v34, %v1028_v33  ;;  %v1073_v30 = vpop.f32.mrb[15].mxu0  ;;  %v1125_v8 = vadd.f32 %v1114_v36, %v1030_v0  ;;  %v5121_v28 = vld [vmem:[%s6605_s4 + $0x14c] ss:$16 sps:$4 sm:$0xff]   ;;  %v5130_v34 = vld [vmem:[%s6605_s4 + $0x140] ss:$16 sps:$4 sm:$0xff]  }
 0x217   :  { %v1116_v32 = vpop.f32.mrb[15].mxu1  ;;  %v986_v2 = vmul.f32 %v3906_v38, %v976_v37  ;;  %v1135_v43 = vmul.f32 0.5, %v1120_v63  ;;  %v1124_v56 = vadd.f32 %v1073_v30, %v1029_v47  ;;  %v1145_v18 = vmul.f32 0.5, %v1122_v10  ;;  %v5115_v47 = vld [vmem:[%s6605_s4 + $0x144] ss:$16 sps:$4 sm:$0xff]   ;;  %v5139_v53 = vpop.permute.xlu0 %1012 }
 0x218   :  { %3909 = vtanh.f32 %v1127_v40  ;;  %v1128_v3 = vmul.f32 0.5, %v1123_v52  ;;  %v1126_v55 = vadd.f32 %v1116_v32, %v1031_v11  ;;  %v5136_v36 = vld [vmem:[%s6605_s4 + $0x148] ss:$16 sps:$4 sm:$0xff]   ;;  %v5144_v52 = vld [vmem:[%s6605_s4 + $0x164] ss:$16 sps:$4 sm:$0xff]   ;;  %vm1017_vm8 = vcmp.eq.s32.totalorder %v5139_v53, 1 }
 0x219   :  { %3911 = vtanh.f32 %v1135_v43  ;;  %v1136_v5 = vmul.f32 0.5, %v1124_v56  ;;  %v3908_v6 = vpop.eup %3907  ;;  %v988_v9 = vsel %vm842_vm6, %v986_v2, 0.0  ;;  %v5063_v14 = vsel %vm842_vm6, %v986_v2, %v4900_v35  ;;  %v5077_v35 = vld [vmem:[%s6605_s4 + $0x100] ss:$16 sps:$4 sm:$0xff]   ;;  %v5150_v30 = vld [vmem:[%s6605_s4 + $0x16c] ss:$16 sps:$4 sm:$0xff]  }
 0x21a   :  { %v987_v7 = vmul.f32 %v3908_v6, %v977_v4  ;;  %3913 = vtanh.f32 %v1128_v3  ;;  %v1146_v51 = vmul.f32 0.5, %v1126_v55  ;;  %v818_v32 = vsel %vm508_vm4, %v4936_v58, 0.0  ;;  %v5164_v0 = vld [vmem:[%s6605_s4 + $0x160] ss:$16 sps:$4 sm:$0xff]   ;;  %v5170_v56 = vld [vmem:[%s6605_s4 + $0x168] ss:$16 sps:$4 sm:$0xff]  }
 0x21b   :  { %3915 = vtanh.f32 %v1121_v1  ;;  %v5176_v48 = vld [vmem:[%s6605_s4 + $0x184] ss:$16 sps:$4 sm:$0xff]   ;;  %v5182_v3 = vld [vmem:[%s6605_s4 + $0x18c] ss:$16 sps:$4 sm:$0xff]   ;;  %v5191_v6 = vld [vmem:[%s6605_s4 + $0x180] ss:$16 sps:$4 sm:$0xff]  }
 0x21c   :  { %v989_v12 = vsel %vm843_vm7, %v987_v7, 0.0  ;;  %3917 = vtanh.f32 %v1136_v5  ;;  %v5067_v15 = vsel %vm843_vm7, %v987_v7, %v4904_v59  ;;  %v5083_v59 = vld [vmem:[%s6605_s4 + $0x108] ss:$16 sps:$4 sm:$0xff]   ;;  %v5209_v10 = vld [vmem:[%s6605_s4 + $0x1ac] ss:$16 sps:$4 sm:$0xff]  }
 0x21d   :  { %v3656_v16 = vpack.c.bf16 %v989_v12, %v988_v9  ;;  %v1207_v17 = vpack.c.bf16 %v5067_v15, %v5063_v14  ;;  %3919 = vtanh.f32 %v1125_v8  ;;  %v5197_v7 = vld [vmem:[%s6605_s4 + $0x188] ss:$16 sps:$4 sm:$0xff]   ;;  %v5203_v9 = vld [vmem:[%s6605_s4 + $0x1a4] ss:$16 sps:$4 sm:$0xff]  }
 0x21e   :  { %3921 = vtanh.f32 %v1145_v18  ;;  %v5227_v55 = vld [vmem:[%s6605_s4 + $0x1c4] ss:$16 sps:$4 sm:$0xff]  }
 0x21f   :  { %3724 = vst [vmem:[%s6609_s5 + $0x8] sm:$0xff] %v3656_v16   ;;  %1241 = vmatmul.mubr.bf16.vlgmr.msra.gmra.mrb[16].mxu0 %v1207_v17  ;;  %1284 = vmatmul.mubr.bf16.vlgmr.msra.gmra.mrb[16].mxu1 %v1207_v17  ;;  %3923 = vtanh.f32 %v1146_v51  ;;  %v5215_v16 = vld [vmem:[%s6605_s4 + $0x1a0] ss:$16 sps:$4 sm:$0xff]   ;;  %v5221_v17 = vld [vmem:[%s6605_s4 + $0x1a8] ss:$16 sps:$4 sm:$0xff]  }
 0x220   :  { %1384 = vmatpush1.bf16.msra.mxu0 %v5077_v35  ;;  %1427 = vmatpush1.bf16.msra.mxu1 %v5083_v59  ;;  %v5245_v51 = vld [vmem:[%s6605_s4 + $0x1c8] ss:$16 sps:$4 sm:$0xff]   ;;  %v5311_v53 = vld [vmem:[%s6604_s3 + $0x24] ss:$16 sps:$4 sm:$0xff]  }
 0x221   :  { %1385 = vmatprep.subr.bf16.mxu0 %v5089_v20  ;;  %1428 = vmatprep.subr.bf16.mxu1 %v5095_v21  ;;  %6855 = vst [vmem:[#allocation28_spill] sm:$0xff] %v5311_v53 }
 0x222   :  { %v3910_v13 = vpop.eup %3909  ;;  %1415 = vmatprep.mubr.bf16.mxu0 %v6808_v62  ;;  %1458 = vmatprep.mubr.bf16.mxu1 %v6808_v62 }
 0x223   :  { %v3912_v22 = vpop.eup %3911  ;;  %v1131_v23 = vmul.f32 0.5, %v3910_v13  ;;  %v5233_v13 = vld [vmem:[%s6605_s4 + $0x1cc] ss:$16 sps:$4 sm:$0xff]  }
 0x224   :  { %v1139_v49 = vmul.f32 0.5, %v3912_v22  ;;  %v3914_v57 = vpop.eup %3913  ;;  %1386 = vmatpush1.bf16.msra.mxu0 %v5103_v42  ;;  %1429 = vmatpush1.bf16.msra.mxu1 %v5109_v46 }
 0x225   :  { %v1133_v61 = vadd.f32 0.5, %v1131_v23  ;;  %v3916_v33 = vpop.eup %3915  ;;  %v1132_v31 = vmul.f32 0.5, %v3914_v57  ;;  %1387 = vmatprep.subr.bf16.mxu0 %v5115_v47  ;;  %1430 = vmatprep.subr.bf16.mxu1 %v5121_v28 }
 0x226   :  { %v1141_v60 = vadd.f32 0.5, %v1139_v49  ;;  %v3918_v27 = vpop.eup %3917  ;;  %v5239_v49 = vld [vmem:[%s6605_s4 + $0x1c0] ss:$16 sps:$4 sm:$0xff]  }
 0x227   :  { %v1155_v26 = vmul.f32 %v3916_v33, %v1133_v61  ;;  %v1134_v37 = vadd.f32 0.5, %v1132_v31  ;;  %v1140_v50 = vmul.f32 0.5, %v3918_v27  ;;  %v3920_v63 = vpop.eup %3919  ;;  %v5251_v61 = vld [vmem:[%s6605_s4 + $0x1e4] ss:$16 sps:$4 sm:$0xff]   ;;  %v5257_v33 = vld [vmem:[%s6605_s4 + $0x1ec] ss:$16 sps:$4 sm:$0xff]  }
 0x228   :  { %v1153_v29 = vmul.f32 %v1141_v60, %v817_v24  ;;  %1388 = vmatpush1.bf16.msra.mxu0 %v5130_v34  ;;  %1431 = vmatpush1.bf16.msra.mxu1 %v5136_v36  ;;  %v3922_v58 = vpop.eup %3921  ;;  %6847 = vst [vmem:[#allocation20_spill] sm:$0xff] %v5257_v33 }
 0x229   :  { %v1142_v38 = vadd.f32 0.5, %v1140_v50  ;;  %v1156_v40 = vmul.f32 %v3920_v63, %v1134_v37  ;;  %1389 = vmatprep.subr.bf16.mxu0 %v5144_v52  ;;  %1432 = vmatprep.subr.bf16.mxu1 %v5150_v30  ;;  %v1149_v5 = vmul.f32 0.5, %v3922_v58  ;;  %v3924_v8 = vpop.eup %3923  ;;  %v5343_v58 = vld [vmem:[%s6604_s3 + $0x4c] ss:$16 sps:$4 sm:$0xff]  }
 0x22a   :  { %v1157_v25 = vadd.f32 %v1155_v26, %v1153_v29  ;;  %v1150_v12 = vmul.f32 0.5, %v3924_v8  ;;  %v5272_v26 = vld [vmem:[%s6605_s4 + $0x1e8] ss:$16 sps:$4 sm:$0xff]   ;;  %6860 = vst [vmem:[#allocation31_spill] sm:$0xff] %v5343_v58  ;;  %v5367_v8 = vld [vmem:[%s6604_s3 + $0x6c] ss:$16 sps:$4 sm:$0xff]  }
 0x22b   :  { %v1154_v2 = vmul.f32 %v1142_v38, %v818_v32  ;;  %v1151_v11 = vadd.f32 0.5, %v1149_v5  ;;  %6849 = vst [vmem:[#allocation23_spill] sm:$0xff] %v5272_v26  ;;  %v5317_v38 = vld [vmem:[%s6604_s3 + $0x2c] ss:$16 sps:$4 sm:$0xff]   ;;  %v5361_v5 = vld [vmem:[%s6604_s3 + $0x64] ss:$16 sps:$4 sm:$0xff]  }
 0x22c   :  { %3925 = vtanh.f32 %v1157_v25  ;;  %v5159_v43 = vsel %vm1017_vm8, %v1157_v25, %v817_v24  ;;  %1390 = vmatpush1.bf16.msra.mxu0 %v5164_v0  ;;  %1433 = vmatpush1.bf16.msra.mxu1 %v5170_v56  ;;  %v1152_v23 = vadd.f32 0.5, %v1150_v12  ;;  %v5266_v24 = vld [vmem:[%s6605_s4 + $0x1e0] ss:$16 sps:$4 sm:$0xff]   ;;  %v5289_v25 = vld [vmem:[%s6604_s3 + $0x4] ss:$16 sps:$4 sm:$0xff]   ;;  %6856 = vst [vmem:[#allocation27_spill] sm:$0xff] %v5317_v38 }
 0x22d   :  { %v1158_v1 = vadd.f32 %v1156_v40, %v1154_v2  ;;  %1391 = vmatprep.subr.bf16.mxu0 %v5176_v48  ;;  %1434 = vmatprep.subr.bf16.mxu1 %v5182_v3  ;;  %6848 = vst [vmem:[#allocation19_spill] sm:$0xff] %v5266_v24  ;;  %6852 = vst [vmem:[#allocation22_spill] sm:$0xff] %v5289_v25  ;;  %v5325_v40 = vld [vmem:[%s6604_s3 + $0x20] ss:$16 sps:$4 sm:$0xff]   ;;  %v5337_v2 = vld [vmem:[%s6604_s3 + $0x44] ss:$16 sps:$4 sm:$0xff]  }
 0x22e   :  { %6857 = vst [vmem:[#allocation30_spill] sm:$0xff] %v5325_v40  ;;  %6859 = vst [vmem:[#allocation32_spill] sm:$0xff] %v5337_v2  ;;  %v5379_v12 = vld [vmem:[%s6604_s3 + $0x68] ss:$16 sps:$4 sm:$0xff]  }
 0x22f   :  { %3927 = vtanh.f32 %v1158_v1  ;;  %v5186_v4 = vsel %vm1018_vm9, %v1158_v1, %v818_v32  ;;  %v5331_v32 = vld [vmem:[%s6604_s3 + $0x28] ss:$16 sps:$4 sm:$0xff]   ;;  %6863 = vst [vmem:[#allocation35_spill] sm:$0xff] %v5361_v5  ;;  %6864 = vst [vmem:[#allocation6_spill] sm:$0xff] %v5367_v8 }
 0x230   :  { %1392 = vmatpush1.bf16.msra.mxu0 %v5191_v6  ;;  %1435 = vmatpush1.bf16.msra.mxu1 %v5197_v7  ;;  %6858 = vst [vmem:[#allocation29_spill] sm:$0xff] %v5331_v32  ;;  %v5355_v1 = vld [vmem:[%s6604_s3 + $0x48] ss:$16 sps:$4 sm:$0xff]   ;;  %6866 = vst [vmem:[#allocation7_spill] sm:$0xff] %v5379_v12 }
 0x231   :  { %1393 = vmatprep.subr.bf16.mxu0 %v5203_v9  ;;  %1436 = vmatprep.subr.bf16.mxu1 %v5209_v10  ;;  %6862 = vst [vmem:[#allocation33_spill] sm:$0xff] %v5355_v1 }
 0x234   :  { %1394 = vmatpush1.bf16.msra.mxu0 %v5215_v16  ;;  %1437 = vmatpush1.bf16.msra.mxu1 %v5221_v17 }
 0x235   :  { %1395 = vmatprep.subr.bf16.mxu0 %v5227_v55  ;;  %1438 = vmatprep.subr.bf16.mxu1 %v5233_v13 }
 0x236   :  { %v3926_v18 = vpop.eup %3925 }
 0x237   :  { %v1161_v22 = vmul.f32 %v3926_v18, %v1151_v11  ;;  %v5373_v11 = vld [vmem:[%s6604_s3 + $0x60] ss:$16 sps:$4 sm:$0xff]   ;;  %v5385_v18 = vld [vmem:[%s6604_s3 + $0x84] ss:$16 sps:$4 sm:$0xff]  }
 0x238   :  { %1396 = vmatpush1.bf16.msra.mxu0 %v5239_v49  ;;  %1439 = vmatpush1.bf16.msra.mxu1 %v5245_v51  ;;  %6865 = vst [vmem:[#allocation9_spill] sm:$0xff] %v5373_v11  ;;  %6867 = vst [vmem:[#allocation10_spill] sm:$0xff] %v5385_v18 }
 0x239   :  { %v3928_v57 = vpop.eup %3927  ;;  %1397 = vmatprep.subr.bf16.mxu0 %v5251_v61  ;;  %1440 = vmatprep.subr.bf16.mxu1 %v5257_v33  ;;  %v1163_v31 = vsel %vm1017_vm8, %v1161_v22, 0.0  ;;  %v5278_v29 = vsel %vm1017_vm8, %v1161_v22, %v4961_v41  ;;  %v5295_v41 = vld [vmem:[%s6604_s3 + $0xc] ss:$16 sps:$4 sm:$0xff]  }
 0x23a   :  { %v1162_v60 = vmul.f32 %v3928_v57, %v1152_v23  ;;  %6850 = vst [vmem:[#allocation21_spill] sm:$0xff] %v5278_v29  ;;  %6853 = vst [vmem:[#allocation26_spill] sm:$0xff] %v5295_v41  ;;  %v5391_v22 = vld [vmem:[%s6604_s3 + $0x8c] ss:$16 sps:$4 sm:$0xff]   ;;  %v5397_v23 = vld [vmem:[%s6604_s3 + $0x80] ss:$16 sps:$4 sm:$0xff]  }
 0x23b   :  { %6868 = vst [vmem:[#allocation8_spill] sm:$0xff] %v5391_v22  ;;  %6869 = vst [vmem:[#allocation12_spill] sm:$0xff] %v5397_v23  ;;  %v5403_v57 = vld [vmem:[%s6604_s3 + $0x88] ss:$16 sps:$4 sm:$0xff]  }
 0x23c   :  { %v1164_v27 = vsel %vm1018_vm9, %v1162_v60, 0.0  ;;  %1398 = vmatpush1.bf16.msra.mxu0 %v5266_v24  ;;  %1441 = vmatpush1.bf16.msra.mxu1 %v5272_v26  ;;  %v5282_v37 = vsel %vm1018_vm9, %v1162_v60, %v4965_v44  ;;  %v5305_v44 = vld [vmem:[%s6604_s3 + $0x8] ss:$16 sps:$4 sm:$0xff]   ;;  %6870 = vst [vmem:[#allocation11_spill] sm:$0xff] %v5403_v57  ;;  %v5409_v60 = vld [vmem:[%s6604_s3 + $0xa4] ss:$16 sps:$4 sm:$0xff]  }
 0x23d   :  { %6851 = vst [vmem:[#allocation24_spill] sm:$0xff] %v5282_v37  ;;  %v3661_v50 = vpack.c.bf16 %v1164_v27, %v1163_v31  ;;  %v1382_v63 = vpack.c.bf16 %v5282_v37, %v5278_v29  ;;  %1558 = vmatprep.subr.bf16.mxu0 %v5289_v25  ;;  %1601 = vmatprep.subr.bf16.mxu1 %v5295_v41  ;;  %6854 = vst [vmem:[#allocation25_spill] sm:$0xff] %v5305_v44  ;;  %v5415_v31 = vld [vmem:[%s6604_s3 + $0xac] ss:$16 sps:$4 sm:$0xff]   ;;  %v5421_v27 = vld [vmem:[%s6604_s3 + $0xa0] ss:$16 sps:$4 sm:$0xff]  }
 0x23e   :  { %6871 = vst [vmem:[#allocation14_spill] sm:$0xff] %v5409_v60  ;;  %6872 = vst [vmem:[#allocation13_spill] sm:$0xff] %v5415_v31 }
 0x23f   :  { %3725 = vst [vmem:[%s6610_s6 + $0x30] sm:$0xff] %v3661_v50   ;;  %1416 = vmatmul.mubr.bf16.vlgmr.msra.gmra.mrb[20].mxu0 %v1382_v63  ;;  %1459 = vmatmul.mubr.bf16.vlgmr.msra.gmra.mrb[20].mxu1 %v1382_v63  ;;  %6873 = vst [vmem:[#allocation16_spill] sm:$0xff] %v5421_v27  ;;  %v5427_v50 = vld [vmem:[%s6604_s3 + $0xa8] ss:$16 sps:$4 sm:$0xff]   ;;  %v5433_v63 = vld [vmem:[%s6604_s3 + $0xc4] ss:$16 sps:$4 sm:$0xff]  }
 0x240   :  { %1559 = vmatpush1.bf16.msra.mxu0 %v4981_v45  ;;  %1602 = vmatpush1.bf16.msra.mxu1 %v5305_v44  ;;  %6874 = vst [vmem:[#allocation15_spill] sm:$0xff] %v5427_v50  ;;  %6875 = vst [vmem:[#allocation17_spill] sm:$0xff] %v5433_v63 }
 0x241   :  { %1560 = vmatprep.subr.bf16.mxu0 %v5311_v53  ;;  %1603 = vmatprep.subr.bf16.mxu1 %v5317_v38 }
 0x242   :  { %1590 = vmatprep.mubr.bf16.mxu0 %v6808_v62  ;;  %1633 = vmatprep.mubr.bf16.mxu1 %v6808_v62 }
 0x244   :  { %1561 = vmatpush1.bf16.msra.mxu0 %v5325_v40  ;;  %1604 = vmatpush1.bf16.msra.mxu1 %v5331_v32 }
 0x245   :  { %1562 = vmatprep.subr.bf16.mxu0 %v5337_v2  ;;  %1605 = vmatprep.subr.bf16.mxu1 %v5343_v58 }
 0x248   :  { %1563 = vmatpush1.bf16.msra.mxu0 %v5349_v39  ;;  %1606 = vmatpush1.bf16.msra.mxu1 %v5355_v1  ;;  %v3498_v1 = vld [vmem:[%s6607_s1 + $0x58] sm:$0xff] }
 0x249   :  { %1564 = vmatprep.subr.bf16.mxu0 %v5361_v5  ;;  %1607 = vmatprep.subr.bf16.mxu1 %v5367_v8  ;;  %v1205_v44 = vunpack.c.l.bf16 %v3498_v1 }
 0x24c   :  { %1565 = vmatpush1.bf16.msra.mxu0 %v5373_v11  ;;  %1608 = vmatpush1.bf16.msra.mxu1 %v5379_v12 }
 0x24d   :  { %1566 = vmatprep.subr.bf16.mxu0 %v5385_v18  ;;  %1609 = vmatprep.subr.bf16.mxu1 %v5391_v22 }
 0x250   :  { %1567 = vmatpush1.bf16.msra.mxu0 %v5397_v23  ;;  %1610 = vmatpush1.bf16.msra.mxu1 %v5403_v57 }
 0x251   :  { %1568 = vmatprep.subr.bf16.mxu0 %v5409_v60  ;;  %1611 = vmatprep.subr.bf16.mxu1 %v5415_v31  ;;  %v5439_v31 = vld [vmem:[%s6604_s3 + $0xcc] ss:$16 sps:$4 sm:$0xff]  }
 0x252   :  { %6876 = vst [vmem:[#allocation36_spill] sm:$0xff] %v5439_v31 }
 0x254   :  { %1569 = vmatpush1.bf16.msra.mxu0 %v5421_v27  ;;  %1612 = vmatpush1.bf16.msra.mxu1 %v5427_v50  ;;  %v5445_v27 = vld [vmem:[%s6604_s3 + $0xc0] ss:$16 sps:$4 sm:$0xff]   ;;  %v5451_v50 = vld [vmem:[%s6604_s3 + $0xc8] ss:$16 sps:$4 sm:$0xff]  }
 0x255   :  { %1570 = vmatprep.subr.bf16.mxu0 %v5433_v63  ;;  %1613 = vmatprep.subr.bf16.mxu1 %v5439_v31  ;;  %6877 = vst [vmem:[#allocation37_spill] sm:$0xff] %v5445_v27  ;;  %6878 = vst [vmem:[#allocation38_spill] sm:$0xff] %v5451_v50  ;;  %v5457_v63 = vld [vmem:[%s6604_s3 + $0xe4] ss:$16 sps:$4 sm:$0xff]   ;;  %v5463_v31 = vld [vmem:[%s6604_s3 + $0xec] ss:$16 sps:$4 sm:$0xff]  }
 0x256   :  { %6879 = vst [vmem:[#allocation39_spill] sm:$0xff] %v5457_v63  ;;  %6880 = vst [vmem:[#allocation40_spill] sm:$0xff] %v5463_v31 }
 0x258   :  { %1571 = vmatpush1.bf16.msra.mxu0 %v5445_v27  ;;  %1614 = vmatpush1.bf16.msra.mxu1 %v5451_v50  ;;  %v5469_v27 = vld [vmem:[%s6604_s3 + $0xe0] ss:$16 sps:$4 sm:$0xff]   ;;  %v5475_v50 = vld [vmem:[%s6604_s3 + $0xe8] ss:$16 sps:$4 sm:$0xff]  }
 0x259   :  { %1572 = vmatprep.subr.bf16.mxu0 %v5457_v63  ;;  %1615 = vmatprep.subr.bf16.mxu1 %v5463_v31  ;;  %6881 = vst [vmem:[#allocation41_spill] sm:$0xff] %v5469_v27  ;;  %6882 = vst [vmem:[#allocation42_spill] sm:$0xff] %v5475_v50  ;;  %v5481_v63 = vld [vmem:[%s6605_s4 + $0x104] ss:$16 sps:$4 sm:$0xff]   ;;  %v5487_v31 = vld [vmem:[%s6605_s4 + $0x10c] ss:$16 sps:$4 sm:$0xff]  }
 0x25a   :  { %6883 = vst [vmem:[#allocation43_spill] sm:$0xff] %v5481_v63  ;;  %6884 = vst [vmem:[#allocation44_spill] sm:$0xff] %v5487_v31 }
 0x25c   :  { %1573 = vmatpush1.bf16.msra.mxu0 %v5469_v27  ;;  %1616 = vmatpush1.bf16.msra.mxu1 %v5475_v50  ;;  %v3495_v27 = vld [vmem:[%s6607_s1 + $0x40] sm:$0xff]  ;;  %v3497_v50 = vld [vmem:[%s6607_s1 + $0x50] sm:$0xff] }
 0x25d   :  { %1733 = vmatprep.subr.bf16.mxu0 %v5481_v63  ;;  %1776 = vmatprep.subr.bf16.mxu1 %v5487_v31  ;;  %v1199_v60 = vunpack.c.l.bf16 %v3495_v27  ;;  %v3496_v63 = vld [vmem:[%s6607_s1 + $0x48] sm:$0xff]  ;;  %v1200_v57 = vunpack.c.h.bf16 %v3495_v27  ;;  %v1203_v23 = vunpack.c.l.bf16 %v3497_v50  ;;  %v1204_v12 = vunpack.c.h.bf16 %v3497_v50 }
 0x25e   :  { %v1201_v31 = vunpack.c.l.bf16 %v3496_v63 }
 0x2f2   :  { %v1242_v22 = vpop.f32.mrb[16].mxu0  ;;  %v1285_v18 = vpop.f32.mrb[16].mxu1 }
 0x2f3   :  { %v1294_v11 = vadd.f32 %v1242_v22, %v1199_v60  ;;  %v1244_v8 = vpop.f32.mrb[17].mxu0  ;;  %v1287_v5 = vpop.f32.mrb[17].mxu1  ;;  %v1296_v50 = vadd.f32 %v1285_v18, %v1201_v31  ;;  %v1202_v22 = vunpack.c.h.bf16 %v3496_v63 }
 0x2f4   :  { %v1295_v39 = vadd.f32 %v1244_v8, %v1200_v57  ;;  %v1246_v58 = vpop.f32.mrb[18].mxu0  ;;  %v1289_v2 = vpop.f32.mrb[18].mxu1  ;;  %v1206_v8 = vunpack.c.h.bf16 %v3498_v1 }
 0x2f5   :  { %v1302_v32 = vmul.f32 0.5, %v1294_v11  ;;  %v1298_v40 = vadd.f32 %v1246_v58, %v1203_v23  ;;  %v1248_v38 = vpop.f32.mrb[19].mxu0  ;;  %v1291_v53 = vpop.f32.mrb[19].mxu1  ;;  %v1300_v25 = vadd.f32 %v1289_v2, %v1205_v44  ;;  %v1297_v37 = vadd.f32 %v1287_v5, %v1202_v22 }
 0x2f6   :  { %v1310_v27 = vmul.f32 0.5, %v1295_v39  ;;  %v1299_v45 = vadd.f32 %v1248_v38, %v1204_v12  ;;  %v1301_v58 = vadd.f32 %v1291_v53, %v1206_v8 }
 0x2f7   :  { %3929 = vtanh.f32 %v1302_v32  ;;  %v1303_v60 = vmul.f32 0.5, %v1298_v40  ;;  %v1320_v11 = vmul.f32 0.5, %v1297_v37 }
 0x2f8   :  { %3931 = vtanh.f32 %v1310_v27  ;;  %v1311_v41 = vmul.f32 0.5, %v1299_v45  ;;  %v1321_v38 = vmul.f32 0.5, %v1301_v58 }
 0x2f9   :  { %3933 = vtanh.f32 %v1303_v60  ;;  %v1191_v60 = vpop.permute.xlu1 %1190 }
 0x2fa   :  { %3935 = vtanh.f32 %v1296_v50  ;;  %v3505_v50 = vld [vmem:[%s6608_s2 + $0x1a0] sm:$0xff]  ;;  %vm1193_vm11 = vcmp.eq.s32.totalorder %v1191_v60, 1 }
 0x2fb   :  { %3937 = vtanh.f32 %v1311_v41  ;;  %v1374_v58 = vunpack.c.l.bf16 %v3505_v50 }
 0x2fc   :  { %3939 = vtanh.f32 %v1300_v25  ;;  %v5503_v25 = vpop.permute.xlu0 %1187 }
 0x2fd   :  { %3941 = vtanh.f32 %v1320_v11  ;;  %vm1192_vm10 = vcmp.eq.s32.totalorder %v5503_v25, 1  ;;  %v3507_v11 = vld [vmem:[%s6608_s2 + $0x1b0] sm:$0xff] }
 0x2fe   :  { %3943 = vtanh.f32 %v1321_v38 }
 0x301   :  { %v3930_v23 = vpop.eup %3929 }
 0x302   :  { %v3932_v57 = vpop.eup %3931  ;;  %v1306_v39 = vmul.f32 0.5, %v3930_v23 }
 0x303   :  { %v1314_v29 = vmul.f32 0.5, %v3932_v57  ;;  %v3934_v32 = vpop.eup %3933  ;;  %v3506_v57 = vld [vmem:[%s6608_s2 + $0x1a8] sm:$0xff] }
 0x304   :  { %v1308_v12 = vadd.f32 0.5, %v1306_v39  ;;  %v3936_v40 = vpop.eup %3935  ;;  %v1307_v45 = vmul.f32 0.5, %v3934_v32  ;;  %v1375_v39 = vunpack.c.h.bf16 %v3505_v50  ;;  %v1378_v32 = vunpack.c.l.bf16 %v3507_v11 }
 0x305   :  { %v1316_v18 = vadd.f32 0.5, %v1314_v29  ;;  %v3938_v31 = vpop.eup %3937  ;;  %v1377_v26 = vunpack.c.h.bf16 %v3506_v57 }
 0x306   :  { %v1330_v44 = vmul.f32 %v3936_v40, %v1308_v12  ;;  %v1309_v1 = vadd.f32 0.5, %v1307_v45  ;;  %v1315_v41 = vmul.f32 0.5, %v3938_v31  ;;  %v3940_v37 = vpop.eup %3939  ;;  %v1376_v31 = vunpack.c.l.bf16 %v3506_v57 }
 0x307   :  { %v1328_v2 = vmul.f32 %v1316_v18, %v5040_v19  ;;  %v3942_v22 = vpop.eup %3941  ;;  %v1379_v18 = vunpack.c.h.bf16 %v3507_v11 }
 0x308   :  { %v1317_v5 = vadd.f32 0.5, %v1315_v41  ;;  %v1331_v63 = vmul.f32 %v3940_v37, %v1309_v1  ;;  %v3944_v38 = vpop.eup %3943 }
 0x309   :  { %v1332_v53 = vadd.f32 %v1330_v44, %v1328_v2  ;;  %v1325_v41 = vmul.f32 0.5, %v3944_v38 }
 0x30a   :  { %v1329_v27 = vmul.f32 %v1317_v5, %v5049_v54 }
 0x30b   :  { %3945 = vtanh.f32 %v1332_v53  ;;  %v5510_v29 = vsel %vm1192_vm10, %v1332_v53, %v5040_v19  ;;  %v1324_v19 = vmul.f32 0.5, %v3942_v22  ;;  %v1327_v33 = vadd.f32 0.5, %v1325_v41 }
 0x30c   :  { %6885 = vst [vmem:[#allocation45_spill] sm:$0xff] %v5510_v29  ;;  %v1333_v8 = vadd.f32 %v1331_v63, %v1329_v27 }
 0x30d   :  { %v1326_v1 = vadd.f32 0.5, %v1324_v19 }
 0x30e   :  { %3947 = vtanh.f32 %v1333_v8  ;;  %v5520_v23 = vsel %vm1193_vm11, %v1333_v8, %v5049_v54  ;;  %v3508_v54 = vld [vmem:[%s6608_s2 + $0x1b8] sm:$0xff] }
 0x30f   :  { %6886 = vst [vmem:[#allocation46_spill] sm:$0xff] %v5520_v23 }
 0x312   :  { %v1417_v12 = vpop.f32.mrb[20].mxu0  ;;  %v1460_v40 = vpop.f32.mrb[20].mxu1 }
 0x313   :  { %v1469_v45 = vadd.f32 %v1417_v12, %v1374_v58  ;;  %v1419_v44 = vpop.f32.mrb[21].mxu0  ;;  %v1462_v2 = vpop.f32.mrb[21].mxu1  ;;  %v1380_v58 = vunpack.c.l.bf16 %v3508_v54  ;;  %v1471_v29 = vadd.f32 %v1460_v40, %v1376_v31 }
 0x314   :  { %v1470_v37 = vadd.f32 %v1419_v44, %v1375_v39  ;;  %v1421_v53 = vpop.f32.mrb[22].mxu0  ;;  %v1464_v5 = vpop.f32.mrb[22].mxu1 }
 0x315   :  { %v3946_v63 = vpop.eup %3945  ;;  %v1477_v27 = vmul.f32 0.5, %v1469_v45  ;;  %v1473_v50 = vadd.f32 %v1421_v53, %v1378_v32  ;;  %v1423_v22 = vpop.f32.mrb[23].mxu0  ;;  %v1475_v44 = vadd.f32 %v1464_v5, %v1380_v58  ;;  %v1472_v45 = vadd.f32 %v1462_v2, %v1377_v26 }
 0x316   :  { %v1466_v8 = vpop.f32.mrb[23].mxu1  ;;  %v1336_v23 = vmul.f32 %v3946_v63, %v1326_v1  ;;  %v1485_v11 = vmul.f32 0.5, %v1470_v37  ;;  %v1474_v12 = vadd.f32 %v1423_v22, %v1379_v18  ;;  %v1381_v1 = vunpack.c.h.bf16 %v3508_v54 }
 0x317   :  { %3949 = vtanh.f32 %v1477_v27  ;;  %v1478_v24 = vmul.f32 0.5, %v1473_v50  ;;  %v1495_v26 = vmul.f32 0.5, %v1472_v45 }
 0x318   :  { %3951 = vtanh.f32 %v1485_v11  ;;  %v1486_v19 = vmul.f32 0.5, %v1474_v12  ;;  %v3948_v38 = vpop.eup %3947  ;;  %v1338_v32 = vsel %vm1192_vm10, %v1336_v23, 0.0  ;;  %v5534_v57 = vsel %vm1192_vm10, %v1336_v23, %v5063_v14 }
 0x319   :  { %v1337_v39 = vmul.f32 %v3948_v38, %v1327_v33  ;;  %3953 = vtanh.f32 %v1478_v24 }
 0x31a   :  { %3955 = vtanh.f32 %v1471_v29  ;;  %v1476_v29 = vadd.f32 %v1466_v8, %v1381_v1  ;;  %v1363_v8 = vpop.permute.xlu0 %1362 }
 0x31b   :  { %v1339_v37 = vsel %vm1193_vm11, %v1337_v39, 0.0  ;;  %3957 = vtanh.f32 %v1486_v19  ;;  %v5538_v40 = vsel %vm1193_vm11, %v1337_v39, %v5067_v15  ;;  %vm1367_vm12 = vcmp.eq.s32.totalorder %v1363_v8, 1  ;;  %v6898_v8 = vld [vmem:[#allocation28_spill] sm:$0xff] }
 0x31c   :  { %v3666_v33 = vpack.c.bf16 %v1339_v37, %v1338_v32  ;;  %v1557_v24 = vpack.c.bf16 %v5538_v40, %v5534_v57  ;;  %3959 = vtanh.f32 %v1475_v44  ;;  %v1496_v23 = vmul.f32 0.5, %v1476_v29  ;;  %v1366_v44 = vpop.permute.xlu1 %1365 }
 0x31d   :  { %3961 = vtanh.f32 %v1495_v26  ;;  %vm1368_vm13 = vcmp.eq.s32.totalorder %v1366_v44, 1  ;;  %v6904_v44 = vld [vmem:[#allocation34_spill] sm:$0xff] }
 0x31e   :  { %3726 = vst [vmem:[%s6609_s5 + $0x10] sm:$0xff] %v3666_v33   ;;  %1591 = vmatmul.mubr.bf16.vlgmr.msra.gmra.mrb[24].mxu0 %v1557_v24  ;;  %1634 = vmatmul.mubr.bf16.vlgmr.msra.gmra.mrb[24].mxu1 %v1557_v24  ;;  %3963 = vtanh.f32 %v1496_v23  ;;  %v6888_v23 = vld [vmem:[#allocation19_spill] sm:$0xff] }
 0x31f   :  { %1734 = vmatpush1.bf16.msra.mxu0 %v5077_v35  ;;  %1777 = vmatpush1.bf16.msra.mxu1 %v5083_v59 }
 0x320   :  { %1735 = vmatprep.subr.bf16.mxu0 %v5089_v20  ;;  %1778 = vmatprep.subr.bf16.mxu1 %v5095_v21 }
 0x321   :  { %v3950_v14 = vpop.eup %3949  ;;  %1765 = vmatprep.mubr.bf16.mxu0 %v6808_v62  ;;  %1808 = vmatprep.mubr.bf16.mxu1 %v6808_v62 }
 0x322   :  { %v3952_v15 = vpop.eup %3951  ;;  %v1481_v25 = vmul.f32 0.5, %v3950_v14  ;;  %v6887_v14 = vld [vmem:[#allocation20_spill] sm:$0xff] }
 0x323   :  { %v1489_v60 = vmul.f32 0.5, %v3952_v15  ;;  %v3954_v18 = vpop.eup %3953  ;;  %1736 = vmatpush1.bf16.msra.mxu0 %v5103_v42  ;;  %1779 = vmatpush1.bf16.msra.mxu1 %v5109_v46 }
 0x324   :  { %v1483_v31 = vadd.f32 0.5, %v1481_v25  ;;  %v3956_v2 = vpop.eup %3955  ;;  %v1482_v41 = vmul.f32 0.5, %v3954_v18  ;;  %1737 = vmatprep.subr.bf16.mxu0 %v5115_v47  ;;  %1780 = vmatprep.subr.bf16.mxu1 %v5121_v28  ;;  %v6889_v18 = vld [vmem:[#allocation23_spill] sm:$0xff] }
 0x325   :  { %v1491_v54 = vadd.f32 0.5, %v1489_v60  ;;  %v3958_v53 = vpop.eup %3957 }
 0x326   :  { %v1505_v5 = vmul.f32 %v3956_v2, %v1483_v31  ;;  %v1484_v27 = vadd.f32 0.5, %v1482_v41  ;;  %v1490_v50 = vmul.f32 0.5, %v3958_v53  ;;  %v3960_v22 = vpop.eup %3959  ;;  %v6890_v31 = vld [vmem:[#allocation21_spill] sm:$0xff] }
 0x327   :  { %v1503_v63 = vmul.f32 %v1491_v54, %v5159_v43  ;;  %1738 = vmatpush1.bf16.msra.mxu0 %v5130_v34  ;;  %1781 = vmatpush1.bf16.msra.mxu1 %v5136_v36  ;;  %v3962_v39 = vpop.eup %3961  ;;  %v6892_v54 = vld [vmem:[#allocation24_spill] sm:$0xff] }
 0x328   :  { %v1492_v58 = vadd.f32 0.5, %v1490_v50  ;;  %v1506_v12 = vmul.f32 %v3960_v22, %v1484_v27  ;;  %1739 = vmatprep.subr.bf16.mxu0 %v5144_v52  ;;  %1782 = vmatprep.subr.bf16.mxu1 %v5150_v30  ;;  %v1499_v1 = vmul.f32 0.5, %v3962_v39  ;;  %v6895_v27 = vld [vmem:[#allocation26_spill] sm:$0xff]  ;;  %v6897_v22 = vld [vmem:[#allocation25_spill] sm:$0xff]  ;;  %v6903_v39 = vld [vmem:[#allocation31_spill] sm:$0xff] }
 0x329   :  { %v1507_v11 = vadd.f32 %v1505_v5, %v1503_v63  ;;  %v6894_v63 = vld [vmem:[#allocation22_spill] sm:$0xff] }
 0x32a   :  { %v1504_v19 = vmul.f32 %v1492_v58, %v5186_v4  ;;  %v1501_v37 = vadd.f32 0.5, %v1499_v1  ;;  %v6896_v50 = vld [vmem:[#allocation18_spill] sm:$0xff]  ;;  %v6906_v1 = vld [vmem:[#allocation35_spill] sm:$0xff] }
 0x32b   :  { %3965 = vtanh.f32 %v1507_v11  ;;  %v5563_v38 = vsel %vm1367_vm12, %v1507_v11, %v5159_v43  ;;  %1740 = vmatpush1.bf16.msra.mxu0 %v5164_v0  ;;  %1783 = vmatpush1.bf16.msra.mxu1 %v5170_v56  ;;  %v3964_v43 = vpop.eup %3963  ;;  %v6899_v11 = vld [vmem:[#allocation27_spill] sm:$0xff]  ;;  %v6900_v58 = vld [vmem:[#allocation30_spill] sm:$0xff] }
 0x32c   :  { %v1508_v32 = vadd.f32 %v1506_v12, %v1504_v19  ;;  %1741 = vmatprep.subr.bf16.mxu0 %v5176_v48  ;;  %1784 = vmatprep.subr.bf16.mxu1 %v5182_v3  ;;  %v1500_v33 = vmul.f32 0.5, %v3964_v43  ;;  %v6901_v12 = vld [vmem:[#allocation29_spill] sm:$0xff]  ;;  %v6902_v19 = vld [vmem:[#allocation32_spill] sm:$0xff]  ;;  %v6907_v43 = vld [vmem:[#allocation6_spill] sm:$0xff] }
 0x32e   :  { %3967 = vtanh.f32 %v1508_v32  ;;  %v5571_v45 = vsel %vm1368_vm13, %v1508_v32, %v5186_v4  ;;  %v1502_v26 = vadd.f32 0.5, %v1500_v33  ;;  %v6905_v32 = vld [vmem:[#allocation33_spill] sm:$0xff]  ;;  %v6909_v33 = vld [vmem:[#allocation7_spill] sm:$0xff] }
 0x32f   :  { %1742 = vmatpush1.bf16.msra.mxu0 %v5191_v6  ;;  %1785 = vmatpush1.bf16.msra.mxu1 %v5197_v7 }
 0x330   :  { %1743 = vmatprep.subr.bf16.mxu0 %v5203_v9  ;;  %1786 = vmatprep.subr.bf16.mxu1 %v5209_v10 }
 0x333   :  { %1744 = vmatpush1.bf16.msra.mxu0 %v5215_v16  ;;  %1787 = vmatpush1.bf16.msra.mxu1 %v5221_v17 }
 0x334   :  { %1745 = vmatprep.subr.bf16.mxu0 %v5227_v55  ;;  %1788 = vmatprep.subr.bf16.mxu1 %v5233_v13 }
 0x335   :  { %v3966_v24 = vpop.eup %3965 }
 0x336   :  { %v1511_v4 = vmul.f32 %v3966_v24, %v1501_v37  ;;  %v6908_v37 = vld [vmem:[#allocation9_spill] sm:$0xff]  ;;  %v6910_v24 = vld [vmem:[#allocation10_spill] sm:$0xff] }
 0x337   :  { %1746 = vmatpush1.bf16.msra.mxu0 %v5239_v49  ;;  %1789 = vmatpush1.bf16.msra.mxu1 %v5245_v51 }
 0x338   :  { %v3968_v29 = vpop.eup %3967  ;;  %1747 = vmatprep.subr.bf16.mxu0 %v5251_v61  ;;  %1790 = vmatprep.subr.bf16.mxu1 %v6887_v14  ;;  %v1513_v25 = vsel %vm1367_vm12, %v1511_v4, 0.0  ;;  %v5591_v2 = vsel %vm1367_vm12, %v1511_v4, %v6890_v31  ;;  %v6911_v4 = vld [vmem:[#allocation8_spill] sm:$0xff]  ;;  %v6917_v31 = vld [vmem:[#allocation15_spill] sm:$0xff] }
 0x339   :  { %v1512_v15 = vmul.f32 %v3968_v29, %v1502_v26  ;;  %6891 = vst [vmem:[#allocation21_spill] sm:$0xff] %v5591_v2  ;;  %v6912_v26 = vld [vmem:[#allocation12_spill] sm:$0xff]  ;;  %v6913_v29 = vld [vmem:[#allocation11_spill] sm:$0xff] }
 0x33b   :  { %v1514_v60 = vsel %vm1368_vm13, %v1512_v15, 0.0  ;;  %1748 = vmatpush1.bf16.msra.mxu0 %v6888_v23  ;;  %1791 = vmatpush1.bf16.msra.mxu1 %v6889_v18  ;;  %v5595_v41 = vsel %vm1368_vm13, %v1512_v15, %v6892_v54  ;;  %v6914_v15 = vld [vmem:[#allocation14_spill] sm:$0xff]  ;;  %v6918_v54 = vld [vmem:[#allocation17_spill] sm:$0xff] }
 0x33c   :  { %6893 = vst [vmem:[#allocation24_spill] sm:$0xff] %v5595_v41  ;;  %v3671_v53 = vpack.c.bf16 %v1514_v60, %v1513_v25  ;;  %v1732_v5 = vpack.c.bf16 %v5595_v41, %v5591_v2  ;;  %1908 = vmatprep.subr.bf16.mxu0 %v6894_v63  ;;  %1951 = vmatprep.subr.bf16.mxu1 %v6895_v27  ;;  %v6915_v25 = vld [vmem:[#allocation13_spill] sm:$0xff]  ;;  %v6916_v60 = vld [vmem:[#allocation16_spill] sm:$0xff] }
 0x33e   :  { %3727 = vst [vmem:[%s6610_s6 + $0x28] sm:$0xff] %v3671_v53   ;;  %1766 = vmatmul.mubr.bf16.vlgmr.msra.gmra.mrb[28].mxu0 %v1732_v5  ;;  %1809 = vmatmul.mubr.bf16.vlgmr.msra.gmra.mrb[28].mxu1 %v1732_v5  ;;  %v6919_v53 = vld [vmem:[#allocation36_spill] sm:$0xff]  ;;  %v6920_v5 = vld [vmem:[#allocation37_spill] sm:$0xff] }
 0x33f   :  { %1909 = vmatpush1.bf16.msra.mxu0 %v6896_v50  ;;  %1952 = vmatpush1.bf16.msra.mxu1 %v6897_v22  ;;  %v6921_v50 = vld [vmem:[#allocation38_spill] sm:$0xff] }
 0x340   :  { %1910 = vmatprep.subr.bf16.mxu0 %v6898_v8  ;;  %1953 = vmatprep.subr.bf16.mxu1 %v6899_v11 }
 0x341   :  { %1940 = vmatprep.mubr.bf16.mxu0 %v6808_v62  ;;  %1983 = vmatprep.mubr.bf16.mxu1 %v6808_v62 }
 0x343   :  { %1911 = vmatpush1.bf16.msra.mxu0 %v6900_v58  ;;  %1954 = vmatpush1.bf16.msra.mxu1 %v6901_v12 }
 0x344   :  { %1912 = vmatprep.subr.bf16.mxu0 %v6902_v19  ;;  %1955 = vmatprep.subr.bf16.mxu1 %v6903_v39 }
 0x347   :  { %1913 = vmatpush1.bf16.msra.mxu0 %v6904_v44  ;;  %1956 = vmatpush1.bf16.msra.mxu1 %v6905_v32 }
 0x348   :  { %1914 = vmatprep.subr.bf16.mxu0 %v6906_v1  ;;  %1957 = vmatprep.subr.bf16.mxu1 %v6907_v43 }
 0x34b   :  { %1915 = vmatpush1.bf16.msra.mxu0 %v6908_v37  ;;  %1958 = vmatpush1.bf16.msra.mxu1 %v6909_v33  ;;  %v3518_v37 = vld [vmem:[%s6607_s1 + $0x78] sm:$0xff] }
 0x34c   :  { %1916 = vmatprep.subr.bf16.mxu0 %v6910_v24  ;;  %1959 = vmatprep.subr.bf16.mxu1 %v6911_v4  ;;  %v6922_v4 = vld [vmem:[#allocation39_spill] sm:$0xff]  ;;  %v1555_v58 = vunpack.c.l.bf16 %v3518_v37 }
 0x34f   :  { %1917 = vmatpush1.bf16.msra.mxu0 %v6912_v26  ;;  %1960 = vmatpush1.bf16.msra.mxu1 %v6913_v29  ;;  %v6923_v26 = vld [vmem:[#allocation40_spill] sm:$0xff]  ;;  %v6924_v29 = vld [vmem:[#allocation41_spill] sm:$0xff] }
 0x350   :  { %1918 = vmatprep.subr.bf16.mxu0 %v6914_v15  ;;  %1961 = vmatprep.subr.bf16.mxu1 %v6915_v25  ;;  %v6925_v15 = vld [vmem:[#allocation42_spill] sm:$0xff]  ;;  %v6926_v25 = vld [vmem:[#allocation43_spill] sm:$0xff] }
 0x353   :  { %1919 = vmatpush1.bf16.msra.mxu0 %v6916_v60  ;;  %1962 = vmatpush1.bf16.msra.mxu1 %v6917_v31  ;;  %v6927_v60 = vld [vmem:[#allocation44_spill] sm:$0xff] }
 0x354   :  { %1920 = vmatprep.subr.bf16.mxu0 %v6918_v54  ;;  %1963 = vmatprep.subr.bf16.mxu1 %v6919_v53  ;;  %v3515_v53 = vld [vmem:[%s6607_s1 + $0x60] sm:$0xff] }
 0x357   :  { %1921 = vmatpush1.bf16.msra.mxu0 %v6920_v5  ;;  %1964 = vmatpush1.bf16.msra.mxu1 %v6921_v50  ;;  %v3517_v50 = vld [vmem:[%s6607_s1 + $0x70] sm:$0xff]  ;;  %v1549_v5 = vunpack.c.l.bf16 %v3515_v53 }
 0x358   :  { %1922 = vmatprep.subr.bf16.mxu0 %v6922_v4  ;;  %1965 = vmatprep.subr.bf16.mxu1 %v6923_v26  ;;  %v3516_v26 = vld [vmem:[%s6607_s1 + $0x68] sm:$0xff]  ;;  %v1553_v4 = vunpack.c.l.bf16 %v3517_v50 }
 0x35b   :  { %1923 = vmatpush1.bf16.msra.mxu0 %v6924_v29  ;;  %1966 = vmatpush1.bf16.msra.mxu1 %v6925_v15  ;;  %v1550_v29 = vunpack.c.h.bf16 %v3515_v53 }
 0x35c   :  { %2083 = vmatprep.subr.bf16.mxu0 %v6926_v25  ;;  %2126 = vmatprep.subr.bf16.mxu1 %v6927_v60  ;;  %v1554_v25 = vunpack.c.h.bf16 %v3517_v50  ;;  %v1551_v60 = vunpack.c.l.bf16 %v3516_v26 }
 0x3f1   :  { %v1592_v15 = vpop.f32.mrb[24].mxu0  ;;  %v1635_v54 = vpop.f32.mrb[24].mxu1 }
 0x3f2   :  { %v1644_v31 = vadd.f32 %v1592_v15, %v1549_v5  ;;  %v1594_v24 = vpop.f32.mrb[25].mxu0  ;;  %v1637_v33 = vpop.f32.mrb[25].mxu1  ;;  %v1646_v50 = vadd.f32 %v1635_v54, %v1551_v60  ;;  %v1552_v15 = vunpack.c.h.bf16 %v3516_v26 }
 0x3f3   :  { %v1645_v43 = vadd.f32 %v1594_v24, %v1550_v29  ;;  %v1596_v1 = vpop.f32.mrb[26].mxu0  ;;  %v1639_v32 = vpop.f32.mrb[26].mxu1  ;;  %v1556_v24 = vunpack.c.h.bf16 %v3518_v37 }
 0x3f4   :  { %v1652_v44 = vmul.f32 0.5, %v1644_v31  ;;  %v1648_v39 = vadd.f32 %v1596_v1, %v1553_v4  ;;  %v1598_v19 = vpop.f32.mrb[27].mxu0  ;;  %v1641_v12 = vpop.f32.mrb[27].mxu1  ;;  %v1650_v22 = vadd.f32 %v1639_v32, %v1555_v58  ;;  %v1647_v27 = vadd.f32 %v1637_v33, %v1552_v15  ;;  %v6928_v32 = vld [vmem:[#allocation45_spill] sm:$0xff] }
 0x3f5   :  { %v1660_v53 = vmul.f32 0.5, %v1645_v43  ;;  %v1649_v11 = vadd.f32 %v1598_v19, %v1554_v25  ;;  %v1651_v1 = vadd.f32 %v1641_v12, %v1556_v24 }
 0x3f6   :  { %3969 = vtanh.f32 %v1652_v44  ;;  %v1653_v5 = vmul.f32 0.5, %v1648_v39  ;;  %v1670_v29 = vmul.f32 0.5, %v1647_v27 }
 0x3f7   :  { %3971 = vtanh.f32 %v1660_v53  ;;  %v1661_v8 = vmul.f32 0.5, %v1649_v11  ;;  %v1671_v19 = vmul.f32 0.5, %v1651_v1 }
 0x3f8   :  { %3973 = vtanh.f32 %v1653_v5  ;;  %v3525_v5 = vld [vmem:[%s6608_s2 + $0x180] sm:$0xff] }
 0x3f9   :  { %3975 = vtanh.f32 %v1646_v50  ;;  %v6929_v50 = vld [vmem:[#allocation46_spill] sm:$0xff] }
 0x3fa   :  { %3977 = vtanh.f32 %v1661_v8 }
 0x3fb   :  { %3979 = vtanh.f32 %v1650_v22  ;;  %v5651_v22 = vpop.permute.xlu0 %1537 }
 0x3fc   :  { %3981 = vtanh.f32 %v1670_v29  ;;  %vm1542_vm14 = vcmp.eq.s32.totalorder %v5651_v22, 1  ;;  %v1541_v29 = vpop.permute.xlu1 %1540 }
 0x3fd   :  { %3983 = vtanh.f32 %v1671_v19  ;;  %vm1543_vm15 = vcmp.eq.s32.totalorder %v1541_v29, 1 }
 0x400   :  { %v3970_v4 = vpop.eup %3969 }
 0x401   :  { %v3972_v31 = vpop.eup %3971  ;;  %v1656_v43 = vmul.f32 0.5, %v3970_v4  ;;  %v3527_v4 = vld [vmem:[%s6608_s2 + $0x190] sm:$0xff] }
 0x402   :  { %v1664_v63 = vmul.f32 0.5, %v3972_v31  ;;  %v3974_v44 = vpop.eup %3973  ;;  %v1724_v31 = vunpack.c.l.bf16 %v3525_v5 }
 0x403   :  { %v1658_v26 = vadd.f32 0.5, %v1656_v43  ;;  %v3976_v39 = vpop.eup %3975  ;;  %v1657_v11 = vmul.f32 0.5, %v3974_v44  ;;  %v3526_v44 = vld [vmem:[%s6608_s2 + $0x188] sm:$0xff] }
 0x404   :  { %v1666_v25 = vadd.f32 0.5, %v1664_v63  ;;  %v3978_v60 = vpop.eup %3977  ;;  %v1727_v18 = vunpack.c.h.bf16 %v3526_v44 }
 0x405   :  { %v1680_v58 = vmul.f32 %v3976_v39, %v1658_v26  ;;  %v1659_v37 = vadd.f32 0.5, %v1657_v11  ;;  %v1665_v8 = vmul.f32 0.5, %v3978_v60  ;;  %v3980_v27 = vpop.eup %3979  ;;  %v1725_v26 = vunpack.c.h.bf16 %v3525_v5 }
 0x406   :  { %v1678_v33 = vmul.f32 %v1666_v25, %v6928_v32  ;;  %v3982_v24 = vpop.eup %3981  ;;  %v1728_v25 = vunpack.c.l.bf16 %v3527_v4 }
 0x407   :  { %v1667_v54 = vadd.f32 0.5, %v1665_v8  ;;  %v1681_v53 = vmul.f32 %v3980_v27, %v1659_v37  ;;  %v1674_v19 = vmul.f32 0.5, %v3982_v24  ;;  %v3984_v39 = vpop.eup %3983  ;;  %v3528_v27 = vld [vmem:[%s6608_s2 + $0x198] sm:$0xff] }
 0x408   :  { %v1682_v12 = vadd.f32 %v1680_v58, %v1678_v33  ;;  %v1729_v58 = vunpack.c.h.bf16 %v3527_v4  ;;  %v1726_v33 = vunpack.c.l.bf16 %v3526_v44 }
 0x409   :  { %v1679_v15 = vmul.f32 %v1667_v54, %v6929_v50  ;;  %v1675_v54 = vmul.f32 0.5, %v3984_v39 }
 0x40a   :  { %3985 = vtanh.f32 %v1682_v12  ;;  %v5658_v63 = vsel %vm1542_vm14, %v1682_v12, %v6928_v32  ;;  %v1676_v12 = vadd.f32 0.5, %v1674_v19 }
 0x40b   :  { %6930 = vst [vmem:[#allocation18_spill] sm:$0xff] %v5658_v63  ;;  %v1683_v1 = vadd.f32 %v1681_v53, %v1679_v15  ;;  %v1677_v14 = vadd.f32 0.5, %v1675_v54 }
 0x40d   :  { %3987 = vtanh.f32 %v1683_v1  ;;  %v5668_v43 = vsel %vm1543_vm15, %v1683_v1, %v6929_v50 }
 0x40e   :  { %6931 = vst [vmem:[#allocation45_spill] sm:$0xff] %v5668_v43 }
 0x411   :  { %v1767_v11 = vpop.f32.mrb[28].mxu0  ;;  %v1810_v60 = vpop.f32.mrb[28].mxu1 }
 0x412   :  { %v1819_v32 = vadd.f32 %v1767_v11, %v1724_v31  ;;  %v1769_v37 = vpop.f32.mrb[29].mxu0  ;;  %v1812_v8 = vpop.f32.mrb[29].mxu1  ;;  %v1730_v31 = vunpack.c.l.bf16 %v3528_v27  ;;  %v1821_v2 = vadd.f32 %v1810_v60, %v1726_v33 }
 0x413   :  { %v1820_v53 = vadd.f32 %v1769_v37, %v1725_v26  ;;  %v1771_v50 = vpop.f32.mrb[30].mxu0  ;;  %v1814_v15 = vpop.f32.mrb[30].mxu1 }
 0x414   :  { %v3986_v24 = vpop.eup %3985  ;;  %v1827_v5 = vmul.f32 0.5, %v1819_v32  ;;  %v1823_v1 = vadd.f32 %v1771_v50, %v1728_v25  ;;  %v1773_v43 = vpop.f32.mrb[31].mxu0  ;;  %v1825_v37 = vadd.f32 %v1814_v15, %v1730_v31  ;;  %v1822_v32 = vadd.f32 %v1812_v8, %v1727_v18  ;;  %v6938_v31 = vld [vmem:[#allocation26_spill] sm:$0xff] }
 0x415   :  { %v1816_v63 = vpop.f32.mrb[31].mxu1  ;;  %v1686_v41 = vmul.f32 %v3986_v24, %v1676_v12  ;;  %v1835_v4 = vmul.f32 0.5, %v1820_v53  ;;  %v1824_v11 = vadd.f32 %v1773_v43, %v1729_v58  ;;  %v1731_v12 = vunpack.c.h.bf16 %v3528_v27 }
 0x416   :  { %3989 = vtanh.f32 %v1827_v5  ;;  %v1828_v23 = vmul.f32 0.5, %v1823_v1  ;;  %v1845_v18 = vmul.f32 0.5, %v1822_v32  ;;  %v6945_v32 = vld [vmem:[#allocation32_spill] sm:$0xff] }
 0x417   :  { %3991 = vtanh.f32 %v1835_v4  ;;  %v1836_v19 = vmul.f32 0.5, %v1824_v11  ;;  %v3988_v39 = vpop.eup %3987  ;;  %v1688_v25 = vsel %vm1542_vm14, %v1686_v41, 0.0  ;;  %v5682_v43 = vsel %vm1542_vm14, %v1686_v41, %v5534_v57  ;;  %v6937_v4 = vld [vmem:[#allocation22_spill] sm:$0xff] }
 0x418   :  { %v1687_v26 = vmul.f32 %v3988_v39, %v1677_v14  ;;  %3993 = vtanh.f32 %v1828_v23  ;;  %v5755_v11 = vld [vmem:[%s6604_s3] ss:$16 sps:$4 sm:$0xff]  }
 0x419   :  { %3995 = vtanh.f32 %v1821_v2  ;;  %v1826_v2 = vadd.f32 %v1816_v63, %v1731_v12  ;;  %6939 = vst [vmem:[#allocation46_spill] sm:$0xff] %v5755_v11  ;;  %v6941_v39 = vld [vmem:[#allocation28_spill] sm:$0xff]  ;;  %v6946_v12 = vld [vmem:[#allocation31_spill] sm:$0xff] }
 0x41a   :  { %v1689_v53 = vsel %vm1543_vm15, %v1687_v26, 0.0  ;;  %3997 = vtanh.f32 %v1836_v19  ;;  %v5686_v44 = vsel %vm1543_vm15, %v1687_v26, %v5538_v40  ;;  %v6940_v19 = vld [vmem:[#allocation25_spill] sm:$0xff]  ;;  %v6942_v26 = vld [vmem:[#allocation27_spill] sm:$0xff] }
 0x41b   :  { %v3676_v14 = vpack.c.bf16 %v1689_v53, %v1688_v25  ;;  %v1907_v23 = vpack.c.bf16 %v5686_v44, %v5682_v43  ;;  %3999 = vtanh.f32 %v1825_v37  ;;  %v1846_v63 = vmul.f32 0.5, %v1826_v2  ;;  %v6943_v37 = vld [vmem:[#allocation30_spill] sm:$0xff]  ;;  %v6944_v25 = vld [vmem:[#allocation29_spill] sm:$0xff] }
 0x41c   :  { %4001 = vtanh.f32 %v1845_v18  ;;  %v6947_v53 = vld [vmem:[#allocation34_spill] sm:$0xff]  ;;  %v6951_v2 = vld [vmem:[#allocation9_spill] sm:$0xff] }
 0x41d   :  { %3728 = vst [vmem:[%s6609_s5 + $0x18] sm:$0xff] %v3676_v14   ;;  %1941 = vmatmul.mubr.bf16.vlgmr.msra.gmra.mrb[32].mxu0 %v1907_v23  ;;  %1984 = vmatmul.mubr.bf16.vlgmr.msra.gmra.mrb[32].mxu1 %v1907_v23  ;;  %4003 = vtanh.f32 %v1846_v63  ;;  %v6948_v14 = vld [vmem:[#allocation33_spill] sm:$0xff]  ;;  %v6949_v23 = vld [vmem:[#allocation35_spill] sm:$0xff]  ;;  %v6950_v18 = vld [vmem:[#allocation6_spill] sm:$0xff] }
 0x41e   :  { %2084 = vmatpush1.bf16.msra.mxu0 %v5077_v35  ;;  %2127 = vmatpush1.bf16.msra.mxu1 %v5083_v59  ;;  %v6956_v63 = vld [vmem:[#allocation11_spill] sm:$0xff] }
 0x41f   :  { %2085 = vmatprep.subr.bf16.mxu0 %v5089_v20  ;;  %2128 = vmatprep.subr.bf16.mxu1 %v5095_v21 }
 0x420   :  { %v3990_v57 = vpop.eup %3989  ;;  %2115 = vmatprep.mubr.bf16.mxu0 %v6808_v62  ;;  %2158 = vmatprep.mubr.bf16.mxu1 %v6808_v62 }
 0x421   :  { %v3992_v40 = vpop.eup %3991  ;;  %v1831_v41 = vmul.f32 0.5, %v3990_v57  ;;  %v6952_v57 = vld [vmem:[#allocation7_spill] sm:$0xff] }
 0x422   :  { %v1839_v22 = vmul.f32 0.5, %v3992_v40  ;;  %v3994_v29 = vpop.eup %3993  ;;  %2086 = vmatpush1.bf16.msra.mxu0 %v5103_v42  ;;  %2129 = vmatpush1.bf16.msra.mxu1 %v5109_v46  ;;  %v1713_v42 = vpop.permute.xlu0 %1712  ;;  %v6953_v40 = vld [vmem:[#allocation10_spill] sm:$0xff] }
 0x423   :  { %v1833_v60 = vadd.f32 0.5, %v1831_v41  ;;  %v3996_v35 = vpop.eup %3995  ;;  %v1832_v20 = vmul.f32 0.5, %v3994_v29  ;;  %2087 = vmatprep.subr.bf16.mxu0 %v5115_v47  ;;  %2130 = vmatprep.subr.bf16.mxu1 %v5121_v28  ;;  %vm1717_vm0 = vcmp.eq.s32.totalorder %v1713_v42, 1  ;;  %v6954_v41 = vld [vmem:[#allocation8_spill] sm:$0xff]  ;;  %v6957_v29 = vld [vmem:[#allocation14_spill] sm:$0xff] }
 0x424   :  { %v1841_v59 = vadd.f32 0.5, %v1839_v22  ;;  %v3998_v21 = vpop.eup %3997  ;;  %v6955_v22 = vld [vmem:[#allocation12_spill] sm:$0xff]  ;;  %v6968_v42 = vld [vmem:[#allocation42_spill] sm:$0xff] }
 0x425   :  { %v1855_v58 = vmul.f32 %v3996_v35, %v1833_v60  ;;  %v1834_v8 = vadd.f32 0.5, %v1832_v20  ;;  %v1840_v27 = vmul.f32 0.5, %v3998_v21  ;;  %v4000_v54 = vpop.eup %3999  ;;  %v6958_v60 = vld [vmem:[#allocation13_spill] sm:$0xff]  ;;  %v6959_v35 = vld [vmem:[#allocation16_spill] sm:$0xff] }
 0x426   :  { %v1853_v33 = vmul.f32 %v1841_v59, %v5563_v38  ;;  %2088 = vmatpush1.bf16.msra.mxu0 %v5130_v34  ;;  %2131 = vmatpush1.bf16.msra.mxu1 %v5136_v36  ;;  %v4002_v34 = vpop.eup %4001  ;;  %v1716_v36 = vpop.permute.xlu1 %1715  ;;  %v6960_v59 = vld [vmem:[#allocation15_spill] sm:$0xff]  ;;  %v6961_v20 = vld [vmem:[#allocation17_spill] sm:$0xff]  ;;  %v6962_v21 = vld [vmem:[#allocation36_spill] sm:$0xff] }
 0x427   :  { %v1842_v50 = vadd.f32 0.5, %v1840_v27  ;;  %v1856_v15 = vmul.f32 %v4000_v54, %v1834_v8  ;;  %2089 = vmatprep.subr.bf16.mxu0 %v5144_v52  ;;  %2132 = vmatprep.subr.bf16.mxu1 %v5150_v30  ;;  %vm1718_vm1 = vcmp.eq.s32.totalorder %v1716_v36, 1  ;;  %v1849_v30 = vmul.f32 0.5, %v4002_v34  ;;  %v6965_v8 = vld [vmem:[#allocation39_spill] sm:$0xff]  ;;  %v6966_v27 = vld [vmem:[#allocation40_spill] sm:$0xff]  ;;  %v6967_v54 = vld [vmem:[#allocation41_spill] sm:$0xff] }
 0x428   :  { %v1857_v46 = vadd.f32 %v1855_v58, %v1853_v33  ;;  %v6963_v58 = vld [vmem:[#allocation37_spill] sm:$0xff]  ;;  %v6964_v33 = vld [vmem:[#allocation38_spill] sm:$0xff]  ;;  %v3536_v36 = vld [vmem:[%s6607_s1 + $0x88] sm:$0xff] }
 0x429   :  { %v1854_v47 = vmul.f32 %v1842_v50, %v5571_v45  ;;  %v6970_v50 = vld [vmem:[#allocation44_spill] sm:$0xff] }
 0x42a   :  { %4005 = vtanh.f32 %v1857_v46  ;;  %v5711_v28 = vsel %vm1717_vm0, %v1857_v46, %v5563_v38  ;;  %2090 = vmatpush1.bf16.msra.mxu0 %v5164_v0  ;;  %2133 = vmatpush1.bf16.msra.mxu1 %v5170_v56  ;;  %v4004_v0 = vpop.eup %4003  ;;  %v1851_v56 = vadd.f32 0.5, %v1849_v30  ;;  %v6969_v46 = vld [vmem:[#allocation43_spill] sm:$0xff] }
 0x42b   :  { %v1858_v24 = vadd.f32 %v1856_v15, %v1854_v47  ;;  %2091 = vmatprep.subr.bf16.mxu0 %v5176_v48  ;;  %2134 = vmatprep.subr.bf16.mxu1 %v5182_v3  ;;  %v1850_v48 = vmul.f32 0.5, %v4004_v0  ;;  %v3535_v15 = vld [vmem:[%s6607_s1 + $0x80] sm:$0xff]  ;;  %v3537_v47 = vld [vmem:[%s6607_s1 + $0x90] sm:$0xff] }
 0x42c   :  { %v1899_v34 = vunpack.c.l.bf16 %v3535_v15  ;;  %v1903_v30 = vunpack.c.l.bf16 %v3537_v47 }
 0x42d   :  { %4007 = vtanh.f32 %v1858_v24  ;;  %v5719_v52 = vsel %vm1718_vm1, %v1858_v24, %v5571_v45  ;;  %v6933_v45 = vld [vmem:[#allocation19_spill] sm:$0xff]  ;;  %v1900_v24 = vunpack.c.h.bf16 %v3535_v15 }
 0x42e   :  { %2092 = vmatpush1.bf16.msra.mxu0 %v5191_v6  ;;  %2135 = vmatpush1.bf16.msra.mxu1 %v5197_v7  ;;  %v1852_v6 = vadd.f32 0.5, %v1850_v48  ;;  %v1904_v48 = vunpack.c.h.bf16 %v3537_v47  ;;  %v3545_v47 = vld [vmem:[%s6608_s2 + $0x160] sm:$0xff] }
 0x42f   :  { %2093 = vmatprep.subr.bf16.mxu0 %v5203_v9  ;;  %2136 = vmatprep.subr.bf16.mxu1 %v5209_v10  ;;  %v6932_v9 = vld [vmem:[#allocation20_spill] sm:$0xff] }
 0x432   :  { %2094 = vmatpush1.bf16.msra.mxu0 %v5215_v16  ;;  %2137 = vmatpush1.bf16.msra.mxu1 %v5221_v17 }
 0x433   :  { %2095 = vmatprep.subr.bf16.mxu0 %v5227_v55  ;;  %2138 = vmatprep.subr.bf16.mxu1 %v5233_v13  ;;  %v6934_v55 = vld [vmem:[#allocation23_spill] sm:$0xff]  ;;  %v6935_v13 = vld [vmem:[#allocation21_spill] sm:$0xff] }
 0x434   :  { %v4006_v3 = vpop.eup %4005 }
 0x435   :  { %v1861_v38 = vmul.f32 %v4006_v3, %v1851_v56 }
 0x436   :  { %2096 = vmatpush1.bf16.msra.mxu0 %v5239_v49  ;;  %2139 = vmatpush1.bf16.msra.mxu1 %v5245_v51  ;;  %v6936_v49 = vld [vmem:[#allocation24_spill] sm:$0xff] }
 0x437   :  { %v4008_v7 = vpop.eup %4007  ;;  %2097 = vmatprep.subr.bf16.mxu0 %v5251_v61  ;;  %2140 = vmatprep.subr.bf16.mxu1 %v6932_v9  ;;  %v1863_v16 = vsel %vm1717_vm0, %v1861_v38, 0.0  ;;  %v5739_v5 = vsel %vm1717_vm0, %v1861_v38, %v6935_v13  ;;  %v1901_v38 = vunpack.c.l.bf16 %v3536_v36  ;;  %v3538_v9 = vld [vmem:[%s6607_s1 + $0x98] sm:$0xff] }
 0x438   :  { %v1862_v10 = vmul.f32 %v4008_v7, %v1852_v6 }
 0x43a   :  { %v1864_v17 = vsel %vm1718_vm1, %v1862_v10, 0.0  ;;  %2098 = vmatpush1.bf16.msra.mxu0 %v6933_v45  ;;  %2141 = vmatpush1.bf16.msra.mxu1 %v6934_v55  ;;  %v5743_v51 = vsel %vm1718_vm1, %v1862_v10, %v6936_v49 }
 0x43b   :  { %v3681_v61 = vpack.c.bf16 %v1864_v17, %v1863_v16  ;;  %v2082_v1 = vpack.c.bf16 %v5743_v51, %v5739_v5  ;;  %2258 = vmatprep.subr.bf16.mxu0 %v6937_v4  ;;  %2301 = vmatprep.subr.bf16.mxu1 %v6938_v31 }
 0x43d   :  { %3729 = vst [vmem:[%s6610_s6 + $0x20] sm:$0xff] %v3681_v61   ;;  %2116 = vmatmul.mubr.bf16.vlgmr.msra.gmra.mrb[36].mxu0 %v2082_v1  ;;  %2159 = vmatmul.mubr.bf16.vlgmr.msra.gmra.mrb[36].mxu1 %v2082_v1  ;;  %v1905_v1 = vunpack.c.l.bf16 %v3538_v9 }
 0x43e   :  { %2259 = vmatpush1.bf16.msra.mxu0 %v5755_v11  ;;  %2302 = vmatpush1.bf16.msra.mxu1 %v6940_v19  ;;  %v1902_v19 = vunpack.c.h.bf16 %v3536_v36  ;;  %v1891_v36 = vpop.permute.xlu1 %1890 }
 0x43f   :  { %2260 = vmatprep.subr.bf16.mxu0 %v6941_v39  ;;  %2303 = vmatprep.subr.bf16.mxu1 %v6942_v26  ;;  %vm1893_vm3 = vcmp.eq.s32.totalorder %v1891_v36, 1 }
 0x440   :  { %2290 = vmatprep.mubr.bf16.mxu0 %v6808_v62  ;;  %2333 = vmatprep.mubr.bf16.mxu1 %v6808_v62 }
 0x442   :  { %2261 = vmatpush1.bf16.msra.mxu0 %v6943_v37  ;;  %2304 = vmatpush1.bf16.msra.mxu1 %v6944_v25 }
 0x443   :  { %2262 = vmatprep.subr.bf16.mxu0 %v6945_v32  ;;  %2305 = vmatprep.subr.bf16.mxu1 %v6946_v12  ;;  %v1906_v32 = vunpack.c.h.bf16 %v3538_v9 }
 0x446   :  { %2263 = vmatpush1.bf16.msra.mxu0 %v6947_v53  ;;  %2306 = vmatpush1.bf16.msra.mxu1 %v6948_v14 }
 0x447   :  { %2264 = vmatprep.subr.bf16.mxu0 %v6949_v23  ;;  %2307 = vmatprep.subr.bf16.mxu1 %v6950_v18 }
 0x44a   :  { %2265 = vmatpush1.bf16.msra.mxu0 %v6951_v2  ;;  %2308 = vmatpush1.bf16.msra.mxu1 %v6952_v57 }
 0x44b   :  { %2266 = vmatprep.subr.bf16.mxu0 %v6953_v40  ;;  %2309 = vmatprep.subr.bf16.mxu1 %v6954_v41 }
 0x44e   :  { %2267 = vmatpush1.bf16.msra.mxu0 %v6955_v22  ;;  %2310 = vmatpush1.bf16.msra.mxu1 %v6956_v63 }
 0x44f   :  { %2268 = vmatprep.subr.bf16.mxu0 %v6957_v29  ;;  %2311 = vmatprep.subr.bf16.mxu1 %v6958_v60 }
 0x452   :  { %2269 = vmatpush1.bf16.msra.mxu0 %v6959_v35  ;;  %2312 = vmatpush1.bf16.msra.mxu1 %v6960_v59  ;;  %v6971_v59 = vld [vmem:[#allocation18_spill] sm:$0xff] }
 0x453   :  { %2270 = vmatprep.subr.bf16.mxu0 %v6961_v20  ;;  %2313 = vmatprep.subr.bf16.mxu1 %v6962_v21 }
 0x456   :  { %2271 = vmatpush1.bf16.msra.mxu0 %v6963_v58  ;;  %2314 = vmatpush1.bf16.msra.mxu1 %v6964_v33 }
 0x457   :  { %2272 = vmatprep.subr.bf16.mxu0 %v6965_v8  ;;  %2315 = vmatprep.subr.bf16.mxu1 %v6966_v27  ;;  %v5804_v8 = vpop.permute.xlu0 %1887 }
 0x458   :  { %vm1892_vm2 = vcmp.eq.s32.totalorder %v5804_v8, 1 }
 0x45a   :  { %2273 = vmatpush1.bf16.msra.mxu0 %v6967_v54  ;;  %2316 = vmatpush1.bf16.msra.mxu1 %v6968_v42 }
 0x45b   :  { %2433 = vmatprep.subr.bf16.mxu0 %v6969_v46  ;;  %2476 = vmatprep.subr.bf16.mxu1 %v6970_v50  ;;  %v6972_v46 = vld [vmem:[#allocation45_spill] sm:$0xff] }
 0x4f0   :  { %v1942_v0 = vpop.f32.mrb[32].mxu0  ;;  %v1985_v56 = vpop.f32.mrb[32].mxu1 }
 0x4f1   :  { %v1994_v3 = vadd.f32 %v1942_v0, %v1899_v34  ;;  %v1944_v6 = vpop.f32.mrb[33].mxu0  ;;  %v1987_v7 = vpop.f32.mrb[33].mxu1  ;;  %v1996_v31 = vadd.f32 %v1985_v56, %v1901_v38  ;;  %v2074_v0 = vunpack.c.l.bf16 %v3545_v47  ;;  %v2075_v38 = vunpack.c.h.bf16 %v3545_v47 }
 0x4f2   :  { %v1995_v10 = vadd.f32 %v1944_v6, %v1900_v24  ;;  %v1946_v16 = vpop.f32.mrb[34].mxu0  ;;  %v1989_v17 = vpop.f32.mrb[34].mxu1  ;;  %v1997_v25 = vadd.f32 %v1987_v7, %v1902_v19 }
 0x4f3   :  { %v2002_v45 = vmul.f32 0.5, %v1994_v3  ;;  %v1998_v55 = vadd.f32 %v1946_v16, %v1903_v30  ;;  %v1948_v13 = vpop.f32.mrb[35].mxu0  ;;  %v1991_v49 = vpop.f32.mrb[35].mxu1  ;;  %v2000_v37 = vadd.f32 %v1989_v17, %v1905_v1  ;;  %v3547_v30 = vld [vmem:[%s6608_s2 + $0x170] sm:$0xff]  ;;  %v3546_v3 = vld [vmem:[%s6608_s2 + $0x168] sm:$0xff] }
 0x4f4   :  { %v2010_v61 = vmul.f32 0.5, %v1995_v10  ;;  %v1999_v4 = vadd.f32 %v1948_v13, %v1904_v48  ;;  %v2020_v12 = vmul.f32 0.5, %v1997_v25  ;;  %v2001_v53 = vadd.f32 %v1991_v49, %v1906_v32  ;;  %v3548_v49 = vld [vmem:[%s6608_s2 + $0x178] sm:$0xff] }
 0x4f5   :  { %4009 = vtanh.f32 %v2002_v45  ;;  %v2003_v39 = vmul.f32 0.5, %v1998_v55  ;;  %v2078_v7 = vunpack.c.l.bf16 %v3547_v30  ;;  %v2079_v16 = vunpack.c.h.bf16 %v3547_v30 }
 0x4f6   :  { %4011 = vtanh.f32 %v2010_v61  ;;  %v2011_v26 = vmul.f32 0.5, %v1999_v4  ;;  %v2021_v57 = vmul.f32 0.5, %v2001_v53  ;;  %v2076_v45 = vunpack.c.l.bf16 %v3546_v3 }
 0x4f7   :  { %4013 = vtanh.f32 %v2003_v39 }
 0x4f8   :  { %4015 = vtanh.f32 %v1996_v31 }
 0x4f9   :  { %4017 = vtanh.f32 %v2011_v26 }
 0x4fa   :  { %4019 = vtanh.f32 %v2000_v37 }
 0x4fb   :  { %4021 = vtanh.f32 %v2020_v12 }
 0x4fc   :  { %4023 = vtanh.f32 %v2021_v57 }
 0x4ff   :  { %v4010_v14 = vpop.eup %4009 }
 0x500   :  { %v4012_v23 = vpop.eup %4011  ;;  %v2006_v18 = vmul.f32 0.5, %v4010_v14  ;;  %v2080_v14 = vunpack.c.l.bf16 %v3548_v49 }
 0x501   :  { %v2014_v2 = vmul.f32 0.5, %v4012_v23  ;;  %v4014_v40 = vpop.eup %4013 }
 0x502   :  { %v2008_v41 = vadd.f32 0.5, %v2006_v18  ;;  %v4016_v22 = vpop.eup %4015  ;;  %v2007_v29 = vmul.f32 0.5, %v4014_v40 }
 0x503   :  { %v2016_v63 = vadd.f32 0.5, %v2014_v2  ;;  %v4018_v60 = vpop.eup %4017  ;;  %v2077_v2 = vunpack.c.h.bf16 %v3546_v3  ;;  %v5881_v3 = vld [vmem:[%s6605_s4 + $0x128] ss:$16 sps:$4 sm:$0xff]  }
 0x504   :  { %v2030_v35 = vmul.f32 %v4016_v22, %v2008_v41  ;;  %v2009_v21 = vadd.f32 0.5, %v2007_v29  ;;  %v2015_v58 = vmul.f32 0.5, %v4018_v60  ;;  %v4020_v33 = vpop.eup %4019 }
 0x505   :  { %v2028_v20 = vmul.f32 %v2016_v63, %v6971_v59  ;;  %v4022_v34 = vpop.eup %4021 }
 0x506   :  { %v2017_v54 = vadd.f32 0.5, %v2015_v58  ;;  %v2031_v42 = vmul.f32 %v4020_v33, %v2009_v21  ;;  %v2024_v48 = vmul.f32 0.5, %v4022_v34  ;;  %v4024_v6 = vpop.eup %4023 }
 0x507   :  { %v2032_v27 = vadd.f32 %v2030_v35, %v2028_v20  ;;  %v2025_v1 = vmul.f32 0.5, %v4024_v6 }
 0x508   :  { %v2029_v50 = vmul.f32 %v2017_v54, %v6972_v46  ;;  %v2026_v61 = vadd.f32 0.5, %v2024_v48  ;;  %v5875_v48 = vld [vmem:[%s6605_s4 + $0x120] ss:$16 sps:$4 sm:$0xff]  }
 0x509   :  { %4025 = vtanh.f32 %v2032_v27  ;;  %v5811_v15 = vsel %vm1892_vm2, %v2032_v27, %v6971_v59  ;;  %v2027_v40 = vadd.f32 0.5, %v2025_v1  ;;  %v2081_v59 = vunpack.c.h.bf16 %v3548_v49  ;;  %v5906_v1 = vld [vmem:[%s6605_s4 + $0x148] ss:$16 sps:$4 sm:$0xff]  }
 0x50a   :  { %v2033_v24 = vadd.f32 %v2031_v42, %v2029_v50  ;;  %v5867_v50 = vld [vmem:[%s6605_s4 + $0x12c] ss:$16 sps:$4 sm:$0xff]  }
 0x50c   :  { %4027 = vtanh.f32 %v2033_v24  ;;  %v5821_v56 = vsel %vm1893_vm3, %v2033_v24, %v6972_v46  ;;  %v5861_v46 = vld [vmem:[%s6605_s4 + $0x124] ss:$16 sps:$4 sm:$0xff]  }
 0x510   :  { %v2117_v9 = vpop.f32.mrb[36].mxu0  ;;  %v2160_v10 = vpop.f32.mrb[36].mxu1 }
 0x511   :  { %v2169_v17 = vadd.f32 %v2117_v9, %v2074_v0  ;;  %v2119_v55 = vpop.f32.mrb[37].mxu0  ;;  %v2162_v13 = vpop.f32.mrb[37].mxu1  ;;  %v2171_v18 = vadd.f32 %v2160_v10, %v2076_v45  ;;  %v5887_v9 = vld [vmem:[%s6605_s4 + $0x144] ss:$16 sps:$4 sm:$0xff]   ;;  %v5893_v10 = vld [vmem:[%s6605_s4 + $0x14c] ss:$16 sps:$4 sm:$0xff]  }
 0x512   :  { %v2170_v4 = vadd.f32 %v2119_v55, %v2075_v38  ;;  %v2121_v31 = vpop.f32.mrb[38].mxu0  ;;  %v2164_v19 = vpop.f32.mrb[38].mxu1  ;;  %v2172_v35 = vadd.f32 %v2162_v13, %v2077_v2  ;;  %v5951_v2 = vld [vmem:[%s6605_s4 + $0x18c] ss:$16 sps:$4 sm:$0xff]  }
 0x513   :  { %v4026_v39 = vpop.eup %4025  ;;  %v2177_v26 = vmul.f32 0.5, %v2169_v17  ;;  %v2173_v37 = vadd.f32 %v2121_v31, %v2078_v7  ;;  %v2123_v25 = vpop.f32.mrb[39].mxu0  ;;  %v2175_v29 = vadd.f32 %v2164_v19, %v2080_v14 }
 0x514   :  { %v2166_v32 = vpop.f32.mrb[39].mxu1  ;;  %v2036_v12 = vmul.f32 %v4026_v39, %v2026_v61  ;;  %v2185_v53 = vmul.f32 0.5, %v2170_v4  ;;  %v2174_v23 = vadd.f32 %v2123_v25, %v2079_v16  ;;  %v2195_v54 = vmul.f32 0.5, %v2172_v35  ;;  %v5900_v61 = vld [vmem:[%s6605_s4 + $0x140] ss:$16 sps:$4 sm:$0xff]   ;;  %v5909_v4 = vpop.permute.xlu0 %2062 }
 0x515   :  { %4029 = vtanh.f32 %v2177_v26  ;;  %v2178_v57 = vmul.f32 0.5, %v2173_v37  ;;  %v2176_v42 = vadd.f32 %v2166_v32, %v2081_v59  ;;  %v5914_v26 = vld [vmem:[%s6605_s4 + $0x164] ss:$16 sps:$4 sm:$0xff]   ;;  %v5920_v37 = vld [vmem:[%s6605_s4 + $0x16c] ss:$16 sps:$4 sm:$0xff]   ;;  %vm2067_vm4 = vcmp.eq.s32.totalorder %v5909_v4, 1 }
 0x516   :  { %4031 = vtanh.f32 %v2185_v53  ;;  %v2186_v41 = vmul.f32 0.5, %v2174_v23  ;;  %v4028_v22 = vpop.eup %4027  ;;  %v2038_v60 = vsel %vm1892_vm2, %v2036_v12, 0.0  ;;  %v5835_v21 = vsel %vm1892_vm2, %v2036_v12, %v5682_v43  ;;  %v5849_v43 = vld [vmem:[%s6605_s4 + $0x100] ss:$16 sps:$4 sm:$0xff]   ;;  %v5939_v53 = vld [vmem:[%s6605_s4 + $0x168] ss:$16 sps:$4 sm:$0xff]   ;;  %v2066_v23 = vpop.permute.xlu1 %2065 }
 0x517   :  { %v2037_v63 = vmul.f32 %v4028_v22, %v2027_v40  ;;  %4033 = vtanh.f32 %v2178_v57  ;;  %v2196_v24 = vmul.f32 0.5, %v2176_v42  ;;  %v5933_v12 = vld [vmem:[%s6605_s4 + $0x160] ss:$16 sps:$4 sm:$0xff]   ;;  %vm2068_vm5 = vcmp.eq.s32.totalorder %v2066_v23, 1  ;;  %v5967_v22 = vld [vmem:[%s6605_s4 + $0x188] ss:$16 sps:$4 sm:$0xff]  }
 0x518   :  { %4035 = vtanh.f32 %v2171_v18  ;;  %v5985_v59 = vld [vmem:[%s6605_s4 + $0x1a0] ss:$16 sps:$4 sm:$0xff]   ;;  %v6081_v4 = vld [vmem:[%s6604_s3 + $0x24] ss:$16 sps:$4 sm:$0xff]  }
 0x519   :  { %v2039_v20 = vsel %vm1893_vm3, %v2037_v63, 0.0  ;;  %4037 = vtanh.f32 %v2186_v41  ;;  %v5839_v58 = vsel %vm1893_vm3, %v2037_v63, %v5686_v44  ;;  %v5855_v44 = vld [vmem:[%s6605_s4 + $0x108] ss:$16 sps:$4 sm:$0xff]   ;;  %v5961_v41 = vld [vmem:[%s6605_s4 + $0x180] ss:$16 sps:$4 sm:$0xff]   ;;  %6981 = vst [vmem:[#allocation28_spill] sm:$0xff] %v6081_v4 }
 0x51a   :  { %v3686_v33 = vpack.c.bf16 %v2039_v20, %v2038_v60  ;;  %v2257_v27 = vpack.c.bf16 %v5839_v58, %v5835_v21  ;;  %4039 = vtanh.f32 %v2175_v29  ;;  %v5979_v29 = vld [vmem:[%s6605_s4 + $0x1ac] ss:$16 sps:$4 sm:$0xff]   ;;  %v5991_v20 = vld [vmem:[%s6605_s4 + $0x1a8] ss:$16 sps:$4 sm:$0xff]   ;;  %v6119_v23 = vld [vmem:[%s6604_s3 + $0x40] ss:$16 sps:$4 sm:$0xff]  }
 0x51b   :  { %4041 = vtanh.f32 %v2195_v54  ;;  %v6003_v54 = vld [vmem:[%s6605_s4 + $0x1cc] ss:$16 sps:$4 sm:$0xff]   ;;  %6987 = vst [vmem:[#allocation34_spill] sm:$0xff] %v6119_v23 }
 0x51c   :  { %3730 = vst [vmem:[%s6609_s5 + $0x20] sm:$0xff] %v3686_v33   ;;  %2291 = vmatmul.mubr.bf16.vlgmr.msra.gmra.mrb[40].mxu0 %v2257_v27  ;;  %2334 = vmatmul.mubr.bf16.vlgmr.msra.gmra.mrb[40].mxu1 %v2257_v27  ;;  %4043 = vtanh.f32 %v2196_v24  ;;  %v5997_v27 = vld [vmem:[%s6605_s4 + $0x1c4] ss:$16 sps:$4 sm:$0xff]  }
 0x51d   :  { %2434 = vmatpush1.bf16.msra.mxu0 %v5849_v43  ;;  %2477 = vmatpush1.bf16.msra.mxu1 %v5855_v44  ;;  %v6021_v24 = vld [vmem:[%s6605_s4 + $0x1e4] ss:$16 sps:$4 sm:$0xff]  }
 0x51e   :  { %2435 = vmatprep.subr.bf16.mxu0 %v5861_v46  ;;  %2478 = vmatprep.subr.bf16.mxu1 %v5867_v50 }
 0x51f   :  { %v4030_v8 = vpop.eup %4029  ;;  %2465 = vmatprep.mubr.bf16.mxu0 %v6808_v62  ;;  %2508 = vmatprep.mubr.bf16.mxu1 %v6808_v62 }
 0x520   :  { %v4032_v47 = vpop.eup %4031  ;;  %v2181_v34 = vmul.f32 0.5, %v4030_v8 }
 0x521   :  { %v2189_v36 = vmul.f32 0.5, %v4032_v47  ;;  %v4034_v30 = vpop.eup %4033  ;;  %2436 = vmatpush1.bf16.msra.mxu0 %v5875_v48  ;;  %2479 = vmatpush1.bf16.msra.mxu1 %v5881_v3  ;;  %v6009_v47 = vld [vmem:[%s6605_s4 + $0x1c0] ss:$16 sps:$4 sm:$0xff]  }
 0x522   :  { %v2183_v0 = vadd.f32 0.5, %v2181_v34  ;;  %v4036_v38 = vpop.eup %4035  ;;  %v2182_v7 = vmul.f32 0.5, %v4034_v30  ;;  %2437 = vmatprep.subr.bf16.mxu0 %v5887_v9  ;;  %2480 = vmatprep.subr.bf16.mxu1 %v5893_v10  ;;  %v6015_v34 = vld [vmem:[%s6605_s4 + $0x1c8] ss:$16 sps:$4 sm:$0xff]   ;;  %v6027_v30 = vld [vmem:[%s6605_s4 + $0x1ec] ss:$16 sps:$4 sm:$0xff]  }
 0x523   :  { %v2191_v6 = vadd.f32 0.5, %v2189_v36  ;;  %v4038_v16 = vpop.eup %4037  ;;  %6973 = vst [vmem:[#allocation20_spill] sm:$0xff] %v6027_v30 }
 0x524   :  { %v2205_v17 = vmul.f32 %v4036_v38, %v2183_v0  ;;  %v2184_v55 = vadd.f32 0.5, %v2182_v7  ;;  %v2190_v13 = vmul.f32 0.5, %v4038_v16  ;;  %v4040_v49 = vpop.eup %4039  ;;  %v6036_v7 = vld [vmem:[%s6605_s4 + $0x1e0] ss:$16 sps:$4 sm:$0xff]   ;;  %v6042_v16 = vld [vmem:[%s6605_s4 + $0x1e8] ss:$16 sps:$4 sm:$0xff]  }
 0x525   :  { %v2203_v45 = vmul.f32 %v2191_v6, %v5711_v28  ;;  %2438 = vmatpush1.bf16.msra.mxu0 %v5900_v61  ;;  %2481 = vmatpush1.bf16.msra.mxu1 %v5906_v1  ;;  %v4042_v14 = vpop.eup %4041  ;;  %6974 = vst [vmem:[#allocation19_spill] sm:$0xff] %v6036_v7  ;;  %6975 = vst [vmem:[#allocation23_spill] sm:$0xff] %v6042_v16 }
 0x526   :  { %v2192_v19 = vadd.f32 0.5, %v2190_v13  ;;  %v2206_v39 = vmul.f32 %v4040_v49, %v2184_v55  ;;  %2439 = vmatprep.subr.bf16.mxu0 %v5914_v26  ;;  %2482 = vmatprep.subr.bf16.mxu1 %v5920_v37  ;;  %v2199_v40 = vmul.f32 0.5, %v4042_v14  ;;  %v4044_v63 = vpop.eup %4043  ;;  %v6059_v49 = vld [vmem:[%s6604_s3 + $0x4] ss:$16 sps:$4 sm:$0xff]   ;;  %v6113_v14 = vld [vmem:[%s6604_s3 + $0x4c] ss:$16 sps:$4 sm:$0xff]  }
 0x527   :  { %v2207_v31 = vadd.f32 %v2205_v17, %v2203_v45  ;;  %v2200_v35 = vmul.f32 0.5, %v4044_v63  ;;  %6978 = vst [vmem:[#allocation22_spill] sm:$0xff] %v6059_v49  ;;  %6986 = vst [vmem:[#allocation31_spill] sm:$0xff] %v6113_v14  ;;  %v6137_v63 = vld [vmem:[%s6604_s3 + $0x6c] ss:$16 sps:$4 sm:$0xff]  }
 0x528   :  { %v2204_v25 = vmul.f32 %v2192_v19, %v5719_v52  ;;  %v2201_v60 = vadd.f32 0.5, %v2199_v40  ;;  %v6095_v19 = vld [vmem:[%s6604_s3 + $0x20] ss:$16 sps:$4 sm:$0xff]   ;;  %v6131_v40 = vld [vmem:[%s6604_s3 + $0x64] ss:$16 sps:$4 sm:$0xff]   ;;  %6990 = vst [vmem:[#allocation6_spill] sm:$0xff] %v6137_v63 }
 0x529   :  { %4045 = vtanh.f32 %v2207_v31  ;;  %v5928_v32 = vsel %vm2067_vm4, %v2207_v31, %v5711_v28  ;;  %2440 = vmatpush1.bf16.msra.mxu0 %v5933_v12  ;;  %2483 = vmatpush1.bf16.msra.mxu1 %v5939_v53  ;;  %v5945_v28 = vld [vmem:[%s6605_s4 + $0x184] ss:$16 sps:$4 sm:$0xff]   ;;  %v2202_v8 = vadd.f32 0.5, %v2200_v35  ;;  %v6087_v31 = vld [vmem:[%s6604_s3 + $0x2c] ss:$16 sps:$4 sm:$0xff]   ;;  %6983 = vst [vmem:[#allocation30_spill] sm:$0xff] %v6095_v19 }
 0x52a   :  { %v2208_v18 = vadd.f32 %v2206_v39, %v2204_v25  ;;  %2441 = vmatprep.subr.bf16.mxu0 %v5945_v28  ;;  %2484 = vmatprep.subr.bf16.mxu1 %v5951_v2  ;;  %6982 = vst [vmem:[#allocation27_spill] sm:$0xff] %v6087_v31  ;;  %v6101_v39 = vld [vmem:[%s6604_s3 + $0x28] ss:$16 sps:$4 sm:$0xff]   ;;  %v6107_v25 = vld [vmem:[%s6604_s3 + $0x44] ss:$16 sps:$4 sm:$0xff]   ;;  %6989 = vst [vmem:[#allocation35_spill] sm:$0xff] %v6131_v40 }
 0x52b   :  { %6984 = vst [vmem:[#allocation29_spill] sm:$0xff] %v6101_v39  ;;  %6985 = vst [vmem:[#allocation32_spill] sm:$0xff] %v6107_v25  ;;  %v6149_v35 = vld [vmem:[%s6604_s3 + $0x68] ss:$16 sps:$4 sm:$0xff]  }
 0x52c   :  { %4047 = vtanh.f32 %v2208_v18  ;;  %v5956_v57 = vsel %vm2068_vm5, %v2208_v18, %v5719_v52  ;;  %v5973_v52 = vld [vmem:[%s6605_s4 + $0x1a4] ss:$16 sps:$4 sm:$0xff]   ;;  %v6125_v18 = vld [vmem:[%s6604_s3 + $0x48] ss:$16 sps:$4 sm:$0xff]   ;;  %6992 = vst [vmem:[#allocation7_spill] sm:$0xff] %v6149_v35 }
 0x52d   :  { %2442 = vmatpush1.bf16.msra.mxu0 %v5961_v41  ;;  %2485 = vmatpush1.bf16.msra.mxu1 %v5967_v22  ;;  %6988 = vst [vmem:[#allocation33_spill] sm:$0xff] %v6125_v18 }
 0x52e   :  { %2443 = vmatprep.subr.bf16.mxu0 %v5973_v52  ;;  %2486 = vmatprep.subr.bf16.mxu1 %v5979_v29 }
 0x531   :  { %2444 = vmatpush1.bf16.msra.mxu0 %v5985_v59  ;;  %2487 = vmatpush1.bf16.msra.mxu1 %v5991_v20 }
 0x532   :  { %2445 = vmatprep.subr.bf16.mxu0 %v5997_v27  ;;  %2488 = vmatprep.subr.bf16.mxu1 %v6003_v54 }
 0x533   :  { %v4046_v33 = vpop.eup %4045 }
 0x534   :  { %v2211_v42 = vmul.f32 %v4046_v33, %v2201_v60  ;;  %v6143_v60 = vld [vmem:[%s6604_s3 + $0x60] ss:$16 sps:$4 sm:$0xff]   ;;  %v6155_v33 = vld [vmem:[%s6604_s3 + $0x84] ss:$16 sps:$4 sm:$0xff]  }
 0x535   :  { %2446 = vmatpush1.bf16.msra.mxu0 %v6009_v47  ;;  %2489 = vmatpush1.bf16.msra.mxu1 %v6015_v34  ;;  %6991 = vst [vmem:[#allocation9_spill] sm:$0xff] %v6143_v60  ;;  %6993 = vst [vmem:[#allocation10_spill] sm:$0xff] %v6155_v33 }
 0x536   :  { %v4048_v36 = vpop.eup %4047  ;;  %2447 = vmatprep.subr.bf16.mxu0 %v6021_v24  ;;  %2490 = vmatprep.subr.bf16.mxu1 %v6027_v30  ;;  %v2213_v38 = vsel %vm2067_vm4, %v2211_v42, 0.0  ;;  %v6048_v17 = vsel %vm2067_vm4, %v2211_v42, %v5739_v5  ;;  %v6065_v5 = vld [vmem:[%s6604_s3 + $0xc] ss:$16 sps:$4 sm:$0xff]  }
 0x537   :  { %v2212_v0 = vmul.f32 %v4048_v36, %v2202_v8  ;;  %6976 = vst [vmem:[#allocation21_spill] sm:$0xff] %v6048_v17  ;;  %6979 = vst [vmem:[#allocation26_spill] sm:$0xff] %v6065_v5  ;;  %v6161_v42 = vld [vmem:[%s6604_s3 + $0x8c] ss:$16 sps:$4 sm:$0xff]   ;;  %v6167_v8 = vld [vmem:[%s6604_s3 + $0x80] ss:$16 sps:$4 sm:$0xff]  }
 0x538   :  { %6994 = vst [vmem:[#allocation8_spill] sm:$0xff] %v6161_v42  ;;  %6995 = vst [vmem:[#allocation12_spill] sm:$0xff] %v6167_v8  ;;  %v6173_v36 = vld [vmem:[%s6604_s3 + $0x88] ss:$16 sps:$4 sm:$0xff]  }
 0x539   :  { %v2214_v6 = vsel %vm2068_vm5, %v2212_v0, 0.0  ;;  %2448 = vmatpush1.bf16.msra.mxu0 %v6036_v7  ;;  %2491 = vmatpush1.bf16.msra.mxu1 %v6042_v16  ;;  %v6052_v45 = vsel %vm2068_vm5, %v2212_v0, %v5743_v51  ;;  %v6075_v51 = vld [vmem:[%s6604_s3 + $0x8] ss:$16 sps:$4 sm:$0xff]   ;;  %6996 = vst [vmem:[#allocation11_spill] sm:$0xff] %v6173_v36  ;;  %v6179_v0 = vld [vmem:[%s6604_s3 + $0xa4] ss:$16 sps:$4 sm:$0xff]  }
 0x53a   :  { %6977 = vst [vmem:[#allocation24_spill] sm:$0xff] %v6052_v45  ;;  %v3691_v55 = vpack.c.bf16 %v2214_v6, %v2213_v38  ;;  %v2432_v13 = vpack.c.bf16 %v6052_v45, %v6048_v17  ;;  %2608 = vmatprep.subr.bf16.mxu0 %v6059_v49  ;;  %2651 = vmatprep.subr.bf16.mxu1 %v6065_v5  ;;  %6980 = vst [vmem:[#allocation25_spill] sm:$0xff] %v6075_v51  ;;  %v6185_v38 = vld [vmem:[%s6604_s3 + $0xac] ss:$16 sps:$4 sm:$0xff]   ;;  %v6191_v6 = vld [vmem:[%s6604_s3 + $0xa0] ss:$16 sps:$4 sm:$0xff]  }
 0x53b   :  { %6997 = vst [vmem:[#allocation14_spill] sm:$0xff] %v6179_v0  ;;  %6998 = vst [vmem:[#allocation13_spill] sm:$0xff] %v6185_v38 }
 0x53c   :  { %3731 = vst [vmem:[%s6610_s6 + $0x18] sm:$0xff] %v3691_v55   ;;  %2466 = vmatmul.mubr.bf16.vlgmr.msra.gmra.mrb[44].mxu0 %v2432_v13  ;;  %2509 = vmatmul.mubr.bf16.vlgmr.msra.gmra.mrb[44].mxu1 %v2432_v13  ;;  %6999 = vst [vmem:[#allocation16_spill] sm:$0xff] %v6191_v6  ;;  %v6197_v55 = vld [vmem:[%s6604_s3 + $0xa8] ss:$16 sps:$4 sm:$0xff]   ;;  %v6203_v13 = vld [vmem:[%s6604_s3 + $0xc4] ss:$16 sps:$4 sm:$0xff]  }
 0x53d   :  { %2609 = vmatpush1.bf16.msra.mxu0 %v5755_v11  ;;  %2652 = vmatpush1.bf16.msra.mxu1 %v6075_v51  ;;  %7000 = vst [vmem:[#allocation15_spill] sm:$0xff] %v6197_v55  ;;  %7001 = vst [vmem:[#allocation17_spill] sm:$0xff] %v6203_v13 }
 0x53e   :  { %2610 = vmatprep.subr.bf16.mxu0 %v6081_v4  ;;  %2653 = vmatprep.subr.bf16.mxu1 %v6087_v31 }
 0x53f   :  { %2640 = vmatprep.mubr.bf16.mxu0 %v6808_v62  ;;  %2683 = vmatprep.mubr.bf16.mxu1 %v6808_v62 }
 0x541   :  { %2611 = vmatpush1.bf16.msra.mxu0 %v6095_v19  ;;  %2654 = vmatpush1.bf16.msra.mxu1 %v6101_v39 }
 0x542   :  { %2612 = vmatprep.subr.bf16.mxu0 %v6107_v25  ;;  %2655 = vmatprep.subr.bf16.mxu1 %v6113_v14 }
 0x545   :  { %2613 = vmatpush1.bf16.msra.mxu0 %v6119_v23  ;;  %2656 = vmatpush1.bf16.msra.mxu1 %v6125_v18  ;;  %v3558_v18 = vld [vmem:[%s6607_s1 + $0xb8] sm:$0xff] }
 0x546   :  { %2614 = vmatprep.subr.bf16.mxu0 %v6131_v40  ;;  %2657 = vmatprep.subr.bf16.mxu1 %v6137_v63  ;;  %v2255_v51 = vunpack.c.l.bf16 %v3558_v18 }
 0x549   :  { %2615 = vmatpush1.bf16.msra.mxu0 %v6143_v60  ;;  %2658 = vmatpush1.bf16.msra.mxu1 %v6149_v35 }
 0x54a   :  { %2616 = vmatprep.subr.bf16.mxu0 %v6155_v33  ;;  %2659 = vmatprep.subr.bf16.mxu1 %v6161_v42 }
 0x54d   :  { %2617 = vmatpush1.bf16.msra.mxu0 %v6167_v8  ;;  %2660 = vmatpush1.bf16.msra.mxu1 %v6173_v36 }
 0x54e   :  { %2618 = vmatprep.subr.bf16.mxu0 %v6179_v0  ;;  %2661 = vmatprep.subr.bf16.mxu1 %v6185_v38  ;;  %v6209_v38 = vld [vmem:[%s6604_s3 + $0xcc] ss:$16 sps:$4 sm:$0xff]  }
 0x54f   :  { %7002 = vst [vmem:[#allocation36_spill] sm:$0xff] %v6209_v38 }
 0x551   :  { %2619 = vmatpush1.bf16.msra.mxu0 %v6191_v6  ;;  %2662 = vmatpush1.bf16.msra.mxu1 %v6197_v55  ;;  %v6215_v6 = vld [vmem:[%s6604_s3 + $0xc0] ss:$16 sps:$4 sm:$0xff]   ;;  %v6221_v55 = vld [vmem:[%s6604_s3 + $0xc8] ss:$16 sps:$4 sm:$0xff]  }
 0x552   :  { %2620 = vmatprep.subr.bf16.mxu0 %v6203_v13  ;;  %2663 = vmatprep.subr.bf16.mxu1 %v6209_v38  ;;  %7003 = vst [vmem:[#allocation37_spill] sm:$0xff] %v6215_v6  ;;  %7004 = vst [vmem:[#allocation38_spill] sm:$0xff] %v6221_v55  ;;  %v6227_v13 = vld [vmem:[%s6604_s3 + $0xe4] ss:$16 sps:$4 sm:$0xff]   ;;  %v6233_v38 = vld [vmem:[%s6604_s3 + $0xec] ss:$16 sps:$4 sm:$0xff]  }
 0x553   :  { %7005 = vst [vmem:[#allocation39_spill] sm:$0xff] %v6227_v13  ;;  %7006 = vst [vmem:[#allocation40_spill] sm:$0xff] %v6233_v38 }
 0x555   :  { %2621 = vmatpush1.bf16.msra.mxu0 %v6215_v6  ;;  %2664 = vmatpush1.bf16.msra.mxu1 %v6221_v55  ;;  %v6239_v6 = vld [vmem:[%s6604_s3 + $0xe0] ss:$16 sps:$4 sm:$0xff]   ;;  %v6245_v55 = vld [vmem:[%s6604_s3 + $0xe8] ss:$16 sps:$4 sm:$0xff]  }
 0x556   :  { %2622 = vmatprep.subr.bf16.mxu0 %v6227_v13  ;;  %2665 = vmatprep.subr.bf16.mxu1 %v6233_v38  ;;  %7007 = vst [vmem:[#allocation41_spill] sm:$0xff] %v6239_v6  ;;  %7008 = vst [vmem:[#allocation42_spill] sm:$0xff] %v6245_v55  ;;  %v6251_v13 = vld [vmem:[%s6605_s4 + $0x104] ss:$16 sps:$4 sm:$0xff]   ;;  %v6257_v38 = vld [vmem:[%s6605_s4 + $0x10c] ss:$16 sps:$4 sm:$0xff]  }
 0x557   :  { %7009 = vst [vmem:[#allocation43_spill] sm:$0xff] %v6251_v13  ;;  %7010 = vst [vmem:[#allocation44_spill] sm:$0xff] %v6257_v38 }
 0x559   :  { %2623 = vmatpush1.bf16.msra.mxu0 %v6239_v6  ;;  %2666 = vmatpush1.bf16.msra.mxu1 %v6245_v55  ;;  %v3555_v6 = vld [vmem:[%s6607_s1 + $0xa0] sm:$0xff]  ;;  %v3557_v55 = vld [vmem:[%s6607_s1 + $0xb0] sm:$0xff] }
 0x55a   :  { %2783 = vmatprep.subr.bf16.mxu0 %v6251_v13  ;;  %2826 = vmatprep.subr.bf16.mxu1 %v6257_v38  ;;  %v2249_v0 = vunpack.c.l.bf16 %v3555_v6  ;;  %v3556_v13 = vld [vmem:[%s6607_s1 + $0xa8] sm:$0xff]  ;;  %v2250_v36 = vunpack.c.h.bf16 %v3555_v6  ;;  %v2253_v8 = vunpack.c.l.bf16 %v3557_v55  ;;  %v2254_v35 = vunpack.c.h.bf16 %v3557_v55 }
 0x55b   :  { %v2251_v38 = vunpack.c.l.bf16 %v3556_v13 }
 0x5ef   :  { %v2292_v42 = vpop.f32.mrb[40].mxu0  ;;  %v2335_v33 = vpop.f32.mrb[40].mxu1 }
 0x5f0   :  { %v2344_v60 = vadd.f32 %v2292_v42, %v2249_v0  ;;  %v2294_v63 = vpop.f32.mrb[41].mxu0  ;;  %v2337_v40 = vpop.f32.mrb[41].mxu1  ;;  %v2346_v55 = vadd.f32 %v2335_v33, %v2251_v38  ;;  %v2252_v42 = vunpack.c.h.bf16 %v3556_v13 }
 0x5f1   :  { %v2345_v23 = vadd.f32 %v2294_v63, %v2250_v36  ;;  %v2296_v14 = vpop.f32.mrb[42].mxu0  ;;  %v2339_v25 = vpop.f32.mrb[42].mxu1  ;;  %v2256_v63 = vunpack.c.h.bf16 %v3558_v18 }
 0x5f2   :  { %v2352_v39 = vmul.f32 0.5, %v2344_v60  ;;  %v2348_v19 = vadd.f32 %v2296_v14, %v2253_v8  ;;  %v2298_v31 = vpop.f32.mrb[43].mxu0  ;;  %v2341_v4 = vpop.f32.mrb[43].mxu1  ;;  %v2350_v49 = vadd.f32 %v2339_v25, %v2255_v51  ;;  %v2347_v45 = vadd.f32 %v2337_v40, %v2252_v42 }
 0x5f3   :  { %v2360_v6 = vmul.f32 0.5, %v2345_v23  ;;  %v2349_v11 = vadd.f32 %v2298_v31, %v2254_v35  ;;  %v2351_v14 = vadd.f32 %v2341_v4, %v2256_v63 }
 0x5f4   :  { %4049 = vtanh.f32 %v2352_v39  ;;  %v2353_v0 = vmul.f32 0.5, %v2348_v19  ;;  %v2370_v60 = vmul.f32 0.5, %v2347_v45 }
 0x5f5   :  { %4051 = vtanh.f32 %v2360_v6  ;;  %v2361_v5 = vmul.f32 0.5, %v2349_v11  ;;  %v2371_v31 = vmul.f32 0.5, %v2351_v14 }
 0x5f6   :  { %4053 = vtanh.f32 %v2353_v0  ;;  %v2241_v0 = vpop.permute.xlu1 %2240 }
 0x5f7   :  { %4055 = vtanh.f32 %v2346_v55  ;;  %v3565_v55 = vld [vmem:[%s6608_s2 + $0x140] sm:$0xff]  ;;  %vm2243_vm7 = vcmp.eq.s32.totalorder %v2241_v0, 1 }
 0x5f8   :  { %4057 = vtanh.f32 %v2361_v5  ;;  %v2424_v14 = vunpack.c.l.bf16 %v3565_v55 }
 0x5f9   :  { %4059 = vtanh.f32 %v2350_v49  ;;  %v6273_v49 = vpop.permute.xlu0 %2237 }
 0x5fa   :  { %4061 = vtanh.f32 %v2370_v60  ;;  %vm2242_vm6 = vcmp.eq.s32.totalorder %v6273_v49, 1  ;;  %v3567_v60 = vld [vmem:[%s6608_s2 + $0x150] sm:$0xff] }
 0x5fb   :  { %4063 = vtanh.f32 %v2371_v31 }
 0x5fe   :  { %v4050_v8 = vpop.eup %4049 }
 0x5ff   :  { %v4052_v36 = vpop.eup %4051  ;;  %v2356_v23 = vmul.f32 0.5, %v4050_v8 }
 0x600   :  { %v2364_v17 = vmul.f32 0.5, %v4052_v36  ;;  %v4054_v39 = vpop.eup %4053  ;;  %v3566_v36 = vld [vmem:[%s6608_s2 + $0x148] sm:$0xff] }
 0x601   :  { %v2358_v35 = vadd.f32 0.5, %v2356_v23  ;;  %v4056_v19 = vpop.eup %4055  ;;  %v2357_v11 = vmul.f32 0.5, %v4054_v39  ;;  %v2425_v23 = vunpack.c.h.bf16 %v3565_v55  ;;  %v2428_v39 = vunpack.c.l.bf16 %v3567_v60 }
 0x602   :  { %v2366_v33 = vadd.f32 0.5, %v2364_v17  ;;  %v4058_v38 = vpop.eup %4057  ;;  %v2427_v16 = vunpack.c.h.bf16 %v3566_v36 }
 0x603   :  { %v2380_v51 = vmul.f32 %v4056_v19, %v2358_v35  ;;  %v2359_v18 = vadd.f32 0.5, %v2357_v11  ;;  %v2365_v5 = vmul.f32 0.5, %v4058_v38  ;;  %v4060_v45 = vpop.eup %4059  ;;  %v2426_v38 = vunpack.c.l.bf16 %v3566_v36 }
 0x604   :  { %v2378_v25 = vmul.f32 %v2366_v33, %v5811_v15  ;;  %v4062_v42 = vpop.eup %4061  ;;  %v2429_v33 = vunpack.c.h.bf16 %v3567_v60 }
 0x605   :  { %v2367_v40 = vadd.f32 0.5, %v2365_v5  ;;  %v2381_v13 = vmul.f32 %v4060_v45, %v2359_v18  ;;  %v4064_v31 = vpop.eup %4063 }
 0x606   :  { %v2382_v4 = vadd.f32 %v2380_v51, %v2378_v25  ;;  %v2375_v5 = vmul.f32 0.5, %v4064_v31 }
 0x607   :  { %v2379_v6 = vmul.f32 %v2367_v40, %v5821_v56 }
 0x608   :  { %4065 = vtanh.f32 %v2382_v4  ;;  %v6280_v17 = vsel %vm2242_vm6, %v2382_v4, %v5811_v15  ;;  %v2374_v15 = vmul.f32 0.5, %v4062_v42  ;;  %v2377_v30 = vadd.f32 0.5, %v2375_v5 }
 0x609   :  { %7011 = vst [vmem:[#allocation18_spill] sm:$0xff] %v6280_v17  ;;  %v2383_v63 = vadd.f32 %v2381_v13, %v2379_v6 }
 0x60a   :  { %v2376_v18 = vadd.f32 0.5, %v2374_v15 }
 0x60b   :  { %4067 = vtanh.f32 %v2383_v63  ;;  %v6290_v8 = vsel %vm2243_vm7, %v2383_v63, %v5821_v56  ;;  %v3568_v56 = vld [vmem:[%s6608_s2 + $0x158] sm:$0xff] }
 0x60c   :  { %7012 = vst [vmem:[#allocation45_spill] sm:$0xff] %v6290_v8 }
 0x60f   :  { %v2467_v35 = vpop.f32.mrb[44].mxu0  ;;  %v2510_v19 = vpop.f32.mrb[44].mxu1 }
 0x610   :  { %v2519_v11 = vadd.f32 %v2467_v35, %v2424_v14  ;;  %v2469_v51 = vpop.f32.mrb[45].mxu0  ;;  %v2512_v25 = vpop.f32.mrb[45].mxu1  ;;  %v2430_v14 = vunpack.c.l.bf16 %v3568_v56  ;;  %v2521_v17 = vadd.f32 %v2510_v19, %v2426_v38 }
 0x611   :  { %v2520_v45 = vadd.f32 %v2469_v51, %v2425_v23  ;;  %v2471_v4 = vpop.f32.mrb[46].mxu0  ;;  %v2514_v40 = vpop.f32.mrb[46].mxu1 }
 0x612   :  { %v4066_v13 = vpop.eup %4065  ;;  %v2527_v6 = vmul.f32 0.5, %v2519_v11  ;;  %v2523_v55 = vadd.f32 %v2471_v4, %v2428_v39  ;;  %v2473_v42 = vpop.f32.mrb[47].mxu0  ;;  %v2525_v51 = vadd.f32 %v2514_v40, %v2430_v14  ;;  %v2522_v11 = vadd.f32 %v2512_v25, %v2427_v16 }
 0x613   :  { %v2516_v63 = vpop.f32.mrb[47].mxu1  ;;  %v2386_v8 = vmul.f32 %v4066_v13, %v2376_v18  ;;  %v2535_v60 = vmul.f32 0.5, %v2520_v45  ;;  %v2524_v35 = vadd.f32 %v2473_v42, %v2429_v33  ;;  %v2431_v18 = vunpack.c.h.bf16 %v3568_v56 }
 0x614   :  { %4069 = vtanh.f32 %v2527_v6  ;;  %v2528_v7 = vmul.f32 0.5, %v2523_v55  ;;  %v2545_v16 = vmul.f32 0.5, %v2522_v11 }
 0x615   :  { %4071 = vtanh.f32 %v2535_v60  ;;  %v2536_v15 = vmul.f32 0.5, %v2524_v35  ;;  %v4068_v31 = vpop.eup %4067  ;;  %v2388_v39 = vsel %vm2242_vm6, %v2386_v8, 0.0  ;;  %v6304_v36 = vsel %vm2242_vm6, %v2386_v8, %v5835_v21 }
 0x616   :  { %v2387_v23 = vmul.f32 %v4068_v31, %v2377_v30  ;;  %4073 = vtanh.f32 %v2528_v7 }
 0x617   :  { %4075 = vtanh.f32 %v2521_v17  ;;  %v2526_v17 = vadd.f32 %v2516_v63, %v2431_v18  ;;  %v2413_v63 = vpop.permute.xlu0 %2412 }
 0x618   :  { %v2389_v45 = vsel %vm2243_vm7, %v2387_v23, 0.0  ;;  %4077 = vtanh.f32 %v2536_v15  ;;  %v6308_v19 = vsel %vm2243_vm7, %v2387_v23, %v5839_v58  ;;  %vm2417_vm8 = vcmp.eq.s32.totalorder %v2413_v63, 1  ;;  %v7024_v63 = vld [vmem:[#allocation28_spill] sm:$0xff] }
 0x619   :  { %v3696_v30 = vpack.c.bf16 %v2389_v45, %v2388_v39  ;;  %v2607_v7 = vpack.c.bf16 %v6308_v19, %v6304_v36  ;;  %4079 = vtanh.f32 %v2525_v51  ;;  %v2546_v8 = vmul.f32 0.5, %v2526_v17  ;;  %v2416_v51 = vpop.permute.xlu1 %2415 }
 0x61a   :  { %4081 = vtanh.f32 %v2545_v16  ;;  %vm2418_vm9 = vcmp.eq.s32.totalorder %v2416_v51, 1  ;;  %v7030_v51 = vld [vmem:[#allocation34_spill] sm:$0xff] }
 0x61b   :  { %3732 = vst [vmem:[%s6609_s5 + $0x28] sm:$0xff] %v3696_v30   ;;  %2641 = vmatmul.mubr.bf16.vlgmr.msra.gmra.mrb[48].mxu0 %v2607_v7  ;;  %2684 = vmatmul.mubr.bf16.vlgmr.msra.gmra.mrb[48].mxu1 %v2607_v7  ;;  %4083 = vtanh.f32 %v2546_v8  ;;  %v7014_v8 = vld [vmem:[#allocation19_spill] sm:$0xff] }
 0x61c   :  { %2784 = vmatpush1.bf16.msra.mxu0 %v5849_v43  ;;  %2827 = vmatpush1.bf16.msra.mxu1 %v5855_v44 }
 0x61d   :  { %2785 = vmatprep.subr.bf16.mxu0 %v5861_v46  ;;  %2828 = vmatprep.subr.bf16.mxu1 %v5867_v50 }
 0x61e   :  { %v4070_v21 = vpop.eup %4069  ;;  %2815 = vmatprep.mubr.bf16.mxu0 %v6808_v62  ;;  %2858 = vmatprep.mubr.bf16.mxu1 %v6808_v62 }
 0x61f   :  { %v4072_v58 = vpop.eup %4071  ;;  %v2531_v49 = vmul.f32 0.5, %v4070_v21  ;;  %v7013_v21 = vld [vmem:[#allocation20_spill] sm:$0xff] }
 0x620   :  { %v2539_v0 = vmul.f32 0.5, %v4072_v58  ;;  %v4074_v33 = vpop.eup %4073  ;;  %2786 = vmatpush1.bf16.msra.mxu0 %v5875_v48  ;;  %2829 = vmatpush1.bf16.msra.mxu1 %v5881_v3 }
 0x621   :  { %v2533_v38 = vadd.f32 0.5, %v2531_v49  ;;  %v4076_v25 = vpop.eup %4075  ;;  %v2532_v5 = vmul.f32 0.5, %v4074_v33  ;;  %2787 = vmatprep.subr.bf16.mxu0 %v5887_v9  ;;  %2830 = vmatprep.subr.bf16.mxu1 %v5893_v10  ;;  %v7015_v33 = vld [vmem:[#allocation23_spill] sm:$0xff] }
 0x622   :  { %v2541_v56 = vadd.f32 0.5, %v2539_v0  ;;  %v4078_v4 = vpop.eup %4077 }
 0x623   :  { %v2555_v40 = vmul.f32 %v4076_v25, %v2533_v38  ;;  %v2534_v6 = vadd.f32 0.5, %v2532_v5  ;;  %v2540_v55 = vmul.f32 0.5, %v4078_v4  ;;  %v4080_v42 = vpop.eup %4079  ;;  %v7016_v38 = vld [vmem:[#allocation21_spill] sm:$0xff] }
 0x624   :  { %v2553_v13 = vmul.f32 %v2541_v56, %v5928_v32  ;;  %2788 = vmatpush1.bf16.msra.mxu0 %v5900_v61  ;;  %2831 = vmatpush1.bf16.msra.mxu1 %v5906_v1  ;;  %v4082_v23 = vpop.eup %4081  ;;  %v7018_v56 = vld [vmem:[#allocation24_spill] sm:$0xff] }
 0x625   :  { %v2542_v14 = vadd.f32 0.5, %v2540_v55  ;;  %v2556_v35 = vmul.f32 %v4080_v42, %v2534_v6  ;;  %2789 = vmatprep.subr.bf16.mxu0 %v5914_v26  ;;  %2832 = vmatprep.subr.bf16.mxu1 %v5920_v37  ;;  %v2549_v18 = vmul.f32 0.5, %v4082_v23  ;;  %v7021_v6 = vld [vmem:[#allocation26_spill] sm:$0xff]  ;;  %v7023_v42 = vld [vmem:[#allocation25_spill] sm:$0xff]  ;;  %v7029_v23 = vld [vmem:[#allocation31_spill] sm:$0xff] }
 0x626   :  { %v2557_v60 = vadd.f32 %v2555_v40, %v2553_v13  ;;  %v7020_v13 = vld [vmem:[#allocation22_spill] sm:$0xff] }
 0x627   :  { %v2554_v15 = vmul.f32 %v2542_v14, %v5956_v57  ;;  %v2551_v45 = vadd.f32 0.5, %v2549_v18  ;;  %v7022_v55 = vld [vmem:[#allocation46_spill] sm:$0xff]  ;;  %v7032_v18 = vld [vmem:[#allocation35_spill] sm:$0xff] }
 0x628   :  { %4085 = vtanh.f32 %v2557_v60  ;;  %v6333_v31 = vsel %vm2417_vm8, %v2557_v60, %v5928_v32  ;;  %2790 = vmatpush1.bf16.msra.mxu0 %v5933_v12  ;;  %2833 = vmatpush1.bf16.msra.mxu1 %v5939_v53  ;;  %v4084_v32 = vpop.eup %4083  ;;  %v7025_v60 = vld [vmem:[#allocation27_spill] sm:$0xff]  ;;  %v7026_v14 = vld [vmem:[#allocation30_spill] sm:$0xff] }
 0x629   :  { %v2558_v39 = vadd.f32 %v2556_v35, %v2554_v15  ;;  %2791 = vmatprep.subr.bf16.mxu0 %v5945_v28  ;;  %2834 = vmatprep.subr.bf16.mxu1 %v5951_v2  ;;  %v2550_v30 = vmul.f32 0.5, %v4084_v32  ;;  %v7027_v35 = vld [vmem:[#allocation29_spill] sm:$0xff]  ;;  %v7028_v15 = vld [vmem:[#allocation32_spill] sm:$0xff]  ;;  %v7033_v32 = vld [vmem:[#allocation6_spill] sm:$0xff] }
 0x62b   :  { %4087 = vtanh.f32 %v2558_v39  ;;  %v6341_v11 = vsel %vm2418_vm9, %v2558_v39, %v5956_v57  ;;  %v2552_v16 = vadd.f32 0.5, %v2550_v30  ;;  %v7031_v39 = vld [vmem:[#allocation33_spill] sm:$0xff]  ;;  %v7035_v30 = vld [vmem:[#allocation7_spill] sm:$0xff] }
 0x62c   :  { %2792 = vmatpush1.bf16.msra.mxu0 %v5961_v41  ;;  %2835 = vmatpush1.bf16.msra.mxu1 %v5967_v22 }
 0x62d   :  { %2793 = vmatprep.subr.bf16.mxu0 %v5973_v52  ;;  %2836 = vmatprep.subr.bf16.mxu1 %v5979_v29 }
 0x630   :  { %2794 = vmatpush1.bf16.msra.mxu0 %v5985_v59  ;;  %2837 = vmatpush1.bf16.msra.mxu1 %v5991_v20 }
 0x631   :  { %2795 = vmatprep.subr.bf16.mxu0 %v5997_v27  ;;  %2838 = vmatprep.subr.bf16.mxu1 %v6003_v54 }
 0x632   :  { %v4086_v7 = vpop.eup %4085 }
 0x633   :  { %v2561_v57 = vmul.f32 %v4086_v7, %v2551_v45  ;;  %v7034_v45 = vld [vmem:[#allocation9_spill] sm:$0xff]  ;;  %v7036_v7 = vld [vmem:[#allocation10_spill] sm:$0xff] }
 0x634   :  { %2796 = vmatpush1.bf16.msra.mxu0 %v6009_v47  ;;  %2839 = vmatpush1.bf16.msra.mxu1 %v6015_v34 }
 0x635   :  { %v4088_v17 = vpop.eup %4087  ;;  %2797 = vmatprep.subr.bf16.mxu0 %v6021_v24  ;;  %2840 = vmatprep.subr.bf16.mxu1 %v7013_v21  ;;  %v2563_v49 = vsel %vm2417_vm8, %v2561_v57, 0.0  ;;  %v6361_v25 = vsel %vm2417_vm8, %v2561_v57, %v7016_v38  ;;  %v7037_v57 = vld [vmem:[#allocation8_spill] sm:$0xff]  ;;  %v7043_v38 = vld [vmem:[#allocation15_spill] sm:$0xff] }
 0x636   :  { %v2562_v58 = vmul.f32 %v4088_v17, %v2552_v16  ;;  %7017 = vst [vmem:[#allocation21_spill] sm:$0xff] %v6361_v25  ;;  %v7038_v16 = vld [vmem:[#allocation12_spill] sm:$0xff]  ;;  %v7039_v17 = vld [vmem:[#allocation11_spill] sm:$0xff] }
 0x638   :  { %v2564_v0 = vsel %vm2418_vm9, %v2562_v58, 0.0  ;;  %2798 = vmatpush1.bf16.msra.mxu0 %v7014_v8  ;;  %2841 = vmatpush1.bf16.msra.mxu1 %v7015_v33  ;;  %v6365_v5 = vsel %vm2418_vm9, %v2562_v58, %v7018_v56  ;;  %v7040_v58 = vld [vmem:[#allocation14_spill] sm:$0xff]  ;;  %v7044_v56 = vld [vmem:[#allocation17_spill] sm:$0xff] }
 0x639   :  { %7019 = vst [vmem:[#allocation24_spill] sm:$0xff] %v6365_v5  ;;  %v3701_v4 = vpack.c.bf16 %v2564_v0, %v2563_v49  ;;  %v2782_v40 = vpack.c.bf16 %v6365_v5, %v6361_v25  ;;  %2958 = vmatprep.subr.bf16.mxu0 %v7020_v13  ;;  %3001 = vmatprep.subr.bf16.mxu1 %v7021_v6  ;;  %v7041_v49 = vld [vmem:[#allocation13_spill] sm:$0xff]  ;;  %v7042_v0 = vld [vmem:[#allocation16_spill] sm:$0xff]  ;;  %v7047_v13 = vld [vmem:[#allocation38_spill] sm:$0xff] }
 0x63a   :  { %v7048_v6 = vld [vmem:[#allocation39_spill] sm:$0xff] }
 0x63b   :  { %3733 = vst [vmem:[%s6610_s6 + $0x10] sm:$0xff] %v3701_v4   ;;  %2816 = vmatmul.mubr.bf16.vlgmr.msra.gmra.mrb[52].mxu0 %v2782_v40  ;;  %2859 = vmatmul.mubr.bf16.vlgmr.msra.gmra.mrb[52].mxu1 %v2782_v40  ;;  %v7045_v4 = vld [vmem:[#allocation36_spill] sm:$0xff]  ;;  %v7046_v40 = vld [vmem:[#allocation37_spill] sm:$0xff] }
 0x63c   :  { %2959 = vmatpush1.bf16.msra.mxu0 %v7022_v55  ;;  %3002 = vmatpush1.bf16.msra.mxu1 %v7023_v42  ;;  %v7049_v55 = vld [vmem:[#allocation40_spill] sm:$0xff]  ;;  %v7050_v42 = vld [vmem:[#allocation41_spill] sm:$0xff] }
 0x63d   :  { %2960 = vmatprep.subr.bf16.mxu0 %v7024_v63  ;;  %3003 = vmatprep.subr.bf16.mxu1 %v7025_v60  ;;  %v7051_v63 = vld [vmem:[#allocation42_spill] sm:$0xff]  ;;  %v7052_v60 = vld [vmem:[#allocation43_spill] sm:$0xff] }
 0x63e   :  { %2990 = vmatprep.mubr.bf16.mxu0 %v6808_v62  ;;  %3033 = vmatprep.mubr.bf16.mxu1 %v6808_v62 }
 0x640   :  { %2961 = vmatpush1.bf16.msra.mxu0 %v7026_v14  ;;  %3004 = vmatpush1.bf16.msra.mxu1 %v7027_v35  ;;  %v7053_v14 = vld [vmem:[#allocation44_spill] sm:$0xff]  ;;  %v3575_v35 = vld [vmem:[%s6607_s1 + $0xc0] sm:$0xff] }
 0x641   :  { %2962 = vmatprep.subr.bf16.mxu0 %v7028_v15  ;;  %3005 = vmatprep.subr.bf16.mxu1 %v7029_v23  ;;  %v3577_v15 = vld [vmem:[%s6607_s1 + $0xd0] sm:$0xff]  ;;  %v2599_v23 = vunpack.c.l.bf16 %v3575_v35 }
 0x644   :  { %2963 = vmatpush1.bf16.msra.mxu0 %v7030_v51  ;;  %3006 = vmatpush1.bf16.msra.mxu1 %v7031_v39  ;;  %v3576_v51 = vld [vmem:[%s6607_s1 + $0xc8] sm:$0xff]  ;;  %v2600_v39 = vunpack.c.h.bf16 %v3575_v35 }
 0x645   :  { %2964 = vmatprep.subr.bf16.mxu0 %v7032_v18  ;;  %3007 = vmatprep.subr.bf16.mxu1 %v7033_v32  ;;  %v2603_v18 = vunpack.c.l.bf16 %v3577_v15 }
 0x648   :  { %2965 = vmatpush1.bf16.msra.mxu0 %v7034_v45  ;;  %3008 = vmatpush1.bf16.msra.mxu1 %v7035_v30  ;;  %v2604_v30 = vunpack.c.h.bf16 %v3577_v15 }
 0x649   :  { %2966 = vmatprep.subr.bf16.mxu0 %v7036_v7  ;;  %3009 = vmatprep.subr.bf16.mxu1 %v7037_v57  ;;  %v2601_v57 = vunpack.c.l.bf16 %v3576_v51 }
 0x64c   :  { %2967 = vmatpush1.bf16.msra.mxu0 %v7038_v16  ;;  %3010 = vmatpush1.bf16.msra.mxu1 %v7039_v17 }
 0x64d   :  { %2968 = vmatprep.subr.bf16.mxu0 %v7040_v58  ;;  %3011 = vmatprep.subr.bf16.mxu1 %v7041_v49  ;;  %v3578_v58 = vld [vmem:[%s6607_s1 + $0xd8] sm:$0xff] }
 0x650   :  { %2969 = vmatpush1.bf16.msra.mxu0 %v7042_v0  ;;  %3012 = vmatpush1.bf16.msra.mxu1 %v7043_v38 }
 0x651   :  { %2970 = vmatprep.subr.bf16.mxu0 %v7044_v56  ;;  %3013 = vmatprep.subr.bf16.mxu1 %v7045_v4 }
 0x654   :  { %2971 = vmatpush1.bf16.msra.mxu0 %v7046_v40  ;;  %3014 = vmatpush1.bf16.msra.mxu1 %v7047_v13 }
 0x655   :  { %2972 = vmatprep.subr.bf16.mxu0 %v7048_v6  ;;  %3015 = vmatprep.subr.bf16.mxu1 %v7049_v55  ;;  %v2605_v55 = vunpack.c.l.bf16 %v3578_v58 }
 0x658   :  { %2973 = vmatpush1.bf16.msra.mxu0 %v7050_v42  ;;  %3016 = vmatpush1.bf16.msra.mxu1 %v7051_v63 }
 0x659   :  { %3131 = vmatprep.subr.bf16.mxu0 %v7052_v60  ;;  %3174 = vmatprep.subr.bf16.mxu1 %v7053_v14  ;;  %v2602_v60 = vunpack.c.h.bf16 %v3576_v51 }
 0x6ee   :  { %v2642_v32 = vpop.f32.mrb[48].mxu0  ;;  %v2685_v45 = vpop.f32.mrb[48].mxu1 }
 0x6ef   :  { %v2694_v7 = vadd.f32 %v2642_v32, %v2599_v23  ;;  %v2644_v16 = vpop.f32.mrb[49].mxu0  ;;  %v2687_v17 = vpop.f32.mrb[49].mxu1  ;;  %v2696_v63 = vadd.f32 %v2685_v45, %v2601_v57 }
 0x6f0   :  { %v2695_v49 = vadd.f32 %v2644_v16, %v2600_v39  ;;  %v2646_v0 = vpop.f32.mrb[50].mxu0  ;;  %v2689_v38 = vpop.f32.mrb[50].mxu1  ;;  %v2697_v23 = vadd.f32 %v2687_v17, %v2602_v60  ;;  %v2606_v39 = vunpack.c.h.bf16 %v3578_v58 }
 0x6f1   :  { %v2702_v56 = vmul.f32 0.5, %v2694_v7  ;;  %v2698_v4 = vadd.f32 %v2646_v0, %v2603_v18  ;;  %v2648_v40 = vpop.f32.mrb[51].mxu0  ;;  %v2691_v13 = vpop.f32.mrb[51].mxu1  ;;  %v2700_v15 = vadd.f32 %v2689_v38, %v2605_v55 }
 0x6f2   :  { %v2710_v6 = vmul.f32 0.5, %v2695_v49  ;;  %v2699_v42 = vadd.f32 %v2648_v40, %v2604_v30  ;;  %v2720_v32 = vmul.f32 0.5, %v2697_v23  ;;  %v2701_v18 = vadd.f32 %v2691_v13, %v2606_v39  ;;  %v6421_v13 = vpop.permute.xlu0 %2587  ;;  %v3585_v39 = vld [vmem:[%s6608_s2 + $0x120] sm:$0xff] }
 0x6f3   :  { %4089 = vtanh.f32 %v2702_v56  ;;  %v2703_v14 = vmul.f32 0.5, %v2698_v4  ;;  %vm2592_vm10 = vcmp.eq.s32.totalorder %v6421_v13, 1 }
 0x6f4   :  { %4091 = vtanh.f32 %v2710_v6  ;;  %v2711_v35 = vmul.f32 0.5, %v2699_v42  ;;  %v2721_v30 = vmul.f32 0.5, %v2701_v18  ;;  %v7054_v6 = vld [vmem:[#allocation18_spill] sm:$0xff]  ;;  %v2591_v18 = vpop.permute.xlu1 %2590 }
 0x6f5   :  { %4093 = vtanh.f32 %v2703_v14  ;;  %vm2593_vm11 = vcmp.eq.s32.totalorder %v2591_v18, 1 }
 0x6f6   :  { %4095 = vtanh.f32 %v2696_v63 }
 0x6f7   :  { %4097 = vtanh.f32 %v2711_v35  ;;  %v7055_v35 = vld [vmem:[#allocation45_spill] sm:$0xff] }
 0x6f8   :  { %4099 = vtanh.f32 %v2700_v15 }
 0x6f9   :  { %4101 = vtanh.f32 %v2720_v32 }
 0x6fa   :  { %4103 = vtanh.f32 %v2721_v30 }
 0x6fd   :  { %v4090_v7 = vpop.eup %4089 }
 0x6fe   :  { %v4092_v16 = vpop.eup %4091  ;;  %v2706_v49 = vmul.f32 0.5, %v4090_v7 }
 0x6ff   :  { %v2714_v0 = vmul.f32 0.5, %v4092_v16  ;;  %v4094_v45 = vpop.eup %4093  ;;  %v3587_v16 = vld [vmem:[%s6608_s2 + $0x130] sm:$0xff] }
 0x700   :  { %v2708_v51 = vadd.f32 0.5, %v2706_v49  ;;  %v4096_v57 = vpop.eup %4095  ;;  %v2707_v4 = vmul.f32 0.5, %v4094_v45  ;;  %v2774_v49 = vunpack.c.l.bf16 %v3585_v39  ;;  %v3586_v45 = vld [vmem:[%s6608_s2 + $0x128] sm:$0xff] }
 0x701   :  { %v2716_v56 = vadd.f32 0.5, %v2714_v0  ;;  %v4098_v40 = vpop.eup %4097  ;;  %v2777_v33 = vunpack.c.h.bf16 %v3586_v45 }
 0x702   :  { %v2730_v38 = vmul.f32 %v4096_v57, %v2708_v51  ;;  %v2709_v58 = vadd.f32 0.5, %v2707_v4  ;;  %v2715_v55 = vmul.f32 0.5, %v4098_v40  ;;  %v4100_v42 = vpop.eup %4099  ;;  %v2775_v51 = vunpack.c.h.bf16 %v3585_v39 }
 0x703   :  { %v2728_v17 = vmul.f32 %v2716_v56, %v7054_v6  ;;  %v4102_v32 = vpop.eup %4101  ;;  %v2778_v56 = vunpack.c.l.bf16 %v3587_v16 }
 0x704   :  { %v2717_v60 = vadd.f32 0.5, %v2715_v55  ;;  %v2731_v14 = vmul.f32 %v4100_v42, %v2709_v58  ;;  %v2724_v30 = vmul.f32 0.5, %v4102_v32  ;;  %v4104_v57 = vpop.eup %4103  ;;  %v3588_v42 = vld [vmem:[%s6608_s2 + $0x138] sm:$0xff] }
 0x705   :  { %v2732_v63 = vadd.f32 %v2730_v38, %v2728_v17  ;;  %v2779_v38 = vunpack.c.h.bf16 %v3587_v16  ;;  %v2776_v17 = vunpack.c.l.bf16 %v3586_v45 }
 0x706   :  { %v2729_v15 = vmul.f32 %v2717_v60, %v7055_v35  ;;  %v2725_v60 = vmul.f32 0.5, %v4104_v57 }
 0x707   :  { %4105 = vtanh.f32 %v2732_v63  ;;  %v6428_v23 = vsel %vm2592_vm10, %v2732_v63, %v7054_v6  ;;  %v2726_v63 = vadd.f32 0.5, %v2724_v30 }
 0x708   :  { %7056 = vst [vmem:[#allocation22_spill] sm:$0xff] %v6428_v23  ;;  %v2733_v7 = vadd.f32 %v2731_v14, %v2729_v15  ;;  %v2727_v21 = vadd.f32 0.5, %v2725_v60 }
 0x70a   :  { %4107 = vtanh.f32 %v2733_v7  ;;  %v6438_v0 = vsel %vm2593_vm11, %v2733_v7, %v7055_v35 }
 0x70b   :  { %7057 = vst [vmem:[#allocation26_spill] sm:$0xff] %v6438_v0 }
 0x70e   :  { %v2817_v4 = vpop.f32.mrb[52].mxu0  ;;  %v2860_v40 = vpop.f32.mrb[52].mxu1 }
 0x70f   :  { %v2869_v6 = vadd.f32 %v2817_v4, %v2774_v49  ;;  %v2819_v58 = vpop.f32.mrb[53].mxu0  ;;  %v2862_v55 = vpop.f32.mrb[53].mxu1  ;;  %v2780_v49 = vunpack.c.l.bf16 %v3588_v42  ;;  %v2871_v25 = vadd.f32 %v2860_v40, %v2776_v17 }
 0x710   :  { %v2870_v14 = vadd.f32 %v2819_v58, %v2775_v51  ;;  %v2821_v35 = vpop.f32.mrb[54].mxu0  ;;  %v2864_v15 = vpop.f32.mrb[54].mxu1 }
 0x711   :  { %v4106_v32 = vpop.eup %4105  ;;  %v2877_v39 = vmul.f32 0.5, %v2869_v6  ;;  %v2873_v7 = vadd.f32 %v2821_v35, %v2778_v56  ;;  %v2823_v0 = vpop.f32.mrb[55].mxu0  ;;  %v2875_v58 = vadd.f32 %v2864_v15, %v2780_v49  ;;  %v2872_v6 = vadd.f32 %v2862_v55, %v2777_v33 }
 0x712   :  { %v2866_v23 = vpop.f32.mrb[55].mxu1  ;;  %v2736_v5 = vmul.f32 %v4106_v32, %v2726_v63  ;;  %v2885_v16 = vmul.f32 0.5, %v2870_v14  ;;  %v2874_v4 = vadd.f32 %v2823_v0, %v2779_v38  ;;  %v2781_v63 = vunpack.c.h.bf16 %v3588_v42 }
 0x713   :  { %4109 = vtanh.f32 %v2877_v39  ;;  %v2878_v8 = vmul.f32 0.5, %v2873_v7  ;;  %v2895_v33 = vmul.f32 0.5, %v2872_v6  ;;  %v3595_v7 = vld [vmem:[%s6607_s1 + $0xe0] sm:$0xff] }
 0x714   :  { %4111 = vtanh.f32 %v2885_v16  ;;  %v2886_v30 = vmul.f32 0.5, %v2874_v4  ;;  %v4108_v57 = vpop.eup %4107  ;;  %v2738_v56 = vsel %vm2592_vm10, %v2736_v5, 0.0  ;;  %v6452_v0 = vsel %vm2592_vm10, %v2736_v5, %v6304_v36  ;;  %v3597_v16 = vld [vmem:[%s6607_s1 + $0xf0] sm:$0xff]  ;;  %v3596_v4 = vld [vmem:[%s6607_s1 + $0xe8] sm:$0xff] }
 0x715   :  { %v2737_v51 = vmul.f32 %v4108_v57, %v2727_v21  ;;  %4113 = vtanh.f32 %v2878_v8  ;;  %v2949_v49 = vunpack.c.l.bf16 %v3595_v7  ;;  %v2953_v57 = vunpack.c.l.bf16 %v3597_v16 }
 0x716   :  { %4115 = vtanh.f32 %v2871_v25  ;;  %v2876_v25 = vadd.f32 %v2866_v23, %v2781_v63  ;;  %v2951_v63 = vunpack.c.l.bf16 %v3596_v4 }
 0x717   :  { %v2739_v14 = vsel %vm2593_vm11, %v2737_v51, 0.0  ;;  %4117 = vtanh.f32 %v2886_v30  ;;  %v6456_v45 = vsel %vm2593_vm11, %v2737_v51, %v6308_v19  ;;  %v2950_v30 = vunpack.c.h.bf16 %v3595_v7 }
 0x718   :  { %v3706_v21 = vpack.c.bf16 %v2739_v14, %v2738_v56  ;;  %v2957_v8 = vpack.c.bf16 %v6456_v45, %v6452_v0  ;;  %4119 = vtanh.f32 %v2875_v58  ;;  %v2896_v23 = vmul.f32 0.5, %v2876_v25 }
 0x719   :  { %4121 = vtanh.f32 %v2895_v33  ;;  %v2954_v56 = vunpack.c.h.bf16 %v3597_v16 }
 0x71a   :  { %3734 = vst [vmem:[%s6609_s5 + $0x30] sm:$0xff] %v3706_v21   ;;  %2991 = vmatmul.mubr.bf16.vlgmr.msra.gmra.mrb[56].mxu0 %v2957_v8  ;;  %3034 = vmatmul.mubr.bf16.vlgmr.msra.gmra.mrb[56].mxu1 %v2957_v8  ;;  %4123 = vtanh.f32 %v2896_v23  ;;  %v3598_v8 = vld [vmem:[%s6607_s1 + $0xf8] sm:$0xff] }
 0x71b   :  { %3132 = vmatpush1.bf16.msra.mxu0 %v5849_v43  ;;  %3175 = vmatpush1.bf16.msra.mxu1 %v5855_v44 }
 0x71c   :  { %3133 = vmatprep.subr.bf16.mxu0 %v5861_v46  ;;  %3176 = vmatprep.subr.bf16.mxu1 %v5867_v50 }
 0x71d   :  { %v4110_v36 = vpop.eup %4109  ;;  %3163 = vmatprep.mubr.bf16.mxu0 %v6808_v62  ;;  %3206 = vmatprep.mubr.bf16.mxu1 %v6808_v62 }
 0x71e   :  { %v4112_v19 = vpop.eup %4111  ;;  %v2881_v5 = vmul.f32 0.5, %v4110_v36 }
 0x71f   :  { %v2889_v13 = vmul.f32 0.5, %v4112_v19  ;;  %v4114_v18 = vpop.eup %4113  ;;  %3134 = vmatpush1.bf16.msra.mxu0 %v5875_v48  ;;  %3177 = vmatpush1.bf16.msra.mxu1 %v5881_v3  ;;  %v2763_v48 = vpop.permute.xlu0 %2762 }
 0x720   :  { %v2883_v40 = vadd.f32 0.5, %v2881_v5  ;;  %v4116_v43 = vpop.eup %4115  ;;  %v2882_v46 = vmul.f32 0.5, %v4114_v18  ;;  %3135 = vmatprep.subr.bf16.mxu0 %v5887_v9  ;;  %3178 = vmatprep.subr.bf16.mxu1 %v5893_v10  ;;  %vm2767_vm12 = vcmp.eq.s32.totalorder %v2763_v48, 1 }
 0x721   :  { %v2891_v44 = vadd.f32 0.5, %v2889_v13  ;;  %v4118_v50 = vpop.eup %4117 }
 0x722   :  { %v2905_v38 = vmul.f32 %v4116_v43, %v2883_v40  ;;  %v2884_v17 = vadd.f32 0.5, %v2882_v46  ;;  %v2890_v55 = vmul.f32 0.5, %v4118_v50  ;;  %v4120_v42 = vpop.eup %4119  ;;  %v2955_v40 = vunpack.c.l.bf16 %v3598_v8 }
 0x723   :  { %v2903_v62 = vmul.f32 %v2891_v44, %v6333_v31  ;;  %3136 = vmatpush1.bf16.msra.mxu0 %v5900_v61  ;;  %3179 = vmatpush1.bf16.msra.mxu1 %v5906_v1  ;;  %v4122_v61 = vpop.eup %4121  ;;  %v2766_v1 = vpop.permute.xlu1 %2765  ;;  %v2952_v46 = vunpack.c.h.bf16 %v3596_v4  ;;  %v3607_v4 = vld [vmem:[%s6608_s2 + $0x110] sm:$0xff] }
 0x724   :  { %v2892_v60 = vadd.f32 0.5, %v2890_v55  ;;  %v2906_v35 = vmul.f32 %v4120_v42, %v2884_v17  ;;  %3137 = vmatprep.subr.bf16.mxu0 %v5914_v26  ;;  %3180 = vmatprep.subr.bf16.mxu1 %v5920_v37  ;;  %vm2768_vm13 = vcmp.eq.s32.totalorder %v2766_v1, 1  ;;  %v2899_v37 = vmul.f32 0.5, %v4122_v61 }
 0x725   :  { %v2907_v3 = vadd.f32 %v2905_v38, %v2903_v62  ;;  %v2956_v55 = vunpack.c.h.bf16 %v3598_v8  ;;  %v3127_v8 = vunpack.c.h.bf16 %v3607_v4 }
 0x726   :  { %v2904_v9 = vmul.f32 %v2892_v60, %v6341_v11 }
 0x727   :  { %4125 = vtanh.f32 %v2907_v3  ;;  %v6481_v10 = vsel %vm2767_vm12, %v2907_v3, %v6333_v31  ;;  %3138 = vmatpush1.bf16.msra.mxu0 %v5933_v12  ;;  %3181 = vmatpush1.bf16.msra.mxu1 %v5939_v53  ;;  %v4124_v12 = vpop.eup %4123  ;;  %v2901_v53 = vadd.f32 0.5, %v2899_v37  ;;  %v2941_v16 = vpop.permute.xlu1 %2940 }
 0x728   :  { %v2908_v15 = vadd.f32 %v2906_v35, %v2904_v9  ;;  %3139 = vmatprep.subr.bf16.mxu0 %v5945_v28  ;;  %3182 = vmatprep.subr.bf16.mxu1 %v5951_v2  ;;  %v2900_v28 = vmul.f32 0.5, %v4124_v12  ;;  %vm2943_vm15 = vcmp.eq.s32.totalorder %v2941_v16, 1 }
 0x72a   :  { %4127 = vtanh.f32 %v2908_v15  ;;  %v6489_v26 = vsel %vm2768_vm13, %v2908_v15, %v6341_v11  ;;  %v7059_v11 = vld [vmem:[#allocation19_spill] sm:$0xff] }
 0x72b   :  { %3140 = vmatpush1.bf16.msra.mxu0 %v5961_v41  ;;  %3183 = vmatpush1.bf16.msra.mxu1 %v5967_v22  ;;  %v2902_v41 = vadd.f32 0.5, %v2900_v28 }
 0x72c   :  { %3141 = vmatprep.subr.bf16.mxu0 %v5973_v52  ;;  %3184 = vmatprep.subr.bf16.mxu1 %v5979_v29  ;;  %v7058_v52 = vld [vmem:[#allocation20_spill] sm:$0xff] }
 0x72f   :  { %3142 = vmatpush1.bf16.msra.mxu0 %v5985_v59  ;;  %3185 = vmatpush1.bf16.msra.mxu1 %v5991_v20 }
 0x730   :  { %3143 = vmatprep.subr.bf16.mxu0 %v5997_v27  ;;  %3186 = vmatprep.subr.bf16.mxu1 %v6003_v54  ;;  %v7060_v27 = vld [vmem:[#allocation23_spill] sm:$0xff]  ;;  %v7061_v54 = vld [vmem:[#allocation21_spill] sm:$0xff] }
 0x731   :  { %v4126_v2 = vpop.eup %4125 }
 0x732   :  { %v2911_v31 = vmul.f32 %v4126_v2, %v2901_v53 }
 0x733   :  { %3144 = vmatpush1.bf16.msra.mxu0 %v6009_v47  ;;  %3187 = vmatpush1.bf16.msra.mxu1 %v6015_v34  ;;  %v7062_v47 = vld [vmem:[#allocation24_spill] sm:$0xff] }
 0x734   :  { %v4128_v22 = vpop.eup %4127  ;;  %3145 = vmatprep.subr.bf16.mxu0 %v6021_v24  ;;  %3188 = vmatprep.subr.bf16.mxu1 %v7058_v52  ;;  %v2913_v59 = vsel %vm2767_vm12, %v2911_v31, 0.0  ;;  %v6509_v32 = vsel %vm2767_vm12, %v2911_v31, %v7061_v54  ;;  %v7063_v31 = vld [vmem:[#allocation22_spill] sm:$0xff] }
 0x735   :  { %v2912_v29 = vmul.f32 %v4128_v22, %v2902_v41 }
 0x737   :  { %v2914_v20 = vsel %vm2768_vm13, %v2912_v29, 0.0  ;;  %3146 = vmatpush1.bf16.msra.mxu0 %v7059_v11  ;;  %3189 = vmatpush1.bf16.msra.mxu1 %v7060_v27  ;;  %v6513_v34 = vsel %vm2768_vm13, %v2912_v29, %v7062_v47  ;;  %v7064_v47 = vld [vmem:[#allocation26_spill] sm:$0xff] }
 0x738   :  { %v3711_v24 = vpack.c.bf16 %v2914_v20, %v2913_v59  ;;  %v3130_v39 = vpack.c.bf16 %v6513_v34, %v6509_v32  ;;  %v6533_v59 = vpop.permute.xlu0 %2937 }
 0x739   :  { %vm2942_vm14 = vcmp.eq.s32.totalorder %v6533_v59, 1 }
 0x73a   :  { %3735 = vst [vmem:[%s6610_s6 + $0x8] sm:$0xff] %v3711_v24   ;;  %3164 = vmatmul.mubr.bf16.vlgmr.msra.gmra.mrb[60].mxu0 %v3130_v39  ;;  %3207 = vmatmul.mubr.bf16.vlgmr.msra.gmra.mrb[60].mxu1 %v3130_v39  ;;  %v3605_v39 = vld [vmem:[%s6608_s2 + $0x100] sm:$0xff] }
 0x7ed   :  { %v2992_v51 = vpop.f32.mrb[56].mxu0  ;;  %v3035_v58 = vpop.f32.mrb[56].mxu1 }
 0x7ee   :  { %v3044_v6 = vadd.f32 %v2992_v51, %v2949_v49  ;;  %v2994_v14 = vpop.f32.mrb[57].mxu0  ;;  %v3037_v21 = vpop.f32.mrb[57].mxu1  ;;  %v3046_v44 = vadd.f32 %v3035_v58, %v2951_v63  ;;  %v3606_v58 = vld [vmem:[%s6608_s2 + $0x108] sm:$0xff]  ;;  %v3126_v63 = vunpack.c.l.bf16 %v3607_v4 }
 0x7ef   :  { %v3045_v33 = vadd.f32 %v2994_v14, %v2950_v30  ;;  %v2996_v25 = vpop.f32.mrb[58].mxu0  ;;  %v3039_v36 = vpop.f32.mrb[58].mxu1  ;;  %v3047_v17 = vadd.f32 %v3037_v21, %v2952_v46 }
 0x7f0   :  { %v3052_v19 = vmul.f32 0.5, %v3044_v6  ;;  %v3048_v5 = vadd.f32 %v2996_v25, %v2953_v57  ;;  %v2998_v13 = vpop.f32.mrb[59].mxu0  ;;  %v3041_v23 = vpop.f32.mrb[59].mxu1  ;;  %v3050_v62 = vadd.f32 %v3039_v36, %v2955_v40  ;;  %v3122_v57 = vunpack.c.l.bf16 %v3605_v39 }
 0x7f1   :  { %v3060_v18 = vmul.f32 0.5, %v3045_v33  ;;  %v3049_v43 = vadd.f32 %v2998_v13, %v2954_v56  ;;  %v3070_v42 = vmul.f32 0.5, %v3047_v17  ;;  %v3051_v48 = vadd.f32 %v3041_v23, %v2956_v55 }
 0x7f2   :  { %4129 = vtanh.f32 %v3052_v19  ;;  %v3053_v50 = vmul.f32 0.5, %v3048_v5  ;;  %v3123_v56 = vunpack.c.h.bf16 %v3605_v39  ;;  %v3124_v25 = vunpack.c.l.bf16 %v3606_v58  ;;  %v3608_v5 = vld [vmem:[%s6608_s2 + $0x118] sm:$0xff] }
 0x7f3   :  { %4131 = vtanh.f32 %v3060_v18  ;;  %v3061_v38 = vmul.f32 0.5, %v3049_v43  ;;  %v3071_v61 = vmul.f32 0.5, %v3051_v48 }
 0x7f4   :  { %4133 = vtanh.f32 %v3053_v50 }
 0x7f5   :  { %4135 = vtanh.f32 %v3046_v44 }
 0x7f6   :  { %4137 = vtanh.f32 %v3061_v38 }
 0x7f7   :  { %4139 = vtanh.f32 %v3050_v62 }
 0x7f8   :  { %4141 = vtanh.f32 %v3070_v42  ;;  %v3128_v42 = vunpack.c.l.bf16 %v3608_v5 }
 0x7f9   :  { %4143 = vtanh.f32 %v3071_v61 }
 0x7fc   :  { %v4130_v3 = vpop.eup %4129 }
 0x7fd   :  { %v4132_v60 = vpop.eup %4131  ;;  %v3056_v35 = vmul.f32 0.5, %v4130_v3 }
 0x7fe   :  { %v3064_v9 = vmul.f32 0.5, %v4132_v60  ;;  %v4134_v1 = vpop.eup %4133  ;;  %v3125_v60 = vunpack.c.h.bf16 %v3606_v58 }
 0x7ff   :  { %v3058_v15 = vadd.f32 0.5, %v3056_v35  ;;  %v4136_v37 = vpop.eup %4135  ;;  %v3057_v53 = vmul.f32 0.5, %v4134_v1 }
 0x800   :  { %v3066_v12 = vadd.f32 0.5, %v3064_v9  ;;  %v4138_v28 = vpop.eup %4137 }
 0x801   :  { %v3080_v2 = vmul.f32 %v4136_v37, %v3058_v15  ;;  %v3059_v22 = vadd.f32 0.5, %v3057_v53  ;;  %v3065_v52 = vmul.f32 0.5, %v4138_v28  ;;  %v4140_v29 = vpop.eup %4139  ;;  %v3129_v28 = vunpack.c.h.bf16 %v3608_v5 }
 0x802   :  { %v3078_v41 = vmul.f32 %v3066_v12, %v7063_v31  ;;  %v4142_v7 = vpop.eup %4141 }
 0x803   :  { %v3067_v11 = vadd.f32 0.5, %v3065_v52  ;;  %v3081_v27 = vmul.f32 %v4140_v29, %v3059_v22  ;;  %v3074_v51 = vmul.f32 0.5, %v4142_v7  ;;  %v4144_v6 = vpop.eup %4143 }
 0x804   :  { %v3082_v20 = vadd.f32 %v3080_v2, %v3078_v41  ;;  %v3075_v23 = vmul.f32 0.5, %v4144_v6 }
 0x805   :  { %v3079_v24 = vmul.f32 %v3067_v11, %v7064_v47  ;;  %v3076_v13 = vadd.f32 0.5, %v3074_v51 }
 0x806   :  { %4145 = vtanh.f32 %v3082_v20  ;;  %v3092_v54 = vsel %vm2942_vm14, %v3082_v20, %v7063_v31  ;;  %v3077_v61 = vadd.f32 0.5, %v3075_v23 }
 0x807   :  { %3290 = vst [vmem:[%s6611_s8] sm:$0xff] %v3092_v54  ;;  %v3083_v49 = vadd.f32 %v3081_v27, %v3079_v24 }
 0x809   :  { %4147 = vtanh.f32 %v3083_v49  ;;  %v3093_v30 = vsel %vm2943_vm15, %v3083_v49, %v7064_v47  ;;  %v3112_v49 = vpop.permute.xlu0 %3111 }
 0x80a   :  { %3291 = vst [vmem:[%s6611_s8 + $0x8] sm:$0xff] %v3093_v30  ;;  %vm3116_vm0 = vcmp.eq.s32.totalorder %v3112_v49, 1 }
 0x80d   :  { %v3165_v14 = vpop.f32.mrb[60].mxu0  ;;  %v3208_v21 = vpop.f32.mrb[60].mxu1 }
 0x80e   :  { %v3217_v33 = vadd.f32 %v3165_v14, %v3122_v57  ;;  %v3167_v36 = vpop.f32.mrb[61].mxu0  ;;  %v3210_v19 = vpop.f32.mrb[61].mxu1  ;;  %v3219_v3 = vadd.f32 %v3208_v21, %v3124_v25 }
 0x80f   :  { %v3218_v18 = vadd.f32 %v3167_v36, %v3123_v56  ;;  %v3169_v40 = vpop.f32.mrb[62].mxu0  ;;  %v3212_v43 = vpop.f32.mrb[62].mxu1  ;;  %v3220_v53 = vadd.f32 %v3210_v19, %v3125_v60 }
 0x810   :  { %v4146_v44 = vpop.eup %4145  ;;  %v3225_v46 = vmul.f32 0.5, %v3217_v33  ;;  %v3221_v50 = vadd.f32 %v3169_v40, %v3126_v63  ;;  %v3171_v38 = vpop.f32.mrb[63].mxu0  ;;  %v3223_v12 = vadd.f32 %v3212_v43, %v3128_v42 }
 0x811   :  { %v3214_v62 = vpop.f32.mrb[63].mxu1  ;;  %v3086_v17 = vmul.f32 %v4146_v44, %v3076_v13  ;;  %v3233_v55 = vmul.f32 0.5, %v3218_v18  ;;  %v3222_v48 = vadd.f32 %v3171_v38, %v3127_v8  ;;  %v3243_v22 = vmul.f32 0.5, %v3220_v53  ;;  %v3115_v63 = vpop.permute.xlu1 %3114 }
 0x812   :  { %4149 = vtanh.f32 %v3225_v46  ;;  %v3226_v35 = vmul.f32 0.5, %v3221_v50  ;;  %v3224_v52 = vadd.f32 %v3214_v62, %v3129_v28  ;;  %vm3117_vm1 = vcmp.eq.s32.totalorder %v3115_v63, 1 }
 0x813   :  { %v3090_v9 = vsel %vm2942_vm14, %v3086_v17, %v6452_v0  ;;  %4151 = vtanh.f32 %v3233_v55  ;;  %v3234_v1 = vmul.f32 0.5, %v3222_v48  ;;  %v4148_v15 = vpop.eup %4147  ;;  %v3088_v2 = vsel %vm2942_vm14, %v3086_v17, 0.0 }
 0x814   :  { %3288 = vst [vmem:[%s6612_s7] sm:$0xff] %v3090_v9  ;;  %v3087_v37 = vmul.f32 %v4148_v15, %v3077_v61  ;;  %4153 = vtanh.f32 %v3226_v35  ;;  %v3244_v27 = vmul.f32 0.5, %v3224_v52 }
 0x815   :  { %4155 = vtanh.f32 %v3219_v3 }
 0x816   :  { %v3089_v31 = vsel %vm2943_vm15, %v3087_v37, 0.0  ;;  %v3091_v0 = vsel %vm2943_vm15, %v3087_v37, %v6456_v45  ;;  %4157 = vtanh.f32 %v3234_v1 }
 0x817   :  { %v3716_v41 = vpack.c.bf16 %v3089_v31, %v3088_v2  ;;  %3289 = vst [vmem:[%s6612_s7 + $0x8] sm:$0xff] %v3091_v0  ;;  %4159 = vtanh.f32 %v3223_v12 }
 0x818   :  { %4161 = vtanh.f32 %v3243_v22 }
 0x819   :  { %3736 = vst [vmem:[%s6609_s5 + $0x38] sm:$0xff] %v3716_v41   ;;  %4163 = vtanh.f32 %v3244_v27 }
 0x81c   :  { %v4150_v29 = vpop.eup %4149 }
 0x81d   :  { %v4152_v59 = vpop.eup %4151  ;;  %v3229_v20 = vmul.f32 0.5, %v4150_v29 }
 0x81e   :  { %v3237_v11 = vmul.f32 0.5, %v4152_v59  ;;  %v4154_v45 = vpop.eup %4153 }
 0x81f   :  { %v3231_v54 = vadd.f32 0.5, %v3229_v20  ;;  %v4156_v47 = vpop.eup %4155  ;;  %v3230_v39 = vmul.f32 0.5, %v4154_v45 }
 0x820   :  { %v3239_v24 = vadd.f32 0.5, %v3237_v11  ;;  %v4158_v7 = vpop.eup %4157 }
 0x821   :  { %v3253_v16 = vmul.f32 %v4156_v47, %v3231_v54  ;;  %v3232_v30 = vadd.f32 0.5, %v3230_v39  ;;  %v3238_v57 = vmul.f32 0.5, %v4158_v7  ;;  %v4160_v51 = vpop.eup %4159 }
 0x822   :  { %v3251_v4 = vmul.f32 %v3239_v24, %v6481_v10  ;;  %v4162_v8 = vpop.eup %4161 }
 0x823   :  { %v3240_v56 = vadd.f32 0.5, %v3238_v57  ;;  %v3254_v6 = vmul.f32 %v4160_v51, %v3232_v30  ;;  %v3247_v36 = vmul.f32 0.5, %v4162_v8  ;;  %v4164_v19 = vpop.eup %4163 }
 0x824   :  { %v3255_v58 = vadd.f32 %v3253_v16, %v3251_v4  ;;  %v3248_v5 = vmul.f32 0.5, %v4164_v19 }
 0x825   :  { %v3252_v21 = vmul.f32 %v3240_v56, %v6489_v26 }
 0x826   :  { %4165 = vtanh.f32 %v3255_v58  ;;  %v3265_v14 = vsel %vm3116_vm0, %v3255_v58, %v6481_v10  ;;  %v3249_v10 = vadd.f32 0.5, %v3247_v36  ;;  %v3250_v40 = vadd.f32 0.5, %v3248_v5 }
 0x827   :  { %3294 = vst [vmem:[%s6613_s10] sm:$0xff] %v3265_v14  ;;  %v3256_v33 = vadd.f32 %v3254_v6, %v3252_v21 }
 0x829   :  { %4167 = vtanh.f32 %v3256_v33  ;;  %v3266_v25 = vsel %vm3117_vm1, %v3256_v33, %v6489_v26 }
 0x82a   :  { %3295 = vst [vmem:[%s6613_s10 + $0x8] sm:$0xff] %v3266_v25 }
 0x830   :  { %v4166_v13 = vpop.eup %4165 }
 0x831   :  { %v3259_v23 = vmul.f32 %v4166_v13, %v3249_v10 }
 0x833   :  { %v3263_v18 = vsel %vm3116_vm0, %v3259_v23, %v6509_v32  ;;  %v4168_v43 = vpop.eup %4167  ;;  %v3261_v44 = vsel %vm3116_vm0, %v3259_v23, 0.0 }
 0x834   :  { %3292 = vst [vmem:[%s6614_s9] sm:$0xff] %v3263_v18  ;;  %v3260_v26 = vmul.f32 %v4168_v43, %v3250_v40 }
 0x836   :  { %v3262_v46 = vsel %vm3117_vm1, %v3260_v26, 0.0  ;;  %v3264_v50 = vsel %vm3117_vm1, %v3260_v26, %v6513_v34 }
 0x837   :  { %v3721_v38 = vpack.c.bf16 %v3262_v46, %v3261_v44  ;;  %3293 = vst [vmem:[%s6614_s9 + $0x8] sm:$0xff] %v3264_v50 }
 0x839   :  { %3722 = vst [vmem:[%s6610_s6] sm:$0xff] %v3721_v38  }

</bundles_post_ra>
